<compile_context>
chip_gen: v6e
topology: v6e:2x2x1
jax: 0.10.0
libtpu: 0.0.40
codegen_flags: <defaults>
</compile_context>

<pallas_src>
import numpy as np
import jax
import jax.numpy as jnp
from jax.experimental import pallas as pl
from jax.experimental.pallas import tpu as pltpu


# --------------------------------------------------------------------------
# Config (mirrors VGG(vgg_dic, image_channels, nums_class) at SMALL sizes).
# feature_block values are [nums_conv, in_cha, out_cha]; None -> image_channels
# (mirrors the try/except TypeError path of the reference module).
# --------------------------------------------------------------------------
VGG_DIC = {"block1": [2, None, 8], "block2": [2, 8, 16]}
IMAGE_CHANNELS = 4
NUM_CLASS = 10
POOL_OUT = 7
H_IN = W_IN = 16
BN_EPS = 1e-5
# NOTE: the reference hard-codes fc = {'fc1': [25088, 4096], 'fc2': [4096, 4096],
# 'fc3': [4096, 'num_class']} (assumes 512 final channels).  Widths are scaled
# down consistently with the small feature config while keeping the exact
# Linear/ReLU/Dropout structure of classifier_block.
FC_HIDDEN = 32


# --------------------------------------------------------------------------
# Static plan of the feature stack
# --------------------------------------------------------------------------
def build_plan(vgg_dic, image_channels, h, w):
    ops, convs = [], []
    bi = 0
    for nums_conv, in_cha, out_cha in vgg_dic.values():
        cin = image_channels if in_cha is None else in_cha
        for _ in range(nums_conv):
            ops.append(("conv", len(convs), bi, h, w, cin, out_cha))
            convs.append((cin, out_cha))
            cin = out_cha
        ops.append(("pool", bi, h, w, cin))
        h, w = h // 2, w // 2
        bi += 1
    return ops, convs, (h, w, cin)


def _pool_avg_matrix(in_size, out_size):
    # Same floor/ceil binning as nn.AdaptiveAvgPool2d.
    p = np.zeros((out_size, in_size), np.float32)
    for i in range(out_size):
        s = (i * in_size) // out_size
        e = -(-((i + 1) * in_size) // out_size)
        p[i, s:e] = 1.0 / (e - s)
    return p


def build_constants(ops, final_hwc, pool_out):
    blocks = []
    for op in ops:
        if op[0] != "pool":
            continue
        _, bi, h, w, c = op
        n = h * w
        wcol = np.arange(n, dtype=np.int64) % w
        m_left = (wcol != 0).astype(np.float32).reshape(n, 1)        # kill w==0 wrap
        m_right = (wcol != w - 1).astype(np.float32).reshape(n, 1)   # kill w==W-1 wrap
        ho, wo = h // 2, w // 2
        sel = np.zeros((ho * wo, n), np.float32)                     # pick even (h, w)
        for i in range(ho):
            for j in range(wo):
                sel[i * wo + j, (2 * i) * w + 2 * j] = 1.0
        blocks.append((jnp.asarray(m_left), jnp.asarray(m_right), jnp.asarray(sel)))
    hf, wf, cf = final_hwc
    ph = _pool_avg_matrix(hf, pool_out)
    pw = _pool_avg_matrix(wf, pool_out)
    q = np.einsum("ih,jw->ijhw", ph, pw).reshape(pool_out * pool_out, hf * wf)
    return {"blocks": blocks, "q": jnp.asarray(q.astype(np.float32))}


# --------------------------------------------------------------------------
# In-kernel building blocks (traced inside the fused feature kernel)
# --------------------------------------------------------------------------
def _conv3x3_bn_relu_flat(x, w_ref, scale, bias, m_left, m_right, pad_ref, H, W):
    # x: (H*W, Cin) flat activation -> (H*W, Cout) flat, Conv(pad=1,no bias)+BN+ReLU.
    N = H * W
    Cout = w_ref.shape[-1]
    pad_ref[...] = jnp.zeros_like(pad_ref)            # zero halo (top/bottom rows)
    pad_ref[W + 1:W + 1 + N, :] = x                   # interior at flat offset W+1
    wgt = w_ref[...]                                  # (3, 3, Cin, Cout)
    acc = jnp.zeros((N, Cout), jnp.float32)
    for dy in range(3):                               # 9 shifted full-plane dots
        for dx in range(3):
            win = pad_ref[dy * W + dx:dy * W + dx + N, :]     # (N, Cin)
            if dx == 0:
                win = win * m_left
            elif dx == 2:
                win = win * m_right
            acc = acc + jnp.dot(win, wgt[dy, dx],
                                preferred_element_type=jnp.float32)
    return jnp.maximum(acc * scale + bias, 0.0)       # fused eval-mode BN + ReLU


def _maxpool2_flat(x, sel, pool_ref, W):
    # MaxPool2d(kernel_size=2) on a flat (H*W, C) post-ReLU activation (>= 0).
    # pool_ref: (H*W + W, C) shift scratch; sel: (Ho*Wo, H*W) 0/1 downsample matrix.
    N = x.shape[0]
    pool_ref[...] = jnp.zeros_like(pool_ref)
    pool_ref[0:N, :] = x
    c = jnp.maximum(x, pool_ref[1:N + 1, :])          # max over horizontal pair
    pool_ref[0:N, :] = c
    r = jnp.maximum(c, pool_ref[W:N + W, :])          # max over vertical pair
    return jnp.dot(sel, r, preferred_element_type=jnp.float32)   # keep even (h, w)


def _make_features_kernel(ops, n_conv, n_block):
    def kernel(*refs):
        x_ref = refs[0]
        conv_refs = refs[1:1 + 3 * n_conv]
        block_refs = refs[1 + 3 * n_conv:1 + 3 * (n_conv + n_block)]
        q_ref = refs[1 + 3 * (n_conv + n_block)]
        o_ref = refs[2 + 3 * (n_conv + n_block)]
        scratch_refs = refs[3 + 3 * (n_conv + n_block):]

        x = x_ref[0]                                  # (H0*W0, Cin0) flat plane
        for oi, op in enumerate(ops):
            if op[0] == "conv":
                _, ci, bi, h, w, cin, cout = op
                w_ref = conv_refs[3 * ci]
                s_ref = conv_refs[3 * ci + 1]
                b_ref = conv_refs[3 * ci + 2]
                ml = block_refs[3 * bi][...]
                mr = block_refs[3 * bi + 1][...]
                x = _conv3x3_bn_relu_flat(x, w_ref, s_ref[...], b_ref[...],
                                          ml, mr, scratch_refs[oi], h, w)
            else:
                _, bi, h, w, c = op
                sel = block_refs[3 * bi + 2][...]
                x = _maxpool2_flat(x, sel, scratch_refs[oi], w)
        # AdaptiveAvgPool2d(7): single (49, Hf*Wf) @ (Hf*Wf, C) matmul, one store.
        o_ref[0] = jnp.dot(q_ref[...], x, preferred_element_type=jnp.float32)
    return kernel


def _classifier_kernel(x_ref, w1_ref, b1_ref, w2_ref, b2_ref, w3_ref, b3_ref, o_ref):
    h = jnp.dot(x_ref[...], w1_ref[...], preferred_element_type=jnp.float32) + b1_ref[...]
    h = jnp.maximum(h, 0.0)
    # TODO(synk): nn.Dropout() is identity in eval mode; train-mode stochastic
    # dropout (and train-mode BatchNorm batch statistics) are not implemented.
    h = jnp.dot(h, w2_ref[...], preferred_element_type=jnp.float32) + b2_ref[...]
    h = jnp.maximum(h, 0.0)
    o_ref[...] = jnp.dot(h, w3_ref[...], preferred_element_type=jnp.float32) + b3_ref[...]


# --------------------------------------------------------------------------
# pallas_call wrappers
# --------------------------------------------------------------------------
def features_forward(x_nhwc, conv_params, consts, ops, n_conv, n_block,
                     final_hwc, pool_out):
    B, H, W, Cin = x_nhwc.shape
    hf, wf, cf = final_hwc
    n_out = pool_out * pool_out
    x_flat = x_nhwc.reshape(B, H * W, Cin)            # flat (h, w) planes, C on lanes

    def const_spec(a):
        nd = a.ndim
        return pl.BlockSpec(a.shape, lambda b, _nd=nd: (0,) * _nd)

    args = [x_flat]
    in_specs = [pl.BlockSpec((1, H * W, Cin), lambda b: (b, 0, 0))]
    for w_, s_, b_ in conv_params:
        args += [w_, s_, b_]
        in_specs += [const_spec(w_), const_spec(s_), const_spec(b_)]
    for ml, mr, sel in consts["blocks"]:
        args += [ml, mr, sel]
        in_specs += [const_spec(ml), const_spec(mr), const_spec(sel)]
    args.append(consts["q"])
    in_specs.append(const_spec(consts["q"]))

    scratch = []
    for op in ops:
        if op[0] == "conv":
            _, ci, bi, h, w, cin, cout = op
            scratch.append(pltpu.VMEM((h * w + 2 * w + 2, cin), jnp.float32))
        else:
            _, bi, h, w, c = op
            scratch.append(pltpu.VMEM((h * w + w, c), jnp.float32))

    kernel = _make_features_kernel(ops, n_conv, n_block)
    return pl.pallas_call(
        kernel,
        out_shape=jax.ShapeDtypeStruct((B, n_out, cf), jnp.float32),
        grid=(B,),
        in_specs=in_specs,
        out_specs=pl.BlockSpec((1, n_out, cf), lambda b: (b, 0, 0)),
        scratch_shapes=scratch,
        compiler_params=pltpu.CompilerParams(
            dimension_semantics=("parallel",)),       # one image per TC on v7x
    )(*args)


def classifier_forward(x, cls_params):
    (w1, b1), (w2, b2), (w3, b3) = cls_params         # weights already (Fin, Fout)
    B = x.shape[0]
    return pl.pallas_call(
        _classifier_kernel,
        out_shape=jax.ShapeDtypeStruct((B, w3.shape[1]), jnp.float32),
    )(x, w1, b1, w2, b2, w3, b3)


# --------------------------------------------------------------------------
# Parameter init (deterministic, synthetic) and forward pass
# --------------------------------------------------------------------------
def init_params(key):
    ops, convs, final_hwc = build_plan(VGG_DIC, IMAGE_CHANNELS, H_IN, W_IN)
    hf, wf, cf = final_hwc

    conv_params = []
    for cin, cout in convs:
        key, kw, kg, kb, km, kv = jax.random.split(key, 6)
        # conv weight stored directly as (3, 3, Cin, Cout) for NHWC kernels
        w = 0.1 * jax.random.normal(kw, (3, 3, cin, cout), jnp.float32)
        gamma = 1.0 + 0.1 * jax.random.normal(kg, (cout,), jnp.float32)
        beta = 0.1 * jax.random.normal(kb, (cout,), jnp.float32)
        rmean = 0.1 * jax.random.normal(km, (cout,), jnp.float32)
        rvar = 1.0 + 0.1 * jnp.abs(jax.random.normal(kv, (cout,), jnp.float32))
        scale = gamma / jnp.sqrt(rvar + BN_EPS)       # folded eval-mode BatchNorm2d
        bias = beta - rmean * scale
        conv_params.append((w, scale.reshape(1, cout), bias.reshape(1, cout)))

    flat_in = cf * POOL_OUT * POOL_OUT
    fc = {"fc1": [flat_in, FC_HIDDEN], "fc2": [FC_HIDDEN, FC_HIDDEN],
          "fc3": [FC_HIDDEN, "num_class"]}
    cls_params = []
    for li, (fin, fout) in enumerate(fc.values()):
        fout = fout if isinstance(fout, int) else NUM_CLASS
        key, kw, kb = jax.random.split(key, 3)
        w = jax.random.normal(kw, (fout, fin), jnp.float32) / jnp.sqrt(fin)  # torch layout
        b = 0.1 * jax.random.normal(kb, (fout,), jnp.float32)
        if li == 0:
            # Absorb the NHWC->NCHW flatten permutation into fc1's input axis:
            # kernel flatten order is (h, w, c); torch.flatten order is (c, h, w).
            w = (w.reshape(fout, cf, POOL_OUT, POOL_OUT)
                  .transpose(0, 2, 3, 1).reshape(fout, fin))
        cls_params.append((w.T, b.reshape(1, fout)))  # pre-transposed to (Fin, Fout)

    consts = build_constants(ops, final_hwc, POOL_OUT)
    params = {"features": conv_params, "classifier": cls_params, "consts": consts}
    static = {"ops": ops, "n_conv": len(convs), "n_block": len(VGG_DIC),
              "final_hwc": final_hwc}
    return params, static


def vgg_forward(params, static, x_nchw):
    # features: [Conv3x3(no bias) -> BatchNorm2d -> ReLU]*n + MaxPool2d(2), x2 blocks
    x = jnp.transpose(x_nchw, (0, 2, 3, 1))           # NCHW -> NHWC boundary glue
    feat = features_forward(x, params["features"], params["consts"],
                            static["ops"], static["n_conv"], static["n_block"],
                            static["final_hwc"], POOL_OUT)
    flat = feat.reshape(feat.shape[0], -1)            # (B, 49*Cf) in (h, w, c) order
    # classifier: Linear+ReLU+Dropout, Linear+ReLU+Dropout, Linear (fused kernel)
    return classifier_forward(flat, params["classifier"])


if __name__ == "__main__":
    key = jax.random.PRNGKey(0)
    kp, kx = jax.random.split(key)
    params, static = init_params(kp)
    x = jax.random.normal(kx, (2, IMAGE_CHANNELS, H_IN, W_IN), jnp.float32)  # NCHW
    fwd = jax.jit(lambda p, xx: vgg_forward(p, static, xx))
    out = fwd(params, x)
    out = jax.block_until_ready(out)
    assert out.shape == (2, NUM_CLASS), out.shape
    assert bool(jnp.all(jnp.isfinite(out)))
    print("KERNEL_OK")
</pallas_src>

<mosaic_0001>
module attributes {stable_mosaic.version = 11 : i64} {
  func.func @kernel(%arg0: i32, %arg1: memref<1x256x4xf32, #tpu.memory_space<vmem>>, %arg2: memref<3x3x4x8xf32, #tpu.memory_space<vmem>>, %arg3: memref<1x8xf32, #tpu.memory_space<vmem>>, %arg4: memref<1x8xf32, #tpu.memory_space<vmem>>, %arg5: memref<3x3x8x8xf32, #tpu.memory_space<vmem>>, %arg6: memref<1x8xf32, #tpu.memory_space<vmem>>, %arg7: memref<1x8xf32, #tpu.memory_space<vmem>>, %arg8: memref<3x3x8x16xf32, #tpu.memory_space<vmem>>, %arg9: memref<1x16xf32, #tpu.memory_space<vmem>>, %arg10: memref<1x16xf32, #tpu.memory_space<vmem>>, %arg11: memref<3x3x16x16xf32, #tpu.memory_space<vmem>>, %arg12: memref<1x16xf32, #tpu.memory_space<vmem>>, %arg13: memref<1x16xf32, #tpu.memory_space<vmem>>, %arg14: memref<256x1xf32, #tpu.memory_space<vmem>>, %arg15: memref<256x1xf32, #tpu.memory_space<vmem>>, %arg16: memref<64x256xf32, #tpu.memory_space<vmem>>, %arg17: memref<64x1xf32, #tpu.memory_space<vmem>>, %arg18: memref<64x1xf32, #tpu.memory_space<vmem>>, %arg19: memref<16x64xf32, #tpu.memory_space<vmem>>, %arg20: memref<49x16xf32, #tpu.memory_space<vmem>>, %arg21: memref<1x49x16xf32, #tpu.memory_space<vmem>>, %arg22: memref<290x4xf32, #tpu.memory_space<vmem>>, %arg23: memref<290x8xf32, #tpu.memory_space<vmem>>, %arg24: memref<272x8xf32, #tpu.memory_space<vmem>>, %arg25: memref<82x8xf32, #tpu.memory_space<vmem>>, %arg26: memref<82x16xf32, #tpu.memory_space<vmem>>, %arg27: memref<72x16xf32, #tpu.memory_space<vmem>>) attributes {dimension_semantics = [#tpu.dimension_semantics<parallel>], iteration_bounds = array<i64: 2>, scalar_prefetch = 0 : i64, scratch_operands = 6 : i64, tpu.core_type = #tpu.core_type<tc>, window_params = [{transform_indices = @transform_0, window_bounds = array<i64: 1, 256, 4>}, {pipeline_mode = #tpu.pipeline_mode<synchronous>, transform_indices = @transform_1, window_bounds = array<i64: 3, 3, 4, 8>}, {pipeline_mode = #tpu.pipeline_mode<synchronous>, transform_indices = @transform_2, window_bounds = array<i64: 1, 8>}, {pipeline_mode = #tpu.pipeline_mode<synchronous>, transform_indices = @transform_3, window_bounds = array<i64: 1, 8>}, {pipeline_mode = #tpu.pipeline_mode<synchronous>, transform_indices = @transform_4, window_bounds = array<i64: 3, 3, 8, 8>}, {pipeline_mode = #tpu.pipeline_mode<synchronous>, transform_indices = @transform_5, window_bounds = array<i64: 1, 8>}, {pipeline_mode = #tpu.pipeline_mode<synchronous>, transform_indices = @transform_6, window_bounds = array<i64: 1, 8>}, {pipeline_mode = #tpu.pipeline_mode<synchronous>, transform_indices = @transform_7, window_bounds = array<i64: 3, 3, 8, 16>}, {pipeline_mode = #tpu.pipeline_mode<synchronous>, transform_indices = @transform_8, window_bounds = array<i64: 1, 16>}, {pipeline_mode = #tpu.pipeline_mode<synchronous>, transform_indices = @transform_9, window_bounds = array<i64: 1, 16>}, {pipeline_mode = #tpu.pipeline_mode<synchronous>, transform_indices = @transform_10, window_bounds = array<i64: 3, 3, 16, 16>}, {pipeline_mode = #tpu.pipeline_mode<synchronous>, transform_indices = @transform_11, window_bounds = array<i64: 1, 16>}, {pipeline_mode = #tpu.pipeline_mode<synchronous>, transform_indices = @transform_12, window_bounds = array<i64: 1, 16>}, {pipeline_mode = #tpu.pipeline_mode<synchronous>, transform_indices = @transform_13, window_bounds = array<i64: 256, 1>}, {pipeline_mode = #tpu.pipeline_mode<synchronous>, transform_indices = @transform_14, window_bounds = array<i64: 256, 1>}, {pipeline_mode = #tpu.pipeline_mode<synchronous>, transform_indices = @transform_15, window_bounds = array<i64: 64, 256>}, {pipeline_mode = #tpu.pipeline_mode<synchronous>, transform_indices = @transform_16, window_bounds = array<i64: 64, 1>}, {pipeline_mode = #tpu.pipeline_mode<synchronous>, transform_indices = @transform_17, window_bounds = array<i64: 64, 1>}, {pipeline_mode = #tpu.pipeline_mode<synchronous>, transform_indices = @transform_18, window_bounds = array<i64: 16, 64>}, {pipeline_mode = #tpu.pipeline_mode<synchronous>, transform_indices = @transform_19, window_bounds = array<i64: 49, 16>}, {transform_indices = @transform_20, window_bounds = array<i64: 1, 49, 16>}]} {
    %c0 = arith.constant 0 : index
    %c0_0 = arith.constant 0 : index
    %c0_1 = arith.constant 0 : index
    %0 = vector.load %arg1[%c0, %c0_0, %c0_1] : memref<1x256x4xf32, #tpu.memory_space<vmem>>, vector<1x256x4xf32>
    %1 = vector.shape_cast %0 : vector<1x256x4xf32> to vector<256x4xf32>
    %c0_2 = arith.constant 0 : index
    %c0_3 = arith.constant 0 : index
    %2 = vector.load %arg14[%c0_2, %c0_3] : memref<256x1xf32, #tpu.memory_space<vmem>>, vector<256x1xf32>
    %c0_4 = arith.constant 0 : index
    %c0_5 = arith.constant 0 : index
    %3 = vector.load %arg15[%c0_4, %c0_5] : memref<256x1xf32, #tpu.memory_space<vmem>>, vector<256x1xf32>
    %c0_6 = arith.constant 0 : index
    %c0_7 = arith.constant 0 : index
    %4 = vector.load %arg3[%c0_6, %c0_7] : memref<1x8xf32, #tpu.memory_space<vmem>>, vector<1x8xf32>
    %c0_8 = arith.constant 0 : index
    %c0_9 = arith.constant 0 : index
    %5 = vector.load %arg4[%c0_8, %c0_9] : memref<1x8xf32, #tpu.memory_space<vmem>>, vector<1x8xf32>
    %cst = arith.constant 0.000000e+00 : f32
    %6 = vector.broadcast %cst : f32 to vector<290x4xf32>
    %c0_10 = arith.constant 0 : index
    %c0_11 = arith.constant 0 : index
    %7 = vector.load %arg22[%c0_10, %c0_11] : memref<290x4xf32, #tpu.memory_space<vmem>>, vector<290x4xf32>
    tpu.vector_store %arg22[%c0_10, %c0_11], %6 {strides = array<i32>} : memref<290x4xf32, #tpu.memory_space<vmem>>, vector<290x4xf32>,
    %c17 = arith.constant 17 : index
    %c0_12 = arith.constant 0 : index
    %8 = vector.load %arg22[%c17, %c0_12] : memref<290x4xf32, #tpu.memory_space<vmem>>, vector<256x4xf32>
    tpu.vector_store %arg22[%c17, %c0_12], %1 {strides = array<i32>} : memref<290x4xf32, #tpu.memory_space<vmem>>, vector<256x4xf32>,
    %c0_13 = arith.constant 0 : index
    %c0_14 = arith.constant 0 : index
    %c0_15 = arith.constant 0 : index
    %c0_16 = arith.constant 0 : index
    %9 = vector.load %arg2[%c0_13, %c0_14, %c0_15, %c0_16] : memref<3x3x4x8xf32, #tpu.memory_space<vmem>>, vector<3x3x4x8xf32>
    %cst_17 = arith.constant 0.000000e+00 : f32
    %10 = vector.broadcast %cst_17 : f32 to vector<256x8xf32>
    %c0_18 = arith.constant 0 : index
    %c0_19 = arith.constant 0 : index
    %11 = vector.load %arg22[%c0_18, %c0_19] : memref<290x4xf32, #tpu.memory_space<vmem>>, vector<256x4xf32>
    %12 = vector.broadcast %2 : vector<256x1xf32> to vector<256x4xf32>
    %13 = arith.mulf %11, %12 : vector<256x4xf32>
    %14 = vector.extract_strided_slice %9 {offsets = [0, 0, 0, 0], sizes = [1, 1, 4, 8], strides = [1, 1, 1, 1]} : vector<3x3x4x8xf32> to vector<1x1x4x8xf32>
    %15 = vector.shape_cast %14 : vector<1x1x4x8xf32> to vector<4x8xf32>
    %cst_20 = arith.constant dense<0.000000e+00> : vector<256x8xf32>
    %16 = tpu.matmul %13, %15, %cst_20 {dimension_numbers = #tpu.dot_dimension_numbers<[1], [0], [0], [1], [0, 0, 1, 1], [], []>} : vector<256x4xf32>, vector<4x8xf32>, vector<256x8xf32> -> vector<256x8xf32>
    %17 = arith.addf %10, %16 : vector<256x8xf32>
    %c1 = arith.constant 1 : index
    %c0_21 = arith.constant 0 : index
    %18 = vector.load %arg22[%c1, %c0_21] : memref<290x4xf32, #tpu.memory_space<vmem>>, vector<256x4xf32>
    %19 = vector.extract_strided_slice %9 {offsets = [0, 1, 0, 0], sizes = [1, 1, 4, 8], strides = [1, 1, 1, 1]} : vector<3x3x4x8xf32> to vector<1x1x4x8xf32>
    %20 = vector.shape_cast %19 : vector<1x1x4x8xf32> to vector<4x8xf32>
    %cst_22 = arith.constant dense<0.000000e+00> : vector<256x8xf32>
    %21 = tpu.matmul %18, %20, %cst_22 {dimension_numbers = #tpu.dot_dimension_numbers<[1], [0], [0], [1], [0, 0, 1, 1], [], []>} : vector<256x4xf32>, vector<4x8xf32>, vector<256x8xf32> -> vector<256x8xf32>
    %22 = arith.addf %17, %21 : vector<256x8xf32>
    %c2 = arith.constant 2 : index
    %c0_23 = arith.constant 0 : index
    %23 = vector.load %arg22[%c2, %c0_23] : memref<290x4xf32, #tpu.memory_space<vmem>>, vector<256x4xf32>
    %24 = vector.broadcast %3 : vector<256x1xf32> to vector<256x4xf32>
    %25 = arith.mulf %23, %24 : vector<256x4xf32>
    %26 = vector.extract_strided_slice %9 {offsets = [0, 2, 0, 0], sizes = [1, 1, 4, 8], strides = [1, 1, 1, 1]} : vector<3x3x4x8xf32> to vector<1x1x4x8xf32>
    %27 = vector.shape_cast %26 : vector<1x1x4x8xf32> to vector<4x8xf32>
    %cst_24 = arith.constant dense<0.000000e+00> : vector<256x8xf32>
    %28 = tpu.matmul %25, %27, %cst_24 {dimension_numbers = #tpu.dot_dimension_numbers<[1], [0], [0], [1], [0, 0, 1, 1], [], []>} : vector<256x4xf32>, vector<4x8xf32>, vector<256x8xf32> -> vector<256x8xf32>
    %29 = arith.addf %22, %28 : vector<256x8xf32>
    %c16 = arith.constant 16 : index
    %c0_25 = arith.constant 0 : index
    %30 = vector.load %arg22[%c16, %c0_25] : memref<290x4xf32, #tpu.memory_space<vmem>>, vector<256x4xf32>
    %31 = vector.broadcast %2 : vector<256x1xf32> to vector<256x4xf32>
    %32 = arith.mulf %30, %31 : vector<256x4xf32>
    %33 = vector.extract_strided_slice %9 {offsets = [1, 0, 0, 0], sizes = [1, 1, 4, 8], strides = [1, 1, 1, 1]} : vector<3x3x4x8xf32> to vector<1x1x4x8xf32>
    %34 = vector.shape_cast %33 : vector<1x1x4x8xf32> to vector<4x8xf32>
    %cst_26 = arith.constant dense<0.000000e+00> : vector<256x8xf32>
    %35 = tpu.matmul %32, %34, %cst_26 {dimension_numbers = #tpu.dot_dimension_numbers<[1], [0], [0], [1], [0, 0, 1, 1], [], []>} : vector<256x4xf32>, vector<4x8xf32>, vector<256x8xf32> -> vector<256x8xf32>
    %36 = arith.addf %29, %35 : vector<256x8xf32>
    %c17_27 = arith.constant 17 : index
    %c0_28 = arith.constant 0 : index
    %37 = vector.load %arg22[%c17_27, %c0_28] : memref<290x4xf32, #tpu.memory_space<vmem>>, vector<256x4xf32>
    %38 = vector.extract_strided_slice %9 {offsets = [1, 1, 0, 0], sizes = [1, 1, 4, 8], strides = [1, 1, 1, 1]} : vector<3x3x4x8xf32> to vector<1x1x4x8xf32>
    %39 = vector.shape_cast %38 : vector<1x1x4x8xf32> to vector<4x8xf32>
    %cst_29 = arith.constant dense<0.000000e+00> : vector<256x8xf32>
    %40 = tpu.matmul %37, %39, %cst_29 {dimension_numbers = #tpu.dot_dimension_numbers<[1], [0], [0], [1], [0, 0, 1, 1], [], []>} : vector<256x4xf32>, vector<4x8xf32>, vector<256x8xf32> -> vector<256x8xf32>
    %41 = arith.addf %36, %40 : vector<256x8xf32>
    %c18 = arith.constant 18 : index
    %c0_30 = arith.constant 0 : index
    %42 = vector.load %arg22[%c18, %c0_30] : memref<290x4xf32, #tpu.memory_space<vmem>>, vector<256x4xf32>
    %43 = vector.broadcast %3 : vector<256x1xf32> to vector<256x4xf32>
    %44 = arith.mulf %42, %43 : vector<256x4xf32>
    %45 = vector.extract_strided_slice %9 {offsets = [1, 2, 0, 0], sizes = [1, 1, 4, 8], strides = [1, 1, 1, 1]} : vector<3x3x4x8xf32> to vector<1x1x4x8xf32>
    %46 = vector.shape_cast %45 : vector<1x1x4x8xf32> to vector<4x8xf32>
    %cst_31 = arith.constant dense<0.000000e+00> : vector<256x8xf32>
    %47 = tpu.matmul %44, %46, %cst_31 {dimension_numbers = #tpu.dot_dimension_numbers<[1], [0], [0], [1], [0, 0, 1, 1], [], []>} : vector<256x4xf32>, vector<4x8xf32>, vector<256x8xf32> -> vector<256x8xf32>
    %48 = arith.addf %41, %47 : vector<256x8xf32>
    %c32 = arith.constant 32 : index
    %c0_32 = arith.constant 0 : index
    %49 = vector.load %arg22[%c32, %c0_32] : memref<290x4xf32, #tpu.memory_space<vmem>>, vector<256x4xf32>
    %50 = vector.broadcast %2 : vector<256x1xf32> to vector<256x4xf32>
    %51 = arith.mulf %49, %50 : vector<256x4xf32>
    %52 = vector.extract_strided_slice %9 {offsets = [2, 0, 0, 0], sizes = [1, 1, 4, 8], strides = [1, 1, 1, 1]} : vector<3x3x4x8xf32> to vector<1x1x4x8xf32>
    %53 = vector.shape_cast %52 : vector<1x1x4x8xf32> to vector<4x8xf32>
    %cst_33 = arith.constant dense<0.000000e+00> : vector<256x8xf32>
    %54 = tpu.matmul %51, %53, %cst_33 {dimension_numbers = #tpu.dot_dimension_numbers<[1], [0], [0], [1], [0, 0, 1, 1], [], []>} : vector<256x4xf32>, vector<4x8xf32>, vector<256x8xf32> -> vector<256x8xf32>
    %55 = arith.addf %48, %54 : vector<256x8xf32>
    %c33 = arith.constant 33 : index
    %c0_34 = arith.constant 0 : index
    %56 = vector.load %arg22[%c33, %c0_34] : memref<290x4xf32, #tpu.memory_space<vmem>>, vector<256x4xf32>
    %57 = vector.extract_strided_slice %9 {offsets = [2, 1, 0, 0], sizes = [1, 1, 4, 8], strides = [1, 1, 1, 1]} : vector<3x3x4x8xf32> to vector<1x1x4x8xf32>
    %58 = vector.shape_cast %57 : vector<1x1x4x8xf32> to vector<4x8xf32>
    %cst_35 = arith.constant dense<0.000000e+00> : vector<256x8xf32>
    %59 = tpu.matmul %56, %58, %cst_35 {dimension_numbers = #tpu.dot_dimension_numbers<[1], [0], [0], [1], [0, 0, 1, 1], [], []>} : vector<256x4xf32>, vector<4x8xf32>, vector<256x8xf32> -> vector<256x8xf32>
    %60 = arith.addf %55, %59 : vector<256x8xf32>
    %c34 = arith.constant 34 : index
    %c0_36 = arith.constant 0 : index
    %61 = vector.load %arg22[%c34, %c0_36] : memref<290x4xf32, #tpu.memory_space<vmem>>, vector<256x4xf32>
    %62 = vector.broadcast %3 : vector<256x1xf32> to vector<256x4xf32>
    %63 = arith.mulf %61, %62 : vector<256x4xf32>
    %64 = vector.extract_strided_slice %9 {offsets = [2, 2, 0, 0], sizes = [1, 1, 4, 8], strides = [1, 1, 1, 1]} : vector<3x3x4x8xf32> to vector<1x1x4x8xf32>
    %65 = vector.shape_cast %64 : vector<1x1x4x8xf32> to vector<4x8xf32>
    %cst_37 = arith.constant dense<0.000000e+00> : vector<256x8xf32>
    %66 = tpu.matmul %63, %65, %cst_37 {dimension_numbers = #tpu.dot_dimension_numbers<[1], [0], [0], [1], [0, 0, 1, 1], [], []>} : vector<256x4xf32>, vector<4x8xf32>, vector<256x8xf32> -> vector<256x8xf32>
    %67 = arith.addf %60, %66 : vector<256x8xf32>
    %68 = vector.broadcast %4 : vector<1x8xf32> to vector<256x8xf32>
    %69 = arith.mulf %67, %68 : vector<256x8xf32>
    %70 = vector.broadcast %5 : vector<1x8xf32> to vector<256x8xf32>
    %71 = arith.addf %69, %70 : vector<256x8xf32>
    %cst_38 = arith.constant 0.000000e+00 : f32
    %72 = vector.broadcast %cst_38 : f32 to vector<256x8xf32>
    %73 = arith.maximumf %71, %72 : vector<256x8xf32>
    %c0_39 = arith.constant 0 : index
    %c0_40 = arith.constant 0 : index
    %74 = vector.load %arg14[%c0_39, %c0_40] : memref<256x1xf32, #tpu.memory_space<vmem>>, vector<256x1xf32>
    %c0_41 = arith.constant 0 : index
    %c0_42 = arith.constant 0 : index
    %75 = vector.load %arg15[%c0_41, %c0_42] : memref<256x1xf32, #tpu.memory_space<vmem>>, vector<256x1xf32>
    %c0_43 = arith.constant 0 : index
    %c0_44 = arith.constant 0 : index
    %76 = vector.load %arg6[%c0_43, %c0_44] : memref<1x8xf32, #tpu.memory_space<vmem>>, vector<1x8xf32>
    %c0_45 = arith.constant 0 : index
    %c0_46 = arith.constant 0 : index
    %77 = vector.load %arg7[%c0_45, %c0_46] : memref<1x8xf32, #tpu.memory_space<vmem>>, vector<1x8xf32>
    %cst_47 = arith.constant 0.000000e+00 : f32
    %78 = vector.broadcast %cst_47 : f32 to vector<290x8xf32>
    %c0_48 = arith.constant 0 : index
    %c0_49 = arith.constant 0 : index
    %79 = vector.load %arg23[%c0_48, %c0_49] : memref<290x8xf32, #tpu.memory_space<vmem>>, vector<290x8xf32>
    tpu.vector_store %arg23[%c0_48, %c0_49], %78 {strides = array<i32>} : memref<290x8xf32, #tpu.memory_space<vmem>>, vector<290x8xf32>,
    %c17_50 = arith.constant 17 : index
    %c0_51 = arith.constant 0 : index
    %80 = vector.load %arg23[%c17_50, %c0_51] : memref<290x8xf32, #tpu.memory_space<vmem>>, vector<256x8xf32>
    tpu.vector_store %arg23[%c17_50, %c0_51], %73 {strides = array<i32>} : memref<290x8xf32, #tpu.memory_space<vmem>>, vector<256x8xf32>,
    %c0_52 = arith.constant 0 : index
    %c0_53 = arith.constant 0 : index
    %c0_54 = arith.constant 0 : index
    %c0_55 = arith.constant 0 : index
    %81 = vector.load %arg5[%c0_52, %c0_53, %c0_54, %c0_55] : memref<3x3x8x8xf32, #tpu.memory_space<vmem>>, vector<3x3x8x8xf32>
    %cst_56 = arith.constant 0.000000e+00 : f32
    %82 = vector.broadcast %cst_56 : f32 to vector<256x8xf32>
    %c0_57 = arith.constant 0 : index
    %c0_58 = arith.constant 0 : index
    %83 = vector.load %arg23[%c0_57, %c0_58] : memref<290x8xf32, #tpu.memory_space<vmem>>, vector<256x8xf32>
    %84 = vector.broadcast %74 : vector<256x1xf32> to vector<256x8xf32>
    %85 = arith.mulf %83, %84 : vector<256x8xf32>
    %86 = vector.extract_strided_slice %81 {offsets = [0, 0, 0, 0], sizes = [1, 1, 8, 8], strides = [1, 1, 1, 1]} : vector<3x3x8x8xf32> to vector<1x1x8x8xf32>
    %87 = vector.shape_cast %86 : vector<1x1x8x8xf32> to vector<8x8xf32>
    %cst_59 = arith.constant dense<0.000000e+00> : vector<256x8xf32>
    %88 = tpu.matmul %85, %87, %cst_59 {dimension_numbers = #tpu.dot_dimension_numbers<[1], [0], [0], [1], [0, 0, 1, 1], [], []>} : vector<256x8xf32>, vector<8x8xf32>, vector<256x8xf32> -> vector<256x8xf32>
    %89 = arith.addf %82, %88 : vector<256x8xf32>
    %c1_60 = arith.constant 1 : index
    %c0_61 = arith.constant 0 : index
    %90 = vector.load %arg23[%c1_60, %c0_61] : memref<290x8xf32, #tpu.memory_space<vmem>>, vector<256x8xf32>
    %91 = vector.extract_strided_slice %81 {offsets = [0, 1, 0, 0], sizes = [1, 1, 8, 8], strides = [1, 1, 1, 1]} : vector<3x3x8x8xf32> to vector<1x1x8x8xf32>
    %92 = vector.shape_cast %91 : vector<1x1x8x8xf32> to vector<8x8xf32>
    %cst_62 = arith.constant dense<0.000000e+00> : vector<256x8xf32>
    %93 = tpu.matmul %90, %92, %cst_62 {dimension_numbers = #tpu.dot_dimension_numbers<[1], [0], [0], [1], [0, 0, 1, 1], [], []>} : vector<256x8xf32>, vector<8x8xf32>, vector<256x8xf32> -> vector<256x8xf32>
    %94 = arith.addf %89, %93 : vector<256x8xf32>
    %c2_63 = arith.constant 2 : index
    %c0_64 = arith.constant 0 : index
    %95 = vector.load %arg23[%c2_63, %c0_64] : memref<290x8xf32, #tpu.memory_space<vmem>>, vector<256x8xf32>
    %96 = vector.broadcast %75 : vector<256x1xf32> to vector<256x8xf32>
    %97 = arith.mulf %95, %96 : vector<256x8xf32>
    %98 = vector.extract_strided_slice %81 {offsets = [0, 2, 0, 0], sizes = [1, 1, 8, 8], strides = [1, 1, 1, 1]} : vector<3x3x8x8xf32> to vector<1x1x8x8xf32>
    %99 = vector.shape_cast %98 : vector<1x1x8x8xf32> to vector<8x8xf32>
    %cst_65 = arith.constant dense<0.000000e+00> : vector<256x8xf32>
    %100 = tpu.matmul %97, %99, %cst_65 {dimension_numbers = #tpu.dot_dimension_numbers<[1], [0], [0], [1], [0, 0, 1, 1], [], []>} : vector<256x8xf32>, vector<8x8xf32>, vector<256x8xf32> -> vector<256x8xf32>
    %101 = arith.addf %94, %100 : vector<256x8xf32>
    %c16_66 = arith.constant 16 : index
    %c0_67 = arith.constant 0 : index
    %102 = vector.load %arg23[%c16_66, %c0_67] : memref<290x8xf32, #tpu.memory_space<vmem>>, vector<256x8xf32>
    %103 = vector.broadcast %74 : vector<256x1xf32> to vector<256x8xf32>
    %104 = arith.mulf %102, %103 : vector<256x8xf32>
    %105 = vector.extract_strided_slice %81 {offsets = [1, 0, 0, 0], sizes = [1, 1, 8, 8], strides = [1, 1, 1, 1]} : vector<3x3x8x8xf32> to vector<1x1x8x8xf32>
    %106 = vector.shape_cast %105 : vector<1x1x8x8xf32> to vector<8x8xf32>
    %cst_68 = arith.constant dense<0.000000e+00> : vector<256x8xf32>
    %107 = tpu.matmul %104, %106, %cst_68 {dimension_numbers = #tpu.dot_dimension_numbers<[1], [0], [0], [1], [0, 0, 1, 1], [], []>} : vector<256x8xf32>, vector<8x8xf32>, vector<256x8xf32> -> vector<256x8xf32>
    %108 = arith.addf %101, %107 : vector<256x8xf32>
    %c17_69 = arith.constant 17 : index
    %c0_70 = arith.constant 0 : index
    %109 = vector.load %arg23[%c17_69, %c0_70] : memref<290x8xf32, #tpu.memory_space<vmem>>, vector<256x8xf32>
    %110 = vector.extract_strided_slice %81 {offsets = [1, 1, 0, 0], sizes = [1, 1, 8, 8], strides = [1, 1, 1, 1]} : vector<3x3x8x8xf32> to vector<1x1x8x8xf32>
    %111 = vector.shape_cast %110 : vector<1x1x8x8xf32> to vector<8x8xf32>
    %cst_71 = arith.constant dense<0.000000e+00> : vector<256x8xf32>
    %112 = tpu.matmul %109, %111, %cst_71 {dimension_numbers = #tpu.dot_dimension_numbers<[1], [0], [0], [1], [0, 0, 1, 1], [], []>} : vector<256x8xf32>, vector<8x8xf32>, vector<256x8xf32> -> vector<256x8xf32>
    %113 = arith.addf %108, %112 : vector<256x8xf32>
    %c18_72 = arith.constant 18 : index
    %c0_73 = arith.constant 0 : index
    %114 = vector.load %arg23[%c18_72, %c0_73] : memref<290x8xf32, #tpu.memory_space<vmem>>, vector<256x8xf32>
    %115 = vector.broadcast %75 : vector<256x1xf32> to vector<256x8xf32>
    %116 = arith.mulf %114, %115 : vector<256x8xf32>
    %117 = vector.extract_strided_slice %81 {offsets = [1, 2, 0, 0], sizes = [1, 1, 8, 8], strides = [1, 1, 1, 1]} : vector<3x3x8x8xf32> to vector<1x1x8x8xf32>
    %118 = vector.shape_cast %117 : vector<1x1x8x8xf32> to vector<8x8xf32>
    %cst_74 = arith.constant dense<0.000000e+00> : vector<256x8xf32>
    %119 = tpu.matmul %116, %118, %cst_74 {dimension_numbers = #tpu.dot_dimension_numbers<[1], [0], [0], [1], [0, 0, 1, 1], [], []>} : vector<256x8xf32>, vector<8x8xf32>, vector<256x8xf32> -> vector<256x8xf32>
    %120 = arith.addf %113, %119 : vector<256x8xf32>
    %c32_75 = arith.constant 32 : index
    %c0_76 = arith.constant 0 : index
    %121 = vector.load %arg23[%c32_75, %c0_76] : memref<290x8xf32, #tpu.memory_space<vmem>>, vector<256x8xf32>
    %122 = vector.broadcast %74 : vector<256x1xf32> to vector<256x8xf32>
    %123 = arith.mulf %121, %122 : vector<256x8xf32>
    %124 = vector.extract_strided_slice %81 {offsets = [2, 0, 0, 0], sizes = [1, 1, 8, 8], strides = [1, 1, 1, 1]} : vector<3x3x8x8xf32> to vector<1x1x8x8xf32>
    %125 = vector.shape_cast %124 : vector<1x1x8x8xf32> to vector<8x8xf32>
    %cst_77 = arith.constant dense<0.000000e+00> : vector<256x8xf32>
    %126 = tpu.matmul %123, %125, %cst_77 {dimension_numbers = #tpu.dot_dimension_numbers<[1], [0], [0], [1], [0, 0, 1, 1], [], []>} : vector<256x8xf32>, vector<8x8xf32>, vector<256x8xf32> -> vector<256x8xf32>
    %127 = arith.addf %120, %126 : vector<256x8xf32>
    %c33_78 = arith.constant 33 : index
    %c0_79 = arith.constant 0 : index
    %128 = vector.load %arg23[%c33_78, %c0_79] : memref<290x8xf32, #tpu.memory_space<vmem>>, vector<256x8xf32>
    %129 = vector.extract_strided_slice %81 {offsets = [2, 1, 0, 0], sizes = [1, 1, 8, 8], strides = [1, 1, 1, 1]} : vector<3x3x8x8xf32> to vector<1x1x8x8xf32>
    %130 = vector.shape_cast %129 : vector<1x1x8x8xf32> to vector<8x8xf32>
    %cst_80 = arith.constant dense<0.000000e+00> : vector<256x8xf32>
    %131 = tpu.matmul %128, %130, %cst_80 {dimension_numbers = #tpu.dot_dimension_numbers<[1], [0], [0], [1], [0, 0, 1, 1], [], []>} : vector<256x8xf32>, vector<8x8xf32>, vector<256x8xf32> -> vector<256x8xf32>
    %132 = arith.addf %127, %131 : vector<256x8xf32>
    %c34_81 = arith.constant 34 : index
    %c0_82 = arith.constant 0 : index
    %133 = vector.load %arg23[%c34_81, %c0_82] : memref<290x8xf32, #tpu.memory_space<vmem>>, vector<256x8xf32>
    %134 = vector.broadcast %75 : vector<256x1xf32> to vector<256x8xf32>
    %135 = arith.mulf %133, %134 : vector<256x8xf32>
    %136 = vector.extract_strided_slice %81 {offsets = [2, 2, 0, 0], sizes = [1, 1, 8, 8], strides = [1, 1, 1, 1]} : vector<3x3x8x8xf32> to vector<1x1x8x8xf32>
    %137 = vector.shape_cast %136 : vector<1x1x8x8xf32> to vector<8x8xf32>
    %cst_83 = arith.constant dense<0.000000e+00> : vector<256x8xf32>
    %138 = tpu.matmul %135, %137, %cst_83 {dimension_numbers = #tpu.dot_dimension_numbers<[1], [0], [0], [1], [0, 0, 1, 1], [], []>} : vector<256x8xf32>, vector<8x8xf32>, vector<256x8xf32> -> vector<256x8xf32>
    %139 = arith.addf %132, %138 : vector<256x8xf32>
    %140 = vector.broadcast %76 : vector<1x8xf32> to vector<256x8xf32>
    %141 = arith.mulf %139, %140 : vector<256x8xf32>
    %142 = vector.broadcast %77 : vector<1x8xf32> to vector<256x8xf32>
    %143 = arith.addf %141, %142 : vector<256x8xf32>
    %cst_84 = arith.constant 0.000000e+00 : f32
    %144 = vector.broadcast %cst_84 : f32 to vector<256x8xf32>
    %145 = arith.maximumf %143, %144 : vector<256x8xf32>
    %c0_85 = arith.constant 0 : index
    %c0_86 = arith.constant 0 : index
    %146 = vector.load %arg16[%c0_85, %c0_86] : memref<64x256xf32, #tpu.memory_space<vmem>>, vector<64x256xf32>
    %cst_87 = arith.constant 0.000000e+00 : f32
    %147 = vector.broadcast %cst_87 : f32 to vector<272x8xf32>
    %c0_88 = arith.constant 0 : index
    %c0_89 = arith.constant 0 : index
    %148 = vector.load %arg24[%c0_88, %c0_89] : memref<272x8xf32, #tpu.memory_space<vmem>>, vector<272x8xf32>
    tpu.vector_store %arg24[%c0_88, %c0_89], %147 {strides = array<i32>} : memref<272x8xf32, #tpu.memory_space<vmem>>, vector<272x8xf32>,
    %c0_90 = arith.constant 0 : index
    %c0_91 = arith.constant 0 : index
    %149 = vector.load %arg24[%c0_90, %c0_91] : memref<272x8xf32, #tpu.memory_space<vmem>>, vector<256x8xf32>
    tpu.vector_store %arg24[%c0_90, %c0_91], %145 {strides = array<i32>} : memref<272x8xf32, #tpu.memory_space<vmem>>, vector<256x8xf32>,
    %c1_92 = arith.constant 1 : index
    %c0_93 = arith.constant 0 : index
    %150 = vector.load %arg24[%c1_92, %c0_93] : memref<272x8xf32, #tpu.memory_space<vmem>>, vector<256x8xf32>
    %151 = arith.maximumf %145, %150 : vector<256x8xf32>
    %c0_94 = arith.constant 0 : index
    %c0_95 = arith.constant 0 : index
    %152 = vector.load %arg24[%c0_94, %c0_95] : memref<272x8xf32, #tpu.memory_space<vmem>>, vector<256x8xf32>
    tpu.vector_store %arg24[%c0_94, %c0_95], %151 {strides = array<i32>} : memref<272x8xf32, #tpu.memory_space<vmem>>, vector<256x8xf32>,
    %c16_96 = arith.constant 16 : index
    %c0_97 = arith.constant 0 : index
    %153 = vector.load %arg24[%c16_96, %c0_97] : memref<272x8xf32, #tpu.memory_space<vmem>>, vector<256x8xf32>
    %154 = arith.maximumf %151, %153 : vector<256x8xf32>
    %cst_98 = arith.constant dense<0.000000e+00> : vector<64x8xf32>
    %155 = tpu.matmul %146, %154, %cst_98 {dimension_numbers = #tpu.dot_dimension_numbers<[1], [0], [0], [1], [0, 0, 1, 1], [], []>} : vector<64x256xf32>, vector<256x8xf32>, vector<64x8xf32> -> vector<64x8xf32>
    %c0_99 = arith.constant 0 : index
    %c0_100 = arith.constant 0 : index
    %156 = vector.load %arg17[%c0_99, %c0_100] : memref<64x1xf32, #tpu.memory_space<vmem>>, vector<64x1xf32>
    %c0_101 = arith.constant 0 : index
    %c0_102 = arith.constant 0 : index
    %157 = vector.load %arg18[%c0_101, %c0_102] : memref<64x1xf32, #tpu.memory_space<vmem>>, vector<64x1xf32>
    %c0_103 = arith.constant 0 : index
    %c0_104 = arith.constant 0 : index
    %158 = vector.load %arg9[%c0_103, %c0_104] : memref<1x16xf32, #tpu.memory_space<vmem>>, vector<1x16xf32>
    %c0_105 = arith.constant 0 : index
    %c0_106 = arith.constant 0 : index
    %159 = vector.load %arg10[%c0_105, %c0_106] : memref<1x16xf32, #tpu.memory_space<vmem>>, vector<1x16xf32>
    %cst_107 = arith.constant 0.000000e+00 : f32
    %160 = vector.broadcast %cst_107 : f32 to vector<82x8xf32>
    %c0_108 = arith.constant 0 : index
    %c0_109 = arith.constant 0 : index
    %161 = vector.load %arg25[%c0_108, %c0_109] : memref<82x8xf32, #tpu.memory_space<vmem>>, vector<82x8xf32>
    tpu.vector_store %arg25[%c0_108, %c0_109], %160 {strides = array<i32>} : memref<82x8xf32, #tpu.memory_space<vmem>>, vector<82x8xf32>,
    %c9 = arith.constant 9 : index
    %c0_110 = arith.constant 0 : index
    %162 = vector.load %arg25[%c9, %c0_110] : memref<82x8xf32, #tpu.memory_space<vmem>>, vector<64x8xf32>
    tpu.vector_store %arg25[%c9, %c0_110], %155 {strides = array<i32>} : memref<82x8xf32, #tpu.memory_space<vmem>>, vector<64x8xf32>,
    %c0_111 = arith.constant 0 : index
    %c0_112 = arith.constant 0 : index
    %c0_113 = arith.constant 0 : index
    %c0_114 = arith.constant 0 : index
    %163 = vector.load %arg8[%c0_111, %c0_112, %c0_113, %c0_114] : memref<3x3x8x16xf32, #tpu.memory_space<vmem>>, vector<3x3x8x16xf32>
    %cst_115 = arith.constant 0.000000e+00 : f32
    %164 = vector.broadcast %cst_115 : f32 to vector<64x16xf32>
    %c0_116 = arith.constant 0 : index
    %c0_117 = arith.constant 0 : index
    %165 = vector.load %arg25[%c0_116, %c0_117] : memref<82x8xf32, #tpu.memory_space<vmem>>, vector<64x8xf32>
    %166 = vector.broadcast %156 : vector<64x1xf32> to vector<64x8xf32>
    %167 = arith.mulf %165, %166 : vector<64x8xf32>
    %168 = vector.extract_strided_slice %163 {offsets = [0, 0, 0, 0], sizes = [1, 1, 8, 16], strides = [1, 1, 1, 1]} : vector<3x3x8x16xf32> to vector<1x1x8x16xf32>
    %169 = vector.shape_cast %168 : vector<1x1x8x16xf32> to vector<8x16xf32>
    %cst_118 = arith.constant dense<0.000000e+00> : vector<64x16xf32>
    %170 = tpu.matmul %167, %169, %cst_118 {dimension_numbers = #tpu.dot_dimension_numbers<[1], [0], [0], [1], [0, 0, 1, 1], [], []>} : vector<64x8xf32>, vector<8x16xf32>, vector<64x16xf32> -> vector<64x16xf32>
    %171 = arith.addf %164, %170 : vector<64x16xf32>
    %c1_119 = arith.constant 1 : index
    %c0_120 = arith.constant 0 : index
    %172 = vector.load %arg25[%c1_119, %c0_120] : memref<82x8xf32, #tpu.memory_space<vmem>>, vector<64x8xf32>
    %173 = vector.extract_strided_slice %163 {offsets = [0, 1, 0, 0], sizes = [1, 1, 8, 16], strides = [1, 1, 1, 1]} : vector<3x3x8x16xf32> to vector<1x1x8x16xf32>
    %174 = vector.shape_cast %173 : vector<1x1x8x16xf32> to vector<8x16xf32>
    %cst_121 = arith.constant dense<0.000000e+00> : vector<64x16xf32>
    %175 = tpu.matmul %172, %174, %cst_121 {dimension_numbers = #tpu.dot_dimension_numbers<[1], [0], [0], [1], [0, 0, 1, 1], [], []>} : vector<64x8xf32>, vector<8x16xf32>, vector<64x16xf32> -> vector<64x16xf32>
    %176 = arith.addf %171, %175 : vector<64x16xf32>
    %c2_122 = arith.constant 2 : index
    %c0_123 = arith.constant 0 : index
    %177 = vector.load %arg25[%c2_122, %c0_123] : memref<82x8xf32, #tpu.memory_space<vmem>>, vector<64x8xf32>
    %178 = vector.broadcast %157 : vector<64x1xf32> to vector<64x8xf32>
    %179 = arith.mulf %177, %178 : vector<64x8xf32>
    %180 = vector.extract_strided_slice %163 {offsets = [0, 2, 0, 0], sizes = [1, 1, 8, 16], strides = [1, 1, 1, 1]} : vector<3x3x8x16xf32> to vector<1x1x8x16xf32>
    %181 = vector.shape_cast %180 : vector<1x1x8x16xf32> to vector<8x16xf32>
    %cst_124 = arith.constant dense<0.000000e+00> : vector<64x16xf32>
    %182 = tpu.matmul %179, %181, %cst_124 {dimension_numbers = #tpu.dot_dimension_numbers<[1], [0], [0], [1], [0, 0, 1, 1], [], []>} : vector<64x8xf32>, vector<8x16xf32>, vector<64x16xf32> -> vector<64x16xf32>
    %183 = arith.addf %176, %182 : vector<64x16xf32>
    %c8 = arith.constant 8 : index
    %c0_125 = arith.constant 0 : index
    %184 = vector.load %arg25[%c8, %c0_125] : memref<82x8xf32, #tpu.memory_space<vmem>>, vector<64x8xf32>
    %185 = vector.broadcast %156 : vector<64x1xf32> to vector<64x8xf32>
    %186 = arith.mulf %184, %185 : vector<64x8xf32>
    %187 = vector.extract_strided_slice %163 {offsets = [1, 0, 0, 0], sizes = [1, 1, 8, 16], strides = [1, 1, 1, 1]} : vector<3x3x8x16xf32> to vector<1x1x8x16xf32>
    %188 = vector.shape_cast %187 : vector<1x1x8x16xf32> to vector<8x16xf32>
    %cst_126 = arith.constant dense<0.000000e+00> : vector<64x16xf32>
    %189 = tpu.matmul %186, %188, %cst_126 {dimension_numbers = #tpu.dot_dimension_numbers<[1], [0], [0], [1], [0, 0, 1, 1], [], []>} : vector<64x8xf32>, vector<8x16xf32>, vector<64x16xf32> -> vector<64x16xf32>
    %190 = arith.addf %183, %189 : vector<64x16xf32>
    %c9_127 = arith.constant 9 : index
    %c0_128 = arith.constant 0 : index
    %191 = vector.load %arg25[%c9_127, %c0_128] : memref<82x8xf32, #tpu.memory_space<vmem>>, vector<64x8xf32>
    %192 = vector.extract_strided_slice %163 {offsets = [1, 1, 0, 0], sizes = [1, 1, 8, 16], strides = [1, 1, 1, 1]} : vector<3x3x8x16xf32> to vector<1x1x8x16xf32>
    %193 = vector.shape_cast %192 : vector<1x1x8x16xf32> to vector<8x16xf32>
    %cst_129 = arith.constant dense<0.000000e+00> : vector<64x16xf32>
    %194 = tpu.matmul %191, %193, %cst_129 {dimension_numbers = #tpu.dot_dimension_numbers<[1], [0], [0], [1], [0, 0, 1, 1], [], []>} : vector<64x8xf32>, vector<8x16xf32>, vector<64x16xf32> -> vector<64x16xf32>
    %195 = arith.addf %190, %194 : vector<64x16xf32>
    %c10 = arith.constant 10 : index
    %c0_130 = arith.constant 0 : index
    %196 = vector.load %arg25[%c10, %c0_130] : memref<82x8xf32, #tpu.memory_space<vmem>>, vector<64x8xf32>
    %197 = vector.broadcast %157 : vector<64x1xf32> to vector<64x8xf32>
    %198 = arith.mulf %196, %197 : vector<64x8xf32>
    %199 = vector.extract_strided_slice %163 {offsets = [1, 2, 0, 0], sizes = [1, 1, 8, 16], strides = [1, 1, 1, 1]} : vector<3x3x8x16xf32> to vector<1x1x8x16xf32>
    %200 = vector.shape_cast %199 : vector<1x1x8x16xf32> to vector<8x16xf32>
    %cst_131 = arith.constant dense<0.000000e+00> : vector<64x16xf32>
    %201 = tpu.matmul %198, %200, %cst_131 {dimension_numbers = #tpu.dot_dimension_numbers<[1], [0], [0], [1], [0, 0, 1, 1], [], []>} : vector<64x8xf32>, vector<8x16xf32>, vector<64x16xf32> -> vector<64x16xf32>
    %202 = arith.addf %195, %201 : vector<64x16xf32>
    %c16_132 = arith.constant 16 : index
    %c0_133 = arith.constant 0 : index
    %203 = vector.load %arg25[%c16_132, %c0_133] : memref<82x8xf32, #tpu.memory_space<vmem>>, vector<64x8xf32>
    %204 = vector.broadcast %156 : vector<64x1xf32> to vector<64x8xf32>
    %205 = arith.mulf %203, %204 : vector<64x8xf32>
    %206 = vector.extract_strided_slice %163 {offsets = [2, 0, 0, 0], sizes = [1, 1, 8, 16], strides = [1, 1, 1, 1]} : vector<3x3x8x16xf32> to vector<1x1x8x16xf32>
    %207 = vector.shape_cast %206 : vector<1x1x8x16xf32> to vector<8x16xf32>
    %cst_134 = arith.constant dense<0.000000e+00> : vector<64x16xf32>
    %208 = tpu.matmul %205, %207, %cst_134 {dimension_numbers = #tpu.dot_dimension_numbers<[1], [0], [0], [1], [0, 0, 1, 1], [], []>} : vector<64x8xf32>, vector<8x16xf32>, vector<64x16xf32> -> vector<64x16xf32>
    %209 = arith.addf %202, %208 : vector<64x16xf32>
    %c17_135 = arith.constant 17 : index
    %c0_136 = arith.constant 0 : index
    %210 = vector.load %arg25[%c17_135, %c0_136] : memref<82x8xf32, #tpu.memory_space<vmem>>, vector<64x8xf32>
    %211 = vector.extract_strided_slice %163 {offsets = [2, 1, 0, 0], sizes = [1, 1, 8, 16], strides = [1, 1, 1, 1]} : vector<3x3x8x16xf32> to vector<1x1x8x16xf32>
    %212 = vector.shape_cast %211 : vector<1x1x8x16xf32> to vector<8x16xf32>
    %cst_137 = arith.constant dense<0.000000e+00> : vector<64x16xf32>
    %213 = tpu.matmul %210, %212, %cst_137 {dimension_numbers = #tpu.dot_dimension_numbers<[1], [0], [0], [1], [0, 0, 1, 1], [], []>} : vector<64x8xf32>, vector<8x16xf32>, vector<64x16xf32> -> vector<64x16xf32>
    %214 = arith.addf %209, %213 : vector<64x16xf32>
    %c18_138 = arith.constant 18 : index
    %c0_139 = arith.constant 0 : index
    %215 = vector.load %arg25[%c18_138, %c0_139] : memref<82x8xf32, #tpu.memory_space<vmem>>, vector<64x8xf32>
    %216 = vector.broadcast %157 : vector<64x1xf32> to vector<64x8xf32>
    %217 = arith.mulf %215, %216 : vector<64x8xf32>
    %218 = vector.extract_strided_slice %163 {offsets = [2, 2, 0, 0], sizes = [1, 1, 8, 16], strides = [1, 1, 1, 1]} : vector<3x3x8x16xf32> to vector<1x1x8x16xf32>
    %219 = vector.shape_cast %218 : vector<1x1x8x16xf32> to vector<8x16xf32>
    %cst_140 = arith.constant dense<0.000000e+00> : vector<64x16xf32>
    %220 = tpu.matmul %217, %219, %cst_140 {dimension_numbers = #tpu.dot_dimension_numbers<[1], [0], [0], [1], [0, 0, 1, 1], [], []>} : vector<64x8xf32>, vector<8x16xf32>, vector<64x16xf32> -> vector<64x16xf32>
    %221 = arith.addf %214, %220 : vector<64x16xf32>
    %222 = vector.broadcast %158 : vector<1x16xf32> to vector<64x16xf32>
    %223 = arith.mulf %221, %222 : vector<64x16xf32>
    %224 = vector.broadcast %159 : vector<1x16xf32> to vector<64x16xf32>
    %225 = arith.addf %223, %224 : vector<64x16xf32>
    %cst_141 = arith.constant 0.000000e+00 : f32
    %226 = vector.broadcast %cst_141 : f32 to vector<64x16xf32>
    %227 = arith.maximumf %225, %226 : vector<64x16xf32>
    %c0_142 = arith.constant 0 : index
    %c0_143 = arith.constant 0 : index
    %228 = vector.load %arg17[%c0_142, %c0_143] : memref<64x1xf32, #tpu.memory_space<vmem>>, vector<64x1xf32>
    %c0_144 = arith.constant 0 : index
    %c0_145 = arith.constant 0 : index
    %229 = vector.load %arg18[%c0_144, %c0_145] : memref<64x1xf32, #tpu.memory_space<vmem>>, vector<64x1xf32>
    %c0_146 = arith.constant 0 : index
    %c0_147 = arith.constant 0 : index
    %230 = vector.load %arg12[%c0_146, %c0_147] : memref<1x16xf32, #tpu.memory_space<vmem>>, vector<1x16xf32>
    %c0_148 = arith.constant 0 : index
    %c0_149 = arith.constant 0 : index
    %231 = vector.load %arg13[%c0_148, %c0_149] : memref<1x16xf32, #tpu.memory_space<vmem>>, vector<1x16xf32>
    %cst_150 = arith.constant 0.000000e+00 : f32
    %232 = vector.broadcast %cst_150 : f32 to vector<82x16xf32>
    %c0_151 = arith.constant 0 : index
    %c0_152 = arith.constant 0 : index
    %233 = vector.load %arg26[%c0_151, %c0_152] : memref<82x16xf32, #tpu.memory_space<vmem>>, vector<82x16xf32>
    tpu.vector_store %arg26[%c0_151, %c0_152], %232 {strides = array<i32>} : memref<82x16xf32, #tpu.memory_space<vmem>>, vector<82x16xf32>,
    %c9_153 = arith.constant 9 : index
    %c0_154 = arith.constant 0 : index
    %234 = vector.load %arg26[%c9_153, %c0_154] : memref<82x16xf32, #tpu.memory_space<vmem>>, vector<64x16xf32>
    tpu.vector_store %arg26[%c9_153, %c0_154], %227 {strides = array<i32>} : memref<82x16xf32, #tpu.memory_space<vmem>>, vector<64x16xf32>,
    %c0_155 = arith.constant 0 : index
    %c0_156 = arith.constant 0 : index
    %c0_157 = arith.constant 0 : index
    %c0_158 = arith.constant 0 : index
    %235 = vector.load %arg11[%c0_155, %c0_156, %c0_157, %c0_158] : memref<3x3x16x16xf32, #tpu.memory_space<vmem>>, vector<3x3x16x16xf32>
    %cst_159 = arith.constant 0.000000e+00 : f32
    %236 = vector.broadcast %cst_159 : f32 to vector<64x16xf32>
    %c0_160 = arith.constant 0 : index
    %c0_161 = arith.constant 0 : index
    %237 = vector.load %arg26[%c0_160, %c0_161] : memref<82x16xf32, #tpu.memory_space<vmem>>, vector<64x16xf32>
    %238 = vector.broadcast %228 : vector<64x1xf32> to vector<64x16xf32>
    %239 = arith.mulf %237, %238 : vector<64x16xf32>
    %240 = vector.extract_strided_slice %235 {offsets = [0, 0, 0, 0], sizes = [1, 1, 16, 16], strides = [1, 1, 1, 1]} : vector<3x3x16x16xf32> to vector<1x1x16x16xf32>
    %241 = vector.shape_cast %240 : vector<1x1x16x16xf32> to vector<16x16xf32>
    %cst_162 = arith.constant dense<0.000000e+00> : vector<64x16xf32>
    %242 = tpu.matmul %239, %241, %cst_162 {dimension_numbers = #tpu.dot_dimension_numbers<[1], [0], [0], [1], [0, 0, 1, 1], [], []>} : vector<64x16xf32>, vector<16x16xf32>, vector<64x16xf32> -> vector<64x16xf32>
    %243 = arith.addf %236, %242 : vector<64x16xf32>
    %c1_163 = arith.constant 1 : index
    %c0_164 = arith.constant 0 : index
    %244 = vector.load %arg26[%c1_163, %c0_164] : memref<82x16xf32, #tpu.memory_space<vmem>>, vector<64x16xf32>
    %245 = vector.extract_strided_slice %235 {offsets = [0, 1, 0, 0], sizes = [1, 1, 16, 16], strides = [1, 1, 1, 1]} : vector<3x3x16x16xf32> to vector<1x1x16x16xf32>
    %246 = vector.shape_cast %245 : vector<1x1x16x16xf32> to vector<16x16xf32>
    %cst_165 = arith.constant dense<0.000000e+00> : vector<64x16xf32>
    %247 = tpu.matmul %244, %246, %cst_165 {dimension_numbers = #tpu.dot_dimension_numbers<[1], [0], [0], [1], [0, 0, 1, 1], [], []>} : vector<64x16xf32>, vector<16x16xf32>, vector<64x16xf32> -> vector<64x16xf32>
    %248 = arith.addf %243, %247 : vector<64x16xf32>
    %c2_166 = arith.constant 2 : index
    %c0_167 = arith.constant 0 : index
    %249 = vector.load %arg26[%c2_166, %c0_167] : memref<82x16xf32, #tpu.memory_space<vmem>>, vector<64x16xf32>
    %250 = vector.broadcast %229 : vector<64x1xf32> to vector<64x16xf32>
    %251 = arith.mulf %249, %250 : vector<64x16xf32>
    %252 = vector.extract_strided_slice %235 {offsets = [0, 2, 0, 0], sizes = [1, 1, 16, 16], strides = [1, 1, 1, 1]} : vector<3x3x16x16xf32> to vector<1x1x16x16xf32>
    %253 = vector.shape_cast %252 : vector<1x1x16x16xf32> to vector<16x16xf32>
    %cst_168 = arith.constant dense<0.000000e+00> : vector<64x16xf32>
    %254 = tpu.matmul %251, %253, %cst_168 {dimension_numbers = #tpu.dot_dimension_numbers<[1], [0], [0], [1], [0, 0, 1, 1], [], []>} : vector<64x16xf32>, vector<16x16xf32>, vector<64x16xf32> -> vector<64x16xf32>
    %255 = arith.addf %248, %254 : vector<64x16xf32>
    %c8_169 = arith.constant 8 : index
    %c0_170 = arith.constant 0 : index
    %256 = vector.load %arg26[%c8_169, %c0_170] : memref<82x16xf32, #tpu.memory_space<vmem>>, vector<64x16xf32>
    %257 = vector.broadcast %228 : vector<64x1xf32> to vector<64x16xf32>
    %258 = arith.mulf %256, %257 : vector<64x16xf32>
    %259 = vector.extract_strided_slice %235 {offsets = [1, 0, 0, 0], sizes = [1, 1, 16, 16], strides = [1, 1, 1, 1]} : vector<3x3x16x16xf32> to vector<1x1x16x16xf32>
    %260 = vector.shape_cast %259 : vector<1x1x16x16xf32> to vector<16x16xf32>
    %cst_171 = arith.constant dense<0.000000e+00> : vector<64x16xf32>
    %261 = tpu.matmul %258, %260, %cst_171 {dimension_numbers = #tpu.dot_dimension_numbers<[1], [0], [0], [1], [0, 0, 1, 1], [], []>} : vector<64x16xf32>, vector<16x16xf32>, vector<64x16xf32> -> vector<64x16xf32>
    %262 = arith.addf %255, %261 : vector<64x16xf32>
    %c9_172 = arith.constant 9 : index
    %c0_173 = arith.constant 0 : index
    %263 = vector.load %arg26[%c9_172, %c0_173] : memref<82x16xf32, #tpu.memory_space<vmem>>, vector<64x16xf32>
    %264 = vector.extract_strided_slice %235 {offsets = [1, 1, 0, 0], sizes = [1, 1, 16, 16], strides = [1, 1, 1, 1]} : vector<3x3x16x16xf32> to vector<1x1x16x16xf32>
    %265 = vector.shape_cast %264 : vector<1x1x16x16xf32> to vector<16x16xf32>
    %cst_174 = arith.constant dense<0.000000e+00> : vector<64x16xf32>
    %266 = tpu.matmul %263, %265, %cst_174 {dimension_numbers = #tpu.dot_dimension_numbers<[1], [0], [0], [1], [0, 0, 1, 1], [], []>} : vector<64x16xf32>, vector<16x16xf32>, vector<64x16xf32> -> vector<64x16xf32>
    %267 = arith.addf %262, %266 : vector<64x16xf32>
    %c10_175 = arith.constant 10 : index
    %c0_176 = arith.constant 0 : index
    %268 = vector.load %arg26[%c10_175, %c0_176] : memref<82x16xf32, #tpu.memory_space<vmem>>, vector<64x16xf32>
    %269 = vector.broadcast %229 : vector<64x1xf32> to vector<64x16xf32>
    %270 = arith.mulf %268, %269 : vector<64x16xf32>
    %271 = vector.extract_strided_slice %235 {offsets = [1, 2, 0, 0], sizes = [1, 1, 16, 16], strides = [1, 1, 1, 1]} : vector<3x3x16x16xf32> to vector<1x1x16x16xf32>
    %272 = vector.shape_cast %271 : vector<1x1x16x16xf32> to vector<16x16xf32>
    %cst_177 = arith.constant dense<0.000000e+00> : vector<64x16xf32>
    %273 = tpu.matmul %270, %272, %cst_177 {dimension_numbers = #tpu.dot_dimension_numbers<[1], [0], [0], [1], [0, 0, 1, 1], [], []>} : vector<64x16xf32>, vector<16x16xf32>, vector<64x16xf32> -> vector<64x16xf32>
    %274 = arith.addf %267, %273 : vector<64x16xf32>
    %c16_178 = arith.constant 16 : index
    %c0_179 = arith.constant 0 : index
    %275 = vector.load %arg26[%c16_178, %c0_179] : memref<82x16xf32, #tpu.memory_space<vmem>>, vector<64x16xf32>
    %276 = vector.broadcast %228 : vector<64x1xf32> to vector<64x16xf32>
    %277 = arith.mulf %275, %276 : vector<64x16xf32>
    %278 = vector.extract_strided_slice %235 {offsets = [2, 0, 0, 0], sizes = [1, 1, 16, 16], strides = [1, 1, 1, 1]} : vector<3x3x16x16xf32> to vector<1x1x16x16xf32>
    %279 = vector.shape_cast %278 : vector<1x1x16x16xf32> to vector<16x16xf32>
    %cst_180 = arith.constant dense<0.000000e+00> : vector<64x16xf32>
    %280 = tpu.matmul %277, %279, %cst_180 {dimension_numbers = #tpu.dot_dimension_numbers<[1], [0], [0], [1], [0, 0, 1, 1], [], []>} : vector<64x16xf32>, vector<16x16xf32>, vector<64x16xf32> -> vector<64x16xf32>
    %281 = arith.addf %274, %280 : vector<64x16xf32>
    %c17_181 = arith.constant 17 : index
    %c0_182 = arith.constant 0 : index
    %282 = vector.load %arg26[%c17_181, %c0_182] : memref<82x16xf32, #tpu.memory_space<vmem>>, vector<64x16xf32>
    %283 = vector.extract_strided_slice %235 {offsets = [2, 1, 0, 0], sizes = [1, 1, 16, 16], strides = [1, 1, 1, 1]} : vector<3x3x16x16xf32> to vector<1x1x16x16xf32>
    %284 = vector.shape_cast %283 : vector<1x1x16x16xf32> to vector<16x16xf32>
    %cst_183 = arith.constant dense<0.000000e+00> : vector<64x16xf32>
    %285 = tpu.matmul %282, %284, %cst_183 {dimension_numbers = #tpu.dot_dimension_numbers<[1], [0], [0], [1], [0, 0, 1, 1], [], []>} : vector<64x16xf32>, vector<16x16xf32>, vector<64x16xf32> -> vector<64x16xf32>
    %286 = arith.addf %281, %285 : vector<64x16xf32>
    %c18_184 = arith.constant 18 : index
    %c0_185 = arith.constant 0 : index
    %287 = vector.load %arg26[%c18_184, %c0_185] : memref<82x16xf32, #tpu.memory_space<vmem>>, vector<64x16xf32>
    %288 = vector.broadcast %229 : vector<64x1xf32> to vector<64x16xf32>
    %289 = arith.mulf %287, %288 : vector<64x16xf32>
    %290 = vector.extract_strided_slice %235 {offsets = [2, 2, 0, 0], sizes = [1, 1, 16, 16], strides = [1, 1, 1, 1]} : vector<3x3x16x16xf32> to vector<1x1x16x16xf32>
    %291 = vector.shape_cast %290 : vector<1x1x16x16xf32> to vector<16x16xf32>
    %cst_186 = arith.constant dense<0.000000e+00> : vector<64x16xf32>
    %292 = tpu.matmul %289, %291, %cst_186 {dimension_numbers = #tpu.dot_dimension_numbers<[1], [0], [0], [1], [0, 0, 1, 1], [], []>} : vector<64x16xf32>, vector<16x16xf32>, vector<64x16xf32> -> vector<64x16xf32>
    %293 = arith.addf %286, %292 : vector<64x16xf32>
    %294 = vector.broadcast %230 : vector<1x16xf32> to vector<64x16xf32>
    %295 = arith.mulf %293, %294 : vector<64x16xf32>
    %296 = vector.broadcast %231 : vector<1x16xf32> to vector<64x16xf32>
    %297 = arith.addf %295, %296 : vector<64x16xf32>
    %cst_187 = arith.constant 0.000000e+00 : f32
    %298 = vector.broadcast %cst_187 : f32 to vector<64x16xf32>
    %299 = arith.maximumf %297, %298 : vector<64x16xf32>
    %c0_188 = arith.constant 0 : index
    %c0_189 = arith.constant 0 : index
    %300 = vector.load %arg19[%c0_188, %c0_189] : memref<16x64xf32, #tpu.memory_space<vmem>>, vector<16x64xf32>
    %cst_190 = arith.constant 0.000000e+00 : f32
    %301 = vector.broadcast %cst_190 : f32 to vector<72x16xf32>
    %c0_191 = arith.constant 0 : index
    %c0_192 = arith.constant 0 : index
    %302 = vector.load %arg27[%c0_191, %c0_192] : memref<72x16xf32, #tpu.memory_space<vmem>>, vector<72x16xf32>
    tpu.vector_store %arg27[%c0_191, %c0_192], %301 {strides = array<i32>} : memref<72x16xf32, #tpu.memory_space<vmem>>, vector<72x16xf32>,
    %c0_193 = arith.constant 0 : index
    %c0_194 = arith.constant 0 : index
    %303 = vector.load %arg27[%c0_193, %c0_194] : memref<72x16xf32, #tpu.memory_space<vmem>>, vector<64x16xf32>
    tpu.vector_store %arg27[%c0_193, %c0_194], %299 {strides = array<i32>} : memref<72x16xf32, #tpu.memory_space<vmem>>, vector<64x16xf32>,
    %c1_195 = arith.constant 1 : index
    %c0_196 = arith.constant 0 : index
    %304 = vector.load %arg27[%c1_195, %c0_196] : memref<72x16xf32, #tpu.memory_space<vmem>>, vector<64x16xf32>
    %305 = arith.maximumf %299, %304 : vector<64x16xf32>
    %c0_197 = arith.constant 0 : index
    %c0_198 = arith.constant 0 : index
    %306 = vector.load %arg27[%c0_197, %c0_198] : memref<72x16xf32, #tpu.memory_space<vmem>>, vector<64x16xf32>
    tpu.vector_store %arg27[%c0_197, %c0_198], %305 {strides = array<i32>} : memref<72x16xf32, #tpu.memory_space<vmem>>, vector<64x16xf32>,
    %c8_199 = arith.constant 8 : index
    %c0_200 = arith.constant 0 : index
    %307 = vector.load %arg27[%c8_199, %c0_200] : memref<72x16xf32, #tpu.memory_space<vmem>>, vector<64x16xf32>
    %308 = arith.maximumf %305, %307 : vector<64x16xf32>
    %cst_201 = arith.constant dense<0.000000e+00> : vector<16x16xf32>
    %309 = tpu.matmul %300, %308, %cst_201 {dimension_numbers = #tpu.dot_dimension_numbers<[1], [0], [0], [1], [0, 0, 1, 1], [], []>} : vector<16x64xf32>, vector<64x16xf32>, vector<16x16xf32> -> vector<16x16xf32>
    %c0_202 = arith.constant 0 : index
    %c0_203 = arith.constant 0 : index
    %310 = vector.load %arg20[%c0_202, %c0_203] : memref<49x16xf32, #tpu.memory_space<vmem>>, vector<49x16xf32>
    %cst_204 = arith.constant dense<0.000000e+00> : vector<49x16xf32>
    %311 = tpu.matmul %310, %309, %cst_204 {dimension_numbers = #tpu.dot_dimension_numbers<[1], [0], [0], [1], [0, 0, 1, 1], [], []>} : vector<49x16xf32>, vector<16x16xf32>, vector<49x16xf32> -> vector<49x16xf32>
    %c0_205 = arith.constant 0 : index
    %c0_206 = arith.constant 0 : index
    %c0_207 = arith.constant 0 : index
    %312 = vector.load %arg21[%c0_205, %c0_206, %c0_207] : memref<1x49x16xf32, #tpu.memory_space<vmem>>, vector<1x49x16xf32>
    %313 = vector.shape_cast %312 : vector<1x49x16xf32> to vector<49x16xf32>
    %314 = vector.shape_cast %311 : vector<49x16xf32> to vector<1x49x16xf32>
    tpu.vector_store %arg21[%c0_205, %c0_206, %c0_207], %314 {strides = array<i32>} : memref<1x49x16xf32, #tpu.memory_space<vmem>>, vector<1x49x16xf32>,
    return
  }
  func.func @transform_0(%arg0: i32) -> (i32, i32, i32) {
    %c0_i32 = arith.constant 0 : i32
    %c0_i32_0 = arith.constant 0 : i32
    %c0_i32_1 = arith.constant 0 : i32
    return %arg0, %c0_i32, %c0_i32_0 : i32, i32, i32
  }
  func.func @transform_1(%arg0: i32) -> (i32, i32, i32, i32) {
    %c0_i32 = arith.constant 0 : i32
    %c0_i32_0 = arith.constant 0 : i32
    %c0_i32_1 = arith.constant 0 : i32
    %c0_i32_2 = arith.constant 0 : i32
    %c0_i32_3 = arith.constant 0 : i32
    return %c0_i32, %c0_i32_0, %c0_i32_1, %c0_i32_2 : i32, i32, i32, i32
  }
  func.func @transform_2(%arg0: i32) -> (i32, i32) {
    %c0_i32 = arith.constant 0 : i32
    %c0_i32_0 = arith.constant 0 : i32
    %c0_i32_1 = arith.constant 0 : i32
    return %c0_i32, %c0_i32_0 : i32, i32
  }
  func.func @transform_3(%arg0: i32) -> (i32, i32) {
    %c0_i32 = arith.constant 0 : i32
    %c0_i32_0 = arith.constant 0 : i32
    %c0_i32_1 = arith.constant 0 : i32
    return %c0_i32, %c0_i32_0 : i32, i32
  }
  func.func @transform_4(%arg0: i32) -> (i32, i32, i32, i32) {
    %c0_i32 = arith.constant 0 : i32
    %c0_i32_0 = arith.constant 0 : i32
    %c0_i32_1 = arith.constant 0 : i32
    %c0_i32_2 = arith.constant 0 : i32
    %c0_i32_3 = arith.constant 0 : i32
    return %c0_i32, %c0_i32_0, %c0_i32_1, %c0_i32_2 : i32, i32, i32, i32
  }
  func.func @transform_5(%arg0: i32) -> (i32, i32) {
    %c0_i32 = arith.constant 0 : i32
    %c0_i32_0 = arith.constant 0 : i32
    %c0_i32_1 = arith.constant 0 : i32
    return %c0_i32, %c0_i32_0 : i32, i32
  }
  func.func @transform_6(%arg0: i32) -> (i32, i32) {
    %c0_i32 = arith.constant 0 : i32
    %c0_i32_0 = arith.constant 0 : i32
    %c0_i32_1 = arith.constant 0 : i32
    return %c0_i32, %c0_i32_0 : i32, i32
  }
  func.func @transform_7(%arg0: i32) -> (i32, i32, i32, i32) {
    %c0_i32 = arith.constant 0 : i32
    %c0_i32_0 = arith.constant 0 : i32
    %c0_i32_1 = arith.constant 0 : i32
    %c0_i32_2 = arith.constant 0 : i32
    %c0_i32_3 = arith.constant 0 : i32
    return %c0_i32, %c0_i32_0, %c0_i32_1, %c0_i32_2 : i32, i32, i32, i32
  }
  func.func @transform_8(%arg0: i32) -> (i32, i32) {
    %c0_i32 = arith.constant 0 : i32
    %c0_i32_0 = arith.constant 0 : i32
    %c0_i32_1 = arith.constant 0 : i32
    return %c0_i32, %c0_i32_0 : i32, i32
  }
  func.func @transform_9(%arg0: i32) -> (i32, i32) {
    %c0_i32 = arith.constant 0 : i32
    %c0_i32_0 = arith.constant 0 : i32
    %c0_i32_1 = arith.constant 0 : i32
    return %c0_i32, %c0_i32_0 : i32, i32
  }
  func.func @transform_10(%arg0: i32) -> (i32, i32, i32, i32) {
    %c0_i32 = arith.constant 0 : i32
    %c0_i32_0 = arith.constant 0 : i32
    %c0_i32_1 = arith.constant 0 : i32
    %c0_i32_2 = arith.constant 0 : i32
    %c0_i32_3 = arith.constant 0 : i32
    return %c0_i32, %c0_i32_0, %c0_i32_1, %c0_i32_2 : i32, i32, i32, i32
  }
  func.func @transform_11(%arg0: i32) -> (i32, i32) {
    %c0_i32 = arith.constant 0 : i32
    %c0_i32_0 = arith.constant 0 : i32
    %c0_i32_1 = arith.constant 0 : i32
    return %c0_i32, %c0_i32_0 : i32, i32
  }
  func.func @transform_12(%arg0: i32) -> (i32, i32) {
    %c0_i32 = arith.constant 0 : i32
    %c0_i32_0 = arith.constant 0 : i32
    %c0_i32_1 = arith.constant 0 : i32
    return %c0_i32, %c0_i32_0 : i32, i32
  }
  func.func @transform_13(%arg0: i32) -> (i32, i32) {
    %c0_i32 = arith.constant 0 : i32
    %c0_i32_0 = arith.constant 0 : i32
    %c0_i32_1 = arith.constant 0 : i32
    return %c0_i32, %c0_i32_0 : i32, i32
  }
  func.func @transform_14(%arg0: i32) -> (i32, i32) {
    %c0_i32 = arith.constant 0 : i32
    %c0_i32_0 = arith.constant 0 : i32
    %c0_i32_1 = arith.constant 0 : i32
    return %c0_i32, %c0_i32_0 : i32, i32
  }
  func.func @transform_15(%arg0: i32) -> (i32, i32) {
    %c0_i32 = arith.constant 0 : i32
    %c0_i32_0 = arith.constant 0 : i32
    %c0_i32_1 = arith.constant 0 : i32
    return %c0_i32, %c0_i32_0 : i32, i32
  }
  func.func @transform_16(%arg0: i32) -> (i32, i32) {
    %c0_i32 = arith.constant 0 : i32
    %c0_i32_0 = arith.constant 0 : i32
    %c0_i32_1 = arith.constant 0 : i32
    return %c0_i32, %c0_i32_0 : i32, i32
  }
  func.func @transform_17(%arg0: i32) -> (i32, i32) {
    %c0_i32 = arith.constant 0 : i32
    %c0_i32_0 = arith.constant 0 : i32
    %c0_i32_1 = arith.constant 0 : i32
    return %c0_i32, %c0_i32_0 : i32, i32
  }
  func.func @transform_18(%arg0: i32) -> (i32, i32) {
    %c0_i32 = arith.constant 0 : i32
    %c0_i32_0 = arith.constant 0 : i32
    %c0_i32_1 = arith.constant 0 : i32
    return %c0_i32, %c0_i32_0 : i32, i32
  }
  func.func @transform_19(%arg0: i32) -> (i32, i32) {
    %c0_i32 = arith.constant 0 : i32
    %c0_i32_0 = arith.constant 0 : i32
    %c0_i32_1 = arith.constant 0 : i32
    return %c0_i32, %c0_i32_0 : i32, i32
  }
  func.func @transform_20(%arg0: i32) -> (i32, i32, i32) {
    %c0_i32 = arith.constant 0 : i32
    %c0_i32_0 = arith.constant 0 : i32
    %c0_i32_1 = arith.constant 0 : i32
    return %arg0, %c0_i32, %c0_i32_0 : i32, i32, i32
  }
}

module attributes {stable_mosaic.version = 11 : i64} {
  func.func @_classifier_kernel(%arg0: memref<2x784xf32, #tpu.memory_space<vmem>>, %arg1: memref<784x32xf32, #tpu.memory_space<vmem>>, %arg2: memref<1x32xf32, #tpu.memory_space<vmem>>, %arg3: memref<32x32xf32, #tpu.memory_space<vmem>>, %arg4: memref<1x32xf32, #tpu.memory_space<vmem>>, %arg5: memref<32x10xf32, #tpu.memory_space<vmem>>, %arg6: memref<1x10xf32, #tpu.memory_space<vmem>>, %arg7: memref<2x10xf32, #tpu.memory_space<vmem>>) attributes {dimension_semantics = [], scalar_prefetch = 0 : i64, scratch_operands = 0 : i64, tpu.core_type = #tpu.core_type<tc>} {
    %c0 = arith.constant 0 : index
    %c0_0 = arith.constant 0 : index
    %0 = vector.load %arg0[%c0, %c0_0] : memref<2x784xf32, #tpu.memory_space<vmem>>, vector<2x784xf32>
    %c0_1 = arith.constant 0 : index
    %c0_2 = arith.constant 0 : index
    %1 = vector.load %arg1[%c0_1, %c0_2] : memref<784x32xf32, #tpu.memory_space<vmem>>, vector<784x32xf32>
    %cst = arith.constant dense<0.000000e+00> : vector<2x32xf32>
    %2 = tpu.matmul %0, %1, %cst {dimension_numbers = #tpu.dot_dimension_numbers<[1], [0], [0], [1], [0, 0, 1, 1], [], []>} : vector<2x784xf32>, vector<784x32xf32>, vector<2x32xf32> -> vector<2x32xf32>
    %c0_3 = arith.constant 0 : index
    %c0_4 = arith.constant 0 : index
    %3 = vector.load %arg2[%c0_3, %c0_4] : memref<1x32xf32, #tpu.memory_space<vmem>>, vector<1x32xf32>
    %4 = vector.broadcast %3 : vector<1x32xf32> to vector<2x32xf32>
    %5 = arith.addf %2, %4 : vector<2x32xf32>
    %cst_5 = arith.constant 0.000000e+00 : f32
    %6 = vector.broadcast %cst_5 : f32 to vector<2x32xf32>
    %7 = arith.maximumf %5, %6 : vector<2x32xf32>
    %c0_6 = arith.constant 0 : index
    %c0_7 = arith.constant 0 : index
    %8 = vector.load %arg3[%c0_6, %c0_7] : memref<32x32xf32, #tpu.memory_space<vmem>>, vector<32x32xf32>
    %cst_8 = arith.constant dense<0.000000e+00> : vector<2x32xf32>
    %9 = tpu.matmul %7, %8, %cst_8 {dimension_numbers = #tpu.dot_dimension_numbers<[1], [0], [0], [1], [0, 0, 1, 1], [], []>} : vector<2x32xf32>, vector<32x32xf32>, vector<2x32xf32> -> vector<2x32xf32>
    %c0_9 = arith.constant 0 : index
    %c0_10 = arith.constant 0 : index
    %10 = vector.load %arg4[%c0_9, %c0_10] : memref<1x32xf32, #tpu.memory_space<vmem>>, vector<1x32xf32>
    %11 = vector.broadcast %10 : vector<1x32xf32> to vector<2x32xf32>
    %12 = arith.addf %9, %11 : vector<2x32xf32>
    %cst_11 = arith.constant 0.000000e+00 : f32
    %13 = vector.broadcast %cst_11 : f32 to vector<2x32xf32>
    %14 = arith.maximumf %12, %13 : vector<2x32xf32>
    %c0_12 = arith.constant 0 : index
    %c0_13 = arith.constant 0 : index
    %15 = vector.load %arg5[%c0_12, %c0_13] : memref<32x10xf32, #tpu.memory_space<vmem>>, vector<32x10xf32>
    %cst_14 = arith.constant dense<0.000000e+00> : vector<2x10xf32>
    %16 = tpu.matmul %14, %15, %cst_14 {dimension_numbers = #tpu.dot_dimension_numbers<[1], [0], [0], [1], [0, 0, 1, 1], [], []>} : vector<2x32xf32>, vector<32x10xf32>, vector<2x10xf32> -> vector<2x10xf32>
    %c0_15 = arith.constant 0 : index
    %c0_16 = arith.constant 0 : index
    %17 = vector.load %arg6[%c0_15, %c0_16] : memref<1x10xf32, #tpu.memory_space<vmem>>, vector<1x10xf32>
    %18 = vector.broadcast %17 : vector<1x10xf32> to vector<2x10xf32>
    %19 = arith.addf %16, %18 : vector<2x10xf32>
    %c0_17 = arith.constant 0 : index
    %c0_18 = arith.constant 0 : index
    %20 = vector.load %arg7[%c0_17, %c0_18] : memref<2x10xf32, #tpu.memory_space<vmem>>, vector<2x10xf32>
    tpu.vector_store %arg7[%c0_17, %c0_18], %19 {strides = array<i32>} : memref<2x10xf32, #tpu.memory_space<vmem>>, vector<2x10xf32>,
    return
  }
}

</mosaic_0001>

<bundles_post_ra>
// kernel: _lambda_.3
= control target key start
LH: loop header
LB: loop body
LE: loop exit
PB: predicated region body
PF: predicated region fallthrough
CT: control target
= control target key end

     0   :  { %v826_v27 = vmov 1983009808   ;;  %v140_v29 = vlaneseq  ;;  %s1235_s0 = inlined_call_operand.vmem [shape: f32[2,784], index: 0, kind: input, shape index: {}]   ;;  %s1236_s1 = inlined_call_operand.vmem [shape: f32[784,32], index: 1, kind: input, shape index: {}]   ;;  %s1237_s2 = inlined_call_operand.vmem [shape: f32[1,32], index: 2, kind: input, shape index: {}]   ;;  %s1238_s3 = inlined_call_operand.vmem [shape: f32[32,32], index: 3, kind: input, shape index: {}]   ;;  %s1239_s4 = inlined_call_operand.vmem [shape: f32[1,32], index: 4, kind: input, shape index: {}]   ;;  %s1240_s5 = inlined_call_operand.vmem [shape: f32[32,10], index: 5, kind: input, shape index: {}]   ;;  %s1241_s6 = inlined_call_operand.vmem [shape: f32[1,10], index: 6, kind: input, shape index: {}]   ;;  %s1242_s7 = inlined_call_operand.hbm [shape: f32[2,10], index: 7, kind: output, shape index: {}]  }
   0x1   :  { %v60_v0 = vld [vmem:[%s1236_s1 + $0xf8] sm:$0xff]  ;;  %v59_v2 = vld [vmem:[%s1236_s1 + $0xf0] sm:$0xff]  ;;  %v58_v6 = vld [vmem:[%s1236_s1 + $0xe8] sm:$0xff]  ;;  %v138_v28 = vunpack.c.l.s4 %v826_v27 }
   0x2   :  { %v44_v1 = vld [vmem:[%s1236_s1 + $0x78] sm:$0xff]  ;;  %651 = vmatprep.subr.mxu0 %v60_v0  ;;  %v43_v4 = vld [vmem:[%s1236_s1 + $0x70] sm:$0xff]  ;;  %v42_v8 = vld [vmem:[%s1236_s1 + $0x68] sm:$0xff]  ;;  %v141_v39 = vshrl.u32 %v140_v29, 7 }
   0x3   :  { %v92_v3 = vld [vmem:[%s1236_s1 + $0x1f8] sm:$0xff]  ;;  %652 = vmatpush3.msra.mxu0 %v44_v1  ;;  %v91_v7 = vld [vmem:[%s1236_s1 + $0x1f0] sm:$0xff]  ;;  %v90_v10 = vld [vmem:[%s1236_s1 + $0x1e8] sm:$0xff]  ;;  %v139_v38 = vunpack.c.0.s8 %v138_v28 }
   0x4   :  { %v76_v5 = vld [vmem:[%s1236_s1 + $0x178] sm:$0xff]  ;;  %686 = vmatprep.subr.mxu1 %v92_v3  ;;  %653 = vmatprep.subr.mxu0 %v59_v2  ;;  %v75_v9 = vld [vmem:[%s1236_s1 + $0x170] sm:$0xff]  ;;  %v57_v11 = vld [vmem:[%s1236_s1 + $0xe0] sm:$0xff] }
   0x5   :  { %687 = vmatpush3.msra.mxu1 %v76_v5  ;;  %654 = vmatpush3.msra.mxu0 %v43_v4  ;;  %v74_v12 = vld [vmem:[%s1236_s1 + $0x168] sm:$0xff]  ;;  %v41_v13 = vld [vmem:[%s1236_s1 + $0x60] sm:$0xff]  ;;  %v56_v15 = vld [vmem:[%s1236_s1 + $0xd8] sm:$0xff]  ;;  %v999_v48 = vsub.s32 %v139_v38, %v141_v39 }
   0x6   :  { %688 = vmatprep.subr.mxu1 %v91_v7  ;;  %655 = vmatprep.subr.mxu0 %v58_v6  ;;  %v89_v14 = vld [vmem:[%s1236_s1 + $0x1e0] sm:$0xff]  ;;  %v40_v17 = vld [vmem:[%s1236_s1 + $0x58] sm:$0xff]  ;;  %v55_v19 = vld [vmem:[%s1236_s1 + $0xd0] sm:$0xff] }
   0x7   :  { %689 = vmatpush3.msra.mxu1 %v75_v9  ;;  %656 = vmatpush3.msra.mxu0 %v42_v8  ;;  %v73_v16 = vld [vmem:[%s1236_s1 + $0x160] sm:$0xff]  ;;  %v88_v18 = vld [vmem:[%s1236_s1 + $0x1d8] sm:$0xff]  ;;  %v39_v21 = vld [vmem:[%s1236_s1 + $0x50] sm:$0xff] }
   0x8   :  { %690 = vmatprep.subr.mxu1 %v90_v10  ;;  %657 = vmatprep.subr.mxu0 %v57_v11  ;;  %v72_v20 = vld [vmem:[%s1236_s1 + $0x158] sm:$0xff]  ;;  %v87_v22 = vld [vmem:[%s1236_s1 + $0x1d0] sm:$0xff]  ;;  %v54_v23 = vld [vmem:[%s1236_s1 + $0xc8] sm:$0xff] }
   0x9   :  { %691 = vmatpush3.msra.mxu1 %v74_v12  ;;  %658 = vmatpush3.msra.mxu0 %v41_v13  ;;  %v71_v24 = vld [vmem:[%s1236_s1 + $0x150] sm:$0xff]  ;;  %v38_v25 = vld [vmem:[%s1236_s1 + $0x48] sm:$0xff]  ;;  %v53_v30 = vld [vmem:[%s1236_s1 + $0xc0] sm:$0xff] }
   0xa   :  { %692 = vmatprep.subr.mxu1 %v89_v14  ;;  %659 = vmatprep.subr.mxu0 %v56_v15  ;;  %v86_v26 = vld [vmem:[%s1236_s1 + $0x1c8] sm:$0xff]  ;;  %v37_v32 = vld [vmem:[%s1236_s1 + $0x40] sm:$0xff]  ;;  %v52_v34 = vld [vmem:[%s1236_s1 + $0xb8] sm:$0xff] }
   0xb   :  { %693 = vmatpush3.msra.mxu1 %v73_v16  ;;  %660 = vmatpush3.msra.mxu0 %v40_v17  ;;  %v70_v31 = vld [vmem:[%s1236_s1 + $0x148] sm:$0xff]  ;;  %v85_v33 = vld [vmem:[%s1236_s1 + $0x1c0] sm:$0xff]  ;;  %v36_v36 = vld [vmem:[%s1236_s1 + $0x38] sm:$0xff] }
   0xc   :  { %694 = vmatprep.subr.mxu1 %v88_v18  ;;  %661 = vmatprep.subr.mxu0 %v55_v19  ;;  %v69_v35 = vld [vmem:[%s1236_s1 + $0x140] sm:$0xff]  ;;  %v84_v37 = vld [vmem:[%s1236_s1 + $0x1b8] sm:$0xff]  ;;  %v51_v40 = vld [vmem:[%s1236_s1 + $0xb0] sm:$0xff] }
   0xd   :  { %695 = vmatpush3.msra.mxu1 %v72_v20  ;;  %662 = vmatpush3.msra.mxu0 %v39_v21  ;;  %v68_v41 = vld [vmem:[%s1236_s1 + $0x138] sm:$0xff]  ;;  %v35_v42 = vld [vmem:[%s1236_s1 + $0x30] sm:$0xff]  ;;  %v50_v44 = vld [vmem:[%s1236_s1 + $0xa8] sm:$0xff] }
   0xe   :  { %696 = vmatprep.subr.mxu1 %v87_v22  ;;  %663 = vmatprep.subr.mxu0 %v54_v23  ;;  %v83_v43 = vld [vmem:[%s1236_s1 + $0x1b0] sm:$0xff]  ;;  %v34_v46 = vld [vmem:[%s1236_s1 + $0x28] sm:$0xff]  ;;  %v49_v49 = vld [vmem:[%s1236_s1 + $0xa0] sm:$0xff] }
   0xf   :  { %697 = vmatpush3.msra.mxu1 %v71_v24  ;;  %664 = vmatpush3.msra.mxu0 %v38_v25  ;;  %v67_v45 = vld [vmem:[%s1236_s1 + $0x130] sm:$0xff]  ;;  %v82_v47 = vld [vmem:[%s1236_s1 + $0x1a8] sm:$0xff]  ;;  %v27_v51 = vld [vmem:[%s1235_s0] sm:$0xff] }
  0x10   :  { %698 = vmatprep.subr.mxu1 %v86_v26  ;;  %665 = vmatprep.subr.mxu0 %v53_v30  ;;  %v66_v50 = vld [vmem:[%s1236_s1 + $0x128] sm:$0xff]  ;;  %v33_v52 = vld [vmem:[%s1236_s1 + $0x20] sm:$0xff]  ;;  %v48_v54 = vld [vmem:[%s1236_s1 + $0x98] sm:$0xff]  ;;  %v143_v58 = vrot.slane %v27_v51, %v999_v48  ;;  %v136_v59 = vcombine.high %v27_v51, %v27_v51 }
  0x11   :  { %699 = vmatpush3.msra.mxu1 %v70_v31  ;;  %666 = vmatpush3.msra.mxu0 %v37_v32  ;;  %v81_v53 = vld [vmem:[%s1236_s1 + $0x1a0] sm:$0xff]  ;;  %v32_v56 = vld [vmem:[%s1236_s1 + $0x18] sm:$0xff]  ;;  %v47_v60 = vld [vmem:[%s1236_s1 + $0x90] sm:$0xff] }
  0x12   :  { %700 = vmatprep.subr.mxu1 %v85_v33  ;;  %667 = vmatprep.subr.mxu0 %v52_v34  ;;  %v65_v55 = vld [vmem:[%s1236_s1 + $0x120] sm:$0xff]  ;;  %v80_v57 = vld [vmem:[%s1236_s1 + $0x198] sm:$0xff]  ;;  %v31_v62 = vld [vmem:[%s1236_s1 + $0x10] sm:$0xff]  ;;  %v151_v4 = vcombine.high %v143_v58, %v143_v58  ;;  %v150_v5 = vrot.slane %v136_v59, %v999_v48 }
  0x13   :  { %701 = vmatpush3.msra.mxu1 %v69_v35  ;;  %668 = vmatpush3.msra.mxu0 %v36_v36  ;;  %v64_v61 = vld [vmem:[%s1236_s1 + $0x118] sm:$0xff]  ;;  %v79_v63 = vld [vmem:[%s1236_s1 + $0x190] sm:$0xff]  ;;  %v46_v0 = vld [vmem:[%s1236_s1 + $0x88] sm:$0xff] }
  0x14   :  { %702 = vmatprep.subr.mxu1 %v84_v37  ;;  %669 = vmatprep.subr.mxu0 %v51_v40  ;;  %v63_v1 = vld [vmem:[%s1236_s1 + $0x110] sm:$0xff]  ;;  %v30_v2 = vld [vmem:[%s1236_s1 + $0x8] sm:$0xff]  ;;  %v45_v6 = vld [vmem:[%s1236_s1 + $0x80] sm:$0xff]  ;;  %v152_v12 = vcombine.high %v150_v5, %v150_v5 }
  0x15   :  { %703 = vmatpush3.msra.mxu1 %v68_v41  ;;  %670 = vmatpush3.msra.mxu0 %v35_v42  ;;  %v78_v3 = vld [vmem:[%s1236_s1 + $0x188] sm:$0xff]  ;;  %v29_v7 = vld [vmem:[%s1236_s1] sm:$0xff]  ;;  %v124_v10 = vld [vmem:[%s1236_s1 + $0x2f8] sm:$0xff] }
  0x16   :  { %704 = vmatprep.subr.mxu1 %v83_v43  ;;  %671 = vmatprep.subr.mxu0 %v50_v44  ;;  %v62_v8 = vld [vmem:[%s1236_s1 + $0x108] sm:$0xff]  ;;  %v77_v9 = vld [vmem:[%s1236_s1 + $0x180] sm:$0xff]  ;;  %v108_v13 = vld [vmem:[%s1236_s1 + $0x278] sm:$0xff] }
  0x17   :  { %705 = vmatpush3.msra.mxu1 %v67_v45  ;;  %672 = vmatpush3.msra.mxu0 %v34_v46  ;;  %v61_v11 = vld [vmem:[%s1236_s1 + $0x100] sm:$0xff]  ;;  %v28_v14 = vld [vmem:[%s1235_s0 + $0x8] sm:$0x3f]  ;;  %v123_v15 = vld [vmem:[%s1236_s1 + $0x2f0] sm:$0xff] }
  0x18   :  { %706 = vmatprep.subr.mxu1 %v82_v47  ;;  %673 = vmatprep.subr.mxu0 %v49_v49  ;;  %v1082_v16 = vrot.slane %v28_v14, %v999_v48 }
  0x19   :  { %707 = vmatpush3.msra.mxu1 %v66_v50  ;;  %674 = vmatpush3.msra.mxu0 %v33_v52 }
  0x1a   :  { %708 = vmatprep.subr.mxu1 %v81_v53  ;;  %675 = vmatprep.subr.mxu0 %v48_v54 }
  0x1b   :  { %709 = vmatpush3.msra.mxu1 %v65_v55  ;;  %676 = vmatpush3.msra.mxu0 %v32_v56 }
  0x1c   :  { %710 = vmatprep.subr.mxu1 %v80_v57  ;;  %677 = vmatprep.subr.mxu0 %v47_v60 }
  0x1d   :  { %711 = vmatpush3.msra.mxu1 %v64_v61  ;;  %678 = vmatpush3.msra.mxu0 %v31_v62 }
  0x1e   :  { %712 = vmatprep.subr.mxu1 %v79_v63  ;;  %679 = vmatprep.subr.mxu0 %v46_v0 }
  0x1f   :  { %713 = vmatpush3.msra.mxu1 %v63_v1  ;;  %680 = vmatpush3.msra.mxu0 %v30_v2 }
  0x20   :  { %714 = vmatprep.subr.mxu1 %v78_v3  ;;  %681 = vmatprep.subr.mxu0 %v45_v6 }
  0x21   :  { %242 = vmatprep.mubr.f32.mxu0 %v151_v4  ;;  %682 = vmatpush3.msra.mxu0 %v29_v7 }
  0x22   :  { %715 = vmatpush3.msra.mxu1 %v62_v8  ;;  %243 = vmatmul.mubr.f32.vlgmr.msra.gmra.mxu0 %v143_v58 }
  0x23   :  { %716 = vmatprep.subr.mxu1 %v77_v9 }
  0x24   :  { %12 = vsyncpa [#allocation3], 0  ;;  %721 = vmatprep.subr.mxu0 %v124_v10  ;;  %717 = vmatpush3.msra.mxu1 %v61_v11  ;;  %v107_v17 = vld [vmem:[%s1236_s1 + $0x270] sm:$0xff]  ;;  %v122_v18 = vld [vmem:[%s1236_s1 + $0x2e8] sm:$0xff]  ;;  %v153_v19 = vcombine.high %v28_v14, %v28_v14  ;;  %v168_v20 = vcombine.high %v1082_v16, %v1082_v16  ;;  %v827_v25 = vmov 0.0   ;;  %vm175_vm0 = vcmask 130048  }
  0x25   :  { %312 = vmatprep.mubr.f32.mxu1 %v152_v12  ;;  %722 = vmatpush3.msra.mxu0 %v108_v13  ;;  %v106_v21 = vld [vmem:[%s1236_s1 + $0x268] sm:$0xff]  ;;  %v121_v23 = vld [vmem:[%s1236_s1 + $0x2e0] sm:$0xff]  ;;  %v120_v27 = vld [vmem:[%s1236_s1 + $0x2d8] sm:$0xff]  ;;  %vm828_vm1 = vmmov 0   ;;  %vm470_vm2 = vcmask 261120   ;;  %s829_s9 = smov [#allocation2]  }
  0x26   :  { %313 = vmatmul.mubr.f32.vlgmr.msra.gmra.mxu1 %v150_v5  ;;  %723 = vmatprep.subr.mxu0 %v123_v15  ;;  %v126_v22 = vld [vmem:[%s1236_s1 + $0x308] sm:$0xff]  ;;  %v105_v24 = vld [vmem:[%s1236_s1 + $0x260] sm:$0xff]  ;;  %v167_v28 = vrot.slane %v153_v19, %v999_v48  ;;  %v104_v29 = vld [vmem:[%s1236_s1 + $0x258] sm:$0xff]  ;;  %s637_s10 = sshll.u32 %s829_s9, 4  ;;  %vm629_vm3 = vcmask 74752   ;;  %s638_s10 = int_to_ptr.vmem [resolvable:$true] %s637_s10 }
  0x27   :  { %724 = vmatpush3.msra.mxu0 %v107_v17  ;;  %382 = vmatprep.mubr.f32.mxu0 %v168_v20  ;;  %v125_v26 = vld [vmem:[%s1236_s1 + $0x300] sm:$0xff]  ;;  %v119_v30 = vld [vmem:[%s1236_s1 + $0x2d0] sm:$0xff]  ;;  %v118_v32 = vld [vmem:[%s1236_s1 + $0x2c8] sm:$0xff]  ;;  %p809_p1 = scmp.lt.s32.totalorder %s638_s10, %s638_s10 }
  0x28   :  { %725 = vmatprep.subr.mxu0 %v122_v18  ;;  %769 = vmatprep.subr.mxu1 %v827_v25  ;;  %v103_v31 = vld [vmem:[%s1236_s1 + $0x250] sm:$0xff]  ;;  %v102_v33 = vld [vmem:[%s1236_s1 + $0x248] sm:$0xff]  ;;  %v117_v34 = vld [vmem:[%s1236_s1 + $0x2c0] sm:$0xff] }
  0x29   :  { %726 = vmatpush3.msra.mxu0 %v106_v21  ;;  %770 = vmatpush3.msra.mxu1 %v126_v22  ;;  %v101_v35 = vld [vmem:[%s1236_s1 + $0x240] sm:$0xff]  ;;  %v116_v36 = vld [vmem:[%s1236_s1 + $0x2b8] sm:$0xff]  ;;  %v115_v38 = vld [vmem:[%s1236_s1 + $0x2b0] sm:$0xff] }
  0x2a   :  { %727 = vmatprep.subr.mxu0 %v121_v23  ;;  %771 = vmatprep.subr.mxu1 %v827_v25  ;;  %v100_v37 = vld [vmem:[%s1236_s1 + $0x238] sm:$0xff]  ;;  %v99_v39 = vld [vmem:[%s1236_s1 + $0x230] sm:$0xff]  ;;  %v114_v40 = vld [vmem:[%s1236_s1 + $0x2a8] sm:$0xff] }
  0x2b   :  { %728 = vmatpush3.msra.mxu0 %v105_v24  ;;  %772 = vmatpush3.msra.mxu1 %v125_v26  ;;  %v98_v41 = vld [vmem:[%s1236_s1 + $0x228] sm:$0xff]  ;;  %v113_v42 = vld [vmem:[%s1236_s1 + $0x2a0] sm:$0xff]  ;;  %v112_v44 = vld [vmem:[%s1236_s1 + $0x298] sm:$0xff] }
  0x2c   :  { %729 = vmatprep.subr.mxu0 %v120_v27  ;;  %773 = vmatprep.mubr.msk.f32.mxu1 %vm828_vm1, %v827_v25  ;;  %v97_v43 = vld [vmem:[%s1236_s1 + $0x220] sm:$0xff]  ;;  %v96_v45 = vld [vmem:[%s1236_s1 + $0x218] sm:$0xff]  ;;  %v111_v46 = vld [vmem:[%s1236_s1 + $0x290] sm:$0xff] }
  0x2d   :  { %730 = vmatpush3.msra.mxu0 %v104_v29  ;;  %774 = vmatmul.mubr.msk.f32.vlgmr.msra.gmra.mxu1 %vm175_vm0, %v167_v28  ;;  %v95_v47 = vld [vmem:[%s1236_s1 + $0x210] sm:$0xff]  ;;  %v110_v48 = vld [vmem:[%s1236_s1 + $0x288] sm:$0xff]  ;;  %v109_v50 = vld [vmem:[%s1236_s1 + $0x280] sm:$0xff] }
  0x2e   :  { %731 = vmatprep.subr.mxu0 %v119_v30  ;;  %776 = vmatprep.subr.mxu1 %v827_v25  ;;  %v94_v49 = vld [vmem:[%s1236_s1 + $0x208] sm:$0xff]  ;;  %v93_v51 = vld [vmem:[%s1236_s1 + $0x200] sm:$0xff]  ;;  %v462_v52 = vld [vmem:[%s1238_s3 + $0x18] sm:$0xff] }
  0x2f   :  { %732 = vmatpush3.msra.mxu0 %v103_v31  ;;  %784 = vmatprep.mubr.msk.f32.mxu1 %vm828_vm1, %v827_v25  ;;  %v461_v53 = vld [vmem:[%s1238_s3 + $0x10] sm:$0xff]  ;;  %v460_v54 = vld [vmem:[%s1238_s3 + $0x8] sm:$0xff]  ;;  %v459_v55 = vld [vmem:[%s1238_s3] sm:$0xff] }
  0x30   :  { %733 = vmatprep.subr.mxu0 %v118_v32  ;;  %777 = vmatpush3.msra.mxu1 %v462_v52  ;;  %v645_v63 = vld [vmem:[%s1237_s2] ss:$0 sm:$0xff]  ;;  %v548_v9 = vld [vmem:[%s1240_s5 + $0x18] sm:$0xff]  ;;  %v547_v10 = vld [vmem:[%s1240_s5 + $0x10] sm:$0xff] }
  0x31   :  { %734 = vmatpush3.msra.mxu0 %v102_v33  ;;  %778 = vmatprep.subr.mxu1 %v827_v25  ;;  %v546_v11 = vld [vmem:[%s1240_s5 + $0x8] sm:$0xff]  ;;  %v545_v12 = vld [vmem:[%s1240_s5] sm:$0xff]  ;;  %s804_s5 = scalar_lea.vmem %s638_s10, 32 }
  0x32   :  { %735 = vmatprep.subr.mxu0 %v117_v34  ;;  %779 = vmatpush3.msra.mxu1 %v461_v53  ;;  %v647_v13 = vld [vmem:[%s1239_s4] ss:$0 sm:$0xff]  ;;  %p805_p0 = scmp.ne.s32.totalorder %s638_s10, %s804_s5  ;;  %p810_p2 = scmp.lt.s32.totalorder %s804_s5, %s804_s5 }
  0x33   :  { %736 = vmatpush3.msra.mxu0 %v101_v35  ;;  %780 = vmatprep.subr.mxu1 %v827_v25  ;;  %v649_v18 = vld [vmem:[%s1241_s6] ss:$0 sm:$0xff] }
  0x34   :  { %737 = vmatprep.subr.mxu0 %v116_v36  ;;  %781 = vmatpush3.msra.mxu1 %v460_v54  ;;  %p811_p3 = por %p810_p2, %p809_p1 }
  0x35   :  { %738 = vmatpush3.msra.mxu0 %v100_v37  ;;  %782 = vmatprep.subr.mxu1 %v827_v25 }
  0x36   :  { %739 = vmatprep.subr.mxu0 %v115_v38  ;;  %783 = vmatpush3.msra.mxu1 %v459_v55  ;;  %p812_p4 = pnand %p811_p3, %p805_p0 }
  0x37   :  { %740 = vmatpush3.msra.mxu0 %v99_v39  ;;  %787 = vmatprep.subr.mxu1 %v827_v25 }
  0x38   :  { %741 = vmatprep.subr.mxu0 %v114_v40 }
  0x39   :  { %742 = vmatpush3.msra.mxu0 %v98_v41 }
  0x3a   :  { %743 = vmatprep.subr.mxu0 %v113_v42 }
  0x3b   :  { %744 = vmatpush3.msra.mxu0 %v97_v43 }
  0x3c   :  { %745 = vmatprep.subr.mxu0 %v112_v44 }
  0x3d   :  { %746 = vmatpush3.msra.mxu0 %v96_v45 }
  0x3e   :  { %747 = vmatprep.subr.mxu0 %v111_v46 }
  0x3f   :  { %748 = vmatpush3.msra.mxu0 %v95_v47 }
  0x40   :  { %749 = vmatprep.subr.mxu0 %v110_v48 }
  0x41   :  { %750 = vmatpush3.msra.mxu0 %v94_v49 }
  0x42   :  { %751 = vmatprep.subr.mxu0 %v109_v50 }
  0x43   :  { %752 = vmatpush3.msra.mxu0 %v93_v51 }
  0x44   :  { %383 = vmatmul.mubr.f32.vlgmr.msra.gmra.mxu0 %v1082_v16 }
  0xe2   :  { %v683_v60 = vpop.f32.mrf.mxu0 }
  0xe4   :  { %v684_v61 = vpop.f32.mrf.mxu0 }
  0xe5   :  { %v685_v62 = vadd.f32 %v684_v61, %v683_v60 }
  0xe6   :  { %v718_v56 = vpop.f32.mrf.mxu1 }
  0xe7   :  { %v245_v0 = vadd.f32 %v685_v62, %v645_v63 }
  0xe8   :  { %v719_v57 = vpop.f32.mrf.mxu1 }
  0xe9   :  { %v720_v1 = vadd.f32 %v719_v57, %v718_v56 }
  0xeb   :  { %v315_v4 = vadd.f32 %v720_v1, %v245_v0 }
  0xed   :  { %v454_v58 = vpop.f32.mrf.mxu1 }
  0xef   :  { %v775_v59 = vpop.f32.mrf.mxu1 }
 0x104   :  { %v753_v2 = vpop.f32.mrf.mxu0 }
 0x106   :  { %v754_v3 = vpop.f32.mrf.mxu0 }
 0x107   :  { %v755_v5 = vadd.f32 %v754_v3, %v753_v2 }
 0x109   :  { %v385_v6 = vadd.f32 %v755_v5, %v315_v4 }
 0x10b   :  { %v455_v7 = vadd.f32 %v454_v58, %v385_v6 }
 0x10d   :  { %v458_v8 = vmax.f32 %v455_v7, 0.0 }
 0x10f   :  { %785 = vmatmul.mubr.msk.f32.vlgmr.msra.gmra.mxu1 %vm470_vm2, %v458_v8 }
 0x110   :  { %788 = vmatpush3.msra.mxu1 %v548_v9  ;;  %795 = vmatprep.mubr.msk.f32.mxu1 %vm828_vm1, %v827_v25 }
 0x111   :  { %789 = vmatprep.subr.mxu1 %v827_v25 }
 0x112   :  { %790 = vmatpush3.msra.mxu1 %v547_v10 }
 0x113   :  { %791 = vmatprep.subr.mxu1 %v827_v25 }
 0x114   :  { %792 = vmatpush3.msra.mxu1 %v546_v11 }
 0x115   :  { %793 = vmatprep.subr.mxu1 %v827_v25 }
 0x116   :  { %794 = vmatpush3.msra.mxu1 %v545_v12 }
 0x1cf   :  { %v540_v14 = vpop.f32.mrf.mxu1 }
 0x1d0   :  { %v541_v15 = vadd.f32 %v647_v13, %v540_v14 }
 0x1d1   :  { %v786_v16 = vpop.f32.mrf.mxu1 }
 0x1d2   :  { %v544_v17 = vmax.f32 %v541_v15, 0.0 }
 0x1d4   :  { %796 = vmatmul.mubr.msk.f32.vlgmr.msra.gmra.mxu1 %vm470_vm2, %v544_v17 }
 0x294   :  { %v625_v19 = vpop.f32.mrf.mxu1 }
 0x295   :  { %v626_v20 = vadd.f32 %v649_v18, %v625_v19 }
 0x296   :  { %v797_v21 = vpop.f32.mrf.mxu1 }
 0x297   :  { %630 = vst.msk [vmem:[#allocation2] sm:$0x3] %vm629_vm3, %v626_v20 }
 0x298   :  { %815 = shalt.err (!%p812_p4)
}
 0x299   :  { %640 = dma.vmem_to_hbm [thread:$0]  %s638_s10, 32, %s1242_s7, [#allocation3]  }
 0x29a   :  { %824 = dma.done.wait [#allocation3], 32  }
 0x29b   :  { %825 = vsyncadd [#allocation3], 4294967264 }
 0x29c   :  { %644 = vsyncpa [#allocation3], 1 }

// kernel: _lambda_.2
= control target key start
LH: loop header
LB: loop body
LE: loop exit
PB: predicated region body
PF: predicated region fallthrough
CT: control target
= control target key end

     0   :  { %s21282_s0 = inlined_call_operand.vmem [shape: f32[2,256,4], index: 0, kind: input, shape index: {}]   ;;  %s21283_s1 = inlined_call_operand.vmem [shape: f32[3,3,4,8], index: 1, kind: input, shape index: {}]   ;;  %s21284_s2 = inlined_call_operand.vmem [shape: f32[1,8], index: 2, kind: input, shape index: {}]   ;;  %s21285_s3 = inlined_call_operand.vmem [shape: f32[1,8], index: 3, kind: input, shape index: {}]   ;;  %s21286_s4 = inlined_call_operand.vmem [shape: f32[3,3,8,8], index: 4, kind: input, shape index: {}]   ;;  %s21287_s5 = inlined_call_operand.vmem [shape: f32[1,8], index: 5, kind: input, shape index: {}]   ;;  %s21288_s6 = inlined_call_operand.vmem [shape: f32[1,8], index: 6, kind: input, shape index: {}]   ;;  %s21289_s7 = inlined_call_operand.vmem [shape: f32[3,3,8,16], index: 7, kind: input, shape index: {}]   ;;  %s21290_s8 = inlined_call_operand.vmem [shape: f32[1,16], index: 8, kind: input, shape index: {}]   ;;  %s21291_s9 = inlined_call_operand.vmem [shape: f32[1,16], index: 9, kind: input, shape index: {}]   ;;  %s21292_s10 = inlined_call_operand.vmem [shape: f32[3,3,16,16], index: 10, kind: input, shape index: {}]   ;;  %s21293_s11 = inlined_call_operand.vmem [shape: f32[1,16], index: 11, kind: input, shape index: {}]   ;;  %s21294_s12 = inlined_call_operand.vmem [shape: f32[1,16], index: 12, kind: input, shape index: {}]   ;;  %s21295_s13 = inlined_call_operand.vmem [shape: f32[256,1], index: 13, kind: input, shape index: {}]   ;;  %s21296_s14 = inlined_call_operand.vmem [shape: f32[256,1], index: 14, kind: input, shape index: {}]   ;;  %s21297_s15 = inlined_call_operand.vmem [shape: f32[64,256], index: 15, kind: input, shape index: {}]   ;;  %s21298_s16 = inlined_call_operand.vmem [shape: f32[64,1], index: 16, kind: input, shape index: {}]   ;;  %s21299_s17 = inlined_call_operand.vmem [shape: f32[64,1], index: 17, kind: input, shape index: {}]   ;;  %s21300_s18 = inlined_call_operand.vmem [shape: f32[16,64], index: 18, kind: input, shape index: {}]   ;;  %s21301_s19 = inlined_call_operand.vmem [shape: f32[49,16], index: 19, kind: input, shape index: {}]   ;;  %s21302_s20 = inlined_call_operand.vmem [shape: f32[2,49,16], index: 20, kind: output, shape index: {}]  }
   0x1   :  { %21552 = sst [smem:[#allocation138_spill]] %s21282_s0 }
   0x2   :  { %21553 = sst [smem:[#allocation139_spill]] %s21283_s1  ;;  %s15703_s1 = smov 0  }
   0x3   :  { %21554 = sst [smem:[#allocation140_spill]] %s21284_s2 }
   0x4   :  { %21555 = sst [smem:[#allocation141_spill]] %s21285_s3 }
   0x5   :  { %21556 = sst [smem:[#allocation142_spill]] %s21286_s4 }
   0x6 LB: > { %s12712_s22 = sadd.s32 4294967295, %s15593_s1   ;;  %p12716_p0 = scmp.ge.s32.totalorder %s15593_s1, 1  ;;  %s15593_s1 = sphi %s15703_s1, %s30_s1  }
   0x7   : > { %p562_p1 = scmp.lt.s32.totalorder %s15593_s1, 3 }
   0x9   : > { %p563_p2 = pnand %p12716_p0, %p562_p1 }
   0xb   : > { %566 = sbr.rel (%p563_p2) target bundleno = 2401 (0x961), region = 100 }
  0x10   : > { %v15714_v0 = vld [vmem:[%s21295_s13 + $0x10] sm:$0xff]  ;;  %v15719_v1 = vld [vmem:[%s21295_s13] sm:$0xff]  ;;  %vm728_vm0 = vcmask 31744   ;;  %v15595_v2 = vmov 0   ;;  %p15723_p3 = scmp.lt.s32.totalorder %s12712_s22, 1  ;;  %v21305_v3 = vmov 0.0  }
  0x11   : > { %15538 = vset.pattern.permute.xlu1 %v15595_v2  ;;  %15537 = vset.pattern.permute.xlu0 %v15595_v2  ;;  %729 = vst.msk [vmem:[#allocation2] sm:$0xff] %vm728_vm0, %v21305_v3  ;;  %730 = vst.msk [vmem:[#allocation2 + $0x8] sm:$0xff] %vm728_vm0, %v21305_v3  ;;  %v15804_v4 = vld [vmem:[%s21295_s13 + $0x18] sm:$0xff]  ;;  %v15809_v5 = vld [vmem:[%s21295_s13 + $0x8] sm:$0xff]  ;;  %vm1160_vm1 = vcmask 1043456   ;;  %s21558_s25 = sld [smem:[#allocation139_spill]] }
  0x12   : > { %852 = vperm.xlu1 %15538, %v15714_v0   ;;  %842 = vperm.xlu0 %15537, %v15719_v1   ;;  %731 = vst.msk [vmem:[#allocation2 + $0x10] sm:$0xff] %vm728_vm0, %v21305_v3  ;;  %732 = vst.msk [vmem:[#allocation2 + $0x18] sm:$0xff] %vm728_vm0, %v21305_v3  ;;  %s22461_s22 = smov (!%p15723_p3, %s12712_s22), 1  ;;  %v15822_v6 = vld [vmem:[%s21295_s13 + $0x28] sm:$0xff]  ;;  %v15827_v7 = vld [vmem:[%s21295_s13 + $0x20] sm:$0xff]  ;;  %s21559_s27 = sld [smem:[#allocation138_spill]] }
  0x13   : > { %733 = vst.msk [vmem:[#allocation2 + $0x20] sm:$0xff] %vm728_vm0, %v21305_v3  ;;  %734 = vst.msk [vmem:[#allocation2 + $0x28] sm:$0xff] %vm728_vm0, %v21305_v3  ;;  %s13468_s23 = sshll.u32 %s22461_s22, 8  ;;  %v15843_v9 = vld [vmem:[%s21296_s14 + $0x8] sm:$0xff]  ;;  %v15848_v10 = vld [vmem:[%s21296_s14] sm:$0xff]  ;;  %vm765_vm2 = vcmask 25600  }
  0x14   : > { %735 = vst.msk [vmem:[#allocation2 + $0x30] sm:$0xff] %vm728_vm0, %v21305_v3  ;;  %736 = vst.msk [vmem:[#allocation2 + $0x38] sm:$0xff] %vm728_vm0, %v21305_v3  ;;  %v15865_v17 = vld [vmem:[%s21296_s14 + $0x18] sm:$0xff]  ;;  %v15870_v18 = vld [vmem:[%s21296_s14 + $0x10] sm:$0xff]  ;;  %vm4923_vm3 = vcmask 64512   ;;  %vm4960_vm4 = vcmask 58368  }
  0x15   : > { %737 = vst.msk [vmem:[#allocation2 + $0x40] sm:$0xff] %vm728_vm0, %v21305_v3  ;;  %738 = vst.msk [vmem:[#allocation2 + $0x48] sm:$0xff] %vm728_vm0, %v21305_v3  ;;  %v15889_v25 = vld [vmem:[%s21296_s14 + $0x28] sm:$0xff]  ;;  %v15894_v26 = vld [vmem:[%s21296_s14 + $0x20] sm:$0xff]  ;;  %vm10888_vm5 = vcmask 130048   ;;  %vm10899_vm6 = vcmask 123904  }
  0x16   : > { %739 = vst.msk [vmem:[#allocation2 + $0x50] sm:$0xff] %vm728_vm0, %v21305_v3  ;;  %740 = vst.msk [vmem:[#allocation2 + $0x58] sm:$0xff] %vm728_vm0, %v21305_v3  ;;  %857 = vperm.xlu1 %15538, %v15804_v4   ;;  %847 = vperm.xlu0 %15537, %v15809_v5   ;;  %v15910_v34 = vld [vmem:[%s21295_s13 + $0x38] sm:$0xff]  ;;  %v15915_v35 = vld [vmem:[%s21295_s13 + $0x30] sm:$0xff]  ;;  %s21701_s0 = sld [smem:[#allocation142_spill]]  ;;  %vm12439_vm7 = vcmask 523264  }
  0x17   : > { %741 = vst.msk [vmem:[#allocation2 + $0x60] sm:$0xff] %vm728_vm0, %v21305_v3  ;;  %742 = vst.msk [vmem:[#allocation2 + $0x68] sm:$0xff] %vm728_vm0, %v21305_v3  ;;  %v800_v8 = vld [vmem:[%s21558_s25 + $0x4] sm:$0xf]  ;;  %v15930_v39 = vld [vmem:[%s21296_s14 + $0x38] sm:$0xff]  ;;  %s21965_s30 = sld [smem:[#allocation140_spill]] }
  0x18   : > { %743 = vst.msk [vmem:[#allocation2 + $0x70] sm:$0xff] %vm728_vm0, %v21305_v3  ;;  %744 = vst.msk [vmem:[#allocation2 + $0x78] sm:$0xff] %vm728_vm0, %v21305_v3  ;;  %s15838_s28 = scalar_lea.vmem %s21559_s27, %s13468_s23  ;;  %14309 = vmatprep.subr.msk.mxu0 %vm1160_vm1, %v800_v8  ;;  %v1032_v11 = vld [vmem:[#allocation2 + $0x1] sm:$0xff]  ;;  %v15935_v41 = vld [vmem:[%s21296_s14 + $0x30] sm:$0xff]  ;;  %s21974_s24 = sld [smem:[#allocation141_spill]]  ;;  %vm15597_vm8 = vmmov 0  }
  0x19   : > { %745 = vst.msk [vmem:[#allocation2 + $0x80] sm:$0xff] %vm728_vm0, %v21305_v3  ;;  %746 = vst.msk [vmem:[#allocation2 + $0x88] sm:$0xff] %vm728_vm0, %v21305_v3  ;;  %14310 = vmatpush3.msk.msra.mxu0 %vm1160_vm1, %v800_v8  ;;  %14311 = vmatprep.mubr.msk.f32.mxu0 %vm728_vm0, %v1032_v11  ;;  %v1033_v12 = vld [vmem:[#allocation2 + $0x9] sm:$0xff]  ;;  %v630_v13 = vld [vmem:[%s15838_s28] sm:$0xff]  ;;  %s15525_s4 = smul.u32 56, %s22461_s22  ;;  %vm12655_vm9 = vcmask 122880  }
  0x1a   : > { %747 = vst.msk [vmem:[#allocation2 + $0x90] sm:$0xff] %vm728_vm0, %v21305_v3  ;;  %748 = vst.msk [vmem:[#allocation2 + $0x98] sm:$0xff] %vm728_vm0, %v21305_v3  ;;  %867 = vperm.xlu1 %15538, %v15822_v6   ;;  %862 = vperm.xlu0 %15537, %v15827_v7   ;;  %v631_v14 = vld [vmem:[%s15838_s28 + $0x8] sm:$0xff]  ;;  %v632_v15 = vld [vmem:[%s15838_s28 + $0x10] sm:$0xff] }
  0x1b   : > { %749 = vst.msk [vmem:[#allocation2 + $0xa0] sm:$0xff] %vm728_vm0, %v21305_v3  ;;  %750 = vst.msk [vmem:[#allocation2 + $0xa8] sm:$0xff] %vm728_vm0, %v21305_v3  ;;  %14312 = vmatmul.mubr.msk.f32.vlgmr.msra.gmra.mxu0 %vm728_vm0, %v1033_v12  ;;  %v633_v16 = vld [vmem:[%s15838_s28 + $0x18] sm:$0xff]  ;;  %v634_v19 = vld [vmem:[%s15838_s28 + $0x20] sm:$0xff]  ;;  %s629_s21 = scalar_lea.vmem %s21302_s20, %s15525_s4 }
  0x1c   : > { %751 = vst.msk [vmem:[#allocation2 + $0xb0] sm:$0xff] %vm728_vm0, %v21305_v3  ;;  %752 = vst.msk [vmem:[#allocation2 + $0xb8] sm:$0xff] %vm728_vm0, %v21305_v3  ;;  %v635_v20 = vld [vmem:[%s15838_s28 + $0x28] sm:$0xff]  ;;  %v636_v21 = vld [vmem:[%s15838_s28 + $0x30] sm:$0xff] }
  0x1d   : > { %753 = vst.msk [vmem:[#allocation2 + $0xc0] sm:$0xff] %vm728_vm0, %v21305_v3  ;;  %754 = vst.msk [vmem:[#allocation2 + $0xc8] sm:$0xff] %vm728_vm0, %v21305_v3  ;;  %v637_v22 = vld [vmem:[%s15838_s28 + $0x38] sm:$0xff]  ;;  %v638_v23 = vld [vmem:[%s15838_s28 + $0x40] sm:$0xff] }
  0x1e   : > { %755 = vst.msk [vmem:[#allocation2 + $0xd0] sm:$0xff] %vm728_vm0, %v21305_v3  ;;  %756 = vst.msk [vmem:[#allocation2 + $0xd8] sm:$0xff] %vm728_vm0, %v21305_v3  ;;  %1752 = vperm.xlu1 %15538, %v15843_v9   ;;  %1747 = vperm.xlu0 %15537, %v15848_v10   ;;  %v639_v24 = vld [vmem:[%s15838_s28 + $0x48] sm:$0xff]  ;;  %v640_v27 = vld [vmem:[%s15838_s28 + $0x50] sm:$0xff] }
  0x1f   : > { %757 = vst.msk [vmem:[#allocation2 + $0xe0] sm:$0xff] %vm728_vm0, %v21305_v3  ;;  %758 = vst.msk [vmem:[#allocation2 + $0xe8] sm:$0xff] %vm728_vm0, %v21305_v3  ;;  %v641_v28 = vld [vmem:[%s15838_s28 + $0x58] sm:$0xff]  ;;  %v642_v31 = vld [vmem:[%s15838_s28 + $0x60] sm:$0xff] }
  0x20   : > { %759 = vst.msk [vmem:[#allocation2 + $0xf0] sm:$0xff] %vm728_vm0, %v21305_v3  ;;  %760 = vst.msk [vmem:[#allocation2 + $0xf8] sm:$0xff] %vm728_vm0, %v21305_v3  ;;  %v643_v33 = vld [vmem:[%s15838_s28 + $0x68] sm:$0xff]  ;;  %v644_v36 = vld [vmem:[%s15838_s28 + $0x70] sm:$0xff] }
  0x21   : > { %761 = vst.msk [vmem:[#allocation2 + $0x100] sm:$0xff] %vm728_vm0, %v21305_v3  ;;  %762 = vst.msk [vmem:[#allocation2 + $0x108] sm:$0xff] %vm728_vm0, %v21305_v3  ;;  %v645_v37 = vld [vmem:[%s15838_s28 + $0x78] sm:$0xff]  ;;  %v646_v42 = vld [vmem:[%s15838_s28 + $0x80] sm:$0xff] }
  0x22   : > { %763 = vst.msk [vmem:[#allocation2 + $0x110] sm:$0xff] %vm728_vm0, %v21305_v3  ;;  %764 = vst.msk [vmem:[#allocation2 + $0x118] sm:$0xff] %vm728_vm0, %v21305_v3  ;;  %1762 = vperm.xlu1 %15538, %v15865_v17   ;;  %1757 = vperm.xlu0 %15537, %v15870_v18   ;;  %v647_v43 = vld [vmem:[%s15838_s28 + $0x88] sm:$0xff]  ;;  %v648_v45 = vld [vmem:[%s15838_s28 + $0x90] sm:$0xff] }
  0x23   : > { %767 = vst.msk [vmem:[#allocation2 + $0x11] sm:$0xff] %vm728_vm0, %v630_v13  ;;  %768 = vst.msk [vmem:[#allocation2 + $0x19] sm:$0xff] %vm728_vm0, %v631_v14  ;;  %v649_v46 = vld [vmem:[%s15838_s28 + $0x98] sm:$0xff]  ;;  %v15950_v47 = vld [vmem:[%s21295_s13 + $0x48] sm:$0xff] }
  0x24   : > { %769 = vst.msk [vmem:[#allocation2 + $0x21] sm:$0xff] %vm728_vm0, %v632_v15  ;;  %770 = vst.msk [vmem:[#allocation2 + $0x29] sm:$0xff] %vm728_vm0, %v633_v16  ;;  %v15957_v49 = vld [vmem:[%s21295_s13 + $0x40] sm:$0xff]  ;;  %v651_v51 = vld [vmem:[%s15838_s28 + $0xa8] sm:$0xff] }
  0x25   : > { %771 = vst.msk [vmem:[#allocation2 + $0x31] sm:$0xff] %vm728_vm0, %v634_v19  ;;  %772 = vst.msk [vmem:[#allocation2 + $0x39] sm:$0xff] %vm728_vm0, %v635_v20  ;;  %v650_v50 = vld [vmem:[%s15838_s28 + $0xa0] sm:$0xff]  ;;  %v652_v53 = vld [vmem:[%s15838_s28 + $0xb0] sm:$0xff] }
  0x26   : > { %773 = vst.msk [vmem:[#allocation2 + $0x41] sm:$0xff] %vm728_vm0, %v636_v21  ;;  %774 = vst.msk [vmem:[#allocation2 + $0x49] sm:$0xff] %vm728_vm0, %v637_v22  ;;  %1772 = vperm.xlu1 %15538, %v15889_v25   ;;  %1767 = vperm.xlu0 %15537, %v15894_v26   ;;  %v653_v54 = vld [vmem:[%s15838_s28 + $0xb8] sm:$0xff]  ;;  %v654_v56 = vld [vmem:[%s15838_s28 + $0xc0] sm:$0xff] }
  0x27   : > { %775 = vst.msk [vmem:[#allocation2 + $0x51] sm:$0xff] %vm728_vm0, %v638_v23  ;;  %776 = vst.msk [vmem:[#allocation2 + $0x59] sm:$0xff] %vm728_vm0, %v639_v24  ;;  %v655_v57 = vld [vmem:[%s15838_s28 + $0xc8] sm:$0xff]  ;;  %v15981_v59 = vld [vmem:[%s21296_s14 + $0x40] sm:$0xff] }
  0x28   : > { %777 = vst.msk [vmem:[#allocation2 + $0x61] sm:$0xff] %vm728_vm0, %v640_v27  ;;  %778 = vst.msk [vmem:[#allocation2 + $0x69] sm:$0xff] %vm728_vm0, %v641_v28  ;;  %v15976_v58 = vld [vmem:[%s21296_s14 + $0x48] sm:$0xff]  ;;  %v656_v60 = vld [vmem:[%s15838_s28 + $0xd0] sm:$0xff] }
  0x29   : > { %779 = vst.msk [vmem:[#allocation2 + $0x71] sm:$0xff] %vm728_vm0, %v642_v31  ;;  %780 = vst.msk [vmem:[#allocation2 + $0x79] sm:$0xff] %vm728_vm0, %v643_v33  ;;  %v657_v61 = vld [vmem:[%s15838_s28 + $0xd8] sm:$0xff]  ;;  %v16001_v8 = vld [vmem:[%s21295_s13 + $0x50] sm:$0xff] }
  0x2a   : > { %v1034_v29 = vld [vmem:[#allocation2 + $0x11] sm:$0xff]  ;;  %v1035_v30 = vld [vmem:[#allocation2 + $0x19] sm:$0xff]  ;;  %781 = vst.msk [vmem:[#allocation2 + $0x81] sm:$0xff] %vm728_vm0, %v644_v36  ;;  %782 = vst.msk [vmem:[#allocation2 + $0x89] sm:$0xff] %vm728_vm0, %v645_v37  ;;  %877 = vperm.xlu1 %15538, %v15910_v34   ;;  %872 = vperm.xlu0 %15537, %v15915_v35  }
  0x2b   : > { %v1036_v32 = vld [vmem:[#allocation2 + $0x21] sm:$0xff]  ;;  %14314 = vmatprep.mubr.msk.f32.mxu0 %vm728_vm0, %v1034_v29  ;;  %v1037_v38 = vld [vmem:[#allocation2 + $0x29] sm:$0xff]  ;;  %783 = vst.msk [vmem:[#allocation2 + $0x91] sm:$0xff] %vm728_vm0, %v646_v42  ;;  %784 = vst.msk [vmem:[#allocation2 + $0x99] sm:$0xff] %vm728_vm0, %v647_v43 }
  0x2c   : > { %14315 = vmatmul.mubr.msk.f32.gmra.mxu0 %vm728_vm0, %v1035_v30  ;;  %v1038_v40 = vld [vmem:[#allocation2 + $0x31] sm:$0xff]  ;;  %v1039_v44 = vld [vmem:[#allocation2 + $0x39] sm:$0xff]  ;;  %785 = vst.msk [vmem:[#allocation2 + $0xa1] sm:$0xff] %vm728_vm0, %v648_v45  ;;  %786 = vst.msk [vmem:[#allocation2 + $0xa9] sm:$0xff] %vm728_vm0, %v649_v46 }
  0x2d   : > { %14317 = vmatprep.mubr.msk.f32.mxu0 %vm728_vm0, %v1036_v32  ;;  %v1040_v48 = vld [vmem:[#allocation2 + $0x41] sm:$0xff]  ;;  %787 = vst.msk [vmem:[#allocation2 + $0xb1] sm:$0xff] %vm728_vm0, %v650_v50  ;;  %788 = vst.msk [vmem:[#allocation2 + $0xb9] sm:$0xff] %vm728_vm0, %v651_v51  ;;  %v1041_v52 = vld [vmem:[#allocation2 + $0x49] sm:$0xff] }
  0x2e   : > { %1782 = vperm.xlu1 %15538, %v15930_v39   ;;  %1777 = vperm.xlu0 %15537, %v15935_v41   ;;  %v1042_v55 = vld [vmem:[#allocation2 + $0x51] sm:$0xff]  ;;  %789 = vst.msk [vmem:[#allocation2 + $0xc1] sm:$0xff] %vm728_vm0, %v652_v53  ;;  %790 = vst.msk [vmem:[#allocation2 + $0xc9] sm:$0xff] %vm728_vm0, %v653_v54  ;;  %v1043_v62 = vld [vmem:[#allocation2 + $0x59] sm:$0xff] }
  0x2f   : > { %791 = vst.msk [vmem:[#allocation2 + $0xd1] sm:$0xff] %vm728_vm0, %v654_v56  ;;  %792 = vst.msk [vmem:[#allocation2 + $0xd9] sm:$0xff] %vm728_vm0, %v655_v57  ;;  %v1044_v63 = vld [vmem:[#allocation2 + $0x61] sm:$0xff]  ;;  %v15996_v2 = vld [vmem:[%s21295_s13 + $0x58] sm:$0xff] }
  0x30   : > { %14318 = vmatmul.mubr.msk.f32.gmra.mxu0 %vm728_vm0, %v1037_v38  ;;  %793 = vst.msk [vmem:[#allocation2 + $0xe1] sm:$0xff] %vm728_vm0, %v656_v60  ;;  %794 = vst.msk [vmem:[#allocation2 + $0xe9] sm:$0xff] %vm728_vm0, %v657_v61  ;;  %v658_v11 = vld [vmem:[%s15838_s28 + $0xe0] sm:$0xff]  ;;  %v659_v12 = vld [vmem:[%s15838_s28 + $0xe8] sm:$0xff] }
  0x31   : > { %14320 = vmatprep.mubr.msk.f32.mxu0 %vm728_vm0, %v1038_v40  ;;  %v1045_v13 = vld [vmem:[#allocation2 + $0x69] sm:$0xff]  ;;  %795 = vst.msk [vmem:[#allocation2 + $0xf1] sm:$0xff] %vm728_vm0, %v658_v11  ;;  %796 = vst.msk [vmem:[#allocation2 + $0xf9] sm:$0xff] %vm728_vm0, %v659_v12  ;;  %v1046_v14 = vld [vmem:[#allocation2 + $0x71] sm:$0xff] }
  0x32   : > { %887 = vperm.xlu1 %15538, %v15950_v47   ;;  %882 = vperm.xlu0 %15537, %v15957_v49   ;;  %v16014_v15 = vld [vmem:[%s21296_s14 + $0x58] sm:$0xff]  ;;  %v16019_v16 = vld [vmem:[%s21296_s14 + $0x50] sm:$0xff]  ;;  %v799_v19 = vld [vmem:[%s21558_s25] sm:$0xf]  ;;  %766 = vst.msk [vmem:[#allocation2 + $0x120] sm:$0x3] %vm765_vm2, %v21305_v3 }
  0x33   : > { %14359 = vmatprep.subr.msk.mxu0 %vm1160_vm1, %v799_v19  ;;  %v1047_v20 = vld [vmem:[#allocation2 + $0x79] sm:$0xff]  ;;  %v1048_v21 = vld [vmem:[#allocation2 + $0x81] sm:$0xff]  ;;  %15523 = vmatprep.subr.msk.mxu1 %vm1160_vm1, %v799_v19  ;;  %v1049_v27 = vld [vmem:[#allocation2 + $0x89] sm:$0xff]  ;;  %4925 = vst.msk [vmem:[#allocation3 + $0x8] sm:$0xff] %vm4923_vm3, %v21305_v3 }
  0x34   : > { %14321 = vmatmul.mubr.msk.f32.gmra.mxu0 %vm728_vm0, %v1039_v44  ;;  %v675_v22 = vld [vmem:[%s21295_s13 + $0x68] sm:$0xff]  ;;  %v674_v23 = vld [vmem:[%s21295_s13 + $0x60] sm:$0xff]  ;;  %15524 = vmatpush3.msk.msra.mxu1 %vm1160_vm1, %v799_v19  ;;  %v1050_v28 = vld [vmem:[#allocation2 + $0x91] sm:$0xff]  ;;  %4924 = vst.msk [vmem:[#allocation3] sm:$0xff] %vm4923_vm3, %v21305_v3 }
  0x35   : > { %14323 = vmatprep.mubr.msk.f32.mxu0 %vm728_vm0, %v1040_v48  ;;  %14360 = vmatpush3.msk.msra.mxu0 %vm1160_vm1, %v799_v19  ;;  %v16041_v24 = vld [vmem:[%s21558_s25 + $0x8] sm:$0xf]  ;;  %v706_v30 = vld [vmem:[%s21296_s14 + $0x60] sm:$0xff]  ;;  %v677_v33 = vld [vmem:[%s21295_s13 + $0x78] sm:$0xff]  ;;  %4926 = vst.msk [vmem:[#allocation3 + $0x10] sm:$0xff] %vm4923_vm3, %v21305_v3 }
  0x36   : > { %1792 = vperm.xlu1 %15538, %v15976_v58   ;;  %1787 = vperm.xlu0 %15537, %v15981_v59   ;;  %v707_v29 = vld [vmem:[%s21296_s14 + $0x68] sm:$0xff]  ;;  %v1051_v31 = vld [vmem:[#allocation2 + $0x99] sm:$0xff]  ;;  %v676_v36 = vld [vmem:[%s21295_s13 + $0x70] sm:$0xff]  ;;  %4927 = vst.msk [vmem:[#allocation3 + $0x18] sm:$0xff] %vm4923_vm3, %v21305_v3 }
  0x37   : > { %14409 = vmatprep.subr.msk.mxu0 %vm1160_vm1, %v16041_v24  ;;  %v1052_v32 = vld [vmem:[#allocation2 + $0xa1] sm:$0xff]  ;;  %v1053_v37 = vld [vmem:[#allocation2 + $0xa9] sm:$0xff]  ;;  %v1054_v38 = vld [vmem:[#allocation2 + $0xb1] sm:$0xff]  ;;  %4928 = vst.msk [vmem:[#allocation3 + $0x20] sm:$0xff] %vm4923_vm3, %v21305_v3 }
  0x38   : > { %14324 = vmatmul.mubr.msk.f32.gmra.mxu0 %vm728_vm0, %v1041_v52  ;;  %v709_v40 = vld [vmem:[%s21296_s14 + $0x78] sm:$0xff]  ;;  %v708_v42 = vld [vmem:[%s21296_s14 + $0x70] sm:$0xff]  ;;  %v1056_v44 = vld [vmem:[#allocation2 + $0xc1] sm:$0xff]  ;;  %4929 = vst.msk [vmem:[#allocation3 + $0x28] sm:$0xff] %vm4923_vm3, %v21305_v3 }
  0x39   : > { %14326 = vmatprep.mubr.msk.f32.mxu0 %vm728_vm0, %v1042_v55  ;;  %v1055_v43 = vld [vmem:[#allocation2 + $0xb9] sm:$0xff]  ;;  %v679_v45 = vld [vmem:[%s21295_s13 + $0x88] sm:$0xff]  ;;  %v1058_v50 = vld [vmem:[#allocation2 + $0xd1] sm:$0xff]  ;;  %4930 = vst.msk [vmem:[#allocation3 + $0x30] sm:$0xff] %vm4923_vm3, %v21305_v3 }
  0x3a   : > { %897 = vperm.xlu1 %15538, %v15996_v2   ;;  %892 = vperm.xlu0 %15537, %v16001_v8   ;;  %v678_v46 = vld [vmem:[%s21295_s13 + $0x80] sm:$0xff]  ;;  %v1057_v48 = vld [vmem:[#allocation2 + $0xc9] sm:$0xff]  ;;  %v681_v55 = vld [vmem:[%s21295_s13 + $0x98] sm:$0xff]  ;;  %4931 = vst.msk [vmem:[#allocation3 + $0x38] sm:$0xff] %vm4923_vm3, %v21305_v3 }
  0x3b   : > { %v711_v51 = vld [vmem:[%s21296_s14 + $0x88] sm:$0xff]  ;;  %v710_v52 = vld [vmem:[%s21296_s14 + $0x80] sm:$0xff]  ;;  %v680_v56 = vld [vmem:[%s21295_s13 + $0x90] sm:$0xff]  ;;  %4932 = vst.msk [vmem:[#allocation3 + $0x40] sm:$0xff] %vm4923_vm3, %v21305_v3 }
  0x3c   : > { %14327 = vmatmul.mubr.msk.f32.gmra.mxu0 %vm728_vm0, %v1043_v62  ;;  %v1059_v53 = vld [vmem:[#allocation2 + $0xd9] sm:$0xff]  ;;  %v1060_v54 = vld [vmem:[#allocation2 + $0xe1] sm:$0xff]  ;;  %v1061_v57 = vld [vmem:[#allocation2 + $0xe9] sm:$0xff]  ;;  %4933 = vst.msk [vmem:[#allocation3 + $0x48] sm:$0xff] %vm4923_vm3, %v21305_v3 }
  0x3d   : > { %14329 = vmatprep.mubr.msk.f32.mxu0 %vm728_vm0, %v1044_v63  ;;  %v1062_v60 = vld [vmem:[#allocation2 + $0xf1] sm:$0xff]  ;;  %v1063_v63 = vld [vmem:[#allocation2 + $0xf9] sm:$0xff]  ;;  %v683_v11 = vld [vmem:[%s21295_s13 + $0xa8] sm:$0xff]  ;;  %4934 = vst.msk [vmem:[#allocation3 + $0x50] sm:$0xff] %vm4923_vm3, %v21305_v3 }
  0x3e   : > { %1802 = vperm.xlu1 %15538, %v16014_v15   ;;  %1797 = vperm.xlu0 %15537, %v16019_v16   ;;  %v713_v61 = vld [vmem:[%s21296_s14 + $0x98] sm:$0xff]  ;;  %v712_v62 = vld [vmem:[%s21296_s14 + $0x90] sm:$0xff]  ;;  %v682_v12 = vld [vmem:[%s21295_s13 + $0xa0] sm:$0xff]  ;;  %4935 = vst.msk [vmem:[#allocation3 + $0x58] sm:$0xff] %vm4923_vm3, %v21305_v3 }
  0x3f   : > { %v685_v19 = vld [vmem:[%s21295_s13 + $0xb8] sm:$0xff]  ;;  %4936 = vst.msk [vmem:[#allocation3 + $0x60] sm:$0xff] %vm4923_vm3, %v21305_v3  ;;  %4937 = vst.msk [vmem:[#allocation3 + $0x68] sm:$0xff] %vm4923_vm3, %v21305_v3 }
  0x40   : > { %14330 = vmatmul.mubr.msk.f32.gmra.mxu0 %vm728_vm0, %v1045_v13  ;;  %v715_v13 = vld [vmem:[%s21296_s14 + $0xa8] sm:$0xff]  ;;  %4938 = vst.msk [vmem:[#allocation3 + $0x70] sm:$0xff] %vm4923_vm3, %v21305_v3  ;;  %4939 = vst.msk [vmem:[#allocation3 + $0x78] sm:$0xff] %vm4923_vm3, %v21305_v3 }
  0x41   : > { %14332 = vmatprep.mubr.msk.f32.mxu0 %vm728_vm0, %v1046_v14  ;;  %v714_v14 = vld [vmem:[%s21296_s14 + $0xa0] sm:$0xff]  ;;  %4940 = vst.msk [vmem:[#allocation3 + $0x80] sm:$0xff] %vm4923_vm3, %v21305_v3  ;;  %4941 = vst.msk [vmem:[#allocation3 + $0x88] sm:$0xff] %vm4923_vm3, %v21305_v3 }
  0x42   : > { %907 = vperm.xlu1 %15538, %v675_v22   ;;  %902 = vperm.xlu0 %15537, %v674_v23   ;;  %v716_v22 = vld [vmem:[%s21296_s14 + $0xb0] sm:$0xff]  ;;  %v687_v23 = vld [vmem:[%s21295_s13 + $0xc8] sm:$0xff]  ;;  %4942 = vst.msk [vmem:[#allocation3 + $0x90] sm:$0xff] %vm4923_vm3, %v21305_v3  ;;  %4943 = vst.msk [vmem:[#allocation3 + $0x98] sm:$0xff] %vm4923_vm3, %v21305_v3 }
  0x43   : > { %4944 = vst.msk [vmem:[#allocation3 + $0xa0] sm:$0xff] %vm4923_vm3, %v21305_v3  ;;  %4945 = vst.msk [vmem:[#allocation3 + $0xa8] sm:$0xff] %vm4923_vm3, %v21305_v3 }
  0x44   : > { %14333 = vmatmul.mubr.msk.f32.gmra.mxu0 %vm728_vm0, %v1047_v20  ;;  %v684_v20 = vld [vmem:[%s21295_s13 + $0xb0] sm:$0xff]  ;;  %4946 = vst.msk [vmem:[#allocation3 + $0xb0] sm:$0xff] %vm4923_vm3, %v21305_v3  ;;  %4947 = vst.msk [vmem:[#allocation3 + $0xb8] sm:$0xff] %vm4923_vm3, %v21305_v3 }
  0x45   : > { %14335 = vmatprep.mubr.msk.f32.mxu0 %vm728_vm0, %v1048_v21  ;;  %v717_v21 = vld [vmem:[%s21296_s14 + $0xb8] sm:$0xff]  ;;  %4948 = vst.msk [vmem:[#allocation3 + $0xc0] sm:$0xff] %vm4923_vm3, %v21305_v3  ;;  %4949 = vst.msk [vmem:[#allocation3 + $0xc8] sm:$0xff] %vm4923_vm3, %v21305_v3 }
  0x46   : > { %1812 = vperm.xlu1 %15538, %v707_v29   ;;  %1807 = vperm.xlu0 %15537, %v706_v30   ;;  %v718_v29 = vld [vmem:[%s21296_s14 + $0xc0] sm:$0xff]  ;;  %v660_v30 = vld [vmem:[%s15838_s28 + $0xf0] sm:$0xff]  ;;  %4950 = vst.msk [vmem:[#allocation3 + $0xd0] sm:$0xff] %vm4923_vm3, %v21305_v3  ;;  %4951 = vst.msk [vmem:[#allocation3 + $0xd8] sm:$0xff] %vm4923_vm3, %v21305_v3 }
  0x47   : > { %797 = vst.msk [vmem:[#allocation2 + $0x101] sm:$0xff] %vm728_vm0, %v660_v30 }
  0x48   : > { %14336 = vmatmul.mubr.msk.f32.gmra.mxu0 %vm728_vm0, %v1049_v27  ;;  %v686_v27 = vld [vmem:[%s21295_s13 + $0xc0] sm:$0xff]  ;;  %4952 = vst.msk [vmem:[#allocation3 + $0xe0] sm:$0xff] %vm4923_vm3, %v21305_v3  ;;  %4953 = vst.msk [vmem:[#allocation3 + $0xe8] sm:$0xff] %vm4923_vm3, %v21305_v3 }
  0x49   : > { %14338 = vmatprep.mubr.msk.f32.mxu0 %vm728_vm0, %v1050_v28  ;;  %v719_v28 = vld [vmem:[%s21296_s14 + $0xc8] sm:$0xff]  ;;  %4954 = vst.msk [vmem:[#allocation3 + $0xf0] sm:$0xff] %vm4923_vm3, %v21305_v3  ;;  %4955 = vst.msk [vmem:[#allocation3 + $0xf8] sm:$0xff] %vm4923_vm3, %v21305_v3 }
  0x4a   : > { %917 = vperm.xlu1 %15538, %v677_v33   ;;  %912 = vperm.xlu0 %15537, %v676_v36   ;;  %v16151_v33 = vld [vmem:[%s21558_s25 + $0xc] sm:$0xf]  ;;  %v661_v36 = vld [vmem:[%s15838_s28 + $0xf8] sm:$0xff]  ;;  %4956 = vst.msk [vmem:[#allocation3 + $0x100] sm:$0xff] %vm4923_vm3, %v21305_v3  ;;  %4957 = vst.msk [vmem:[#allocation3 + $0x108] sm:$0xff] %vm4923_vm3, %v21305_v3 }
  0x4b   : > { %14459 = vmatprep.subr.msk.mxu1 %vm1160_vm1, %v16151_v33  ;;  %798 = vst.msk [vmem:[#allocation2 + $0x109] sm:$0xff] %vm728_vm0, %v661_v36 }
  0x4c   : > { %14339 = vmatmul.mubr.msk.f32.gmra.mxu0 %vm728_vm0, %v1051_v31  ;;  %v689_v31 = vld [vmem:[%s21295_s13 + $0xd8] sm:$0xff]  ;;  %4958 = vst.msk [vmem:[#allocation3 + $0x110] sm:$0xff] %vm4923_vm3, %v21305_v3  ;;  %4959 = vst.msk [vmem:[#allocation3 + $0x118] sm:$0xff] %vm4923_vm3, %v21305_v3 }
  0x4d   : > { %14341 = vmatprep.mubr.msk.f32.mxu0 %vm728_vm0, %v1052_v32  ;;  %v688_v32 = vld [vmem:[%s21295_s13 + $0xd0] sm:$0xff]  ;;  %9040 = vst.msk [vmem:[#allocation4] sm:$0xff] %vm4923_vm3, %v21305_v3  ;;  %9041 = vst.msk [vmem:[#allocation4 + $0x8] sm:$0xff] %vm4923_vm3, %v21305_v3 }
  0x4e   : > { %1822 = vperm.xlu1 %15538, %v709_v40   ;;  %1817 = vperm.xlu0 %15537, %v708_v42   ;;  %v691_v40 = vld [vmem:[%s21295_s13 + $0xe8] sm:$0xff]  ;;  %v690_v42 = vld [vmem:[%s21295_s13 + $0xe0] sm:$0xff]  ;;  %9042 = vst.msk [vmem:[#allocation4 + $0x10] sm:$0xff] %vm4923_vm3, %v21305_v3  ;;  %9043 = vst.msk [vmem:[#allocation4 + $0x18] sm:$0xff] %vm4923_vm3, %v21305_v3 }
  0x4f   : > { %9044 = vst.msk [vmem:[#allocation4 + $0x20] sm:$0xff] %vm4923_vm3, %v21305_v3  ;;  %9045 = vst.msk [vmem:[#allocation4 + $0x28] sm:$0xff] %vm4923_vm3, %v21305_v3 }
  0x50   : > { %14342 = vmatmul.mubr.msk.f32.gmra.mxu0 %vm728_vm0, %v1053_v37  ;;  %v721_v37 = vld [vmem:[%s21296_s14 + $0xd8] sm:$0xff]  ;;  %9046 = vst.msk [vmem:[#allocation4 + $0x30] sm:$0xff] %vm4923_vm3, %v21305_v3  ;;  %9047 = vst.msk [vmem:[#allocation4 + $0x38] sm:$0xff] %vm4923_vm3, %v21305_v3 }
  0x51   : > { %14344 = vmatprep.mubr.msk.f32.mxu0 %vm728_vm0, %v1054_v38  ;;  %v720_v38 = vld [vmem:[%s21296_s14 + $0xd0] sm:$0xff]  ;;  %9048 = vst.msk [vmem:[#allocation4 + $0x40] sm:$0xff] %vm4923_vm3, %v21305_v3  ;;  %9049 = vst.msk [vmem:[#allocation4 + $0x48] sm:$0xff] %vm4923_vm3, %v21305_v3 }
  0x52   : > { %927 = vperm.xlu1 %15538, %v679_v45   ;;  %922 = vperm.xlu0 %15537, %v678_v46   ;;  %v16179_v45 = vld [vmem:[%s21295_s13 + $0xf8] sm:$0xff]  ;;  %v16184_v46 = vld [vmem:[%s21295_s13 + $0xf0] sm:$0xff]  ;;  %9050 = vst.msk [vmem:[#allocation4 + $0x50] sm:$0xff] %vm4923_vm3, %v21305_v3  ;;  %9051 = vst.msk [vmem:[#allocation4 + $0x58] sm:$0xff] %vm4923_vm3, %v21305_v3 }
  0x53   : > { %9052 = vst.msk [vmem:[#allocation4 + $0x60] sm:$0xff] %vm4923_vm3, %v21305_v3  ;;  %9053 = vst.msk [vmem:[#allocation4 + $0x68] sm:$0xff] %vm4923_vm3, %v21305_v3 }
  0x54   : > { %14345 = vmatmul.mubr.msk.f32.gmra.mxu0 %vm728_vm0, %v1055_v43  ;;  %v723_v43 = vld [vmem:[%s21296_s14 + $0xe8] sm:$0xff]  ;;  %9054 = vst.msk [vmem:[#allocation4 + $0x70] sm:$0xff] %vm4923_vm3, %v21305_v3  ;;  %9055 = vst.msk [vmem:[#allocation4 + $0x78] sm:$0xff] %vm4923_vm3, %v21305_v3 }
  0x55   : > { %14347 = vmatprep.mubr.msk.f32.mxu0 %vm728_vm0, %v1056_v44  ;;  %v722_v44 = vld [vmem:[%s21296_s14 + $0xe0] sm:$0xff]  ;;  %9056 = vst.msk [vmem:[#allocation4 + $0x80] sm:$0xff] %vm4923_vm3, %v21305_v3  ;;  %9057 = vst.msk [vmem:[#allocation4 + $0x88] sm:$0xff] %vm4923_vm3, %v21305_v3 }
  0x56   : > { %1832 = vperm.xlu1 %15538, %v711_v51   ;;  %1827 = vperm.xlu0 %15537, %v710_v52   ;;  %9058 = vst.msk [vmem:[#allocation4 + $0x90] sm:$0xff] %vm4923_vm3, %v21305_v3  ;;  %9059 = vst.msk [vmem:[#allocation4 + $0x98] sm:$0xff] %vm4923_vm3, %v21305_v3  ;;  %v724_v51 = vld [vmem:[%s21296_s14 + $0xf0] sm:$0xff] }
  0x57   : > { %9060 = vst.msk [vmem:[#allocation4 + $0xa0] sm:$0xff] %vm4923_vm3, %v21305_v3  ;;  %9061 = vst.msk [vmem:[#allocation4 + $0xa8] sm:$0xff] %vm4923_vm3, %v21305_v3 }
  0x58   : > { %14348 = vmatmul.mubr.msk.f32.gmra.mxu0 %vm728_vm0, %v1057_v48  ;;  %9062 = vst.msk [vmem:[#allocation4 + $0xb0] sm:$0xff] %vm4923_vm3, %v21305_v3  ;;  %9063 = vst.msk [vmem:[#allocation4 + $0xb8] sm:$0xff] %vm4923_vm3, %v21305_v3  ;;  %v808_v48 = vld [vmem:[#allocation2] sm:$0xff] }
  0x59   : > { %14350 = vmatprep.mubr.msk.f32.mxu0 %vm728_vm0, %v1058_v50  ;;  %9064 = vst.msk [vmem:[#allocation4 + $0xc0] sm:$0xff] %vm4923_vm3, %v21305_v3  ;;  %9065 = vst.msk [vmem:[#allocation4 + $0xc8] sm:$0xff] %vm4923_vm3, %v21305_v3  ;;  %v725_v50 = vld [vmem:[%s21296_s14 + $0xf8] sm:$0xff] }
  0x5a   : > { %937 = vperm.xlu1 %15538, %v681_v55   ;;  %932 = vperm.xlu0 %15537, %v680_v56   ;;  %9066 = vst.msk [vmem:[#allocation4 + $0xd0] sm:$0xff] %vm4923_vm3, %v21305_v3  ;;  %9067 = vst.msk [vmem:[#allocation4 + $0xd8] sm:$0xff] %vm4923_vm3, %v21305_v3  ;;  %v809_v55 = vld [vmem:[#allocation2 + $0x8] sm:$0xff]  ;;  %v16359_v56 = vld [vmem:[#allocation2 + $0x10] sm:$0xff] }
  0x5b   : > { %9068 = vst.msk [vmem:[#allocation4 + $0xe0] sm:$0xff] %vm4923_vm3, %v21305_v3  ;;  %9069 = vst.msk [vmem:[#allocation4 + $0xe8] sm:$0xff] %vm4923_vm3, %v21305_v3 }
  0x5c   : > { %14351 = vmatmul.mubr.msk.f32.gmra.mxu0 %vm728_vm0, %v1059_v53  ;;  %9070 = vst.msk [vmem:[#allocation4 + $0xf0] sm:$0xff] %vm4923_vm3, %v21305_v3  ;;  %9071 = vst.msk [vmem:[#allocation4 + $0xf8] sm:$0xff] %vm4923_vm3, %v21305_v3 }
  0x5d   : > { %14353 = vmatprep.mubr.msk.f32.mxu0 %vm728_vm0, %v1060_v54  ;;  %9072 = vst.msk [vmem:[#allocation4 + $0x100] sm:$0xff] %vm4923_vm3, %v21305_v3  ;;  %9073 = vst.msk [vmem:[#allocation4 + $0x108] sm:$0xff] %vm4923_vm3, %v21305_v3 }
  0x5e   : > { %1842 = vperm.xlu1 %15538, %v713_v61   ;;  %1837 = vperm.xlu0 %15537, %v712_v62   ;;  %9389 = vst.msk [vmem:[#allocation5] sm:$0xff] %vm4923_vm3, %v21305_v3  ;;  %9390 = vst.msk [vmem:[#allocation5 + $0x8] sm:$0xff] %vm4923_vm3, %v21305_v3 }
  0x5f   : > { %9391 = vst.msk [vmem:[#allocation5 + $0x10] sm:$0xff] %vm4923_vm3, %v21305_v3  ;;  %9392 = vst.msk [vmem:[#allocation5 + $0x18] sm:$0xff] %vm4923_vm3, %v21305_v3 }
  0x60   : > { %14354 = vmatmul.mubr.msk.f32.gmra.mxu0 %vm728_vm0, %v1061_v57  ;;  %9393 = vst.msk [vmem:[#allocation5 + $0x20] sm:$0xff] %vm4923_vm3, %v21305_v3  ;;  %9394 = vst.msk [vmem:[#allocation5 + $0x28] sm:$0xff] %vm4923_vm3, %v21305_v3 }
  0x61   : > { %14356 = vmatprep.mubr.msk.f32.mxu0 %vm728_vm0, %v1062_v60  ;;  %9395 = vst.msk [vmem:[#allocation5 + $0x30] sm:$0xff] %vm4923_vm3, %v21305_v3  ;;  %9396 = vst.msk [vmem:[#allocation5 + $0x38] sm:$0xff] %vm4923_vm3, %v21305_v3 }
  0x62   : > { %947 = vperm.xlu1 %15538, %v683_v11   ;;  %942 = vperm.xlu0 %15537, %v682_v12   ;;  %9397 = vst.msk [vmem:[#allocation5 + $0x40] sm:$0xff] %vm4923_vm3, %v21305_v3  ;;  %9398 = vst.msk [vmem:[#allocation5 + $0x48] sm:$0xff] %vm4923_vm3, %v21305_v3  ;;  %v803_v11 = vld [vmem:[%s21558_s25 + $0x10] sm:$0xf]  ;;  %v16377_v12 = vld [vmem:[#allocation2 + $0x20] sm:$0xff] }
  0x64   : > { %14357 = vmatmul.mubr.msk.f32.gmra.mxu0 %vm728_vm0, %v1063_v63  ;;  %v16370_v63 = vld [vmem:[#allocation2 + $0x18] sm:$0xff] }
  0x66   : > { %1852 = vperm.xlu1 %15538, %v715_v13   ;;  %1847 = vperm.xlu0 %15537, %v714_v14  }
  0x6a   : > { %957 = vperm.xlu1 %15538, %v685_v19   ;;  %952 = vperm.xlu0 %15537, %v684_v20   ;;  %v1713_v19 = vld [vmem:[#allocation2 + $0x2] sm:$0xff] }
  0x6b   : > { %v16394_v20 = vld [vmem:[#allocation2 + $0x28] sm:$0xff] }
  0x6e   : > { %1862 = vperm.xlu1 %15538, %v717_v21   ;;  %1857 = vperm.xlu0 %15537, %v716_v22  }
  0x72   : > { %967 = vperm.xlu1 %15538, %v687_v23   ;;  %962 = vperm.xlu0 %15537, %v686_v27   ;;  %v3101_v23 = vld [vmem:[#allocation2 + $0x12] sm:$0xff] }
  0x76   : > { %1872 = vperm.xlu1 %15538, %v719_v28   ;;  %1867 = vperm.xlu0 %15537, %v718_v29  }
  0x7a   : > { %977 = vperm.xlu1 %15538, %v689_v31   ;;  %972 = vperm.xlu0 %15537, %v688_v32  }
  0x7e   : > { %1882 = vperm.xlu1 %15538, %v721_v37   ;;  %1877 = vperm.xlu0 %15537, %v720_v38  }
  0x82   : > { %987 = vperm.xlu1 %15538, %v691_v40   ;;  %982 = vperm.xlu0 %15537, %v690_v42   ;;  %v16435_v42 = vld [vmem:[#allocation2 + $0x30] sm:$0xff] }
  0x86   : > { %1892 = vperm.xlu1 %15538, %v723_v43   ;;  %1887 = vperm.xlu0 %15537, %v722_v44   ;;  %v4332_v44 = vld [vmem:[#allocation2 + $0x3a] sm:$0xff] }
  0x8a   : > { %997 = vperm.xlu1 %15538, %v16179_v45   ;;  %992 = vperm.xlu0 %15537, %v16184_v46   ;;  %v4331_v45 = vld [vmem:[#allocation2 + $0x32] sm:$0xff] }
  0x8d   : > { %v16354_v52 = vpop.permute.xlu1 %852  ;;  %v16356_v53 = vpop.permute.xlu0 %842 }
  0x8e   : > { %21560 = vst [vmem:[#allocation8_spill] sm:$0xff] %v16356_v53  ;;  %v1000_v54 = vmul.f32 %v16356_v53, %v808_v48  ;;  %1902 = vperm.xlu1 %15538, %v725_v50   ;;  %1897 = vperm.xlu0 %15537, %v724_v51   ;;  %v1002_v62 = vmul.f32 %v16354_v52, %v16359_v56 }
  0x90   : > { %14361 = vmatprep.mubr.msk.f32.mxu0 %vm728_vm0, %v1000_v54  ;;  %v16465_v54 = vld [vmem:[#allocation2 + $0x40] sm:$0xff] }
  0x91   : > { %v16362_v57 = vpop.permute.xlu1 %857  ;;  %v16364_v60 = vpop.permute.xlu0 %847 }
  0x92   : > { %v1001_v61 = vmul.f32 %v16364_v60, %v809_v55  ;;  %5042 = vperm.xlu1 %15538, %v15809_v5   ;;  %5037 = vperm.xlu0 %15537, %v15719_v1   ;;  %v1003_v1 = vmul.f32 %v16362_v57, %v16370_v63 }
  0x94   : > { %14362 = vmatmul.mubr.msk.f32.vlgmr.msra.gmra.mxu0 %vm728_vm0, %v1001_v61 }
  0x95   : > { %v16379_v13 = vpop.permute.xlu1 %867  ;;  %v16381_v14 = vpop.permute.xlu0 %862  ;;  %14364 = vmatprep.mubr.msk.f32.mxu0 %vm728_vm0, %v1002_v62  ;;  %14410 = vmatpush3.msk.msra.mxu0 %vm1160_vm1, %v16041_v24  ;;  %v4334_v62 = vld [vmem:[#allocation2 + $0x4a] sm:$0xff] }
  0x96   : > { %v1004_v5 = vmul.f32 %v16377_v12, %v16381_v14  ;;  %5940 = vperm.xlu1 %15538, %v15843_v9   ;;  %5935 = vperm.xlu0 %15537, %v15848_v10   ;;  %v1005_v22 = vmul.f32 %v16394_v20, %v16379_v13  ;;  %v1714_v10 = vld [vmem:[#allocation2 + $0xa] sm:$0xff] }
  0x97   : > { %14509 = vmatprep.subr.msk.mxu0 %vm1160_vm1, %v803_v11 }
  0x98   : > { %14365 = vmatmul.mubr.msk.f32.gmra.mxu0 %vm728_vm0, %v1003_v1 }
  0x99   : > { %v16396_v21 = vpop.permute.xlu1 %1752  ;;  %v16398_v24 = vpop.permute.xlu0 %1747  ;;  %14367 = vmatprep.mubr.msk.f32.mxu0 %vm728_vm0, %v1004_v5 }
  0x9a   : > { %21561 = vst [vmem:[#allocation9_spill] sm:$0xff] %v16396_v21  ;;  %21562 = vst [vmem:[#allocation10_spill] sm:$0xff] %v16398_v24  ;;  %v1905_v9 = vmul.f32 %v16398_v24, %v1713_v19  ;;  %5052 = vperm.xlu1 %15538, %v15804_v4   ;;  %5047 = vperm.xlu0 %15537, %v15714_v0   ;;  %v1906_v29 = vmul.f32 %v16396_v21, %v1714_v10  ;;  %v3102_v0 = vld [vmem:[#allocation2 + $0x1a] sm:$0xff]  ;;  %v4329_v4 = vld [vmem:[#allocation2 + $0x22] sm:$0xff] }
  0x9c   : > { %14368 = vmatmul.mubr.msk.f32.gmra.mxu0 %vm728_vm0, %v1005_v22 }
  0x9d   : > { %v16407_v27 = vpop.permute.xlu1 %1762  ;;  %v16409_v28 = vpop.permute.xlu0 %1757  ;;  %14411 = vmatprep.mubr.msk.f32.mxu0 %vm728_vm0, %v1905_v9 }
  0x9e   : > { %21563 = vst [vmem:[#allocation11_spill] sm:$0xff] %v16407_v27  ;;  %21564 = vst [vmem:[#allocation12_spill] sm:$0xff] %v16409_v28  ;;  %v1907_v30 = vmul.f32 %v3101_v23, %v16409_v28  ;;  %5950 = vperm.xlu1 %15538, %v15865_v17   ;;  %5945 = vperm.xlu0 %15537, %v15870_v18   ;;  %v1908_v36 = vmul.f32 %v3102_v0, %v16407_v27  ;;  %v16428_v17 = vld [vmem:[#allocation2 + $0x38] sm:$0xff]  ;;  %v4330_v18 = vld [vmem:[#allocation2 + $0x2a] sm:$0xff] }
  0x9f   : > { %v16794_v27 = vld [vmem:[#allocation2 + $0xca] sm:$0xff]  ;;  %v16796_v28 = vld [vmem:[#allocation2 + $0xc2] sm:$0xff] }
  0xa0   : > { %14412 = vmatmul.mubr.msk.f32.vlgmr.msra.gmra.mxu0 %vm728_vm0, %v1906_v29  ;;  %v4335_v29 = vld [vmem:[#allocation2 + $0x52] sm:$0xff]  ;;  %21603 = vst [vmem:[#allocation51_spill] sm:$0xff] %v16794_v27  ;;  %21604 = vst [vmem:[#allocation52_spill] sm:$0xff] %v16796_v28 }
  0xa1   : > { %v16417_v31 = vpop.permute.xlu1 %1772  ;;  %v16419_v32 = vpop.permute.xlu0 %1767  ;;  %14414 = vmatprep.mubr.msk.f32.mxu0 %vm728_vm0, %v1907_v30  ;;  %14510 = vmatpush3.msk.msra.mxu0 %vm1160_vm1, %v803_v11  ;;  %v4333_v11 = vld [vmem:[#allocation2 + $0x42] sm:$0xff] }
  0xa2   : > { %21565 = vst [vmem:[#allocation13_spill] sm:$0xff] %v16417_v31  ;;  %21566 = vst [vmem:[#allocation14_spill] sm:$0xff] %v16419_v32  ;;  %v1909_v37 = vmul.f32 %v4329_v4, %v16419_v32  ;;  %5062 = vperm.xlu1 %15538, %v15822_v6   ;;  %5057 = vperm.xlu0 %15537, %v15827_v7   ;;  %v1910_v43 = vmul.f32 %v4330_v18, %v16417_v31 }
  0xa4   : > { %14415 = vmatmul.mubr.msk.f32.gmra.mxu0 %vm728_vm0, %v1908_v36 }
  0xa5   : > { %v16430_v38 = vpop.permute.xlu1 %877  ;;  %v16432_v40 = vpop.permute.xlu0 %872  ;;  %14417 = vmatprep.mubr.msk.f32.mxu0 %vm728_vm0, %v1909_v37 }
  0xa6   : > { %v1007_v6 = vmul.f32 %v16428_v17, %v16430_v38  ;;  %5960 = vperm.xlu1 %15538, %v15889_v25   ;;  %5955 = vperm.xlu0 %15537, %v15894_v26   ;;  %v1006_v7 = vmul.f32 %v16435_v42, %v16432_v40  ;;  %v16458_v25 = vld [vmem:[%s21558_s25 + $0x14] sm:$0xf]  ;;  %v16463_v26 = vld [vmem:[#allocation2 + $0x48] sm:$0xff] }
  0xa8   : > { %14418 = vmatmul.mubr.msk.f32.gmra.mxu0 %vm728_vm0, %v1910_v43  ;;  %14370 = vmatprep.mubr.msk.f32.mxu1 %vm728_vm0, %v1006_v7  ;;  %v4338_v7 = vld [vmem:[#allocation2 + $0x6a] sm:$0xff] }
  0xa9   : > { %v16446_v46 = vpop.permute.xlu1 %1782  ;;  %v16448_v48 = vpop.permute.xlu0 %1777  ;;  %14371 = vmatmul.mubr.msk.f32.vlgmr.msra.gmra.mxu1 %vm728_vm0, %v1007_v6  ;;  %v4869_v6 = vld [vmem:[%s21295_s13 + $0x60] sm:$0xff] }
  0xaa   : > { %21567 = vst [vmem:[#allocation15_spill] sm:$0xff] %v16446_v46  ;;  %21568 = vst [vmem:[#allocation16_spill] sm:$0xff] %v16448_v48  ;;  %v1912_v50 = vmul.f32 %v4332_v44, %v16446_v46  ;;  %v1911_v51 = vmul.f32 %v4331_v45, %v16448_v48  ;;  %5072 = vperm.xlu1 %15538, %v15910_v34   ;;  %5067 = vperm.xlu0 %15537, %v15915_v35   ;;  %v4337_v44 = vld [vmem:[#allocation2 + $0x62] sm:$0xff]  ;;  %v16748_v46 = vld [vmem:[#allocation2 + $0xb2] sm:$0xff] }
  0xab   : > { %14460 = vmatpush3.msk.msra.mxu1 %vm1160_vm1, %v16151_v33  ;;  %v16481_v33 = vld [vmem:[%s21558_s25 + $0x18] sm:$0xf]  ;;  %21595 = vst [vmem:[#allocation43_spill] sm:$0xff] %v16748_v46 }
  0xac   : > { %14420 = vmatprep.mubr.msk.f32.mxu0 %vm728_vm0, %v1911_v51  ;;  %14559 = vmatprep.subr.msk.mxu1 %vm1160_vm1, %v16458_v25  ;;  %v4902_v51 = vld [vmem:[%s21296_s14 + $0x68] sm:$0xff] }
  0xad   : > { %v16467_v55 = vpop.permute.xlu1 %887  ;;  %v16469_v61 = vpop.permute.xlu0 %882  ;;  %14421 = vmatmul.mubr.msk.f32.gmra.mxu0 %vm728_vm0, %v1912_v50  ;;  %14609 = vmatprep.subr.msk.mxu0 %vm1160_vm1, %v16481_v33 }
  0xae   : > { %v1009_v34 = vmul.f32 %v16463_v26, %v16467_v55  ;;  %v1008_v35 = vmul.f32 %v16465_v54, %v16469_v61  ;;  %5970 = vperm.xlu1 %15538, %v15930_v39   ;;  %5965 = vperm.xlu0 %15537, %v15935_v41   ;;  %v16498_v39 = vld [vmem:[#allocation2 + $0x58] sm:$0xff]  ;;  %v16500_v41 = vld [vmem:[#allocation2 + $0x50] sm:$0xff] }
  0xb0   : > { %14373 = vmatprep.mubr.msk.f32.mxu1 %vm728_vm0, %v1008_v35  ;;  %v16560_v35 = vld [vmem:[#allocation2 + $0x78] sm:$0xff] }
  0xb1   : > { %v16488_v1 = vpop.permute.xlu1 %1792  ;;  %v16490_v5 = vpop.permute.xlu0 %1787  ;;  %14374 = vmatmul.mubr.msk.f32.gmra.mxu1 %vm728_vm0, %v1009_v34  ;;  %v4901_v34 = vld [vmem:[%s21296_s14 + $0x60] sm:$0xff] }
  0xb2   : > { %21569 = vst [vmem:[#allocation17_spill] sm:$0xff] %v16488_v1  ;;  %21570 = vst [vmem:[#allocation18_spill] sm:$0xff] %v16490_v5  ;;  %v1914_v19 = vmul.f32 %v4334_v62, %v16488_v1  ;;  %v1913_v22 = vmul.f32 %v4333_v11, %v16490_v5  ;;  %5082 = vperm.xlu1 %15538, %v15950_v47   ;;  %5077 = vperm.xlu0 %15537, %v15957_v49   ;;  %v4336_v49 = vld [vmem:[#allocation2 + $0x5a] sm:$0xff]  ;;  %v16562_v62 = vld [vmem:[#allocation2 + $0x70] sm:$0xff] }
  0xb3   : > { %v4909_v1 = vld [vmem:[%s21296_s14 + $0xa0] sm:$0xff] }
  0xb4   : > { %14423 = vmatprep.mubr.msk.f32.mxu0 %vm728_vm0, %v1913_v22 }
  0xb5   : > { %v16502_v9 = vpop.permute.xlu1 %897  ;;  %v16504_v10 = vpop.permute.xlu0 %892  ;;  %14424 = vmatmul.mubr.msk.f32.gmra.mxu0 %vm728_vm0, %v1914_v19 }
  0xb6   : > { %v1011_v23 = vmul.f32 %v16498_v39, %v16502_v9  ;;  %v1010_v47 = vmul.f32 %v16500_v41, %v16504_v10  ;;  %5980 = vperm.xlu1 %15538, %v15976_v58   ;;  %5975 = vperm.xlu0 %15537, %v15981_v59   ;;  %v16524_v58 = vld [vmem:[#allocation2 + $0x68] sm:$0xff]  ;;  %v16526_v59 = vld [vmem:[#allocation2 + $0x60] sm:$0xff] }
  0xb8   : > { %14376 = vmatprep.mubr.msk.f32.mxu1 %vm728_vm0, %v1010_v47  ;;  %v4872_v47 = vld [vmem:[%s21295_s13 + $0x78] sm:$0xff] }
  0xb9   : > { %v16514_v30 = vpop.permute.xlu1 %1802  ;;  %v16516_v0 = vpop.permute.xlu0 %1797  ;;  %14377 = vmatmul.mubr.msk.f32.gmra.mxu1 %vm728_vm0, %v1011_v23 }
  0xba   : > { %21571 = vst [vmem:[#allocation19_spill] sm:$0xff] %v16514_v30  ;;  %21572 = vst [vmem:[#allocation20_spill] sm:$0xff] %v16516_v0  ;;  %v1916_v4 = vmul.f32 %v4336_v49, %v16514_v30  ;;  %v1915_v36 = vmul.f32 %v4335_v29, %v16516_v0  ;;  %5092 = vperm.xlu1 %15538, %v15996_v2   ;;  %5087 = vperm.xlu0 %15537, %v16001_v8   ;;  %v4870_v8 = vld [vmem:[%s21295_s13 + $0x68] sm:$0xff]  ;;  %v4871_v49 = vld [vmem:[%s21295_s13 + $0x70] sm:$0xff] }
  0xbb   : > { %v16580_v29 = vld [vmem:[#allocation2 + $0x7a] sm:$0xff]  ;;  %v16704_v30 = vld [vmem:[#allocation2 + $0xa2] sm:$0xff] }
  0xbc   : > { %14426 = vmatprep.mubr.msk.f32.mxu0 %vm728_vm0, %v1915_v36  ;;  %21575 = vst [vmem:[#allocation23_spill] sm:$0xff] %v16580_v29  ;;  %21589 = vst [vmem:[#allocation37_spill] sm:$0xff] %v16704_v30 }
  0xbd   : > { %v16528_v37 = vpop.permute.xlu1 %907  ;;  %v16530_v18 = vpop.permute.xlu0 %902  ;;  %14427 = vmatmul.mubr.msk.f32.gmra.mxu0 %vm728_vm0, %v1916_v4  ;;  %v16582_v4 = vld [vmem:[#allocation2 + $0x72] sm:$0xff] }
  0xbe   : > { %v1013_v43 = vmul.f32 %v16524_v58, %v16528_v37  ;;  %v1012_v2 = vmul.f32 %v16526_v59, %v16530_v18  ;;  %5990 = vperm.xlu1 %15538, %v16014_v15   ;;  %5985 = vperm.xlu0 %15537, %v16019_v16   ;;  %21576 = vst [vmem:[#allocation24_spill] sm:$0xff] %v16582_v4 }
  0xc0   : > { %14379 = vmatprep.mubr.msk.f32.mxu1 %vm728_vm0, %v1012_v2 }
  0xc1   : > { %v16546_v45 = vpop.permute.xlu1 %1812  ;;  %v16548_v50 = vpop.permute.xlu0 %1807  ;;  %14380 = vmatmul.mubr.msk.f32.gmra.mxu1 %vm728_vm0, %v1013_v43 }
  0xc2   : > { %21573 = vst [vmem:[#allocation21_spill] sm:$0xff] %v16546_v45  ;;  %21574 = vst [vmem:[#allocation22_spill] sm:$0xff] %v16548_v50  ;;  %v1918_v15 = vmul.f32 %v4338_v7, %v16546_v45  ;;  %v1917_v16 = vmul.f32 %v4337_v44, %v16548_v50  ;;  %5102 = vperm.xlu1 %15538, %v4870_v8   ;;  %5097 = vperm.xlu0 %15537, %v4869_v6   ;;  %v4904_v6 = vld [vmem:[%s21296_s14 + $0x78] sm:$0xff]  ;;  %v4903_v7 = vld [vmem:[%s21296_s14 + $0x70] sm:$0xff] }
  0xc3   : > { %v16600_v44 = vld [vmem:[#allocation2 + $0x88] sm:$0xff] }
  0xc4   : > { %14429 = vmatprep.mubr.msk.f32.mxu0 %vm728_vm0, %v1917_v16  ;;  %v16680_v50 = vld [vmem:[#allocation2 + $0xa8] sm:$0xff] }
  0xc5   : > { %v16564_v11 = vpop.permute.xlu1 %917  ;;  %v16566_v19 = vpop.permute.xlu0 %912  ;;  %14430 = vmatmul.mubr.msk.f32.gmra.mxu0 %vm728_vm0, %v1918_v15  ;;  %v16602_v15 = vld [vmem:[#allocation2 + $0x80] sm:$0xff] }
  0xc6   : > { %v1015_v22 = vmul.f32 %v16560_v35, %v16564_v11  ;;  %v1014_v23 = vmul.f32 %v16562_v62, %v16566_v19  ;;  %6000 = vperm.xlu1 %15538, %v4902_v51   ;;  %5995 = vperm.xlu0 %15537, %v4901_v34  }
  0xc8   : > { %14382 = vmatprep.mubr.msk.f32.mxu1 %vm728_vm0, %v1014_v23  ;;  %v4874_v23 = vld [vmem:[%s21295_s13 + $0x88] sm:$0xff] }
  0xc9   : > { %v16584_v36 = vpop.permute.xlu1 %1822  ;;  %v16586_v43 = vpop.permute.xlu0 %1817  ;;  %14383 = vmatmul.mubr.msk.f32.gmra.mxu1 %vm728_vm0, %v1015_v22 }
  0xca   : > { %21577 = vst [vmem:[#allocation25_spill] sm:$0xff] %v16584_v36  ;;  %21578 = vst [vmem:[#allocation26_spill] sm:$0xff] %v16586_v43  ;;  %v1920_v2 = vmul.f32 %v16580_v29, %v16584_v36  ;;  %v1919_v8 = vmul.f32 %v16582_v4, %v16586_v43  ;;  %5112 = vperm.xlu1 %15538, %v4872_v47   ;;  %5107 = vperm.xlu0 %15537, %v4871_v49   ;;  %v4873_v47 = vld [vmem:[%s21295_s13 + $0x80] sm:$0xff]  ;;  %v16620_v49 = vld [vmem:[#allocation2 + $0x8a] sm:$0xff] }
  0xcb   : > { %21579 = vst [vmem:[#allocation27_spill] sm:$0xff] %v16620_v49  ;;  %v4905_v36 = vld [vmem:[%s21296_s14 + $0x80] sm:$0xff]  ;;  %v16640_v43 = vld [vmem:[#allocation2 + $0x98] sm:$0xff]  ;;  %v4907_v4 = vld [vmem:[%s21296_s14 + $0x90] sm:$0xff] }
  0xcc   : > { %14432 = vmatprep.mubr.msk.f32.mxu0 %vm728_vm0, %v1919_v8 }
  0xcd   : > { %v16604_v16 = vpop.permute.xlu1 %927  ;;  %v16606_v51 = vpop.permute.xlu0 %922  ;;  %14433 = vmatmul.mubr.msk.f32.gmra.mxu0 %vm728_vm0, %v1920_v2  ;;  %v16622_v2 = vld [vmem:[#allocation2 + $0x82] sm:$0xff] }
  0xce   : > { %v1017_v34 = vmul.f32 %v16600_v44, %v16604_v16  ;;  %v1016_v22 = vmul.f32 %v16602_v15, %v16606_v51  ;;  %6010 = vperm.xlu1 %15538, %v4904_v6   ;;  %6005 = vperm.xlu0 %15537, %v4903_v7   ;;  %21580 = vst [vmem:[#allocation28_spill] sm:$0xff] %v16622_v2 }
  0xd0   : > { %14385 = vmatprep.mubr.msk.f32.mxu1 %vm728_vm0, %v1016_v22  ;;  %v4906_v22 = vld [vmem:[%s21296_s14 + $0x88] sm:$0xff] }
  0xd1   : > { %v16624_v8 = vpop.permute.xlu1 %1832  ;;  %v16626_v3 = vpop.permute.xlu0 %1827  ;;  %14386 = vmatmul.mubr.msk.f32.gmra.mxu1 %vm728_vm0, %v1017_v34  ;;  %v16642_v34 = vld [vmem:[#allocation2 + $0x90] sm:$0xff] }
  0xd2   : > { %21581 = vst [vmem:[#allocation29_spill] sm:$0xff] %v16624_v8  ;;  %21582 = vst [vmem:[#allocation30_spill] sm:$0xff] %v16626_v3  ;;  %v1922_v6 = vmul.f32 %v16620_v49, %v16624_v8  ;;  %v1921_v7 = vmul.f32 %v16622_v2, %v16626_v3  ;;  %5122 = vperm.xlu1 %15538, %v4874_v23   ;;  %5117 = vperm.xlu0 %15537, %v4873_v47   ;;  %v4875_v3 = vld [vmem:[%s21295_s13 + $0x90] sm:$0xff]  ;;  %v16660_v2 = vld [vmem:[#allocation2 + $0x9a] sm:$0xff] }
  0xd3   : > { %21583 = vst [vmem:[#allocation31_spill] sm:$0xff] %v16660_v2 }
  0xd4   : > { %14435 = vmatprep.mubr.msk.f32.mxu0 %vm728_vm0, %v1921_v7  ;;  %v4876_v7 = vld [vmem:[%s21295_s13 + $0x98] sm:$0xff] }
  0xd5   : > { %v16644_v8 = vpop.permute.xlu1 %937  ;;  %v16646_v49 = vpop.permute.xlu0 %932  ;;  %14436 = vmatmul.mubr.msk.f32.gmra.mxu0 %vm728_vm0, %v1922_v6  ;;  %v16662_v6 = vld [vmem:[#allocation2 + $0x92] sm:$0xff] }
  0xd6   : > { %v1019_v23 = vmul.f32 %v16640_v43, %v16644_v8  ;;  %v1018_v47 = vmul.f32 %v16642_v34, %v16646_v49  ;;  %6020 = vperm.xlu1 %15538, %v4906_v22   ;;  %6015 = vperm.xlu0 %15537, %v4905_v36   ;;  %21584 = vst [vmem:[#allocation32_spill] sm:$0xff] %v16662_v6 }
  0xd8   : > { %14388 = vmatprep.mubr.msk.f32.mxu1 %vm728_vm0, %v1018_v47  ;;  %v4908_v47 = vld [vmem:[%s21296_s14 + $0x98] sm:$0xff] }
  0xd9   : > { %v16664_v29 = vpop.permute.xlu1 %1842  ;;  %v16666_v45 = vpop.permute.xlu0 %1837  ;;  %14389 = vmatmul.mubr.msk.f32.gmra.mxu1 %vm728_vm0, %v1019_v23  ;;  %v16682_v23 = vld [vmem:[#allocation2 + $0xa0] sm:$0xff] }
  0xda   : > { %21585 = vst [vmem:[#allocation33_spill] sm:$0xff] %v16664_v29  ;;  %21586 = vst [vmem:[#allocation34_spill] sm:$0xff] %v16666_v45  ;;  %v1924_v36 = vmul.f32 %v16660_v2, %v16664_v29  ;;  %v1923_v22 = vmul.f32 %v16662_v6, %v16666_v45  ;;  %5132 = vperm.xlu1 %15538, %v4876_v7   ;;  %5127 = vperm.xlu0 %15537, %v4875_v3   ;;  %v4877_v45 = vld [vmem:[%s21295_s13 + $0xa0] sm:$0xff] }
  0xdb   : > { %v16700_v6 = vpop.f32.mrf.mxu0 }
  0xdc   : > { %14438 = vmatprep.mubr.msk.f32.mxu0 %vm728_vm0, %v1923_v22  ;;  %v4878_v22 = vld [vmem:[%s21295_s13 + $0xa8] sm:$0xff]  ;;  %21587 = vst [vmem:[#allocation35_spill] sm:$0xff] %v16700_v6 }
  0xdd   : > { %v16684_v29 = vpop.permute.xlu1 %947  ;;  %v16686_v2 = vpop.permute.xlu0 %942  ;;  %14439 = vmatmul.mubr.msk.f32.gmra.mxu0 %vm728_vm0, %v1924_v36  ;;  %v16702_v36 = vld [vmem:[#allocation2 + $0xaa] sm:$0xff] }
  0xde   : > { %v1021_v3 = vmul.f32 %v16680_v50, %v16684_v29  ;;  %v1020_v7 = vmul.f32 %v16682_v23, %v16686_v2  ;;  %6030 = vperm.xlu1 %15538, %v4908_v47   ;;  %6025 = vperm.xlu0 %15537, %v4907_v4   ;;  %21588 = vst [vmem:[#allocation36_spill] sm:$0xff] %v16702_v36  ;;  %v4910_v6 = vld [vmem:[%s21296_s14 + $0xa8] sm:$0xff]  ;;  %v16722_v5 = vpop.f32.mrf.mxu0 }
  0xdf   : > { %21592 = vst [vmem:[#allocation40_spill] sm:$0xff] %v16722_v5  ;;  %v4880_v5 = vld [vmem:[%s21295_s13 + $0xb8] sm:$0xff] }
  0xe0   : > { %14391 = vmatprep.mubr.msk.f32.mxu1 %vm728_vm0, %v1020_v7 }
  0xe1   : > { %v16706_v0 = vpop.permute.xlu1 %1852  ;;  %v16708_v47 = vpop.permute.xlu0 %1847  ;;  %14392 = vmatmul.mubr.msk.f32.gmra.mxu1 %vm728_vm0, %v1021_v3  ;;  %v16724_v3 = vld [vmem:[#allocation2 + $0xb8] sm:$0xff] }
  0xe2   : > { %21590 = vst [vmem:[#allocation38_spill] sm:$0xff] %v16706_v0  ;;  %21591 = vst [vmem:[#allocation39_spill] sm:$0xff] %v16708_v47  ;;  %v1926_v4 = vmul.f32 %v16702_v36, %v16706_v0  ;;  %v1925_v7 = vmul.f32 %v16704_v30, %v16708_v47  ;;  %5142 = vperm.xlu1 %15538, %v4878_v22   ;;  %5137 = vperm.xlu0 %15537, %v4877_v45   ;;  %v16726_v0 = vld [vmem:[#allocation2 + $0xb0] sm:$0xff] }
  0xe3   : > { %v4879_v47 = vld [vmem:[%s21295_s13 + $0xb0] sm:$0xff] }
  0xe4   : > { %14441 = vmatprep.mubr.msk.f32.mxu0 %vm728_vm0, %v1925_v7 }
  0xe5   : > { %v16728_v36 = vpop.permute.xlu1 %957  ;;  %v16730_v22 = vpop.permute.xlu0 %952  ;;  %14442 = vmatmul.mubr.msk.f32.gmra.mxu0 %vm728_vm0, %v1926_v4  ;;  %v16746_v4 = vld [vmem:[#allocation2 + $0xba] sm:$0xff] }
  0xe6   : > { %v1023_v45 = vmul.f32 %v16724_v3, %v16728_v36  ;;  %v1022_v7 = vmul.f32 %v16726_v0, %v16730_v22  ;;  %6040 = vperm.xlu1 %15538, %v4910_v6   ;;  %6035 = vperm.xlu0 %15537, %v4909_v1   ;;  %21594 = vst [vmem:[#allocation42_spill] sm:$0xff] %v16746_v4 }
  0xe8   : > { %14394 = vmatprep.mubr.msk.f32.mxu1 %vm728_vm0, %v1022_v7 }
  0xe9   : > { %v16750_v48 = vpop.permute.xlu1 %1862  ;;  %v16752_v6 = vpop.permute.xlu0 %1857  ;;  %14395 = vmatmul.mubr.msk.f32.gmra.mxu1 %vm728_vm0, %v1023_v45  ;;  %v4911_v45 = vld [vmem:[%s21296_s14 + $0xb0] sm:$0xff] }
  0xea   : > { %21596 = vst [vmem:[#allocation44_spill] sm:$0xff] %v16750_v48  ;;  %21597 = vst [vmem:[#allocation45_spill] sm:$0xff] %v16752_v6  ;;  %v1928_v1 = vmul.f32 %v16746_v4, %v16750_v48  ;;  %v1927_v7 = vmul.f32 %v16748_v46, %v16752_v6  ;;  %5152 = vperm.xlu1 %15538, %v4880_v5   ;;  %5147 = vperm.xlu0 %15537, %v4879_v47   ;;  %v16770_v48 = vld [vmem:[#allocation2 + $0xc8] sm:$0xff]  ;;  %v16772_v4 = vld [vmem:[#allocation2 + $0xc0] sm:$0xff] }
  0xeb   : > { %v4882_v46 = vld [vmem:[%s21295_s13 + $0xc8] sm:$0xff] }
  0xec   : > { %v16744_v30 = vpop.f32.mrf.mxu0  ;;  %14444 = vmatprep.mubr.msk.f32.mxu0 %vm728_vm0, %v1927_v7 }
  0xed   : > { %21593 = vst [vmem:[#allocation41_spill] sm:$0xff] %v16744_v30  ;;  %v4912_v30 = vld [vmem:[%s21296_s14 + $0xb8] sm:$0xff]  ;;  %v16774_v6 = vpop.permute.xlu1 %967  ;;  %v16776_v5 = vpop.permute.xlu0 %962  ;;  %14445 = vmatmul.mubr.msk.f32.gmra.mxu0 %vm728_vm0, %v1928_v1  ;;  %v4881_v1 = vld [vmem:[%s21295_s13 + $0xc0] sm:$0xff] }
  0xee   : > { %v16759_v31 = vpop.f32.mrf.mxu0  ;;  %21600 = vst [vmem:[#allocation48_spill] sm:$0xff] %v16774_v6  ;;  %v1025_v47 = vmul.f32 %v16770_v48, %v16774_v6  ;;  %v1024_v7 = vmul.f32 %v16772_v4, %v16776_v5  ;;  %6050 = vperm.xlu1 %15538, %v4912_v30   ;;  %6045 = vperm.xlu0 %15537, %v4911_v45  }
  0xef   : > { %21598 = vst [vmem:[#allocation46_spill] sm:$0xff] %v16759_v31 }
  0xf0   : > { %v16768_v32 = vpop.f32.mrf.mxu0  ;;  %14397 = vmatprep.mubr.msk.f32.mxu1 %vm728_vm0, %v1024_v7 }
  0xf1   : > { %21599 = vst [vmem:[#allocation47_spill] sm:$0xff] %v16768_v32  ;;  %v16798_v21 = vpop.permute.xlu1 %1872  ;;  %v16800_v30 = vpop.permute.xlu0 %1867  ;;  %14398 = vmatmul.mubr.msk.f32.gmra.mxu1 %vm728_vm0, %v1025_v47  ;;  %v4913_v47 = vld [vmem:[%s21296_s14 + $0xc0] sm:$0xff] }
  0xf2   : > { %v16783_v31 = vpop.f32.mrf.mxu0  ;;  %21605 = vst [vmem:[#allocation53_spill] sm:$0xff] %v16798_v21  ;;  %21606 = vst [vmem:[#allocation54_spill] sm:$0xff] %v16800_v30  ;;  %v1930_v45 = vmul.f32 %v16794_v27, %v16798_v21  ;;  %v1929_v7 = vmul.f32 %v16796_v28, %v16800_v30  ;;  %5162 = vperm.xlu1 %15538, %v4882_v46   ;;  %5157 = vperm.xlu0 %15537, %v4881_v1   ;;  %v16818_v21 = vld [vmem:[#allocation2 + $0xd8] sm:$0xff]  ;;  %v16820_v27 = vld [vmem:[#allocation2 + $0xd0] sm:$0xff] }
  0xf3   : > { %21601 = vst [vmem:[#allocation49_spill] sm:$0xff] %v16783_v31  ;;  %21609 = vst [vmem:[#allocation57_spill] sm:$0xff] %v16818_v21 }
  0xf4   : > { %v16792_v32 = vpop.f32.mrf.mxu0  ;;  %14447 = vmatprep.mubr.msk.f32.mxu0 %vm728_vm0, %v1929_v7  ;;  %21610 = vst [vmem:[#allocation58_spill] sm:$0xff] %v16820_v27 }
  0xf5   : > { %21602 = vst [vmem:[#allocation50_spill] sm:$0xff] %v16792_v32  ;;  %v4914_v32 = vld [vmem:[%s21296_s14 + $0xc8] sm:$0xff]  ;;  %v16822_v30 = vpop.permute.xlu1 %977  ;;  %v16824_v46 = vpop.permute.xlu0 %972  ;;  %14448 = vmatmul.mubr.msk.f32.gmra.mxu0 %vm728_vm0, %v1930_v45  ;;  %v16840_v45 = vld [vmem:[#allocation2 + $0xda] sm:$0xff] }
  0xf6   : > { %v16807_v31 = vpop.f32.mrf.mxu0  ;;  %21611 = vst [vmem:[#allocation59_spill] sm:$0xff] %v16822_v30  ;;  %21612 = vst [vmem:[#allocation60_spill] sm:$0xff] %v16824_v46  ;;  %v1027_v1 = vmul.f32 %v16818_v21, %v16822_v30  ;;  %v1026_v7 = vmul.f32 %v16820_v27, %v16824_v46  ;;  %6060 = vperm.xlu1 %15538, %v4914_v32   ;;  %6055 = vperm.xlu0 %15537, %v4913_v47   ;;  %v16842_v30 = vld [vmem:[#allocation2 + $0xd2] sm:$0xff] }
  0xf7   : > { %21607 = vst [vmem:[#allocation55_spill] sm:$0xff] %v16807_v31  ;;  %v4884_v31 = vld [vmem:[%s21295_s13 + $0xd8] sm:$0xff]  ;;  %21614 = vst [vmem:[#allocation62_spill] sm:$0xff] %v16840_v45  ;;  %v4915_v46 = vld [vmem:[%s21296_s14 + $0xd0] sm:$0xff] }
  0xf8   : > { %v16816_v24 = vpop.f32.mrf.mxu0  ;;  %14400 = vmatprep.mubr.msk.f32.mxu1 %vm728_vm0, %v1026_v7  ;;  %21615 = vst [vmem:[#allocation63_spill] sm:$0xff] %v16842_v30 }
  0xf9   : > { %21608 = vst [vmem:[#allocation56_spill] sm:$0xff] %v16816_v24  ;;  %v4883_v24 = vld [vmem:[%s21295_s13 + $0xd0] sm:$0xff]  ;;  %v16844_v21 = vpop.permute.xlu1 %1882  ;;  %v16846_v32 = vpop.permute.xlu0 %1877  ;;  %14401 = vmatmul.mubr.msk.f32.gmra.mxu1 %vm728_vm0, %v1027_v1  ;;  %v16862_v1 = vld [vmem:[#allocation2 + $0xe8] sm:$0xff] }
  0xfa   : > { %v16838_v28 = vpop.f32.mrf.mxu0  ;;  %21616 = vst [vmem:[#allocation64_spill] sm:$0xff] %v16844_v21  ;;  %21617 = vst [vmem:[#allocation65_spill] sm:$0xff] %v16846_v32  ;;  %v1932_v47 = vmul.f32 %v16840_v45, %v16844_v21  ;;  %v1931_v7 = vmul.f32 %v16842_v30, %v16846_v32  ;;  %5172 = vperm.xlu1 %15538, %v4884_v31   ;;  %5167 = vperm.xlu0 %15537, %v4883_v24   ;;  %v16864_v21 = vld [vmem:[#allocation2 + $0xe0] sm:$0xff] }
  0xfb   : > { %21613 = vst [vmem:[#allocation61_spill] sm:$0xff] %v16838_v28  ;;  %v4916_v28 = vld [vmem:[%s21296_s14 + $0xd8] sm:$0xff]  ;;  %21619 = vst [vmem:[#allocation67_spill] sm:$0xff] %v16862_v1  ;;  %v4885_v32 = vld [vmem:[%s21295_s13 + $0xe0] sm:$0xff] }
  0xfc   : > { %14450 = vmatprep.mubr.msk.f32.mxu0 %vm728_vm0, %v1931_v7  ;;  %v16860_v6 = vpop.f32.mrf.mxu0  ;;  %21620 = vst [vmem:[#allocation68_spill] sm:$0xff] %v16864_v21 }
  0xfd   : > { %21618 = vst [vmem:[#allocation66_spill] sm:$0xff] %v16860_v6  ;;  %v16866_v45 = vpop.permute.xlu1 %987  ;;  %v16868_v31 = vpop.permute.xlu0 %982  ;;  %14451 = vmatmul.mubr.msk.f32.gmra.mxu0 %vm728_vm0, %v1932_v47  ;;  %v4886_v6 = vld [vmem:[%s21295_s13 + $0xe8] sm:$0xff] }
  0xfe   : > { %21621 = vst [vmem:[#allocation69_spill] sm:$0xff] %v16866_v45  ;;  %21622 = vst [vmem:[#allocation70_spill] sm:$0xff] %v16868_v31  ;;  %v1029_v24 = vmul.f32 %v16862_v1, %v16866_v45  ;;  %v1028_v7 = vmul.f32 %v16864_v21, %v16868_v31  ;;  %6070 = vperm.xlu1 %15538, %v4916_v28   ;;  %6065 = vperm.xlu0 %15537, %v4915_v46   ;;  %v16882_v30 = vpop.f32.mrf.mxu0  ;;  %v16884_v47 = vld [vmem:[#allocation2 + $0xea] sm:$0xff]  ;;  %v16886_v45 = vld [vmem:[#allocation2 + $0xe2] sm:$0xff]  ;;  %v21629_v21 = vmov 0.0  }
  0xff   : > { %21623 = vst [vmem:[#allocation71_spill] sm:$0xff] %v16882_v30  ;;  %21624 = vst [vmem:[#allocation72_spill] sm:$0xff] %v16884_v47  ;;  %v4918_v30 = vld [vmem:[%s21296_s14 + $0xe8] sm:$0xff]  ;;  %v4917_v31 = vld [vmem:[%s21296_s14 + $0xe0] sm:$0xff] }
 0x100   : > { %14403 = vmatprep.mubr.msk.f32.mxu1 %vm728_vm0, %v1028_v7  ;;  %21625 = vst [vmem:[#allocation73_spill] sm:$0xff] %v16886_v45  ;;  %4961 = vst.msk [vmem:[#allocation3 + $0x120] sm:$0x3] %vm4960_vm4, %v21629_v21 }
 0x101   : > { %v16888_v1 = vpop.permute.xlu1 %1892  ;;  %v16890_v28 = vpop.permute.xlu0 %1887  ;;  %14404 = vmatmul.mubr.msk.f32.gmra.mxu1 %vm728_vm0, %v1029_v24  ;;  %9399 = vst.msk [vmem:[#allocation5 + $0x50] sm:$0x3] %vm4960_vm4, %v21629_v21 }
 0x102   : > { %21626 = vst [vmem:[#allocation74_spill] sm:$0xff] %v16888_v1  ;;  %21627 = vst [vmem:[#allocation75_spill] sm:$0xff] %v16890_v28  ;;  %v1934_v46 = vmul.f32 %v16884_v47, %v16888_v1  ;;  %v1933_v7 = vmul.f32 %v16886_v45, %v16890_v28  ;;  %5182 = vperm.xlu1 %15538, %v4886_v6   ;;  %5177 = vperm.xlu0 %15537, %v4885_v32   ;;  %v16904_v24 = vpop.f32.mrf.mxu0  ;;  %v16908_v1 = vld [vmem:[#allocation2 + $0xf8] sm:$0xff]  ;;  %v16910_v6 = vld [vmem:[#allocation2 + $0xf0] sm:$0xff] }
 0x103   : > { %21628 = vst [vmem:[#allocation76_spill] sm:$0xff] %v16904_v24  ;;  %v2325_v47 = vmul.f32 %v16356_v53, %v16359_v56  ;;  %v4888_v45 = vld [vmem:[%s21295_s13 + $0xf8] sm:$0xff]  ;;  %10889 = vst.msk [vmem:[#allocation6] sm:$0xff] %vm10888_vm5, %v21629_v21 }
 0x104   : > { %14453 = vmatprep.mubr.msk.f32.mxu0 %vm728_vm0, %v1933_v7  ;;  %v16930_v27 = vpop.f32.mrf.mxu0  ;;  %v4920_v53 = vld [vmem:[%s21296_s14 + $0xf8] sm:$0xff]  ;;  %10890 = vst.msk [vmem:[#allocation6 + $0x8] sm:$0xff] %vm10888_vm5, %v21629_v21  ;;  %10891 = vst.msk [vmem:[#allocation6 + $0x10] sm:$0xff] %vm10888_vm5, %v21629_v21 }
 0x105   : > { %v16912_v32 = vpop.permute.xlu1 %997  ;;  %v16914_v7 = vpop.permute.xlu0 %992  ;;  %14454 = vmatmul.mubr.msk.f32.gmra.mxu0 %vm728_vm0, %v1934_v46  ;;  %v4887_v46 = vld [vmem:[%s21295_s13 + $0xf0] sm:$0xff]  ;;  %21632 = vst [vmem:[#allocation79_spill] sm:$0xff] %v16930_v27  ;;  %10892 = vst.msk [vmem:[#allocation6 + $0x18] sm:$0xff] %vm10888_vm5, %v21629_v21 }
 0x106   : > { %21630 = vst [vmem:[#allocation77_spill] sm:$0xff] %v16912_v32  ;;  %21631 = vst [vmem:[#allocation78_spill] sm:$0xff] %v16914_v7  ;;  %v1031_v28 = vmul.f32 %v16908_v1, %v16912_v32  ;;  %v1030_v24 = vmul.f32 %v16910_v6, %v16914_v7  ;;  %6080 = vperm.xlu1 %15538, %v4918_v30   ;;  %6075 = vperm.xlu0 %15537, %v4917_v31   ;;  %v16932_v32 = vld [vmem:[#allocation2 + $0xfa] sm:$0xff]  ;;  %v16937_v30 = vld [vmem:[#allocation2 + $0xf2] sm:$0xff] }
 0x107   : > { %21633 = vst [vmem:[#allocation80_spill] sm:$0xff] %v16932_v32  ;;  %10893 = vst.msk [vmem:[#allocation6 + $0x20] sm:$0xff] %vm10888_vm5, %v21629_v21 }
 0x108   : > { %14406 = vmatprep.mubr.msk.f32.mxu1 %vm728_vm0, %v1030_v24  ;;  %v2326_v24 = vmul.f32 %v16364_v60, %v16370_v63  ;;  %v2713_v63 = vld [vmem:[#allocation2 + $0x11] sm:$0xff]  ;;  %10894 = vst.msk [vmem:[#allocation6 + $0x28] sm:$0xff] %vm10888_vm5, %v21629_v21  ;;  %10895 = vst.msk [vmem:[#allocation6 + $0x30] sm:$0xff] %vm10888_vm5, %v21629_v21 }
 0x109   : > { %v16934_v7 = vpop.permute.xlu1 %1902  ;;  %14407 = vmatmul.mubr.msk.f32.gmra.mxu1 %vm728_vm0, %v1031_v28  ;;  %v16941_v31 = vpop.permute.xlu0 %1897  ;;  %v2327_v28 = vmul.f32 %v16377_v12, %v16354_v52  ;;  %v16965_v12 = vld [vmem:[%s21558_s25 + $0x1c] sm:$0xf]  ;;  %10896 = vst.msk [vmem:[#allocation6 + $0x38] sm:$0xff] %vm10888_vm5, %v21629_v21  ;;  %10897 = vst.msk [vmem:[#allocation6 + $0x40] sm:$0xff] %vm10888_vm5, %v21629_v21 }
 0x10a   : > { %21634 = vst [vmem:[#allocation81_spill] sm:$0xff] %v16934_v7  ;;  %v1936_v56 = vmul.f32 %v16932_v32, %v16934_v7  ;;  %21635 = vst [vmem:[#allocation82_spill] sm:$0xff] %v16941_v31  ;;  %14461 = vmatprep.mubr.msk.f32.mxu1 %vm728_vm0, %v2325_v47  ;;  %v1935_v27 = vmul.f32 %v16937_v30, %v16941_v31  ;;  %5192 = vperm.xlu1 %15538, %v4888_v45   ;;  %v4919_v7 = vld [vmem:[%s21296_s14 + $0xf0] sm:$0xff]  ;;  %v16956_v47 = vpop.f32.mrf.mxu0  ;;  %v17312_v32 = vld [vmem:[#allocation2 + $0xd9] sm:$0xff] }
 0x10b   : > { %5187 = vperm.xlu0 %15537, %v4887_v46   ;;  %21636 = vst [vmem:[#allocation83_spill] sm:$0xff] %v16956_v47  ;;  %v2328_v45 = vmul.f32 %v16394_v20, %v16362_v57  ;;  %v2714_v46 = vld [vmem:[#allocation2 + $0x19] sm:$0xff]  ;;  %v16987_v20 = vld [vmem:[#allocation2 + $0x21] sm:$0xff]  ;;  %10898 = vst.msk [vmem:[#allocation6 + $0x48] sm:$0xff] %vm10888_vm5, %v21629_v21 }
 0x10c   : > { %14456 = vmatprep.mubr.msk.f32.mxu0 %vm728_vm0, %v1935_v27  ;;  %v2329_v27 = vmul.f32 %v16435_v42, %v16381_v14  ;;  %21638 = vst [vmem:[#allocation85_spill] sm:$0xff] %v16987_v20  ;;  %v16996_v42 = vld [vmem:[%s21558_s25 + $0x20] sm:$0xf]  ;;  %12382 = vst.msk [vmem:[#allocation7] sm:$0xff] %vm10888_vm5, %v21629_v21  ;;  %v17231_v47 = vld [vmem:[#allocation2 + $0x91] sm:$0xff] }
 0x10d   : > { %14462 = vmatmul.mubr.msk.f32.vlgmr.msra.gmra.mxu1 %vm728_vm0, %v2326_v24  ;;  %14457 = vmatmul.mubr.msk.f32.gmra.mxu0 %vm728_vm0, %v1936_v56  ;;  %v16975_v56 = vld [vmem:[%s21298_s16 + $0x8] sm:$0xff]  ;;  %v16980_v24 = vld [vmem:[%s21298_s16] sm:$0xff]  ;;  %12383 = vst.msk [vmem:[#allocation7 + $0x8] sm:$0xff] %vm10888_vm5, %v21629_v21  ;;  %12384 = vst.msk [vmem:[#allocation7 + $0x10] sm:$0xff] %vm10888_vm5, %v21629_v21 }
 0x10e   : > { %14464 = vmatprep.mubr.msk.f32.mxu1 %vm728_vm0, %v2327_v28  ;;  %6090 = vperm.xlu1 %15538, %v4920_v53   ;;  %v16984_v53 = vpop.f32.mrf.mxu0  ;;  %v2331_v28 = vmul.f32 %v16465_v54, %v16432_v40  ;;  %v17023_v54 = vld [vmem:[#allocation2 + $0x31] sm:$0xff]  ;;  %12385 = vst.msk [vmem:[#allocation7 + $0x18] sm:$0xff] %vm10888_vm5, %v21629_v21  ;;  %12386 = vst.msk [vmem:[#allocation7 + $0x20] sm:$0xff] %vm10888_vm5, %v21629_v21  ;;  %v17258_v31 = vld [vmem:[#allocation2 + $0xa9] sm:$0xff] }
 0x10f   : > { %6085 = vperm.xlu0 %15537, %v4919_v7   ;;  %14511 = vmatprep.mubr.msk.f32.mxu0 %vm728_vm0, %v2713_v63  ;;  %21637 = vst [vmem:[#allocation84_spill] sm:$0xff] %v16984_v53  ;;  %v17002_v7 = vld [vmem:[#allocation2 + $0x29] sm:$0xff]  ;;  %21641 = vst [vmem:[#allocation88_spill] sm:$0xff] %v17023_v54  ;;  %v17146_v53 = vld [vmem:[#allocation2 + $0x79] sm:$0xff] }
 0x110   : > { %14560 = vmatpush3.msk.msra.mxu1 %vm1160_vm1, %v16458_v25  ;;  %v2330_v25 = vmul.f32 %v16428_v17, %v16379_v13  ;;  %21639 = vst [vmem:[#allocation86_spill] sm:$0xff] %v17002_v7  ;;  %v17011_v63 = vld [vmem:[%s21299_s17 + $0x8] sm:$0xff]  ;;  %v17016_v17 = vld [vmem:[%s21299_s17] sm:$0xff]  ;;  %21654 = vst [vmem:[#allocation101_spill] sm:$0xff] %v17146_v53 }
 0x111   : > { %14465 = vmatmul.mubr.msk.f32.gmra.mxu1 %vm728_vm0, %v2328_v45  ;;  %14659 = vmatprep.subr.msk.mxu1 %vm1160_vm1, %v16965_v12  ;;  %v17020_v45 = vpop.f32.mrf.mxu0  ;;  %12387 = vst.msk [vmem:[#allocation7 + $0x28] sm:$0xff] %vm10888_vm5, %v21629_v21  ;;  %12388 = vst.msk [vmem:[#allocation7 + $0x30] sm:$0xff] %vm10888_vm5, %v21629_v21 }
 0x112   : > { %14512 = vmatmul.mubr.msk.f32.vlgmr.msra.gmra.mxu0 %vm728_vm0, %v2714_v46  ;;  %14467 = vmatprep.mubr.msk.f32.mxu1 %vm728_vm0, %v2329_v27  ;;  %21640 = vst [vmem:[#allocation87_spill] sm:$0xff] %v17020_v45  ;;  %v2332_v46 = vmul.f32 %v16463_v26, %v16430_v38  ;;  %v2333_v27 = vmul.f32 %v16500_v41, %v16469_v61  ;;  %v17048_v26 = vld [vmem:[%s21298_s16 + $0x10] sm:$0xff]  ;;  %v17053_v45 = vld [vmem:[#allocation2 + $0x41] sm:$0xff]  ;;  %12389 = vst.msk [vmem:[#allocation7 + $0x38] sm:$0xff] %vm10888_vm5, %v21629_v21 }
 0x113   : > { %9432 = vperm.xlu1 %15538, %v16975_v56   ;;  %9427 = vperm.xlu0 %15537, %v16980_v24   ;;  %21644 = vst [vmem:[#allocation91_spill] sm:$0xff] %v17053_v45  ;;  %v2334_v41 = vmul.f32 %v16498_v39, %v16467_v55  ;;  %v17076_v39 = vld [vmem:[%s21299_s17 + $0x10] sm:$0xff]  ;;  %12390 = vst.msk [vmem:[#allocation7 + $0x40] sm:$0xff] %vm10888_vm5, %v21629_v21 }
 0x114   : > { %14514 = vmatprep.mubr.msk.f32.mxu0 %vm728_vm0, %v16987_v20  ;;  %14610 = vmatpush3.msk.msra.mxu0 %vm1160_vm1, %v16481_v33  ;;  %v17034_v33 = vld [vmem:[#allocation2 + $0x39] sm:$0xff]  ;;  %21659 = vst [vmem:[#allocation106_spill] sm:$0xff] %v17231_v47  ;;  %21663 = vst [vmem:[#allocation110_spill] sm:$0xff] %v17258_v31 }
 0x115   : > { %14468 = vmatmul.mubr.msk.f32.gmra.mxu1 %vm728_vm0, %v2330_v25  ;;  %14709 = vmatprep.subr.msk.mxu0 %vm1160_vm1, %v16996_v42  ;;  %21642 = vst [vmem:[#allocation89_spill] sm:$0xff] %v17034_v33  ;;  %v17043_v25 = vld [vmem:[%s21298_s16 + $0x18] sm:$0xff]  ;;  %10900 = vst.msk [vmem:[#allocation6 + $0x50] sm:$0x3] %vm10899_vm6, %v21629_v21 }
 0x116   : > { %14515 = vmatmul.mubr.msk.f32.gmra.mxu0 %vm728_vm0, %v17002_v7  ;;  %14470 = vmatprep.mubr.msk.f32.mxu1 %vm728_vm0, %v2331_v28  ;;  %v17050_v28 = vpop.f32.mrf.mxu0  ;;  %v2343_v7 = vmul.f32 %v16682_v23, %v16646_v49  ;;  %v17240_v20 = vld [vmem:[#allocation2 + $0x99] sm:$0xff] }
 0x117   : > { %9754 = vperm.xlu1 %15538, %v17011_v63   ;;  %9749 = vperm.xlu0 %15537, %v17016_v17   ;;  %21643 = vst [vmem:[#allocation90_spill] sm:$0xff] %v17050_v28  ;;  %v2335_v28 = vmul.f32 %v16526_v59, %v16504_v10  ;;  %v2336_v59 = vmul.f32 %v16524_v58, %v16502_v9  ;;  %v17104_v58 = vld [vmem:[%s21298_s16 + $0x20] sm:$0xff]  ;;  %21660 = vst [vmem:[#allocation107_spill] sm:$0xff] %v17240_v20  ;;  %v15539_v21 = vld [vmem:[#allocation2 + $0x12] sm:$0xff] }
 0x118   : > { %14517 = vmatprep.mubr.msk.f32.mxu0 %vm728_vm0, %v17023_v54  ;;  %v17062_v54 = vld [vmem:[#allocation2 + $0x49] sm:$0xff] }
 0x119   : > { %14471 = vmatmul.mubr.msk.f32.gmra.mxu1 %vm728_vm0, %v2332_v46  ;;  %21645 = vst [vmem:[#allocation92_spill] sm:$0xff] %v17062_v54  ;;  %v17071_v46 = vld [vmem:[%s21299_s17 + $0x18] sm:$0xff] }
 0x11a   : > { %14518 = vmatmul.mubr.msk.f32.gmra.mxu0 %vm728_vm0, %v17034_v33  ;;  %14473 = vmatprep.mubr.msk.f32.mxu1 %vm728_vm0, %v2333_v27  ;;  %v17078_v27 = vpop.f32.mrf.mxu0  ;;  %v17081_v33 = vld [vmem:[#allocation2 + $0x51] sm:$0xff] }
 0x11b   : > { %9442 = vperm.xlu1 %15538, %v17043_v25   ;;  %9437 = vperm.xlu0 %15537, %v17048_v26   ;;  %21646 = vst [vmem:[#allocation93_spill] sm:$0xff] %v17078_v27  ;;  %21647 = vst [vmem:[#allocation94_spill] sm:$0xff] %v17081_v33  ;;  %v2337_v27 = vmul.f32 %v16562_v62, %v16530_v18  ;;  %v2338_v62 = vmul.f32 %v16560_v35, %v16528_v37  ;;  %v17132_v35 = vld [vmem:[%s21299_s17 + $0x20] sm:$0xff] }
 0x11c   : > { %14520 = vmatprep.mubr.msk.f32.mxu0 %vm728_vm0, %v17053_v45  ;;  %v17090_v45 = vld [vmem:[#allocation2 + $0x59] sm:$0xff] }
 0x11d   : > { %14474 = vmatmul.mubr.msk.f32.gmra.mxu1 %vm728_vm0, %v2334_v41  ;;  %21648 = vst [vmem:[#allocation95_spill] sm:$0xff] %v17090_v45  ;;  %v17099_v41 = vld [vmem:[%s21298_s16 + $0x28] sm:$0xff] }
 0x11e   : > { %14521 = vmatmul.mubr.msk.f32.gmra.mxu0 %vm728_vm0, %v17062_v54  ;;  %14476 = vmatprep.mubr.msk.f32.mxu1 %vm728_vm0, %v2335_v28  ;;  %v17106_v28 = vpop.f32.mrf.mxu0  ;;  %v17109_v54 = vld [vmem:[#allocation2 + $0x61] sm:$0xff] }
 0x11f   : > { %9764 = vperm.xlu1 %15538, %v17071_v46   ;;  %9759 = vperm.xlu0 %15537, %v17076_v39   ;;  %21649 = vst [vmem:[#allocation96_spill] sm:$0xff] %v17106_v28  ;;  %21650 = vst [vmem:[#allocation97_spill] sm:$0xff] %v17109_v54  ;;  %v2339_v28 = vmul.f32 %v16602_v15, %v16566_v19 }
 0x120   : > { %14523 = vmatprep.mubr.msk.f32.mxu0 %vm728_vm0, %v17081_v33  ;;  %v17118_v33 = vld [vmem:[#allocation2 + $0x69] sm:$0xff] }
 0x121   : > { %14477 = vmatmul.mubr.msk.f32.gmra.mxu1 %vm728_vm0, %v2336_v59  ;;  %21651 = vst [vmem:[#allocation98_spill] sm:$0xff] %v17118_v33  ;;  %v17127_v59 = vld [vmem:[%s21299_s17 + $0x28] sm:$0xff] }
 0x122   : > { %14524 = vmatmul.mubr.msk.f32.gmra.mxu0 %vm728_vm0, %v17090_v45  ;;  %14479 = vmatprep.mubr.msk.f32.mxu1 %vm728_vm0, %v2337_v27  ;;  %v17134_v27 = vpop.f32.mrf.mxu0  ;;  %v17137_v45 = vld [vmem:[#allocation2 + $0x71] sm:$0xff] }
 0x123   : > { %9452 = vperm.xlu1 %15538, %v17099_v41   ;;  %9447 = vperm.xlu0 %15537, %v17104_v58   ;;  %21652 = vst [vmem:[#allocation99_spill] sm:$0xff] %v17134_v27  ;;  %21653 = vst [vmem:[#allocation100_spill] sm:$0xff] %v17137_v45 }
 0x124   : > { %14526 = vmatprep.mubr.msk.f32.mxu0 %vm728_vm0, %v17109_v54  ;;  %v2340_v54 = vmul.f32 %v16600_v44, %v16564_v11  ;;  %v17160_v44 = vld [vmem:[%s21298_s16 + $0x30] sm:$0xff]  ;;  %v17162_v27 = vpop.f32.mrf.mxu0 }
 0x125   : > { %14480 = vmatmul.mubr.msk.f32.gmra.mxu1 %vm728_vm0, %v2338_v62  ;;  %v2341_v62 = vmul.f32 %v16642_v34, %v16606_v51  ;;  %21655 = vst [vmem:[#allocation102_spill] sm:$0xff] %v17162_v27  ;;  %v17203_v27 = vld [vmem:[#allocation2 + $0x81] sm:$0xff] }
 0x126   : > { %14527 = vmatmul.mubr.msk.f32.gmra.mxu0 %vm728_vm0, %v17118_v33  ;;  %14482 = vmatprep.mubr.msk.f32.mxu1 %vm728_vm0, %v2339_v28  ;;  %v17155_v28 = vld [vmem:[%s21298_s16 + $0x38] sm:$0xff]  ;;  %21656 = vst [vmem:[#allocation103_spill] sm:$0xff] %v17203_v27  ;;  %v17212_v33 = vld [vmem:[#allocation2 + $0x89] sm:$0xff] }
 0x127   : > { %9774 = vperm.xlu1 %15538, %v17127_v59   ;;  %9769 = vperm.xlu0 %15537, %v17132_v35   ;;  %21657 = vst [vmem:[#allocation104_spill] sm:$0xff] %v17212_v33 }
 0x128   : > { %14529 = vmatprep.mubr.msk.f32.mxu0 %vm728_vm0, %v17137_v45  ;;  %v2342_v45 = vmul.f32 %v16640_v43, %v16604_v16 }
 0x129   : > { %14483 = vmatmul.mubr.msk.f32.gmra.mxu1 %vm728_vm0, %v2340_v54  ;;  %v17221_v54 = vld [vmem:[%s21299_s17 + $0x38] sm:$0xff] }
 0x12a   : > { %14530 = vmatmul.mubr.msk.f32.gmra.mxu0 %vm728_vm0, %v17146_v53  ;;  %14485 = vmatprep.mubr.msk.f32.mxu1 %vm728_vm0, %v2341_v62  ;;  %v17226_v62 = vld [vmem:[%s21299_s17 + $0x30] sm:$0xff]  ;;  %v17228_v53 = vpop.f32.mrf.mxu0 }
 0x12b   : > { %9462 = vperm.xlu1 %15538, %v17155_v28   ;;  %9457 = vperm.xlu0 %15537, %v17160_v44   ;;  %21658 = vst [vmem:[#allocation105_spill] sm:$0xff] %v17228_v53  ;;  %v2345_v53 = vmul.f32 %v16726_v0, %v16686_v2 }
 0x12c   : > { %14532 = vmatprep.mubr.msk.f32.mxu0 %vm728_vm0, %v17203_v27  ;;  %v2344_v27 = vmul.f32 %v16680_v50, %v16644_v8 }
 0x12d   : > { %14486 = vmatmul.mubr.msk.f32.gmra.mxu1 %vm728_vm0, %v2342_v45  ;;  %v17246_v45 = vpop.f32.mrf.mxu0 }
 0x12e   : > { %14533 = vmatmul.mubr.msk.f32.gmra.mxu0 %vm728_vm0, %v17212_v33  ;;  %14488 = vmatprep.mubr.msk.f32.mxu1 %vm728_vm0, %v2343_v7  ;;  %21661 = vst [vmem:[#allocation108_spill] sm:$0xff] %v17246_v45  ;;  %v17249_v7 = vld [vmem:[#allocation2 + $0xa1] sm:$0xff]  ;;  %v2346_v33 = vmul.f32 %v16724_v3, %v16684_v29  ;;  %v2347_v45 = vmul.f32 %v16772_v4, %v16730_v22 }
 0x12f   : > { %9784 = vperm.xlu1 %15538, %v17221_v54   ;;  %9779 = vperm.xlu0 %15537, %v17226_v62   ;;  %21662 = vst [vmem:[#allocation109_spill] sm:$0xff] %v17249_v7 }
 0x130   : > { %14535 = vmatprep.mubr.msk.f32.mxu0 %vm728_vm0, %v17231_v47 }
 0x131   : > { %14489 = vmatmul.mubr.msk.f32.gmra.mxu1 %vm728_vm0, %v2344_v27  ;;  %v17264_v27 = vpop.f32.mrf.mxu0 }
 0x132   : > { %14536 = vmatmul.mubr.msk.f32.gmra.mxu0 %vm728_vm0, %v17240_v20  ;;  %14491 = vmatprep.mubr.msk.f32.mxu1 %vm728_vm0, %v2345_v53  ;;  %21664 = vst [vmem:[#allocation111_spill] sm:$0xff] %v17264_v27  ;;  %v17267_v53 = vld [vmem:[#allocation2 + $0xb1] sm:$0xff]  ;;  %v21667_v27 = vld [vmem:[#allocation58_spill] sm:$0xff] }
 0x133   : > { %10942 = vperm.xlu1 %15538, %v16975_v56   ;;  %10937 = vperm.xlu0 %15537, %v16980_v24   ;;  %21665 = vst [vmem:[#allocation112_spill] sm:$0xff] %v17267_v53  ;;  %v2348_v56 = vmul.f32 %v16770_v48, %v16728_v36  ;;  %v17276_v24 = vld [vmem:[#allocation2 + $0xb9] sm:$0xff]  ;;  %v17294_v20 = vld [vmem:[#allocation2 + $0xc9] sm:$0xff] }
 0x134   : > { %14538 = vmatprep.mubr.msk.f32.mxu0 %vm728_vm0, %v17249_v7  ;;  %21666 = vst [vmem:[#allocation113_spill] sm:$0xff] %v17276_v24  ;;  %v2349_v7 = vmul.f32 %v21667_v27, %v16776_v5 }
 0x135   : > { %14492 = vmatmul.mubr.msk.f32.gmra.mxu1 %vm728_vm0, %v2346_v33  ;;  %v17282_v33 = vpop.f32.mrf.mxu0 }
 0x136   : > { %14539 = vmatmul.mubr.msk.f32.gmra.mxu0 %vm728_vm0, %v17258_v31  ;;  %14494 = vmatprep.mubr.msk.f32.mxu1 %vm728_vm0, %v2347_v45  ;;  %21668 = vst [vmem:[#allocation58_spill] sm:$0xff] %v17282_v33  ;;  %v17285_v45 = vld [vmem:[#allocation2 + $0xc1] sm:$0xff]  ;;  %v21674_v33 = vld [vmem:[#allocation68_spill] sm:$0xff] }
 0x137   : > { %11264 = vperm.xlu1 %15538, %v17011_v63   ;;  %11259 = vperm.xlu0 %15537, %v17016_v17   ;;  %21669 = vst [vmem:[#allocation114_spill] sm:$0xff] %v17285_v45  ;;  %v21670_v63 = vld [vmem:[#allocation48_spill] sm:$0xff]  ;;  %v21671_v17 = vld [vmem:[#allocation57_spill] sm:$0xff]  ;;  %21679 = vst [vmem:[#allocation68_spill] sm:$0xff] %v17312_v32 }
 0x138   : > { %14541 = vmatprep.mubr.msk.f32.mxu0 %vm728_vm0, %v17267_v53  ;;  %v2350_v31 = vmul.f32 %v21671_v17, %v21670_v63  ;;  %21672 = vst [vmem:[#allocation48_spill] sm:$0xff] %v17294_v20  ;;  %v21673_v53 = vld [vmem:[#allocation60_spill] sm:$0xff] }
 0x139   : > { %14495 = vmatmul.mubr.msk.f32.gmra.mxu1 %vm728_vm0, %v2348_v56  ;;  %v2351_v47 = vmul.f32 %v21674_v33, %v21673_v53  ;;  %v17300_v56 = vpop.f32.mrf.mxu0 }
 0x13a   : > { %14542 = vmatmul.mubr.msk.f32.gmra.mxu0 %vm728_vm0, %v17276_v24  ;;  %14497 = vmatprep.mubr.msk.f32.mxu1 %vm728_vm0, %v2349_v7  ;;  %21675 = vst [vmem:[#allocation57_spill] sm:$0xff] %v17300_v56  ;;  %v17303_v7 = vld [vmem:[#allocation2 + $0xd1] sm:$0xff] }
 0x13b   : > { %10952 = vperm.xlu1 %15538, %v17043_v25   ;;  %10947 = vperm.xlu0 %15537, %v17048_v26   ;;  %21676 = vst [vmem:[#allocation60_spill] sm:$0xff] %v17303_v7  ;;  %v21677_v25 = vld [vmem:[#allocation59_spill] sm:$0xff] }
 0x13c   : > { %14544 = vmatprep.mubr.msk.f32.mxu0 %vm728_vm0, %v17285_v45  ;;  %v21678_v26 = vld [vmem:[#allocation67_spill] sm:$0xff]  ;;  %v21680_v45 = vld [vmem:[#allocation70_spill] sm:$0xff] }
 0x13d   : > { %14498 = vmatmul.mubr.msk.f32.gmra.mxu1 %vm728_vm0, %v2350_v31  ;;  %v2352_v24 = vmul.f32 %v21678_v26, %v21677_v25  ;;  %v2353_v56 = vmul.f32 %v16910_v6, %v21680_v45  ;;  %v17318_v31 = vpop.f32.mrf.mxu0 }
 0x13e   : > { %14545 = vmatmul.mubr.msk.f32.gmra.mxu0 %vm728_vm0, %v17294_v20  ;;  %14500 = vmatprep.mubr.msk.f32.mxu1 %vm728_vm0, %v2351_v47  ;;  %21681 = vst [vmem:[#allocation59_spill] sm:$0xff] %v17318_v31  ;;  %v17321_v47 = vld [vmem:[#allocation2 + $0xe1] sm:$0xff] }
 0x13f   : > { %11274 = vperm.xlu1 %15538, %v17071_v46   ;;  %11269 = vperm.xlu0 %15537, %v17076_v39   ;;  %21682 = vst [vmem:[#allocation67_spill] sm:$0xff] %v17321_v47  ;;  %v21683_v46 = vld [vmem:[#allocation69_spill] sm:$0xff] }
 0x140   : > { %14547 = vmatprep.mubr.msk.f32.mxu0 %vm728_vm0, %v17303_v7  ;;  %v2354_v39 = vmul.f32 %v16908_v1, %v21683_v46  ;;  %v17328_v20 = vld [vmem:[#allocation2 + $0x100] sm:$0xff]  ;;  %v17332_v7 = vld [vmem:[#allocation2 + $0xe9] sm:$0xff] }
 0x141   : > { %14501 = vmatmul.mubr.msk.f32.gmra.mxu1 %vm728_vm0, %v2352_v24  ;;  %21684 = vst [vmem:[#allocation70_spill] sm:$0xff] %v17332_v7  ;;  %v21685_v24 = vld [vmem:[#allocation78_spill] sm:$0xff] }
 0x142   : > { %14548 = vmatmul.mubr.msk.f32.gmra.mxu0 %vm728_vm0, %v17312_v32  ;;  %14503 = vmatprep.mubr.msk.f32.mxu1 %vm728_vm0, %v2353_v56  ;;  %v2355_v31 = vmul.f32 %v17328_v20, %v21685_v24  ;;  %v17338_v32 = vpop.f32.mrf.mxu0  ;;  %v17342_v56 = vld [vmem:[#allocation2 + $0xf1] sm:$0xff] }
 0x143   : > { %10962 = vperm.xlu1 %15538, %v17099_v41   ;;  %10957 = vperm.xlu0 %15537, %v17104_v58   ;;  %21686 = vst [vmem:[#allocation115_spill] sm:$0xff] %v17338_v32  ;;  %21687 = vst [vmem:[#allocation116_spill] sm:$0xff] %v17342_v56  ;;  %v17344_v41 = vld [vmem:[#allocation2 + $0x108] sm:$0xff]  ;;  %v21688_v58 = vld [vmem:[#allocation77_spill] sm:$0xff] }
 0x144   : > { %14550 = vmatprep.mubr.msk.f32.mxu0 %vm728_vm0, %v17321_v47  ;;  %v2356_v24 = vmul.f32 %v17344_v41, %v21688_v58  ;;  %v17353_v32 = vld [vmem:[#allocation2 + $0xf9] sm:$0xff]  ;;  %v17358_v46 = vpop.f32.mrf.mxu0 }
 0x145   : > { %14504 = vmatmul.mubr.msk.f32.gmra.mxu1 %vm728_vm0, %v2354_v39  ;;  %21689 = vst [vmem:[#allocation77_spill] sm:$0xff] %v17353_v32  ;;  %v21690_v39 = vld [vmem:[#allocation10_spill] sm:$0xff] }
 0x146   : > { %14551 = vmatmul.mubr.msk.f32.gmra.mxu0 %vm728_vm0, %v17332_v7  ;;  %14506 = vmatprep.mubr.msk.f32.mxu1 %vm728_vm0, %v2355_v31  ;;  %v3133_v47 = vmul.f32 %v15539_v21, %v21690_v39  ;;  %21691 = vst [vmem:[#allocation10_spill] sm:$0xff] %v17358_v46  ;;  %v17361_v31 = vld [vmem:[#allocation2 + $0x101] sm:$0xff]  ;;  %v17369_v21 = vld [vmem:[#allocation2 + $0x109] sm:$0xff]  ;;  %v21695_v46 = vld [vmem:[#allocation12_spill] sm:$0xff] }
 0x147   : > { %11284 = vperm.xlu1 %15538, %v17127_v59   ;;  %11279 = vperm.xlu0 %15537, %v17132_v35   ;;  %21692 = vst [vmem:[#allocation117_spill] sm:$0xff] %v17361_v31  ;;  %v15540_v59 = vld [vmem:[#allocation2 + $0x1a] sm:$0xff]  ;;  %21694 = vst [vmem:[#allocation118_spill] sm:$0xff] %v17369_v21 }
 0x148   : > { %14553 = vmatprep.mubr.msk.f32.mxu0 %vm728_vm0, %v17342_v56  ;;  %v21693_v35 = vld [vmem:[#allocation9_spill] sm:$0xff] }
 0x149   : > { %14507 = vmatmul.mubr.msk.f32.gmra.mxu1 %vm728_vm0, %v2356_v24  ;;  %v3134_v7 = vmul.f32 %v15540_v59, %v21693_v35  ;;  %v17371_v56 = vld [vmem:[#allocation2 + $0x22] sm:$0xff]  ;;  %v21697_v59 = vld [vmem:[#allocation8_spill] sm:$0xff] }
 0x14a   : > { %14554 = vmatmul.mubr.msk.f32.gmra.mxu0 %vm728_vm0, %v17353_v32  ;;  %14561 = vmatprep.mubr.msk.f32.mxu1 %vm728_vm0, %v3133_v47  ;;  %v3135_v24 = vmul.f32 %v17371_v56, %v21695_v46  ;;  %v17377_v32 = vpop.f32.mrf.mxu0  ;;  %v15542_v47 = vld [vmem:[#allocation2 + $0x20] sm:$0xff] }
 0x14b   : > { %10972 = vperm.xlu1 %15538, %v17155_v28   ;;  %10967 = vperm.xlu0 %15537, %v17160_v44   ;;  %21696 = vst [vmem:[#allocation119_spill] sm:$0xff] %v17377_v32  ;;  %v3553_v35 = vmul.f32 %v15542_v47, %v21697_v59  ;;  %v17384_v28 = vld [vmem:[#allocation2 + $0x2a] sm:$0xff] }
 0x14c   : > { %14556 = vmatprep.mubr.msk.f32.mxu0 %vm728_vm0, %v17361_v31  ;;  %v21698_v44 = vld [vmem:[#allocation11_spill] sm:$0xff]  ;;  %v15544_v32 = vld [vmem:[#allocation2 + $0x28] sm:$0xff] }
 0x14d   : > { %14562 = vmatmul.mubr.msk.f32.vlgmr.msra.gmra.mxu1 %vm728_vm0, %v3134_v7  ;;  %v3136_v46 = vmul.f32 %v17384_v28, %v21698_v44  ;;  %v3554_v7 = vmul.f32 %v15544_v32, %v16364_v60  ;;  %v17391_v31 = vld [vmem:[#allocation2 + $0x32] sm:$0xff]  ;;  %v21699_v47 = vld [vmem:[#allocation14_spill] sm:$0xff]  ;;  %v17411_v32 = vld [vmem:[%s21701_s0] sm:$0xff] }
 0x14e   : > { %14557 = vmatmul.mubr.msk.f32.gmra.mxu0 %vm728_vm0, %v17369_v21  ;;  %14564 = vmatprep.mubr.msk.f32.mxu1 %vm728_vm0, %v3135_v24  ;;  %v3137_v59 = vmul.f32 %v17391_v31, %v21699_v47  ;;  %v17396_v24 = vpop.f32.mrf.mxu0  ;;  %v21705_v21 = vld [vmem:[#allocation16_spill] sm:$0xff] }
 0x14f   : > { %11294 = vperm.xlu1 %15538, %v17221_v54   ;;  %11289 = vperm.xlu0 %15537, %v17226_v62   ;;  %21700 = vst [vmem:[#allocation8_spill] sm:$0xff] %v17396_v24  ;;  %v17403_v54 = vld [vmem:[%s21701_s0 + $0x8] sm:$0xff]  ;;  %v15546_v62 = vld [vmem:[#allocation2 + $0x30] sm:$0xff] }
 0x150   : > { %14611 = vmatprep.mubr.msk.f32.mxu0 %vm728_vm0, %v3553_v35  ;;  %14660 = vmatpush3.msk.msra.mxu1 %vm1160_vm1, %v16965_v12  ;;  %v3555_v60 = vmul.f32 %v15546_v62, %v16354_v52  ;;  %v17415_v12 = vld [vmem:[#allocation2 + $0x3a] sm:$0xff]  ;;  %v17423_v62 = vld [vmem:[#allocation2 + $0x42] sm:$0xff] }
 0x151   : > { %14565 = vmatmul.mubr.msk.f32.gmra.mxu1 %vm728_vm0, %v3136_v46  ;;  %14759 = vmatprep.subr.mxu1 %v17403_v54  ;;  %21702 = vst [vmem:[#allocation120_spill] sm:$0xff] %v17415_v12  ;;  %v21703_v35 = vld [vmem:[#allocation13_spill] sm:$0xff]  ;;  %v15548_v52 = vld [vmem:[#allocation2 + $0x38] sm:$0xff]  ;;  %21704 = vst [vmem:[#allocation121_spill] sm:$0xff] %v17423_v62 }
 0x152   : > { %14612 = vmatmul.mubr.msk.f32.vlgmr.msra.gmra.mxu0 %vm728_vm0, %v3554_v7  ;;  %14567 = vmatprep.mubr.msk.f32.mxu1 %vm728_vm0, %v3137_v59  ;;  %v3138_v24 = vmul.f32 %v17415_v12, %v21703_v35  ;;  %v3556_v46 = vmul.f32 %v15548_v52, %v16362_v57  ;;  %v3139_v7 = vmul.f32 %v17423_v62, %v21705_v21  ;;  %v15550_v59 = vld [vmem:[#allocation2 + $0x40] sm:$0xff]  ;;  %v21707_v57 = vld [vmem:[#allocation15_spill] sm:$0xff]  ;;  %v15552_v21 = vld [vmem:[#allocation2 + $0x48] sm:$0xff] }
 0x153   : > { %14614 = vmatprep.mubr.msk.f32.mxu0 %vm728_vm0, %v3555_v60  ;;  %14710 = vmatpush3.msk.msra.mxu0 %vm1160_vm1, %v16996_v42  ;;  %v3557_v44 = vmul.f32 %v15550_v59, %v16381_v14  ;;  %v17432_v42 = vld [vmem:[#allocation2 + $0x4a] sm:$0xff]  ;;  %v3558_v35 = vmul.f32 %v15552_v21, %v16379_v13  ;;  %v17440_v62 = vld [vmem:[#allocation2 + $0x52] sm:$0xff] }
 0x154   : > { %v14363_v47 = vpop.f32.mrf.mxu0  ;;  %14809 = vmatprep.subr.mxu0 %v17411_v32  ;;  %21706 = vst [vmem:[#allocation122_spill] sm:$0xff] %v17432_v42  ;;  %v3140_v60 = vmul.f32 %v17432_v42, %v21707_v57  ;;  %21709 = vst [vmem:[#allocation124_spill] sm:$0xff] %v17440_v62  ;;  %v21710_v14 = vld [vmem:[#allocation18_spill] sm:$0xff] }
 0x155   : > { %14568 = vmatmul.mubr.msk.f32.gmra.mxu1 %vm728_vm0, %v3138_v24  ;;  %v3141_v24 = vmul.f32 %v17440_v62, %v21710_v14  ;;  %v15556_v14 = vld [vmem:[#allocation2 + $0x58] sm:$0xff] }
 0x156   : > { %14615 = vmatmul.mubr.msk.f32.gmra.mxu0 %vm728_vm0, %v3556_v46  ;;  %14570 = vmatprep.mubr.msk.f32.mxu1 %vm728_vm0, %v3139_v7  ;;  %v17436_v52 = vpop.f32.mrf.mxu0  ;;  %v15554_v46 = vld [vmem:[#allocation2 + $0x50] sm:$0xff]  ;;  %v3560_v57 = vmul.f32 %v15556_v14, %v16430_v38 }
 0x157   : > { %21708 = vst [vmem:[#allocation123_spill] sm:$0xff] %v17436_v52  ;;  %14617 = vmatprep.mubr.msk.f32.mxu0 %vm728_vm0, %v3557_v44  ;;  %v3559_v7 = vmul.f32 %v15554_v46, %v16432_v40  ;;  %v17448_v52 = vld [vmem:[#allocation2 + $0x5a] sm:$0xff]  ;;  %v17456_v40 = vld [vmem:[#allocation2 + $0x62] sm:$0xff] }
 0x158   : > { %v14366_v59 = vpop.f32.mrf.mxu0  ;;  %21711 = vst [vmem:[#allocation125_spill] sm:$0xff] %v17448_v52  ;;  %v21712_v44 = vld [vmem:[#allocation17_spill] sm:$0xff]  ;;  %21714 = vst [vmem:[#allocation127_spill] sm:$0xff] %v17456_v40  ;;  %v21715_v46 = vld [vmem:[#allocation20_spill] sm:$0xff] }
 0x159   : > { %14571 = vmatmul.mubr.msk.f32.gmra.mxu1 %vm728_vm0, %v3140_v60  ;;  %v3142_v13 = vmul.f32 %v17448_v52, %v21712_v44  ;;  %v3143_v60 = vmul.f32 %v17456_v40, %v21715_v46  ;;  %v15560_v46 = vld [vmem:[#allocation2 + $0x68] sm:$0xff] }
 0x15a   : > { %14618 = vmatmul.mubr.msk.f32.gmra.mxu0 %vm728_vm0, %v3558_v35  ;;  %14573 = vmatprep.mubr.msk.f32.mxu1 %vm728_vm0, %v3141_v24  ;;  %v17452_v21 = vpop.f32.mrf.mxu0  ;;  %v15558_v35 = vld [vmem:[#allocation2 + $0x60] sm:$0xff]  ;;  %v3562_v44 = vmul.f32 %v15560_v46, %v16467_v55 }
 0x15b   : > { %21713 = vst [vmem:[#allocation126_spill] sm:$0xff] %v17452_v21  ;;  %14620 = vmatprep.mubr.msk.f32.mxu0 %vm728_vm0, %v3559_v7  ;;  %v3561_v24 = vmul.f32 %v15558_v35, %v16469_v61  ;;  %v17464_v21 = vld [vmem:[#allocation2 + $0x6a] sm:$0xff]  ;;  %v21719_v35 = vld [vmem:[#allocation24_spill] sm:$0xff] }
 0x15c   : > { %v14369_v62 = vpop.f32.mrf.mxu0  ;;  %v21716_v7 = vld [vmem:[#allocation19_spill] sm:$0xff]  ;;  %v21718_v61 = vld [vmem:[#allocation22_spill] sm:$0xff] }
 0x15d   : > { %14574 = vmatmul.mubr.msk.f32.gmra.mxu1 %vm728_vm0, %v3142_v13  ;;  %v3144_v38 = vmul.f32 %v17464_v21, %v21716_v7  ;;  %v3145_v40 = vmul.f32 %v21719_v35, %v21718_v61  ;;  %v21720_v13 = vld [vmem:[#allocation35_spill] sm:$0xff] }
 0x15e   : > { %14621 = vmatmul.mubr.msk.f32.gmra.mxu0 %vm728_vm0, %v3560_v57  ;;  %14576 = vmatprep.mubr.msk.f32.mxu1 %vm728_vm0, %v3143_v60  ;;  %v17468_v14 = vpop.f32.mrf.mxu0  ;;  %v1560_v52 = vadd.f32 %v14363_v47, %v21720_v13  ;;  %v15561_v57 = vld [vmem:[#allocation2 + $0x70] sm:$0xff]  ;;  %v15562_v47 = vld [vmem:[#allocation2 + $0x78] sm:$0xff] }
 0x15f   : > { %21717 = vst [vmem:[#allocation19_spill] sm:$0xff] %v17468_v14  ;;  %14623 = vmatprep.mubr.msk.f32.mxu0 %vm728_vm0, %v3561_v24  ;;  %v3563_v60 = vmul.f32 %v15561_v57, %v16504_v10  ;;  %v21721_v24 = vld [vmem:[#allocation21_spill] sm:$0xff]  ;;  %v21722_v14 = vld [vmem:[#allocation23_spill] sm:$0xff]  ;;  %v3564_v35 = vmul.f32 %v15562_v47, %v16502_v9  ;;  %v21723_v10 = vld [vmem:[#allocation26_spill] sm:$0xff] }
 0x160   : > { %v14413_v42 = vpop.f32.mrf.mxu0  ;;  %v3146_v55 = vmul.f32 %v21722_v14, %v21721_v24  ;;  %v21724_v13 = vld [vmem:[#allocation28_spill] sm:$0xff]  ;;  %v21726_v14 = vld [vmem:[#allocation25_spill] sm:$0xff] }
 0x161   : > { %14577 = vmatmul.mubr.msk.f32.gmra.mxu1 %vm728_vm0, %v3144_v38  ;;  %v17477_v12 = vadd.f32 %v14413_v42, %v1560_v52  ;;  %v3147_v57 = vmul.f32 %v21724_v13, %v21723_v10  ;;  %v21725_v38 = vld [vmem:[#allocation41_spill] sm:$0xff]  ;;  %v3565_v52 = vmul.f32 %v16602_v15, %v16530_v18  ;;  %v21729_v18 = vld [vmem:[#allocation30_spill] sm:$0xff]  ;;  %v21730_v15 = vld [vmem:[#allocation32_spill] sm:$0xff] }
 0x162   : > { %14624 = vmatmul.mubr.msk.f32.gmra.mxu0 %vm728_vm0, %v3562_v44  ;;  %14579 = vmatprep.mubr.msk.f32.mxu1 %vm728_vm0, %v3145_v40  ;;  %v17483_v46 = vpop.f32.mrf.mxu0  ;;  %v1570_v42 = vadd.f32 %v14366_v59, %v21725_v38  ;;  %v15563_v59 = vld [vmem:[#allocation2 + $0x88] sm:$0xff]  ;;  %v3149_v38 = vmul.f32 %v21730_v15, %v21729_v18 }
 0x163   : > { %14626 = vmatprep.mubr.msk.f32.mxu0 %vm728_vm0, %v3563_v60  ;;  %v21727_v60 = vld [vmem:[#allocation27_spill] sm:$0xff]  ;;  %v3566_v13 = vmul.f32 %v15563_v59, %v16528_v37  ;;  %v21736_v15 = vld [vmem:[#allocation50_spill] sm:$0xff] }
 0x164   : > { %v14416_v44 = vpop.f32.mrf.mxu0  ;;  %v3148_v9 = vmul.f32 %v21727_v60, %v21726_v14  ;;  %v21733_v60 = vld [vmem:[#allocation31_spill] sm:$0xff] }
 0x165   : > { %14580 = vmatmul.mubr.msk.f32.gmra.mxu1 %vm728_vm0, %v3146_v55  ;;  %v17493_v40 = vadd.f32 %v14416_v44, %v1570_v42  ;;  %v21731_v55 = vld [vmem:[#allocation47_spill] sm:$0xff] }
 0x166   : > { %14627 = vmatmul.mubr.msk.f32.gmra.mxu0 %vm728_vm0, %v3564_v35  ;;  %14582 = vmatprep.mubr.msk.f32.mxu1 %vm728_vm0, %v3147_v57  ;;  %v17499_v47 = vpop.f32.mrf.mxu0  ;;  %v1580_v42 = vadd.f32 %v14369_v62, %v21731_v55  ;;  %v3567_v35 = vmul.f32 %v16642_v34, %v16566_v19  ;;  %v3568_v19 = vmul.f32 %v16640_v43, %v16564_v11  ;;  %v21734_v34 = vld [vmem:[#allocation34_spill] sm:$0xff]  ;;  %v21735_v62 = vld [vmem:[#allocation37_spill] sm:$0xff] }
 0x167   : > { %21728 = vst [vmem:[#allocation22_spill] sm:$0xff] %v17499_v47  ;;  %14629 = vmatprep.mubr.msk.f32.mxu0 %vm728_vm0, %v3565_v52  ;;  %v21732_v52 = vld [vmem:[#allocation29_spill] sm:$0xff] }
 0x168   : > { %v14419_v44 = vpop.f32.mrf.mxu0  ;;  %v3150_v37 = vmul.f32 %v21733_v60, %v21732_v52  ;;  %v3570_v60 = vmul.f32 %v16680_v50, %v16604_v16  ;;  %v3572_v50 = vmul.f32 %v16724_v3, %v16644_v8  ;;  %v21743_v16 = vld [vmem:[#allocation45_spill] sm:$0xff] }
 0x169   : > { %14583 = vmatmul.mubr.msk.f32.gmra.mxu1 %vm728_vm0, %v3148_v9  ;;  %v17509_v57 = vadd.f32 %v14419_v44, %v1580_v42  ;;  %v14372_v59 = vpop.f32.mrf.mxu1  ;;  %v3151_v9 = vmul.f32 %v21735_v62, %v21734_v34  ;;  %v21738_v44 = vld [vmem:[#allocation36_spill] sm:$0xff] }
 0x16a   : > { %14630 = vmatmul.mubr.msk.f32.gmra.mxu0 %vm728_vm0, %v3566_v13  ;;  %14585 = vmatprep.mubr.msk.f32.mxu1 %vm728_vm0, %v3149_v38  ;;  %v17515_v47 = vpop.f32.mrf.mxu0  ;;  %v1590_v55 = vadd.f32 %v14372_v59, %v21736_v15  ;;  %v3569_v13 = vmul.f32 %v16682_v23, %v16606_v51  ;;  %v21739_v51 = vld [vmem:[#allocation39_spill] sm:$0xff] }
 0x16b   : > { %14632 = vmatprep.mubr.msk.f32.mxu0 %vm728_vm0, %v3567_v35  ;;  %v21737_v35 = vld [vmem:[#allocation33_spill] sm:$0xff]  ;;  %v17532_v43 = vpop.f32.mrf.mxu1  ;;  %v21740_v23 = vld [vmem:[#allocation43_spill] sm:$0xff] }
 0x16c   : > { %v3152_v11 = vmul.f32 %v21738_v44, %v21737_v35  ;;  %v3153_v59 = vmul.f32 %v21740_v23, %v21739_v51  ;;  %v3573_v44 = vmul.f32 %v16772_v4, %v16686_v2  ;;  %v21746_v23 = vld [vmem:[#allocation44_spill] sm:$0xff]  ;;  %v21748_v2 = vld [vmem:[#allocation54_spill] sm:$0xff]  ;;  %v21749_v4 = vld [vmem:[#allocation63_spill] sm:$0xff] }
 0x16d   : > { %v14422_v38 = vpop.f32.mrf.mxu0  ;;  %14586 = vmatmul.mubr.msk.f32.gmra.mxu1 %vm728_vm0, %v3150_v37  ;;  %v3571_v37 = vmul.f32 %v16726_v0, %v16646_v49  ;;  %v21745_v49 = vld [vmem:[#allocation56_spill] sm:$0xff] }
 0x16e   : > { %v17526_v42 = vadd.f32 %v14422_v38, %v1590_v55  ;;  %14633 = vmatmul.mubr.msk.f32.gmra.mxu0 %vm728_vm0, %v3568_v19  ;;  %14588 = vmatprep.mubr.msk.f32.mxu1 %vm728_vm0, %v3151_v9  ;;  %v21741_v19 = vld [vmem:[#allocation38_spill] sm:$0xff] }
 0x16f   : > { %14635 = vmatprep.mubr.msk.f32.mxu0 %vm728_vm0, %v3569_v13  ;;  %v21742_v9 = vld [vmem:[#allocation42_spill] sm:$0xff]  ;;  %v17546_v55 = vpop.f32.mrf.mxu0  ;;  %v21744_v13 = vld [vmem:[#allocation52_spill] sm:$0xff] }
 0x170   : > { %v3154_v15 = vmul.f32 %v21742_v9, %v21741_v19  ;;  %v3155_v0 = vmul.f32 %v21744_v13, %v21743_v16  ;;  %v3575_v9 = vmul.f32 %v21667_v27, %v16730_v22  ;;  %v21751_v13 = vld [vmem:[#allocation62_spill] sm:$0xff] }
 0x171   : > { %v14375_v62 = vpop.f32.mrf.mxu1  ;;  %14589 = vmatmul.mubr.msk.f32.gmra.mxu1 %vm728_vm0, %v3152_v11  ;;  %v21754_v27 = vld [vmem:[#allocation66_spill] sm:$0xff] }
 0x172   : > { %14636 = vmatmul.mubr.msk.f32.gmra.mxu0 %vm728_vm0, %v3570_v60  ;;  %14591 = vmatprep.mubr.msk.f32.mxu1 %vm728_vm0, %v3153_v59  ;;  %v1600_v38 = vadd.f32 %v14375_v62, %v21745_v49  ;;  %v21747_v59 = vld [vmem:[#allocation51_spill] sm:$0xff]  ;;  %v3157_v62 = vmul.f32 %v21749_v4, %v21748_v2  ;;  %v21756_v4 = vld [vmem:[#allocation72_spill] sm:$0xff] }
 0x173   : > { %14638 = vmatprep.mubr.msk.f32.mxu0 %vm728_vm0, %v3571_v37  ;;  %v3156_v8 = vmul.f32 %v21747_v59, %v21746_v23  ;;  %v17563_v3 = vpop.f32.mrf.mxu1  ;;  %v3574_v37 = vmul.f32 %v16770_v48, %v16684_v29  ;;  %v3576_v48 = vmul.f32 %v21671_v17, %v16728_v36  ;;  %v21752_v29 = vld [vmem:[#allocation65_spill] sm:$0xff] }
 0x175   : > { %v14425_v11 = vpop.f32.mrf.mxu0  ;;  %14592 = vmatmul.mubr.msk.f32.gmra.mxu1 %vm728_vm0, %v3154_v15 }
 0x176   : > { %v17557_v60 = vadd.f32 %v14425_v11, %v1600_v38  ;;  %14639 = vmatmul.mubr.msk.f32.gmra.mxu0 %vm728_vm0, %v3572_v50  ;;  %14594 = vmatprep.mubr.msk.f32.mxu1 %vm728_vm0, %v3155_v0  ;;  %v21750_v50 = vld [vmem:[#allocation53_spill] sm:$0xff]  ;;  %v3577_v11 = vmul.f32 %v21674_v33, %v16776_v5  ;;  %v21757_v5 = vld [vmem:[#allocation75_spill] sm:$0xff] }
 0x177   : > { %14641 = vmatprep.mubr.msk.f32.mxu0 %vm728_vm0, %v3573_v44  ;;  %v3158_v0 = vmul.f32 %v21751_v13, %v21750_v50  ;;  %v17577_v49 = vpop.f32.mrf.mxu0  ;;  %v21753_v38 = vld [vmem:[#allocation73_spill] sm:$0xff]  ;;  %v3161_v33 = vmul.f32 %v16937_v30, %v21757_v5  ;;  %v21758_v13 = vld [vmem:[#allocation74_spill] sm:$0xff]  ;;  %v3580_v30 = vmul.f32 %v16908_v1, %v21677_v25 }
 0x178   : > { %v3159_v22 = vmul.f32 %v21753_v38, %v21752_v29  ;;  %v17608_v38 = vld [vmem:[#allocation2 + $0x102] sm:$0xff] }
 0x179   : > { %v14378_v15 = vpop.f32.mrf.mxu1  ;;  %14595 = vmatmul.mubr.msk.f32.gmra.mxu1 %vm728_vm0, %v3156_v8  ;;  %v21762_v1 = vld [vmem:[#allocation81_spill] sm:$0xff] }
 0x17a   : > { %14642 = vmatmul.mubr.msk.f32.gmra.mxu0 %vm728_vm0, %v3574_v37  ;;  %14597 = vmatprep.mubr.msk.f32.mxu1 %vm728_vm0, %v3157_v62  ;;  %v1610_v44 = vadd.f32 %v14378_v15, %v21754_v27  ;;  %v21755_v37 = vld [vmem:[#allocation64_spill] sm:$0xff]  ;;  %v3578_v62 = vmul.f32 %v21678_v26, %v21670_v63  ;;  %v3581_v27 = vmul.f32 %v17328_v20, %v21680_v45  ;;  %v21763_v20 = vld [vmem:[#allocation69_spill] sm:$0xff] }
 0x17b   : > { %14644 = vmatprep.mubr.msk.f32.mxu0 %vm728_vm0, %v3575_v9  ;;  %v3160_v36 = vmul.f32 %v21756_v4, %v21755_v37  ;;  %v17594_v17 = vpop.f32.mrf.mxu1  ;;  %v3579_v9 = vmul.f32 %v16910_v6, %v21673_v53  ;;  %v21760_v6 = vld [vmem:[#allocation82_spill] sm:$0xff]  ;;  %v21761_v63 = vld [vmem:[#allocation76_spill] sm:$0xff]  ;;  %v3582_v45 = vmul.f32 %v17344_v41, %v21763_v20 }
 0x17c   : > { %v3163_v53 = vmul.f32 %v17608_v38, %v21760_v6 }
 0x17d   : > { %v14428_v59 = vpop.f32.mrf.mxu0  ;;  %14598 = vmatmul.mubr.msk.f32.gmra.mxu1 %vm728_vm0, %v3158_v0  ;;  %v21759_v0 = vld [vmem:[#allocation80_spill] sm:$0xff] }
 0x17e   : > { %v17588_v8 = vadd.f32 %v14428_v59, %v1610_v44  ;;  %14645 = vmatmul.mubr.msk.f32.gmra.mxu0 %vm728_vm0, %v3576_v48  ;;  %14600 = vmatprep.mubr.msk.f32.mxu1 %vm728_vm0, %v3159_v22  ;;  %v3162_v48 = vmul.f32 %v21759_v0, %v21758_v13  ;;  %v3551_v59 = vld [vmem:[#allocation2 + $0x110] sm:$0xff]  ;;  %v21765_v0 = vld [vmem:[#allocation85_spill] sm:$0xff] }
 0x17f   : > { %14647 = vmatprep.mubr.msk.f32.mxu0 %vm728_vm0, %v3577_v11  ;;  %v17610_v22 = vpop.f32.mrf.mxu0  ;;  %v17621_v11 = vld [vmem:[#allocation2 + $0x10a] sm:$0xff] }
 0x180   : > { %v3164_v25 = vmul.f32 %v17621_v11, %v21762_v1 }
 0x181   : > { %v14381_v15 = vpop.f32.mrf.mxu1  ;;  %14601 = vmatmul.mubr.msk.f32.gmra.mxu1 %vm728_vm0, %v3160_v36 }
 0x182   : > { %14648 = vmatmul.mubr.msk.f32.gmra.mxu0 %vm728_vm0, %v3578_v62  ;;  %14603 = vmatprep.mubr.msk.f32.mxu1 %vm728_vm0, %v3161_v33  ;;  %v1620_v26 = vadd.f32 %v14381_v15, %v21761_v63  ;;  %v3552_v62 = vld [vmem:[#allocation2 + $0x118] sm:$0xff]  ;;  %v21764_v33 = vld [vmem:[#allocation78_spill] sm:$0xff]  ;;  %v21766_v63 = vld [vmem:[#allocation83_spill] sm:$0xff] }
 0x183   : > { %14650 = vmatprep.mubr.msk.f32.mxu0 %vm728_vm0, %v3579_v9  ;;  %v17629_v36 = vpop.f32.mrf.mxu1  ;;  %v3583_v9 = vmul.f32 %v3551_v59, %v21764_v33  ;;  %v21768_v59 = vld [vmem:[#allocation84_spill] sm:$0xff] }
 0x184   : > { %v21771_v33 = vld [vmem:[#allocation12_spill] sm:$0xff] }
 0x185   : > { %v14431_v44 = vpop.f32.mrf.mxu0  ;;  %14604 = vmatmul.mubr.msk.f32.gmra.mxu1 %vm728_vm0, %v3162_v48 }
 0x186   : > { %v17623_v4 = vadd.f32 %v14431_v44, %v1620_v26  ;;  %14651 = vmatmul.mubr.msk.f32.gmra.mxu0 %vm728_vm0, %v3580_v30  ;;  %14606 = vmatprep.mubr.msk.f32.mxu1 %vm728_vm0, %v3163_v53  ;;  %v3584_v53 = vmul.f32 %v3552_v62, %v21688_v58  ;;  %v4361_v26 = vmul.f32 %v17371_v56, %v21690_v39  ;;  %v21767_v44 = vld [vmem:[#allocation86_spill] sm:$0xff]  ;;  %v21770_v62 = vld [vmem:[#allocation9_spill] sm:$0xff] }
 0x187   : > { %14653 = vmatprep.mubr.msk.f32.mxu0 %vm728_vm0, %v3581_v27  ;;  %v17639_v48 = vpop.f32.mrf.mxu0  ;;  %v4362_v56 = vmul.f32 %v17384_v28, %v21770_v62  ;;  %v21774_v28 = vld [vmem:[#allocation11_spill] sm:$0xff] }
 0x189   : > { %v14384_v15 = vpop.f32.mrf.mxu1  ;;  %14607 = vmatmul.mubr.msk.f32.gmra.mxu1 %vm728_vm0, %v3164_v25 }
 0x18a   : > { %14654 = vmatmul.mubr.msk.f32.gmra.mxu0 %vm728_vm0, %v3582_v45  ;;  %14661 = vmatprep.mubr.msk.f32.mxu1 %vm728_vm0, %v21765_v0  ;;  %v1630_v41 = vadd.f32 %v14384_v15, %v21766_v63  ;;  %v21769_v45 = vld [vmem:[#allocation88_spill] sm:$0xff]  ;;  %v21772_v0 = vld [vmem:[#allocation89_spill] sm:$0xff] }
 0x18b   : > { %14656 = vmatprep.mubr.msk.f32.mxu0 %vm728_vm0, %v3583_v9  ;;  %v1624_v30 = vpop.f32.mrf.mxu1  ;;  %v4363_v9 = vmul.f32 %v17391_v31, %v21771_v33  ;;  %v21777_v31 = vld [vmem:[#allocation14_spill] sm:$0xff]  ;;  %v21782_v33 = vld [vmem:[#allocation13_spill] sm:$0xff] }
 0x18c   : > { %v1625_v25 = vadd.f32 %v1624_v30, %v21768_v59  ;;  %v21773_v30 = vld [vmem:[#allocation91_spill] sm:$0xff] }
 0x18d   : > { %v14434_v27 = vpop.f32.mrf.mxu0  ;;  %14662 = vmatmul.mubr.msk.f32.vlgmr.msra.gmra.mxu1 %vm728_vm0, %v21767_v44 }
 0x18e   : > { %v17649_v20 = vadd.f32 %v14434_v27, %v1630_v41  ;;  %14657 = vmatmul.mubr.msk.f32.gmra.mxu0 %vm728_vm0, %v3584_v53  ;;  %14664 = vmatprep.mubr.msk.f32.mxu1 %vm728_vm0, %v21769_v45  ;;  %v21775_v53 = vld [vmem:[#allocation120_spill] sm:$0xff]  ;;  %v21776_v41 = vld [vmem:[#allocation87_spill] sm:$0xff]  ;;  %v21778_v27 = vld [vmem:[#allocation121_spill] sm:$0xff] }
 0x18f   : > { %14711 = vmatprep.mubr.msk.f32.mxu0 %vm728_vm0, %v4361_v26  ;;  %v2172_v58 = vpop.f32.mrf.mxu0  ;;  %14760 = vmatpush3.msra.mxu1 %v17403_v54  ;;  %v4364_v63 = vmul.f32 %v21775_v53, %v21774_v28  ;;  %v4365_v44 = vmul.f32 %v21778_v27, %v21777_v31  ;;  %v21780_v45 = vld [vmem:[#allocation90_spill] sm:$0xff]  ;;  %v21785_v28 = vld [vmem:[#allocation124_spill] sm:$0xff]  ;;  %v21789_v31 = vld [vmem:[#allocation125_spill] sm:$0xff] }
 0x190   : > { %v17658_v39 = vadd.f32 %v2172_v58, %v1625_v25  ;;  %v21779_v25 = vld [vmem:[#allocation92_spill] sm:$0xff] }
 0x191   : > { %v14387_v15 = vpop.f32.mrf.mxu1  ;;  %14665 = vmatmul.mubr.msk.f32.gmra.mxu1 %vm728_vm0, %v21772_v0 }
 0x192   : > { %14712 = vmatmul.mubr.msk.f32.vlgmr.msra.gmra.mxu0 %vm728_vm0, %v4362_v56  ;;  %14667 = vmatprep.mubr.msk.f32.mxu1 %vm728_vm0, %v21773_v30  ;;  %v1640_v26 = vadd.f32 %v14387_v15, %v21776_v41  ;;  %v21781_v56 = vld [vmem:[#allocation94_spill] sm:$0xff]  ;;  %v21784_v30 = vld [vmem:[#allocation16_spill] sm:$0xff] }
 0x193   : > { %14714 = vmatprep.mubr.msk.f32.mxu0 %vm728_vm0, %v4363_v9  ;;  %v1634_v54 = vpop.f32.mrf.mxu1  ;;  %14810 = vmatpush3.msra.mxu0 %v17411_v32  ;;  %v21783_v9 = vld [vmem:[#allocation122_spill] sm:$0xff]  ;;  %v4367_v53 = vmul.f32 %v21785_v28, %v21784_v30  ;;  %v21795_v30 = vld [vmem:[#allocation17_spill] sm:$0xff] }
 0x194   : > { %v1635_v58 = vadd.f32 %v1634_v54, %v21780_v45  ;;  %v4366_v15 = vmul.f32 %v21783_v9, %v21782_v33  ;;  %v21786_v54 = vld [vmem:[#allocation95_spill] sm:$0xff]  ;;  %v21794_v9 = vld [vmem:[#allocation100_spill] sm:$0xff]  ;;  %v4370_v28 = vmul.f32 %v17464_v21, %v21795_v30  ;;  %v21801_v30 = vld [vmem:[#allocation106_spill] sm:$0xff] }
 0x195   : > { %v14437_v59 = vpop.f32.mrf.mxu0  ;;  %14668 = vmatmul.mubr.msk.f32.gmra.mxu1 %vm728_vm0, %v21779_v25  ;;  %v21791_v25 = vld [vmem:[#allocation18_spill] sm:$0xff]  ;;  %v21792_v45 = vld [vmem:[#allocation127_spill] sm:$0xff] }
 0x196   : > { %v17677_v62 = vadd.f32 %v14437_v59, %v1640_v26  ;;  %14715 = vmatmul.mubr.msk.f32.gmra.mxu0 %vm728_vm0, %v4364_v63  ;;  %14670 = vmatprep.mubr.msk.f32.mxu1 %vm728_vm0, %v21781_v56  ;;  %v21787_v63 = vld [vmem:[#allocation97_spill] sm:$0xff]  ;;  %v21788_v26 = vld [vmem:[#allocation15_spill] sm:$0xff] }
 0x197   : > { %14717 = vmatprep.mubr.msk.f32.mxu0 %vm728_vm0, %v4365_v44  ;;  %v2182_v32 = vpop.f32.mrf.mxu0  ;;  %v4368_v27 = vmul.f32 %v21789_v31, %v21788_v26  ;;  %v21790_v44 = vld [vmem:[#allocation93_spill] sm:$0xff]  ;;  %v21798_v31 = vld [vmem:[#allocation103_spill] sm:$0xff] }
 0x198   : > { %v17685_v0 = vadd.f32 %v2182_v32, %v1635_v58  ;;  %v4369_v58 = vmul.f32 %v21792_v45, %v21791_v25  ;;  %v21793_v32 = vld [vmem:[#allocation98_spill] sm:$0xff]  ;;  %v21797_v26 = vld [vmem:[#allocation101_spill] sm:$0xff]  ;;  %v21799_v21 = vld [vmem:[#allocation99_spill] sm:$0xff] }
 0x199   : > { %v14390_v41 = vpop.f32.mrf.mxu1  ;;  %14671 = vmatmul.mubr.msk.f32.gmra.mxu1 %vm728_vm0, %v21786_v54  ;;  %v15566_v45 = vld [vmem:[#allocation2 + $0x82] sm:$0xff] }
 0x19a   : > { %14718 = vmatmul.mubr.msk.f32.gmra.mxu0 %vm728_vm0, %v4366_v15  ;;  %14673 = vmatprep.mubr.msk.f32.mxu1 %vm728_vm0, %v21787_v63  ;;  %v1650_v59 = vadd.f32 %v14390_v41, %v21790_v44  ;;  %v21796_v41 = vld [vmem:[#allocation20_spill] sm:$0xff] }
 0x19b   : > { %14720 = vmatprep.mubr.msk.f32.mxu0 %vm728_vm0, %v4367_v53  ;;  %v17707_v15 = vpop.f32.mrf.mxu1  ;;  %v15564_v53 = vld [vmem:[#allocation2 + $0x72] sm:$0xff]  ;;  %v15565_v44 = vld [vmem:[#allocation2 + $0x7a] sm:$0xff] }
 0x19c   : > { %v4371_v54 = vmul.f32 %v15564_v53, %v21796_v41  ;;  %v15568_v41 = vld [vmem:[#allocation2 + $0x92] sm:$0xff] }
 0x19d   : > { %v14440_v56 = vpop.f32.mrf.mxu0  ;;  %14674 = vmatmul.mubr.msk.f32.gmra.mxu1 %vm728_vm0, %v21793_v32  ;;  %v21800_v32 = vld [vmem:[#allocation104_spill] sm:$0xff] }
 0x19e   : > { %v17702_v33 = vadd.f32 %v14440_v56, %v1650_v59  ;;  %14721 = vmatmul.mubr.msk.f32.gmra.mxu0 %vm728_vm0, %v4368_v27  ;;  %14676 = vmatprep.mubr.msk.f32.mxu1 %vm728_vm0, %v21794_v9  ;;  %v4372_v59 = vmul.f32 %v15565_v44, %v21716_v7  ;;  %v15567_v7 = vld [vmem:[#allocation2 + $0x8a] sm:$0xff]  ;;  %v15569_v44 = vld [vmem:[#allocation2 + $0x9a] sm:$0xff] }
 0x19f   : > { %14723 = vmatprep.mubr.msk.f32.mxu0 %vm728_vm0, %v4369_v58  ;;  %v17718_v27 = vpop.f32.mrf.mxu0  ;;  %v4373_v58 = vmul.f32 %v15566_v45, %v21718_v61  ;;  %v4374_v53 = vmul.f32 %v15567_v7, %v21721_v24  ;;  %v4375_v61 = vmul.f32 %v15568_v41, %v21723_v10  ;;  %v21804_v24 = vld [vmem:[#allocation105_spill] sm:$0xff] }
 0x1a1   : > { %v14393_v63 = vpop.f32.mrf.mxu1  ;;  %14677 = vmatmul.mubr.msk.f32.gmra.mxu1 %vm728_vm0, %v21797_v26  ;;  %v21803_v26 = vld [vmem:[#allocation109_spill] sm:$0xff] }
 0x1a2   : > { %14724 = vmatmul.mubr.msk.f32.gmra.mxu0 %vm728_vm0, %v4370_v28  ;;  %14679 = vmatprep.mubr.msk.f32.mxu1 %vm728_vm0, %v21798_v31  ;;  %v1660_v25 = vadd.f32 %v14393_v63, %v21799_v21  ;;  %v21802_v63 = vld [vmem:[#allocation107_spill] sm:$0xff] }
 0x1a3   : > { %14726 = vmatprep.mubr.msk.f32.mxu0 %vm728_vm0, %v4371_v54  ;;  %v17731_v28 = vpop.f32.mrf.mxu1 }
 0x1a5   : > { %v14443_v56 = vpop.f32.mrf.mxu0  ;;  %14680 = vmatmul.mubr.msk.f32.gmra.mxu1 %vm728_vm0, %v21800_v32  ;;  %v21806_v32 = vld [vmem:[#allocation112_spill] sm:$0xff] }
 0x1a6   : > { %v17726_v9 = vadd.f32 %v14443_v56, %v1660_v25  ;;  %14727 = vmatmul.mubr.msk.f32.gmra.mxu0 %vm728_vm0, %v4372_v59  ;;  %14682 = vmatprep.mubr.msk.f32.mxu1 %vm728_vm0, %v21801_v30  ;;  %v4376_v59 = vmul.f32 %v15569_v44, %v21726_v14  ;;  %v15570_v25 = vld [vmem:[#allocation2 + $0xa2] sm:$0xff]  ;;  %v15571_v14 = vld [vmem:[#allocation2 + $0xaa] sm:$0xff] }
 0x1a7   : > { %14729 = vmatprep.mubr.msk.f32.mxu0 %vm728_vm0, %v4373_v58  ;;  %v17741_v31 = vpop.f32.mrf.mxu0  ;;  %v4377_v10 = vmul.f32 %v15570_v25, %v21729_v18  ;;  %v21805_v58 = vld [vmem:[#allocation110_spill] sm:$0xff]  ;;  %v4378_v7 = vmul.f32 %v15571_v14, %v21732_v52  ;;  %v21809_v52 = vld [vmem:[#allocation111_spill] sm:$0xff]  ;;  %v21810_v25 = vld [vmem:[#allocation48_spill] sm:$0xff] }
 0x1a8   : > { %v15576_v14 = vld [vmem:[#allocation2 + $0xd2] sm:$0xff] }
 0x1a9   : > { %v14396_v54 = vpop.f32.mrf.mxu1  ;;  %14683 = vmatmul.mubr.msk.f32.gmra.mxu1 %vm728_vm0, %v21802_v63 }
 0x1aa   : > { %14730 = vmatmul.mubr.msk.f32.gmra.mxu0 %vm728_vm0, %v4374_v53  ;;  %14685 = vmatprep.mubr.msk.f32.mxu1 %vm728_vm0, %v21803_v26  ;;  %v1670_v21 = vadd.f32 %v14396_v54, %v21804_v24  ;;  %v15572_v53 = vld [vmem:[#allocation2 + $0xb2] sm:$0xff]  ;;  %v21808_v54 = vld [vmem:[#allocation114_spill] sm:$0xff]  ;;  %v15573_v26 = vld [vmem:[#allocation2 + $0xba] sm:$0xff] }
 0x1ab   : > { %14732 = vmatprep.mubr.msk.f32.mxu0 %vm728_vm0, %v4375_v61  ;;  %v17754_v30 = vpop.f32.mrf.mxu1  ;;  %v4379_v18 = vmul.f32 %v15572_v53, %v21734_v34  ;;  %v21807_v61 = vld [vmem:[#allocation113_spill] sm:$0xff]  ;;  %v4380_v44 = vmul.f32 %v15573_v26, %v21737_v35  ;;  %v15575_v35 = vld [vmem:[#allocation2 + $0xca] sm:$0xff]  ;;  %v21812_v53 = vld [vmem:[#allocation68_spill] sm:$0xff] }
 0x1ac   : > { %v15574_v24 = vld [vmem:[#allocation2 + $0xc2] sm:$0xff] }
 0x1ad   : > { %v14446_v45 = vpop.f32.mrf.mxu0  ;;  %14686 = vmatmul.mubr.msk.f32.gmra.mxu1 %vm728_vm0, %v21805_v58  ;;  %v4381_v34 = vmul.f32 %v15574_v24, %v21739_v51  ;;  %v4383_v51 = vmul.f32 %v15576_v14, %v21743_v16  ;;  %v21818_v14 = vld [vmem:[#allocation117_spill] sm:$0xff] }
 0x1ae   : > { %v17749_v56 = vadd.f32 %v14446_v45, %v1670_v21  ;;  %14733 = vmatmul.mubr.msk.f32.gmra.mxu0 %vm728_vm0, %v4376_v59  ;;  %14688 = vmatprep.mubr.msk.f32.mxu1 %vm728_vm0, %v21806_v32  ;;  %v21811_v45 = vld [vmem:[#allocation60_spill] sm:$0xff]  ;;  %v4382_v32 = vmul.f32 %v15575_v35, %v21741_v19  ;;  %v21814_v19 = vld [vmem:[#allocation57_spill] sm:$0xff] }
 0x1af   : > { %14735 = vmatprep.mubr.msk.f32.mxu0 %vm728_vm0, %v4377_v10  ;;  %v17764_v63 = vpop.f32.mrf.mxu0 }
 0x1b1   : > { %v14399_v41 = vpop.f32.mrf.mxu1  ;;  %14689 = vmatmul.mubr.msk.f32.gmra.mxu1 %vm728_vm0, %v21807_v61  ;;  %v15577_v61 = vld [vmem:[#allocation2 + $0xda] sm:$0xff] }
 0x1b2   : > { %14736 = vmatmul.mubr.msk.f32.gmra.mxu0 %vm728_vm0, %v4378_v7  ;;  %14691 = vmatprep.mubr.msk.f32.mxu1 %vm728_vm0, %v21808_v54  ;;  %v1680_v59 = vadd.f32 %v14399_v41, %v21809_v52  ;;  %v4384_v54 = vmul.f32 %v15577_v61, %v21746_v23  ;;  %v15579_v23 = vld [vmem:[#allocation2 + $0xea] sm:$0xff] }
 0x1b3   : > { %14738 = vmatprep.mubr.msk.f32.mxu0 %vm728_vm0, %v4379_v18  ;;  %v17777_v58 = vpop.f32.mrf.mxu1  ;;  %v21813_v18 = vld [vmem:[#allocation67_spill] sm:$0xff] }
 0x1b5   : > { %v14449_v21 = vpop.f32.mrf.mxu0  ;;  %14692 = vmatmul.mubr.msk.f32.gmra.mxu1 %vm728_vm0, %v21810_v25  ;;  %v4386_v25 = vmul.f32 %v15579_v23, %v21750_v50  ;;  %v5003_v23 = vld [vmem:[#allocation3] sm:$0xff] }
 0x1b6   : > { %v17772_v10 = vadd.f32 %v14449_v21, %v1680_v59  ;;  %14739 = vmatmul.mubr.msk.f32.gmra.mxu0 %vm728_vm0, %v4380_v44  ;;  %14694 = vmatprep.mubr.msk.f32.mxu1 %vm728_vm0, %v21811_v45  ;;  %v15578_v44 = vld [vmem:[#allocation2 + $0xe2] sm:$0xff]  ;;  %v15580_v45 = vld [vmem:[#allocation2 + $0xf2] sm:$0xff] }
 0x1b7   : > { %14741 = vmatprep.mubr.msk.f32.mxu0 %vm728_vm0, %v4381_v34  ;;  %v17787_v41 = vpop.f32.mrf.mxu0  ;;  %v4385_v16 = vmul.f32 %v15578_v44, %v21748_v2  ;;  %v21815_v59 = vld [vmem:[#allocation70_spill] sm:$0xff]  ;;  %v21816_v34 = vld [vmem:[#allocation116_spill] sm:$0xff]  ;;  %v4387_v2 = vmul.f32 %v15580_v45, %v21752_v29  ;;  %v4389_v29 = vmul.f32 %v17608_v38, %v21757_v5  ;;  %v4390_v5 = vmul.f32 %v17621_v11, %v21758_v13 }
 0x1b8   : > { %v4360_v38 = vld [vmem:[#allocation2 + $0x11a] sm:$0xff]  ;;  %v5228_v45 = vld [vmem:[#allocation3 + $0x9] sm:$0xff] }
 0x1b9   : > { %v14402_v7 = vpop.f32.mrf.mxu1  ;;  %14695 = vmatmul.mubr.msk.f32.gmra.mxu1 %vm728_vm0, %v21812_v53  ;;  %v15581_v53 = vld [vmem:[#allocation2 + $0xfa] sm:$0xff]  ;;  %v4392_v13 = vmul.f32 %v4360_v38, %v21762_v1 }
 0x1ba   : > { %14742 = vmatmul.mubr.msk.f32.gmra.mxu0 %vm728_vm0, %v4382_v32  ;;  %14697 = vmatprep.mubr.msk.f32.mxu1 %vm728_vm0, %v21813_v18  ;;  %v1690_v26 = vadd.f32 %v14402_v7, %v21814_v19  ;;  %v21817_v32 = vld [vmem:[#allocation77_spill] sm:$0xff]  ;;  %v3971_v7 = vld [vmem:[#allocation2 + $0x111] sm:$0xff]  ;;  %v4388_v50 = vmul.f32 %v15581_v53, %v21755_v37  ;;  %v21820_v19 = vld [vmem:[#allocation118_spill] sm:$0xff] }
 0x1bb   : > { %14744 = vmatprep.mubr.msk.f32.mxu0 %vm728_vm0, %v4383_v51  ;;  %v17800_v21 = vpop.f32.mrf.mxu1  ;;  %v21819_v18 = vld [vmem:[#allocation115_spill] sm:$0xff] }
 0x1bc   : > { %v5227_v37 = vld [vmem:[#allocation3 + $0x1] sm:$0xff] }
 0x1bd   : > { %v14452_v52 = vpop.f32.mrf.mxu0  ;;  %14698 = vmatmul.mubr.msk.f32.gmra.mxu1 %vm728_vm0, %v21815_v59 }
 0x1be   : > { %v17795_v24 = vadd.f32 %v14452_v52, %v1690_v26  ;;  %14745 = vmatmul.mubr.msk.f32.gmra.mxu0 %vm728_vm0, %v4384_v54  ;;  %14700 = vmatprep.mubr.msk.f32.mxu1 %vm728_vm0, %v21816_v34  ;;  %v4359_v26 = vld [vmem:[#allocation2 + $0x112] sm:$0xff] }
 0x1bf   : > { %14747 = vmatprep.mubr.msk.f32.mxu0 %vm728_vm0, %v4385_v16  ;;  %v17810_v51 = vpop.f32.mrf.mxu0  ;;  %v3972_v16 = vld [vmem:[#allocation2 + $0x119] sm:$0xff]  ;;  %v4391_v59 = vmul.f32 %v4359_v26, %v21760_v6  ;;  %v5004_v6 = vld [vmem:[#allocation3 + $0x8] sm:$0xff] }
 0x1c1   : > { %v14405_v35 = vpop.f32.mrf.mxu1  ;;  %14701 = vmatmul.mubr.msk.f32.gmra.mxu1 %vm728_vm0, %v21817_v32 }
 0x1c2   : > { %14748 = vmatmul.mubr.msk.f32.gmra.mxu0 %vm728_vm0, %v4386_v25  ;;  %14703 = vmatprep.mubr.msk.f32.mxu1 %vm728_vm0, %v21818_v14  ;;  %v1700_v61 = vadd.f32 %v14405_v35, %v21819_v18  ;;  %v17830_v25 = vpop.permute.xlu0 %5037  ;;  %v17840_v35 = vpop.permute.xlu1 %5042  ;;  %v21823_v14 = vld [vmem:[#allocation119_spill] sm:$0xff] }
 0x1c3   : > { %14750 = vmatprep.mubr.msk.f32.mxu0 %vm728_vm0, %v4387_v2  ;;  %v17823_v52 = vpop.f32.mrf.mxu1  ;;  %21821 = vst [vmem:[#allocation24_spill] sm:$0xff] %v17830_v25  ;;  %21822 = vst [vmem:[#allocation35_spill] sm:$0xff] %v17840_v35  ;;  %v5195_v32 = vmul.f32 %v17830_v25, %v5003_v23 }
 0x1c5   : > { %v14455_v54 = vpop.f32.mrf.mxu0  ;;  %14704 = vmatmul.mubr.msk.f32.gmra.mxu1 %vm728_vm0, %v21820_v19 }
 0x1c6   : > { %v17819_v44 = vadd.f32 %v14455_v54, %v1700_v61  ;;  %14751 = vmatmul.mubr.msk.f32.gmra.mxu0 %vm728_vm0, %v4388_v50  ;;  %14706 = vmatprep.mubr.msk.f32.mxu1 %vm728_vm0, %v3971_v7 }
 0x1c7   : > { %14753 = vmatprep.mubr.msk.f32.mxu0 %vm728_vm0, %v4389_v29  ;;  %v17838_v11 = vpop.f32.mrf.mxu0  ;;  %v5196_v29 = vmul.f32 %v17840_v35, %v5004_v6 }
 0x1c9   : > { %v14408_v34 = vpop.f32.mrf.mxu1  ;;  %14707 = vmatmul.mubr.msk.f32.gmra.mxu1 %vm728_vm0, %v3972_v16 }
 0x1ca   : > { %14754 = vmatmul.mubr.msk.f32.gmra.mxu0 %vm728_vm0, %v4390_v5  ;;  %14761 = vmatprep.mubr.msk.f32.mxu1 %vm4923_vm3, %v5227_v37  ;;  %v1710_v7 = vadd.f32 %v14408_v34, %v21823_v14 }
 0x1cb   : > { %14756 = vmatprep.mubr.msk.f32.mxu0 %vm728_vm0, %v4391_v59  ;;  %v17835_v2 = vpop.f32.mrf.mxu1 }
 0x1cd   : > { %v14463_v53 = vpop.f32.mrf.mxu1  ;;  %14762 = vmatmul.mubr.msk.f32.vlgmr.msra.gmra.mxu1 %vm4923_vm3, %v5228_v45  ;;  %v14458_v50 = vpop.f32.mrf.mxu0 }
 0x1ce   : > { %v2682_v18 = vadd.f32 %v14463_v53, %v17477_v12  ;;  %14757 = vmatmul.mubr.msk.f32.gmra.mxu0 %vm728_vm0, %v4392_v13  ;;  %v17847_v61 = vadd.f32 %v14458_v50, %v1710_v7 }
 0x1cf   : > { %14811 = vmatprep.mubr.msk.f32.mxu0 %vm4923_vm3, %v5195_v32  ;;  %v17850_v1 = vpop.f32.mrf.mxu1  ;;  %v17853_v54 = vpop.f32.mrf.mxu0 }
 0x1d1   : > { %v14466_v19 = vpop.f32.mrf.mxu1 }
 0x1d2   : > { %v2684_v26 = vadd.f32 %v14466_v19, %v17493_v40  ;;  %v14513_v16 = vpop.f32.mrf.mxu0  ;;  %14812 = vmatmul.mubr.msk.f32.vlgmr.msra.gmra.mxu0 %vm4923_vm3, %v5196_v29 }
 0x1d3   : > { %v17857_v37 = vadd.f32 %v14513_v16, %v2682_v18  ;;  %v17859_v12 = vpop.f32.mrf.mxu1 }
 0x1d4   : > { %v17861_v5 = vpop.f32.mrf.mxu0 }
 0x1d5   : > { %v14469_v38 = vpop.f32.mrf.mxu1 }
 0x1d6   : > { %v2686_v59 = vadd.f32 %v14469_v38, %v17509_v57  ;;  %v14516_v34 = vpop.f32.mrf.mxu0 }
 0x1d7   : > { %v17864_v23 = vadd.f32 %v14516_v34, %v2684_v26  ;;  %v17866_v45 = vpop.f32.mrf.mxu1 }
 0x1d8   : > { %v17868_v13 = vpop.f32.mrf.mxu0 }
 0x1d9   : > { %21824 = vst [vmem:[#allocation21_spill] sm:$0xff] %v17864_v23  ;;  %v14472_v40 = vpop.f32.mrf.mxu1 }
 0x1da   : > { %v2688_v6 = vadd.f32 %v14472_v40, %v17526_v42  ;;  %v14519_v32 = vpop.f32.mrf.mxu0 }
 0x1db   : > { %v17871_v14 = vadd.f32 %v14519_v32, %v2686_v59  ;;  %v17873_v7 = vpop.f32.mrf.mxu1 }
 0x1dc   : > { %v17875_v53 = vpop.f32.mrf.mxu0 }
 0x1dd   : > { %21825 = vst [vmem:[#allocation23_spill] sm:$0xff] %v17871_v14  ;;  %v14475_v50 = vpop.f32.mrf.mxu1 }
 0x1de   : > { %v2690_v57 = vadd.f32 %v14475_v50, %v17557_v60  ;;  %v14522_v18 = vpop.f32.mrf.mxu0 }
 0x1df   : > { %v17878_v29 = vadd.f32 %v14522_v18, %v2688_v6  ;;  %v17880_v19 = vpop.f32.mrf.mxu1 }
 0x1e0   : > { %v17882_v26 = vpop.f32.mrf.mxu0 }
 0x1e1   : > { %21826 = vst [vmem:[#allocation26_spill] sm:$0xff] %v17878_v29  ;;  %v14478_v16 = vpop.f32.mrf.mxu1 }
 0x1e2   : > { %v2692_v42 = vadd.f32 %v14478_v16, %v17588_v8  ;;  %v14525_v38 = vpop.f32.mrf.mxu0 }
 0x1e3   : > { %v17885_v59 = vadd.f32 %v14525_v38, %v2690_v57  ;;  %v17887_v34 = vpop.f32.mrf.mxu1 }
 0x1e4   : > { %v17889_v40 = vpop.f32.mrf.mxu0 }
 0x1e5   : > { %21827 = vst [vmem:[#allocation28_spill] sm:$0xff] %v17885_v59  ;;  %v14481_v32 = vpop.f32.mrf.mxu1  ;;  %v17903_v59 = vpop.permute.xlu1 %5940 }
 0x1e6   : > { %v2694_v60 = vadd.f32 %v14481_v32, %v17623_v4  ;;  %v14528_v50 = vpop.f32.mrf.mxu0  ;;  %21830 = vst [vmem:[#allocation27_spill] sm:$0xff] %v17903_v59  ;;  %v17907_v4 = vpop.permute.xlu0 %5935 }
 0x1e7   : > { %v17892_v6 = vadd.f32 %v14528_v50, %v2692_v42  ;;  %v17894_v18 = vpop.f32.mrf.mxu1  ;;  %21831 = vst [vmem:[#allocation30_spill] sm:$0xff] %v17907_v4 }
 0x1e8   : > { %v17896_v35 = vpop.f32.mrf.mxu0 }
 0x1e9   : > { %21828 = vst [vmem:[#allocation41_spill] sm:$0xff] %v17892_v6  ;;  %v14484_v25 = vpop.f32.mrf.mxu1 }
 0x1ea   : > { %v2696_v8 = vadd.f32 %v14484_v25, %v17649_v20  ;;  %v14531_v16 = vpop.f32.mrf.mxu0 }
 0x1eb   : > { %v17899_v57 = vadd.f32 %v14531_v16, %v2694_v60  ;;  %v17901_v38 = vpop.f32.mrf.mxu1  ;;  %v17916_v60 = vpop.permute.xlu1 %5052 }
 0x1ec   : > { %v17905_v29 = vpop.f32.mrf.mxu0  ;;  %21834 = vst [vmem:[#allocation29_spill] sm:$0xff] %v17916_v60 }
 0x1ed   : > { %21829 = vst [vmem:[#allocation25_spill] sm:$0xff] %v17899_v57  ;;  %v14487_v42 = vpop.f32.mrf.mxu1  ;;  %v17919_v57 = vpop.permute.xlu0 %5047 }
 0x1ee   : > { %v2698_v32 = vadd.f32 %v14487_v42, %v17677_v62  ;;  %v14534_v50 = vpop.f32.mrf.mxu0  ;;  %21835 = vst [vmem:[#allocation31_spill] sm:$0xff] %v17919_v57 }
 0x1ef   : > { %v17910_v6 = vadd.f32 %v14534_v50, %v2696_v8  ;;  %v17912_v14 = vpop.f32.mrf.mxu1  ;;  %v17932_v60 = vpop.permute.xlu1 %5950 }
 0x1f0   : > { %v17914_v20 = vpop.f32.mrf.mxu0  ;;  %21840 = vst [vmem:[#allocation36_spill] sm:$0xff] %v17932_v60 }
 0x1f1   : > { %21832 = vst [vmem:[#allocation32_spill] sm:$0xff] %v17910_v6  ;;  %21833 = vst [vmem:[#allocation47_spill] sm:$0xff] %v17914_v20  ;;  %v14490_v25 = vpop.f32.mrf.mxu1 }
 0x1f2   : > { %v2700_v16 = vadd.f32 %v14490_v25, %v17702_v33  ;;  %v14537_v59 = vpop.f32.mrf.mxu0  ;;  %v17936_v25 = vpop.permute.xlu0 %5945 }
 0x1f3   : > { %v17921_v23 = vadd.f32 %v14537_v59, %v2698_v32  ;;  %v17923_v4 = vpop.f32.mrf.mxu1  ;;  %21842 = vst [vmem:[#allocation43_spill] sm:$0xff] %v17936_v25 }
 0x1f4   : > { %v17925_v62 = vpop.f32.mrf.mxu0 }
 0x1f5   : > { %21836 = vst [vmem:[#allocation34_spill] sm:$0xff] %v17921_v23  ;;  %21837 = vst [vmem:[#allocation37_spill] sm:$0xff] %v17925_v62  ;;  %v14493_v8 = vpop.f32.mrf.mxu1 }
 0x1f6   : > { %v2702_v42 = vadd.f32 %v14493_v8, %v17726_v9  ;;  %v14540_v50 = vpop.f32.mrf.mxu0  ;;  %v17945_v8 = vpop.permute.xlu1 %5062 }
 0x1f7   : > { %v17928_v6 = vadd.f32 %v14540_v50, %v2700_v16  ;;  %v17930_v20 = vpop.f32.mrf.mxu1  ;;  %21846 = vst [vmem:[#allocation52_spill] sm:$0xff] %v17945_v8 }
 0x1f8   : > { %21839 = vst [vmem:[#allocation33_spill] sm:$0xff] %v17930_v20  ;;  %v17934_v33 = vpop.f32.mrf.mxu0 }
 0x1f9   : > { %21838 = vst [vmem:[#allocation50_spill] sm:$0xff] %v17928_v6  ;;  %21841 = vst [vmem:[#allocation39_spill] sm:$0xff] %v17934_v33  ;;  %v14496_v59 = vpop.f32.mrf.mxu1  ;;  %v17948_v6 = vpop.permute.xlu0 %5057 }
 0x1fa   : > { %v2704_v32 = vadd.f32 %v14496_v59, %v17749_v56  ;;  %v14543_v23 = vpop.f32.mrf.mxu0  ;;  %21847 = vst [vmem:[#allocation56_spill] sm:$0xff] %v17948_v6  ;;  %v17961_v8 = vpop.permute.xlu1 %5960 }
 0x1fb   : > { %v17939_v57 = vadd.f32 %v14543_v23, %v2702_v42  ;;  %v17941_v62 = vpop.f32.mrf.mxu1  ;;  %21853 = vst [vmem:[#allocation62_spill] sm:$0xff] %v17961_v8 }
 0x1fc   : > { %21844 = vst [vmem:[#allocation42_spill] sm:$0xff] %v17941_v62  ;;  %v17943_v9 = vpop.f32.mrf.mxu0  ;;  %v21936_v62 = vld [vmem:[#allocation46_spill] sm:$0xff] }
 0x1fd   : > { %21843 = vst [vmem:[#allocation38_spill] sm:$0xff] %v17939_v57  ;;  %21845 = vst [vmem:[#allocation45_spill] sm:$0xff] %v17943_v9  ;;  %v14499_v16 = vpop.f32.mrf.mxu1 }
 0x1fe   : > { %v2706_v50 = vadd.f32 %v14499_v16, %v17772_v10  ;;  %v14546_v60 = vpop.f32.mrf.mxu0  ;;  %v17965_v16 = vpop.permute.xlu0 %5955 }
 0x1ff   : > { %v17950_v33 = vadd.f32 %v14546_v60, %v2704_v32  ;;  %v17952_v25 = vpop.f32.mrf.mxu1  ;;  %21855 = vst [vmem:[#allocation73_spill] sm:$0xff] %v17965_v16 }
 0x200   : > { %21849 = vst [vmem:[#allocation51_spill] sm:$0xff] %v17952_v25  ;;  %v17954_v56 = vpop.f32.mrf.mxu0 }
 0x201   : > { %21848 = vst [vmem:[#allocation44_spill] sm:$0xff] %v17950_v33  ;;  %21850 = vst [vmem:[#allocation54_spill] sm:$0xff] %v17954_v56  ;;  %v14502_v23 = vpop.f32.mrf.mxu1 }
 0x202   : > { %v2708_v42 = vadd.f32 %v14502_v23, %v17795_v24  ;;  %v14549_v59 = vpop.f32.mrf.mxu0  ;;  %v4996_v24 = vld [vmem:[%s21701_s0 + $0x10] sm:$0xff] }
 0x203   : > { %v17957_v57 = vadd.f32 %v14549_v59, %v2706_v50  ;;  %v17959_v9 = vpop.f32.mrf.mxu1  ;;  %14859 = vmatprep.subr.mxu1 %v4996_v24  ;;  %v17977_v59 = vpop.permute.xlu1 %5072 }
 0x204   : > { %21852 = vst [vmem:[#allocation53_spill] sm:$0xff] %v17959_v9  ;;  %v17963_v10 = vpop.f32.mrf.mxu0  ;;  %14860 = vmatpush3.msra.mxu1 %v4996_v24  ;;  %21859 = vst [vmem:[#allocation75_spill] sm:$0xff] %v17977_v59 }
 0x205   : > { %21851 = vst [vmem:[#allocation63_spill] sm:$0xff] %v17957_v57  ;;  %21854 = vst [vmem:[#allocation65_spill] sm:$0xff] %v17963_v10  ;;  %v14505_v60 = vpop.f32.mrf.mxu1 }
 0x206   : > { %v2710_v32 = vadd.f32 %v14505_v60, %v17819_v44  ;;  %v14552_v33 = vpop.f32.mrf.mxu0  ;;  %v17980_v44 = vpop.permute.xlu0 %5067 }
 0x207   : > { %v17968_v6 = vadd.f32 %v14552_v33, %v2708_v42  ;;  %v17970_v56 = vpop.f32.mrf.mxu1  ;;  %21860 = vst [vmem:[#allocation74_spill] sm:$0xff] %v17980_v44  ;;  %v17994_v24 = vpop.permute.xlu1 %5970 }
 0x208   : > { %21857 = vst [vmem:[#allocation64_spill] sm:$0xff] %v17970_v56  ;;  %v17975_v50 = vpop.f32.mrf.mxu0  ;;  %21865 = vst [vmem:[#allocation69_spill] sm:$0xff] %v17994_v24 }
 0x209   : > { %21856 = vst [vmem:[#allocation66_spill] sm:$0xff] %v17968_v6  ;;  %21858 = vst [vmem:[#allocation72_spill] sm:$0xff] %v17975_v50  ;;  %v14508_v23 = vpop.f32.mrf.mxu1 }
 0x20a   : > { %v2712_v8 = vadd.f32 %v14508_v23, %v17847_v61  ;;  %v14555_v16 = vpop.f32.mrf.mxu0  ;;  %v17998_v61 = vpop.permute.xlu0 %5965 }
 0x20b   : > { %v17982_v33 = vadd.f32 %v14555_v16, %v2710_v32  ;;  %v17984_v42 = vpop.f32.mrf.mxu1  ;;  %21867 = vst [vmem:[#allocation85_spill] sm:$0xff] %v17998_v61 }
 0x20c   : > { %21862 = vst [vmem:[#allocation82_spill] sm:$0xff] %v17984_v42  ;;  %v17986_v60 = vpop.f32.mrf.mxu0 }
 0x20d   : > { %21861 = vst [vmem:[#allocation80_spill] sm:$0xff] %v17982_v33  ;;  %21863 = vst [vmem:[#allocation76_spill] sm:$0xff] %v17986_v60  ;;  %v17988_v6 = vpop.f32.mrf.mxu1 }
 0x20e   : > { %v14558_v57 = vpop.f32.mrf.mxu0 }
 0x20f   : > { %v17990_v50 = vadd.f32 %v14558_v57, %v2712_v8  ;;  %v17992_v56 = vpop.f32.mrf.mxu1  ;;  %v18010_v57 = vpop.permute.xlu1 %5082 }
 0x210   : > { %v17996_v59 = vpop.f32.mrf.mxu0  ;;  %21872 = vst [vmem:[#allocation9_spill] sm:$0xff] %v18010_v57 }
 0x211   : > { %21864 = vst [vmem:[#allocation81_spill] sm:$0xff] %v17990_v50  ;;  %21866 = vst [vmem:[#allocation78_spill] sm:$0xff] %v17996_v59  ;;  %v18000_v23 = vpop.f32.mrf.mxu1  ;;  %v18014_v50 = vpop.permute.xlu0 %5077 }
 0x212   : > { %21868 = vst [vmem:[#allocation83_spill] sm:$0xff] %v18000_v23  ;;  %v18002_v16 = vpop.f32.mrf.mxu0  ;;  %21874 = vst [vmem:[#allocation89_spill] sm:$0xff] %v18014_v50 }
 0x213   : > { %v18004_v32 = vpop.f32.mrf.mxu1  ;;  %v18026_v10 = vpop.permute.xlu1 %5980 }
 0x214   : > { %21869 = vst [vmem:[#allocation86_spill] sm:$0xff] %v18004_v32  ;;  %v18006_v33 = vpop.f32.mrf.mxu0  ;;  %21880 = vst [vmem:[#allocation121_spill] sm:$0xff] %v18026_v10  ;;  %v4997_v10 = vld [vmem:[%s21701_s0 + $0x18] sm:$0xff] }
 0x215   : > { %21870 = vst [vmem:[#allocation84_spill] sm:$0xff] %v18006_v33  ;;  %v18008_v44 = vpop.f32.mrf.mxu1  ;;  %14909 = vmatprep.subr.mxu0 %v4997_v10 }
 0x216   : > { %21871 = vst [vmem:[#allocation88_spill] sm:$0xff] %v18008_v44  ;;  %v18012_v8 = vpop.f32.mrf.mxu0  ;;  %v18030_v44 = vpop.permute.xlu0 %5975  ;;  %14910 = vmatpush3.msra.mxu0 %v4997_v10 }
 0x217   : > { %21873 = vst [vmem:[#allocation12_spill] sm:$0xff] %v18012_v8  ;;  %v18016_v24 = vpop.f32.mrf.mxu1  ;;  %21882 = vst [vmem:[#allocation90_spill] sm:$0xff] %v18030_v44  ;;  %v21937_v8 = vld [vmem:[#allocation126_spill] sm:$0xff] }
 0x218   : > { %21875 = vst [vmem:[#allocation91_spill] sm:$0xff] %v18016_v24  ;;  %v18018_v59 = vpop.f32.mrf.mxu0  ;;  %v1565_v32 = vadd.f32 %v21937_v8, %v21936_v62 }
 0x219   : > { %21876 = vst [vmem:[#allocation11_spill] sm:$0xff] %v18018_v59  ;;  %v18020_v61 = vpop.f32.mrf.mxu1 }
 0x21a   : > { %21877 = vst [vmem:[#allocation120_spill] sm:$0xff] %v18020_v61  ;;  %v18022_v60 = vpop.f32.mrf.mxu0  ;;  %v18042_v61 = vpop.permute.xlu1 %5092 }
 0x21b   : > { %21878 = vst [vmem:[#allocation87_spill] sm:$0xff] %v18022_v60  ;;  %v18024_v42 = vpop.f32.mrf.mxu1  ;;  %21888 = vst [vmem:[#allocation95_spill] sm:$0xff] %v18042_v61 }
 0x21c   : > { %21879 = vst [vmem:[#allocation14_spill] sm:$0xff] %v18024_v42  ;;  %v18028_v9 = vpop.f32.mrf.mxu0  ;;  %v18049_v42 = vpop.permute.xlu0 %5087 }
 0x21d   : > { %21881 = vst [vmem:[#allocation92_spill] sm:$0xff] %v18028_v9  ;;  %v18032_v57 = vpop.f32.mrf.mxu1  ;;  %21890 = vst [vmem:[#allocation15_spill] sm:$0xff] %v18049_v42 }
 0x21e   : > { %21883 = vst [vmem:[#allocation94_spill] sm:$0xff] %v18032_v57  ;;  %v18034_v25 = vpop.f32.mrf.mxu0  ;;  %v18061_v61 = vpop.permute.xlu1 %5990 }
 0x21f   : > { %21884 = vst [vmem:[#allocation13_spill] sm:$0xff] %v18034_v25  ;;  %v18036_v50 = vpop.f32.mrf.mxu1  ;;  %21896 = vst [vmem:[#allocation100_spill] sm:$0xff] %v18061_v61 }
 0x220   : > { %21885 = vst [vmem:[#allocation122_spill] sm:$0xff] %v18036_v50  ;;  %v18038_v24 = vpop.f32.mrf.mxu0  ;;  %v18065_v25 = vpop.permute.xlu0 %5985 }
 0x221   : > { %21886 = vst [vmem:[#allocation16_spill] sm:$0xff] %v18038_v24  ;;  %v18040_v59 = vpop.f32.mrf.mxu1  ;;  %21898 = vst [vmem:[#allocation20_spill] sm:$0xff] %v18065_v25 }
 0x222   : > { %21887 = vst [vmem:[#allocation124_spill] sm:$0xff] %v18040_v59  ;;  %v18044_v60 = vpop.f32.mrf.mxu0 }
 0x223   : > { %21889 = vst [vmem:[#allocation97_spill] sm:$0xff] %v18044_v60  ;;  %v18051_v44 = vpop.f32.mrf.mxu1 }
 0x224   : > { %21891 = vst [vmem:[#allocation125_spill] sm:$0xff] %v18051_v44  ;;  %v18053_v57 = vpop.f32.mrf.mxu0 }
 0x225   : > { %21892 = vst [vmem:[#allocation93_spill] sm:$0xff] %v18053_v57  ;;  %v18055_v50 = vpop.f32.mrf.mxu1 }
 0x226   : > { %21893 = vst [vmem:[#allocation18_spill] sm:$0xff] %v18055_v50  ;;  %v18057_v24 = vpop.f32.mrf.mxu0  ;;  %v18077_v50 = vpop.permute.xlu1 %5102 }
 0x227   : > { %21894 = vst [vmem:[#allocation127_spill] sm:$0xff] %v18057_v24  ;;  %v18059_v59 = vpop.f32.mrf.mxu1  ;;  %21904 = vst [vmem:[#allocation107_spill] sm:$0xff] %v18077_v50 }
 0x228   : > { %21895 = vst [vmem:[#allocation98_spill] sm:$0xff] %v18059_v59  ;;  %v18063_v60 = vpop.f32.mrf.mxu0  ;;  %v18081_v59 = vpop.permute.xlu0 %5097 }
 0x229   : > { %21897 = vst [vmem:[#allocation17_spill] sm:$0xff] %v18063_v60  ;;  %v18067_v9 = vpop.f32.mrf.mxu1  ;;  %21906 = vst [vmem:[#allocation105_spill] sm:$0xff] %v18081_v59 }
 0x22a   : > { %21899 = vst [vmem:[#allocation101_spill] sm:$0xff] %v18067_v9  ;;  %v18069_v42 = vpop.f32.mrf.mxu0 }
 0x22b   : > { %21900 = vst [vmem:[#allocation103_spill] sm:$0xff] %v18069_v42  ;;  %v18071_v44 = vpop.f32.mrf.mxu1 }
 0x22c   : > { %21901 = vst [vmem:[#allocation99_spill] sm:$0xff] %v18071_v44  ;;  %v18073_v57 = vpop.f32.mrf.mxu0  ;;  %v18093_v44 = vpop.permute.xlu1 %6000 }
 0x22d   : > { %21902 = vst [vmem:[#allocation104_spill] sm:$0xff] %v18073_v57  ;;  %v18075_v10 = vpop.f32.mrf.mxu1  ;;  %21912 = vst [vmem:[#allocation48_spill] sm:$0xff] %v18093_v44 }
 0x22e   : > { %21903 = vst [vmem:[#allocation106_spill] sm:$0xff] %v18075_v10  ;;  %v18079_v24 = vpop.f32.mrf.mxu0  ;;  %v18097_v10 = vpop.permute.xlu0 %5995 }
 0x22f   : > { %21905 = vst [vmem:[#allocation109_spill] sm:$0xff] %v18079_v24  ;;  %v18083_v61 = vpop.f32.mrf.mxu1  ;;  %21914 = vst [vmem:[#allocation68_spill] sm:$0xff] %v18097_v10 }
 0x230   : > { %21907 = vst [vmem:[#allocation110_spill] sm:$0xff] %v18083_v61  ;;  %v18085_v60 = vpop.f32.mrf.mxu0 }
 0x231   : > { %21908 = vst [vmem:[#allocation112_spill] sm:$0xff] %v18085_v60  ;;  %v18087_v25 = vpop.f32.mrf.mxu1 }
 0x232   : > { %21909 = vst [vmem:[#allocation113_spill] sm:$0xff] %v18087_v25  ;;  %v18089_v9 = vpop.f32.mrf.mxu0  ;;  %v18109_v25 = vpop.permute.xlu1 %5112 }
 0x233   : > { %21910 = vst [vmem:[#allocation114_spill] sm:$0xff] %v18089_v9  ;;  %v18091_v42 = vpop.f32.mrf.mxu1  ;;  %21920 = vst [vmem:[#allocation117_spill] sm:$0xff] %v18109_v25 }
 0x234   : > { %21911 = vst [vmem:[#allocation111_spill] sm:$0xff] %v18091_v42  ;;  %v18095_v57 = vpop.f32.mrf.mxu0  ;;  %v18113_v42 = vpop.permute.xlu0 %5107 }
 0x235   : > { %21913 = vst [vmem:[#allocation60_spill] sm:$0xff] %v18095_v57  ;;  %v18099_v50 = vpop.f32.mrf.mxu1  ;;  %21922 = vst [vmem:[#allocation118_spill] sm:$0xff] %v18113_v42 }
 0x236   : > { %21915 = vst [vmem:[#allocation67_spill] sm:$0xff] %v18099_v50  ;;  %v18101_v24 = vpop.f32.mrf.mxu0  ;;  %v18128_v25 = vpop.permute.xlu1 %6010 }
 0x237   : > { %21916 = vst [vmem:[#allocation57_spill] sm:$0xff] %v18101_v24  ;;  %v18103_v59 = vpop.f32.mrf.mxu1  ;;  %21928 = vst [vmem:[#allocation132_spill] sm:$0xff] %v18128_v25  ;;  %v21939_v25 = vld [vmem:[#allocation19_spill] sm:$0xff] }
 0x238   : > { %21917 = vst [vmem:[#allocation70_spill] sm:$0xff] %v18103_v59  ;;  %v18105_v61 = vpop.f32.mrf.mxu0  ;;  %v18132_v42 = vpop.permute.xlu0 %6005 }
 0x239   : > { %21918 = vst [vmem:[#allocation116_spill] sm:$0xff] %v18105_v61  ;;  %v18107_v60 = vpop.f32.mrf.mxu1  ;;  %v4998_v61 = vld [vmem:[%s21701_s0 + $0x20] sm:$0xff]  ;;  %21930 = vst [vmem:[#allocation134_spill] sm:$0xff] %v18132_v42 }
 0x23a   : > { %21919 = vst [vmem:[#allocation77_spill] sm:$0xff] %v18107_v60  ;;  %v18111_v9 = vpop.f32.mrf.mxu0  ;;  %14959 = vmatprep.subr.mxu1 %v4998_v61  ;;  %v21938_v61 = vld [vmem:[#allocation49_spill] sm:$0xff] }
 0x23b   : > { %21921 = vst [vmem:[#allocation115_spill] sm:$0xff] %v18111_v9  ;;  %v18115_v44 = vpop.f32.mrf.mxu1  ;;  %v21935_v9 = vld [vmem:[#allocation123_spill] sm:$0xff]  ;;  %v1575_v20 = vadd.f32 %v21939_v25, %v21938_v61 }
 0x23c   : > { %21923 = vst [vmem:[#allocation119_spill] sm:$0xff] %v18115_v44  ;;  %v18117_v57 = vpop.f32.mrf.mxu0  ;;  %v18160_v8 = vpop.permute.xlu0 %5117 }
 0x23d   : > { %21924 = vst [vmem:[#allocation128_spill] sm:$0xff] %v18117_v57  ;;  %v18119_v10 = vpop.f32.mrf.mxu1  ;;  %21945 = vst [vmem:[#allocation46_spill] sm:$0xff] %v18160_v8  ;;  %v2265_v25 = vadd.f32 %v17515_v47, %v1575_v20  ;;  %v21950_v8 = vld [vmem:[#allocation108_spill] sm:$0xff] }
 0x23e   : > { %21925 = vst [vmem:[#allocation129_spill] sm:$0xff] %v18119_v10  ;;  %v18121_v50 = vpop.f32.mrf.mxu0  ;;  %v1665_v47 = vadd.f32 %v17754_v30, %v21950_v8  ;;  %v21953_v8 = vld [vmem:[#allocation10_spill] sm:$0xff] }
 0x23f   : > { %21926 = vst [vmem:[#allocation130_spill] sm:$0xff] %v18121_v50  ;;  %v18126_v59 = vpop.f32.mrf.mxu1  ;;  %v21934_v50 = vld [vmem:[#allocation40_spill] sm:$0xff] }
 0x240   : > { %21927 = vst [vmem:[#allocation131_spill] sm:$0xff] %v18126_v59  ;;  %v18130_v60 = vpop.f32.mrf.mxu0  ;;  %v1555_v24 = vadd.f32 %v21935_v9, %v21934_v50  ;;  %v21944_v9 = vld [vmem:[#allocation61_spill] sm:$0xff]  ;;  %v2283_v30 = vadd.f32 %v17764_v63, %v1665_v47 }
 0x241   : > { %21929 = vst [vmem:[#allocation133_spill] sm:$0xff] %v18130_v60  ;;  %v18134_v44 = vpop.f32.mrf.mxu1  ;;  %v21940_v60 = vld [vmem:[#allocation55_spill] sm:$0xff]  ;;  %v1595_v50 = vadd.f32 %v17563_v3, %v21944_v9 }
 0x242   : > { %21931 = vst [vmem:[#allocation135_spill] sm:$0xff] %v18134_v44  ;;  %v18136_v57 = vpop.f32.mrf.mxu0  ;;  %v1585_v42 = vadd.f32 %v17532_v43, %v21940_v60  ;;  %v18152_v44 = vpop.permute.xlu1 %5122  ;;  %v21946_v43 = vld [vmem:[#allocation71_spill] sm:$0xff] }
 0x243   : > { %21932 = vst [vmem:[#allocation136_spill] sm:$0xff] %v18136_v57  ;;  %v18138_v10 = vpop.f32.mrf.mxu1  ;;  %21942 = vst [vmem:[#allocation123_spill] sm:$0xff] %v18152_v44  ;;  %v21943_v57 = vld [vmem:[#allocation22_spill] sm:$0xff]  ;;  %v1605_v60 = vadd.f32 %v17594_v17, %v21946_v43  ;;  %v1695_v43 = vadd.f32 %v17823_v52, %v21953_v8  ;;  %v2685_v52 = vadd.f32 %v17866_v45, %v2265_v25 }
 0x244   : > { %21933 = vst [vmem:[#allocation137_spill] sm:$0xff] %v18138_v10  ;;  %v18144_v59 = vpop.f32.mrf.mxu0  ;;  %v2261_v10 = vadd.f32 %v17483_v46, %v1555_v24  ;;  %v2263_v23 = vadd.f32 %v21943_v57, %v1565_v32  ;;  %v2267_v61 = vadd.f32 %v17546_v55, %v1585_v42  ;;  %v2269_v24 = vadd.f32 %v17577_v49, %v1595_v50  ;;  %v21948_v32 = vld [vmem:[#allocation96_spill] sm:$0xff]  ;;  %v21949_v57 = vld [vmem:[#allocation102_spill] sm:$0xff]  ;;  %v21952_v42 = vld [vmem:[#allocation59_spill] sm:$0xff] }
 0x245   : > { %v18150_v33 = vpop.f32.mrf.mxu1  ;;  %v1645_v3 = vadd.f32 %v17707_v15, %v21948_v32  ;;  %v1655_v9 = vadd.f32 %v17731_v28, %v21949_v57  ;;  %v2271_v17 = vadd.f32 %v17610_v22, %v1605_v60  ;;  %v1685_v49 = vadd.f32 %v17800_v21, %v21952_v42 }
 0x246   : > { %21941 = vst [vmem:[#allocation40_spill] sm:$0xff] %v18150_v33  ;;  %v18158_v62 = vpop.f32.mrf.mxu0  ;;  %v21947_v33 = vld [vmem:[#allocation79_spill] sm:$0xff]  ;;  %v2681_v60 = vadd.f32 %v17850_v1, %v2261_v10  ;;  %v2683_v63 = vadd.f32 %v17859_v12, %v2263_v23  ;;  %v2689_v10 = vadd.f32 %v17880_v19, %v2269_v24  ;;  %v3073_v45 = vadd.f32 %v17875_v53, %v2685_v52  ;;  %v21959_v24 = vld [vmem:[#allocation84_spill] sm:$0xff]  ;;  %v21969_v52 = vld [vmem:[#allocation42_spill] sm:$0xff] }
 0x247   : > { %v1615_v44 = vadd.f32 %v17629_v36, %v21947_v33  ;;  %v18168_v46 = vpop.f32.mrf.mxu1  ;;  %v21951_v36 = vld [vmem:[#allocation58_spill] sm:$0xff]  ;;  %v2279_v15 = vadd.f32 %v17718_v27, %v1645_v3  ;;  %v2281_v28 = vadd.f32 %v17741_v31, %v1655_v9  ;;  %v18201_v27 = vpop.permute.xlu1 %6020  ;;  %v18204_v31 = vadd.f32 %v17838_v11, %v1695_v43  ;;  %v21968_v43 = vld [vmem:[#allocation12_spill] sm:$0xff] }
 0x248   : > { %v18177_v55 = vpop.f32.mrf.mxu0  ;;  %v1675_v33 = vadd.f32 %v17777_v58, %v21951_v36  ;;  %v2287_v58 = vadd.f32 %v17810_v51, %v1685_v49  ;;  %21955 = vst [vmem:[#allocation126_spill] sm:$0xff] %v18201_v27  ;;  %v18211_v51 = vpop.permute.xlu0 %6015  ;;  %v3069_v1 = vadd.f32 %v17861_v5, %v2681_v60  ;;  %v3490_v11 = vadd.f32 %v17988_v6, %v17857_v37  ;;  %v21964_v36 = vld [vmem:[#allocation39_spill] sm:$0xff] }
 0x249   : > { %v2273_v20 = vadd.f32 %v17639_v48, %v1615_v44  ;;  %v18185_v50 = vpop.f32.mrf.mxu1  ;;  %v21954_v44 = vld [vmem:[#allocation8_spill] sm:$0xff]  ;;  %21956 = vst [vmem:[#allocation49_spill] sm:$0xff] %v18211_v51  ;;  %v3071_v12 = vadd.f32 %v17868_v13, %v2683_v63  ;;  %v2691_v23 = vadd.f32 %v17887_v34, %v2271_v17  ;;  %v2695_v53 = vadd.f32 %v17901_v38, %v17658_v39  ;;  %v21961_v39 = vld [vmem:[#allocation47_spill] sm:$0xff] }
 0x24a   : > { %v18192_v22 = vpop.f32.mrf.mxu0  ;;  %v2285_v48 = vadd.f32 %v17787_v41, %v1675_v33  ;;  %v1705_v21 = vadd.f32 %v17835_v2, %v21954_v44  ;;  %v2687_v41 = vadd.f32 %v17873_v7, %v2267_v61  ;;  %v3489_v19 = vadd.f32 %v17992_v56, %v3069_v1  ;;  %v21957_v56 = vld [vmem:[#allocation21_spill] sm:$0xff]  ;;  %v21958_v61 = vld [vmem:[#allocation83_spill] sm:$0xff] }
 0x24b   : > { %v18199_v32 = vpop.f32.mrf.mxu1  ;;  %v2693_v5 = vadd.f32 %v17894_v18, %v2273_v20  ;;  %v3910_v37 = vadd.f32 %v18002_v16, %v3490_v11  ;;  %v18235_v13 = vadd.f32 %v17896_v35, %v2691_v23  ;;  %v2699_v34 = vadd.f32 %v17923_v4, %v2279_v15  ;;  %v18250_v17 = vpop.permute.xlu1 %5132  ;;  %v21963_v4 = vld [vmem:[#allocation33_spill] sm:$0xff]  ;;  %v21967_v15 = vld [vmem:[#allocation86_spill] sm:$0xff]  ;;  %v21973_v23 = vld [vmem:[#allocation88_spill] sm:$0xff] }
 0x24c   : > { %v18209_v3 = vpop.f32.mrf.mxu0  ;;  %v18214_v2 = vadd.f32 %v17853_v54, %v1705_v21  ;;  %v18223_v7 = vadd.f32 %v17882_v26, %v2687_v41  ;;  %v18229_v54 = vadd.f32 %v17889_v40, %v2689_v10  ;;  %v2697_v26 = vadd.f32 %v17912_v14, %v17685_v0  ;;  %21960 = vst [vmem:[#allocation19_spill] sm:$0xff] %v18250_v17  ;;  %v21962_v0 = vld [vmem:[#allocation37_spill] sm:$0xff]  ;;  %v18267_v49 = vpop.permute.xlu0 %5127  ;;  %v21971_v10 = vld [vmem:[#allocation51_spill] sm:$0xff] }
 0x24d   : > { %v14663_v57 = vpop.f32.mrf.mxu1  ;;  %v18245_v18 = vadd.f32 %v17905_v29, %v2693_v5  ;;  %v3492_v16 = vadd.f32 %v21958_v61, %v21957_v56  ;;  %v3909_v9 = vadd.f32 %v21959_v24, %v3489_v19  ;;  %v18253_v38 = vadd.f32 %v21961_v39, %v2695_v53  ;;  %v18265_v33 = vld [vmem:[%s21965_s30] ss:$0 sm:$0xff]  ;;  %21966 = vst [vmem:[#allocation55_spill] sm:$0xff] %v18267_v49  ;;  %v21976_v56 = vld [vmem:[#allocation54_spill] sm:$0xff]  ;;  %v21978_v24 = vld [vmem:[#allocation91_spill] sm:$0xff] }
 0x24e   : > { %v18226_v25 = vpop.f32.mrf.mxu0  ;;  %v4298_v35 = vadd.f32 %v14663_v57, %v3910_v37  ;;  %v18256_v14 = vadd.f32 %v21962_v0, %v2697_v26  ;;  %v2701_v20 = vadd.f32 %v21963_v4, %v2281_v28  ;;  %v18260_v29 = vadd.f32 %v21964_v36, %v2699_v34  ;;  %v21970_v41 = vld [vmem:[#allocation45_spill] sm:$0xff]  ;;  %v21972_v57 = vld [vmem:[#allocation23_spill] sm:$0xff] }
 0x24f   : > { %v4138_v6 = vpop.f32.mrf.mxu1  ;;  %v3491_v8 = vadd.f32 %v21967_v15, %v3071_v12  ;;  %v3912_v44 = vadd.f32 %v21968_v43, %v3492_v16  ;;  %v2703_v28 = vadd.f32 %v21969_v52, %v2283_v30  ;;  %v2705_v11 = vadd.f32 %v21971_v10, %v2285_v48  ;;  %v18281_v19 = vld [vmem:[%s21974_s24] ss:$0 sm:$0xff]  ;;  %v21975_v37 = vld [vmem:[#allocation11_spill] sm:$0xff]  ;;  %v18293_v15 = vpop.permute.xlu1 %6030 }
 0x250   : > { %v18242_v40 = vpop.f32.mrf.mxu0  ;;  %v4297_v21 = vadd.f32 %v4138_v6, %v3909_v9  ;;  %v18273_v1 = vadd.f32 %v21970_v41, %v2701_v20  ;;  %v3494_v5 = vadd.f32 %v21973_v23, %v21972_v57  ;;  %v21977_v48 = vld [vmem:[#allocation53_spill] sm:$0xff]  ;;  %v3493_v9 = vadd.f32 %v21978_v24, %v3073_v45  ;;  %21980 = vst [vmem:[#allocation22_spill] sm:$0xff] %v18293_v15  ;;  %v18301_v41 = vpop.permute.xlu0 %6025 }
 0x251   : > { %v14666_v47 = vpop.f32.mrf.mxu1  ;;  %v3911_v6 = vadd.f32 %v21975_v37, %v3491_v8  ;;  %v18286_v61 = vadd.f32 %v21976_v56, %v2703_v28  ;;  %v2707_v16 = vadd.f32 %v21977_v48, %v2287_v58  ;;  %v21981_v8 = vld [vmem:[#allocation65_spill] sm:$0xff]  ;;  %21985 = vst [vmem:[#allocation61_spill] sm:$0xff] %v18301_v41  ;;  %v21987_v37 = vld [vmem:[#allocation14_spill] sm:$0xff]  ;;  %v22032_v41 = vld [vmem:[#allocation60_spill] sm:$0xff] }
 0x252   : > { %v14713_v42 = vpop.f32.mrf.mxu0  ;;  %v4300_v53 = vadd.f32 %v14666_v47, %v3912_v44  ;;  %v18296_v43 = vadd.f32 %v21981_v8, %v2705_v11  ;;  %v21982_v44 = vld [vmem:[#allocation26_spill] sm:$0xff] }
 0x253   : > { %v4718_v60 = vadd.f32 %v14713_v42, %v4298_v35  ;;  %v4148_v63 = vpop.f32.mrf.mxu1  ;;  %v21979_v35 = vld [vmem:[#allocation87_spill] sm:$0xff] }
 0x254   : > { %v4558_v12 = vpop.f32.mrf.mxu0  ;;  %v3914_v39 = vadd.f32 %v21979_v35, %v3494_v5  ;;  %v4299_v20 = vadd.f32 %v4148_v63, %v3911_v6  ;;  %v3495_v6 = vadd.f32 %v21987_v37, %v18223_v7  ;;  %v21992_v7 = vld [vmem:[#allocation16_spill] sm:$0xff] }
 0x255   : > { %v4756_v26 = vmul.f32 %v18265_v33, %v4718_v60  ;;  %v4717_v30 = vadd.f32 %v4558_v12, %v4297_v21  ;;  %v14669_v34 = vpop.f32.mrf.mxu1  ;;  %v21983_v21 = vld [vmem:[#allocation120_spill] sm:$0xff] }
 0x256   : > { %v14716_v0 = vpop.f32.mrf.mxu0  ;;  %v3496_v58 = vadd.f32 %v21983_v21, %v21982_v44  ;;  %v21984_v60 = vld [vmem:[#allocation92_spill] sm:$0xff]  ;;  %v4302_v52 = vadd.f32 %v14669_v34, %v3914_v39 }
 0x257   : > { %v4794_v4 = vadd.f32 %v18281_v19, %v4756_v26  ;;  %v4755_v36 = vmul.f32 %v18265_v33, %v4717_v30  ;;  %v4720_v47 = vadd.f32 %v14716_v0, %v4300_v53  ;;  %v4158_v42 = vpop.f32.mrf.mxu1  ;;  %v3913_v45 = vadd.f32 %v21984_v60, %v3493_v9  ;;  %v21986_v12 = vld [vmem:[#allocation64_spill] sm:$0xff]  ;;  %v21988_v53 = vld [vmem:[#allocation13_spill] sm:$0xff] }
 0x258   : > { %v4568_v28 = vpop.f32.mrf.mxu0  ;;  %v2709_v11 = vadd.f32 %v21986_v12, %v18204_v31  ;;  %v3916_v26 = vadd.f32 %v21988_v53, %v3496_v58  ;;  %v21989_v39 = vld [vmem:[#allocation72_spill] sm:$0xff]  ;;  %v18329_v12 = vpop.permute.xlu0 %5137 }
 0x259   : > { %v4826_v10 = vmax.f32 %v4794_v4, 0.0  ;;  %v4793_v63 = vadd.f32 %v18281_v19, %v4755_v36  ;;  %v4758_v57 = vmul.f32 %v18265_v33, %v4720_v47  ;;  %v4719_v23 = vadd.f32 %v4568_v28, %v4299_v20  ;;  %v14672_v5 = vpop.f32.mrf.mxu1  ;;  %v21990_v31 = vld [vmem:[#allocation28_spill] sm:$0xff]  ;;  %v21991_v4 = vld [vmem:[#allocation94_spill] sm:$0xff]  ;;  %21996 = vst [vmem:[#allocation71_spill] sm:$0xff] %v18329_v12 }
 0x25a   : > { %v4301_v30 = vadd.f32 %v4158_v42, %v3913_v45  ;;  %v14719_v34 = vpop.f32.mrf.mxu0  ;;  %v18314_v0 = vadd.f32 %v21989_v39, %v2707_v16  ;;  %v3498_v20 = vadd.f32 %v21991_v4, %v21990_v31  ;;  %v3915_v36 = vadd.f32 %v21992_v7, %v3495_v6  ;;  %v18322_v45 = vpop.permute.xlu1 %5142  ;;  %v21993_v16 = vld [vmem:[#allocation82_spill] sm:$0xff] }
 0x25b   : > { %4963 = vst.msk [vmem:[#allocation3 + $0x19] sm:$0xff] %vm4923_vm3, %v4826_v10  ;;  %v4825_v56 = vmax.f32 %v4793_v63, 0.0  ;;  %v4796_v48 = vadd.f32 %v18281_v19, %v4758_v57  ;;  %v4757_v24 = vmul.f32 %v18265_v33, %v4719_v23  ;;  %v4722_v9 = vadd.f32 %v14719_v34, %v4302_v52  ;;  %v4168_v35 = vpop.f32.mrf.mxu1  ;;  %v21994_v28 = vld [vmem:[#allocation122_spill] sm:$0xff]  ;;  %v21995_v63 = vld [vmem:[#allocation97_spill] sm:$0xff]  ;;  %v21997_v34 = vld [vmem:[#allocation76_spill] sm:$0xff] }
 0x25c   : > { %v4304_v47 = vadd.f32 %v14672_v5, %v3916_v26  ;;  %v4578_v42 = vpop.f32.mrf.mxu0  ;;  %v2711_v52 = vadd.f32 %v21993_v16, %v18214_v2  ;;  %v3497_v10 = vadd.f32 %v21994_v28, %v18229_v54  ;;  %v3918_v57 = vadd.f32 %v21995_v63, %v3498_v20  ;;  %v21999_v54 = vld [vmem:[#allocation124_spill] sm:$0xff]  ;;  %v18352_v16 = vld [vmem:[%s21701_s0 + $0x28] sm:$0xff] }
 0x25d   : > { %4962 = vst.msk [vmem:[#allocation3 + $0x11] sm:$0xff] %vm4923_vm3, %v4825_v56  ;;  %v4828_v8 = vmax.f32 %v4796_v48, 0.0  ;;  %v4795_v44 = vadd.f32 %v18281_v19, %v4757_v24  ;;  %v4760_v21 = vmul.f32 %v18265_v33, %v4722_v9  ;;  %v4721_v58 = vadd.f32 %v4578_v42, %v4301_v30  ;;  %v14675_v60 = vpop.f32.mrf.mxu1  ;;  %v21998_v56 = vld [vmem:[#allocation41_spill] sm:$0xff]  ;;  %15009 = vmatprep.subr.mxu0 %v18352_v16 }
 0x25e   : > { %v4303_v23 = vadd.f32 %v4168_v35, %v3915_v36  ;;  %v14722_v5 = vpop.f32.mrf.mxu0  ;;  %v18335_v2 = vadd.f32 %v21997_v34, %v2709_v11  ;;  %v3500_v48 = vadd.f32 %v21999_v54, %v21998_v56  ;;  %v22000_v24 = vld [vmem:[#allocation93_spill] sm:$0xff]  ;;  %v4306_v35 = vadd.f32 %v14675_v60, %v3918_v57 }
 0x25f   : > { %4965 = vst.msk [vmem:[#allocation3 + $0x29] sm:$0xff] %vm4923_vm3, %v4828_v8  ;;  %v4827_v37 = vmax.f32 %v4795_v44, 0.0  ;;  %v4798_v6 = vadd.f32 %v18281_v19, %v4760_v21  ;;  %v4759_v53 = vmul.f32 %v18265_v33, %v4721_v58  ;;  %v4724_v26 = vadd.f32 %v14722_v5, %v4304_v47  ;;  %v4178_v30 = vpop.f32.mrf.mxu1  ;;  %v22001_v47 = vld [vmem:[#allocation78_spill] sm:$0xff]  ;;  %v22002_v11 = vld [vmem:[#allocation125_spill] sm:$0xff]  ;;  %v22003_v44 = vld [vmem:[#allocation127_spill] sm:$0xff] }
 0x260   : > { %v3917_v9 = vadd.f32 %v22000_v24, %v3497_v10  ;;  %v4588_v39 = vpop.f32.mrf.mxu0  ;;  %v18344_v42 = vadd.f32 %v22001_v47, %v2711_v52  ;;  %v3499_v8 = vadd.f32 %v22002_v11, %v18235_v13  ;;  %v3920_v21 = vadd.f32 %v22003_v44, %v3500_v48  ;;  %v18358_v13 = vpop.permute.xlu1 %6040  ;;  %v22006_v5 = vld [vmem:[#allocation18_spill] sm:$0xff] }
 0x261   : > { %4964 = vst.msk [vmem:[#allocation3 + $0x21] sm:$0xff] %vm4923_vm3, %v4827_v37  ;;  %v4830_v31 = vmax.f32 %v4798_v6, 0.0  ;;  %v4797_v4 = vadd.f32 %v18281_v19, %v4759_v53  ;;  %v4762_v20 = vmul.f32 %v18265_v33, %v4724_v26  ;;  %v4723_v7 = vadd.f32 %v4588_v39, %v4303_v23  ;;  %v14678_v36 = vpop.f32.mrf.mxu1  ;;  %22004 = vst [vmem:[#allocation79_spill] sm:$0xff] %v18358_v13  ;;  %v22005_v23 = vld [vmem:[#allocation25_spill] sm:$0xff]  ;;  %v22007_v6 = vld [vmem:[#allocation98_spill] sm:$0xff] }
 0x262   : > { %v4305_v58 = vadd.f32 %v4178_v30, %v3917_v9  ;;  %v14725_v60 = vpop.f32.mrf.mxu0  ;;  %v3502_v37 = vadd.f32 %v22006_v5, %v22005_v23  ;;  %v3501_v53 = vadd.f32 %v22007_v6, %v18245_v18  ;;  %v22008_v26 = vld [vmem:[#allocation17_spill] sm:$0xff]  ;;  %v4308_v34 = vadd.f32 %v14678_v36, %v3920_v21  ;;  %v18369_v9 = vpop.permute.xlu0 %6035  ;;  %v22013_v23 = vld [vmem:[#allocation32_spill] sm:$0xff] }
 0x263   : > { %4967 = vst.msk [vmem:[#allocation3 + $0x39] sm:$0xff] %vm4923_vm3, %v4830_v31  ;;  %v4829_v28 = vmax.f32 %v4797_v4, 0.0  ;;  %v4800_v10 = vadd.f32 %v18281_v19, %v4762_v20  ;;  %v4761_v52 = vmul.f32 %v18265_v33, %v4723_v7  ;;  %v4726_v63 = vadd.f32 %v14725_v60, %v4306_v35  ;;  %v4188_v57 = vpop.f32.mrf.mxu1  ;;  %22009 = vst [vmem:[#allocation96_spill] sm:$0xff] %v18369_v9  ;;  %v5230_v20 = vld [vmem:[#allocation3 + $0x19] sm:$0xff]  ;;  %v22010_v7 = vld [vmem:[#allocation103_spill] sm:$0xff] }
 0x264   : > { %v3919_v30 = vadd.f32 %v22008_v26, %v3499_v8  ;;  %v4598_v56 = vpop.f32.mrf.mxu0  ;;  %v5229_v54 = vld [vmem:[#allocation3 + $0x11] sm:$0xff]  ;;  %v3922_v36 = vadd.f32 %v22010_v7, %v3502_v37  ;;  %v22011_v8 = vld [vmem:[#allocation31_spill] sm:$0xff] }
 0x265   : > { %v18365_v48 = vld [vmem:[#allocation3 + $0x10] sm:$0xff]  ;;  %v18367_v24 = vld [vmem:[#allocation3 + $0x18] sm:$0xff]  ;;  %4966 = vst.msk [vmem:[#allocation3 + $0x31] sm:$0xff] %vm4923_vm3, %v4829_v28  ;;  %v4832_v35 = vmax.f32 %v4800_v10, 0.0  ;;  %v4799_v39 = vadd.f32 %v18281_v19, %v4761_v52  ;;  %v4764_v31 = vmul.f32 %v18265_v33, %v4726_v63  ;;  %v4725_v4 = vadd.f32 %v4598_v56, %v4305_v58  ;;  %14764 = vmatprep.mubr.msk.f32.mxu1 %vm4923_vm3, %v5229_v54  ;;  %v14681_v18 = vpop.f32.mrf.mxu1  ;;  %v22015_v37 = vld [vmem:[#allocation99_spill] sm:$0xff] }
 0x266   : > { %v4307_v47 = vadd.f32 %v4188_v57, %v3919_v30  ;;  %v14728_v11 = vpop.f32.mrf.mxu0  ;;  %14765 = vmatmul.mubr.msk.f32.gmra.mxu1 %vm4923_vm3, %v5230_v20  ;;  %v5197_v44 = vmul.f32 %v22011_v8, %v18365_v48  ;;  %v22012_v21 = vld [vmem:[#allocation29_spill] sm:$0xff]  ;;  %v3503_v6 = vadd.f32 %v22015_v37, %v18253_v38  ;;  %v22016_v26 = vld [vmem:[#allocation104_spill] sm:$0xff]  ;;  %v4310_v56 = vadd.f32 %v14681_v18, %v3922_v36  ;;  %v18399_v18 = vpop.permute.xlu1 %5152 }
 0x267   : > { %v5198_v60 = vmul.f32 %v22012_v21, %v18367_v24  ;;  %4969 = vst.msk [vmem:[#allocation3 + $0x49] sm:$0xff] %vm4923_vm3, %v4832_v35  ;;  %v4831_v28 = vmax.f32 %v4799_v39, 0.0  ;;  %v4802_v58 = vadd.f32 %v18281_v19, %v4764_v31  ;;  %v4763_v10 = vmul.f32 %v18265_v33, %v4725_v4  ;;  %v4198_v63 = vpop.f32.mrf.mxu1  ;;  %v22014_v57 = vld [vmem:[#allocation101_spill] sm:$0xff] }
 0x268   : > { %v4728_v52 = vadd.f32 %v14728_v11, %v4308_v34  ;;  %v3504_v5 = vadd.f32 %v22014_v57, %v22013_v23  ;;  %v3921_v30 = vadd.f32 %v22016_v26, %v3501_v53  ;;  %14814 = vmatprep.mubr.msk.f32.mxu0 %vm4923_vm3, %v5197_v44  ;;  %v4608_v54 = vpop.f32.mrf.mxu0  ;;  %v5231_v35 = vld [vmem:[#allocation3 + $0x21] sm:$0xff]  ;;  %v5232_v53 = vld [vmem:[#allocation3 + $0x29] sm:$0xff]  ;;  %v22017_v36 = vld [vmem:[#allocation109_spill] sm:$0xff] }
 0x269   : > { %v18390_v39 = vld [vmem:[#allocation3 + $0x20] sm:$0xff]  ;;  %v18392_v31 = vld [vmem:[#allocation3 + $0x28] sm:$0xff]  ;;  %4968 = vst.msk [vmem:[#allocation3 + $0x41] sm:$0xff] %vm4923_vm3, %v4831_v28  ;;  %v4834_v34 = vmax.f32 %v4802_v58, 0.0  ;;  %v4801_v4 = vadd.f32 %v18281_v19, %v4763_v10  ;;  %v4727_v7 = vadd.f32 %v4608_v54, %v4307_v47  ;;  %14815 = vmatmul.mubr.msk.f32.gmra.mxu0 %vm4923_vm3, %v5198_v60  ;;  %14767 = vmatprep.mubr.msk.f32.mxu1 %vm4923_vm3, %v5231_v35  ;;  %v14684_v38 = vpop.f32.mrf.mxu1  ;;  %v22018_v28 = vld [vmem:[#allocation56_spill] sm:$0xff] }
 0x26a   : > { %v4766_v20 = vmul.f32 %v18265_v33, %v4728_v52  ;;  %v3924_v11 = vadd.f32 %v22017_v36, %v3504_v5  ;;  %v4309_v44 = vadd.f32 %v4198_v63, %v3921_v30  ;;  %v14731_v23 = vpop.f32.mrf.mxu0  ;;  %14768 = vmatmul.mubr.msk.f32.gmra.mxu1 %vm4923_vm3, %v5232_v53  ;;  %v5199_v58 = vmul.f32 %v22018_v28, %v18390_v39  ;;  %v22019_v10 = vld [vmem:[#allocation52_spill] sm:$0xff]  ;;  %v18407_v52 = vpop.permute.xlu0 %5147  ;;  %v22021_v26 = vld [vmem:[#allocation34_spill] sm:$0xff] }
 0x26b   : > { %v5200_v47 = vmul.f32 %v22019_v10, %v18392_v31  ;;  %22020 = vst [vmem:[#allocation102_spill] sm:$0xff] %v18407_v52  ;;  %4971 = vst.msk [vmem:[#allocation3 + $0x59] sm:$0xff] %vm4923_vm3, %v4834_v34  ;;  %v4833_v60 = vmax.f32 %v4801_v4, 0.0  ;;  %v4765_v37 = vmul.f32 %v18265_v33, %v4727_v7  ;;  %v4730_v5 = vadd.f32 %v14731_v23, %v4310_v56  ;;  %v4208_v63 = vpop.f32.mrf.mxu1  ;;  %v22022_v30 = vld [vmem:[#allocation106_spill] sm:$0xff]  ;;  %v22024_v36 = vld [vmem:[#allocation112_spill] sm:$0xff] }
 0x26c   : > { %v4804_v57 = vadd.f32 %v18281_v19, %v4766_v20  ;;  %v3506_v54 = vadd.f32 %v22022_v30, %v22021_v26  ;;  %v22023_v35 = vld [vmem:[#allocation110_spill] sm:$0xff]  ;;  %v3923_v13 = vadd.f32 %v22024_v36, %v3503_v6  ;;  %v4312_v9 = vadd.f32 %v14684_v38, %v3924_v11  ;;  %14817 = vmatprep.mubr.msk.f32.mxu0 %vm4923_vm3, %v5199_v58  ;;  %v4618_v15 = vpop.f32.mrf.mxu0  ;;  %v5233_v34 = vld [vmem:[#allocation3 + $0x31] sm:$0xff] }
 0x26d   : > { %v3505_v53 = vadd.f32 %v22023_v35, %v18256_v14  ;;  %v18418_v4 = vld [vmem:[#allocation3 + $0x30] sm:$0xff]  ;;  %v18420_v20 = vld [vmem:[#allocation3 + $0x38] sm:$0xff]  ;;  %4970 = vst.msk [vmem:[#allocation3 + $0x51] sm:$0xff] %vm4923_vm3, %v4833_v60  ;;  %v4803_v7 = vadd.f32 %v18281_v19, %v4765_v37  ;;  %v4768_v23 = vmul.f32 %v18265_v33, %v4730_v5  ;;  %v4729_v26 = vadd.f32 %v4618_v15, %v4309_v44  ;;  %v14687_v14 = vpop.f32.mrf.mxu1  ;;  %v22025_v38 = vld [vmem:[#allocation114_spill] sm:$0xff] }
 0x26e   : > { %v4836_v56 = vmax.f32 %v4804_v57, 0.0  ;;  %14818 = vmatmul.mubr.msk.f32.gmra.mxu0 %vm4923_vm3, %v5200_v47  ;;  %14770 = vmatprep.mubr.msk.f32.mxu1 %vm4923_vm3, %v5233_v34  ;;  %v5234_v6 = vld [vmem:[#allocation3 + $0x39] sm:$0xff]  ;;  %v3926_v11 = vadd.f32 %v22025_v38, %v3506_v54  ;;  %v4311_v58 = vadd.f32 %v4208_v63, %v3923_v13  ;;  %v14734_v30 = vpop.f32.mrf.mxu0  ;;  %v22027_v37 = vld [vmem:[#allocation75_spill] sm:$0xff]  ;;  %v18436_v54 = vpop.permute.xlu1 %6050 }
 0x26f   : > { %14771 = vmatmul.mubr.msk.f32.gmra.mxu1 %vm4923_vm3, %v5234_v6  ;;  %v22026_v60 = vld [vmem:[#allocation74_spill] sm:$0xff]  ;;  %v5202_v35 = vmul.f32 %v22027_v37, %v18420_v20  ;;  %v4835_v15 = vmax.f32 %v4803_v7, 0.0  ;;  %v4806_v44 = vadd.f32 %v18281_v19, %v4768_v23  ;;  %v4767_v47 = vmul.f32 %v18265_v33, %v4729_v26  ;;  %v4218_v36 = vpop.f32.mrf.mxu1  ;;  %22028 = vst [vmem:[#allocation108_spill] sm:$0xff] %v18436_v54  ;;  %v22030_v63 = vld [vmem:[#allocation113_spill] sm:$0xff]  ;;  %v22031_v6 = vld [vmem:[#allocation111_spill] sm:$0xff]  ;;  %v18450_v26 = vpop.permute.xlu0 %6045 }
 0x270   : > { %v5201_v57 = vmul.f32 %v22026_v60, %v18418_v4  ;;  %4973 = vst.msk [vmem:[#allocation3 + $0x69] sm:$0xff] %vm4923_vm3, %v4836_v56  ;;  %v4732_v5 = vadd.f32 %v14734_v30, %v4312_v9  ;;  %v22029_v13 = vld [vmem:[#allocation50_spill] sm:$0xff]  ;;  %v3507_v38 = vadd.f32 %v22031_v6, %v18260_v29  ;;  %v3925_v27 = vadd.f32 %v22032_v41, %v3505_v53  ;;  %v4628_v56 = vpop.f32.mrf.mxu0  ;;  %v18448_v9 = vld [vmem:[#allocation3 + $0x48] sm:$0xff] }
 0x271   : > { %v3508_v34 = vadd.f32 %v22030_v63, %v22029_v13  ;;  %v4314_v51 = vadd.f32 %v14687_v14, %v3926_v11  ;;  %v18444_v7 = vld [vmem:[#allocation3 + $0x41] sm:$0xff]  ;;  %22034 = vst [vmem:[#allocation59_spill] sm:$0xff] %v18448_v9  ;;  %22035 = vst [vmem:[#allocation10_spill] sm:$0xff] %v18450_v26  ;;  %v4838_v30 = vmax.f32 %v4806_v44, 0.0  ;;  %v4805_v13 = vadd.f32 %v18281_v19, %v4767_v47  ;;  %v14690_v53 = vpop.f32.mrf.mxu1  ;;  %v18458_v14 = vld [vmem:[#allocation3 + $0x49] sm:$0xff] }
 0x272   : > { %14820 = vmatprep.mubr.msk.f32.mxu0 %vm4923_vm3, %v5201_v57  ;;  %22033 = vst [vmem:[#allocation58_spill] sm:$0xff] %v18444_v7  ;;  %v18446_v23 = vld [vmem:[#allocation3 + $0x40] sm:$0xff]  ;;  %4972 = vst.msk [vmem:[#allocation3 + $0x61] sm:$0xff] %vm4923_vm3, %v4835_v15  ;;  %v4770_v29 = vmul.f32 %v18265_v33, %v4732_v5  ;;  %v4731_v41 = vadd.f32 %v4628_v56, %v4311_v58  ;;  %14773 = vmatprep.mubr.msk.f32.mxu1 %vm4923_vm3, %v18444_v7  ;;  %v22037_v11 = vld [vmem:[#allocation57_spill] sm:$0xff]  ;;  %v14737_v6 = vpop.f32.mrf.mxu0 }
 0x273   : > { %14821 = vmatmul.mubr.msk.f32.gmra.mxu0 %vm4923_vm3, %v5202_v35  ;;  %22036 = vst [vmem:[#allocation8_spill] sm:$0xff] %v18458_v14  ;;  %v3928_v57 = vadd.f32 %v22037_v11, %v3508_v34  ;;  %v4313_v63 = vadd.f32 %v4218_v36, %v3925_v27  ;;  %14774 = vmatmul.mubr.msk.f32.gmra.mxu1 %vm4923_vm3, %v18458_v14  ;;  %v22038_v15 = vld [vmem:[#allocation89_spill] sm:$0xff]  ;;  %4975 = vst.msk [vmem:[#allocation3 + $0x79] sm:$0xff] %vm4923_vm3, %v4838_v30  ;;  %v4837_v35 = vmax.f32 %v4805_v13, 0.0  ;;  %v4228_v34 = vpop.f32.mrf.mxu1  ;;  %v22040_v27 = vld [vmem:[#allocation38_spill] sm:$0xff] }
 0x274   : > { %v5203_v44 = vmul.f32 %v22038_v15, %v18446_v23  ;;  %v22039_v58 = vld [vmem:[#allocation9_spill] sm:$0xff]  ;;  %v4808_v5 = vadd.f32 %v18281_v19, %v4770_v29  ;;  %v4769_v56 = vmul.f32 %v18265_v33, %v4731_v41  ;;  %v4734_v7 = vadd.f32 %v14737_v6, %v4314_v51  ;;  %v22041_v36 = vld [vmem:[#allocation67_spill] sm:$0xff]  ;;  %v22042_v14 = vld [vmem:[#allocation70_spill] sm:$0xff] }
 0x275   : > { %v5204_v47 = vmul.f32 %v22039_v58, %v18448_v9  ;;  %v3510_v11 = vadd.f32 %v22041_v36, %v22040_v27  ;;  %v3509_v54 = vadd.f32 %v22042_v14, %v18273_v1  ;;  %v22043_v26 = vld [vmem:[#allocation116_spill] sm:$0xff]  ;;  %v4316_v37 = vadd.f32 %v14690_v53, %v3928_v57  ;;  %v4638_v58 = vpop.f32.mrf.mxu0  ;;  %v18480_v29 = vld [vmem:[#allocation3 + $0x58] sm:$0xff]  ;;  %4974 = vst.msk [vmem:[#allocation3 + $0x71] sm:$0xff] %vm4923_vm3, %v4837_v35  ;;  %v18490_v53 = vpop.permute.xlu1 %5162  ;;  %v22048_v14 = vld [vmem:[#allocation115_spill] sm:$0xff] }
 0x276   : > { %v3927_v15 = vadd.f32 %v22043_v26, %v3507_v38  ;;  %14823 = vmatprep.mubr.msk.f32.mxu0 %vm4923_vm3, %v5203_v44  ;;  %v18476_v30 = vld [vmem:[#allocation3 + $0x51] sm:$0xff]  ;;  %22046 = vst [vmem:[#allocation84_spill] sm:$0xff] %v18480_v29  ;;  %v4840_v51 = vmax.f32 %v4808_v5, 0.0  ;;  %v4807_v41 = vadd.f32 %v18281_v19, %v4769_v56  ;;  %v4772_v6 = vmul.f32 %v18265_v33, %v4734_v7  ;;  %v14693_v38 = vpop.f32.mrf.mxu1  ;;  %v18488_v26 = vld [vmem:[#allocation3 + $0x59] sm:$0xff]  ;;  %v22049_v7 = vld [vmem:[#allocation15_spill] sm:$0xff]  ;;  %v18499_v5 = vpop.permute.xlu0 %5157 }
 0x277   : > { %22044 = vst [vmem:[#allocation21_spill] sm:$0xff] %v18476_v30  ;;  %v18478_v13 = vld [vmem:[#allocation3 + $0x50] sm:$0xff]  ;;  %v4733_v1 = vadd.f32 %v4638_v58, %v4313_v63  ;;  %14824 = vmatmul.mubr.msk.f32.gmra.mxu0 %vm4923_vm3, %v5204_v47  ;;  %14776 = vmatprep.mubr.msk.f32.mxu1 %vm4923_vm3, %v18476_v30  ;;  %22047 = vst [vmem:[#allocation47_spill] sm:$0xff] %v18488_v26  ;;  %v3930_v57 = vadd.f32 %v22048_v14, %v3510_v11  ;;  %v14740_v35 = vpop.f32.mrf.mxu0  ;;  %v22050_v58 = vld [vmem:[#allocation95_spill] sm:$0xff] }
 0x278   : > { %22045 = vst [vmem:[#allocation83_spill] sm:$0xff] %v18478_v13  ;;  %v4315_v44 = vadd.f32 %v4228_v34, %v3927_v15  ;;  %14777 = vmatmul.mubr.msk.f32.gmra.mxu1 %vm4923_vm3, %v18488_v26  ;;  %v5205_v63 = vmul.f32 %v22049_v7, %v18478_v13  ;;  %v5206_v47 = vmul.f32 %v22050_v58, %v18480_v29  ;;  %4977 = vst.msk [vmem:[#allocation3 + $0x89] sm:$0xff] %vm4923_vm3, %v4840_v51  ;;  %v4238_v34 = vpop.f32.mrf.mxu1  ;;  %v22051_v11 = vld [vmem:[#allocation44_spill] sm:$0xff]  ;;  %v22052_v14 = vld [vmem:[#allocation77_spill] sm:$0xff] }
 0x279   : > { %v4839_v56 = vmax.f32 %v4807_v41, 0.0  ;;  %v4810_v27 = vadd.f32 %v18281_v19, %v4772_v6  ;;  %v4771_v36 = vmul.f32 %v18265_v33, %v4733_v1  ;;  %v4736_v15 = vadd.f32 %v14740_v35, %v4316_v37  ;;  %v22053_v30 = vld [vmem:[#allocation119_spill] sm:$0xff]  ;;  %v22054_v13 = vld [vmem:[#allocation128_spill] sm:$0xff]  ;;  %v4648_v29 = vpop.f32.mrf.mxu0  ;;  %v18512_v41 = vld [vmem:[#allocation3 + $0x60] sm:$0xff] }
 0x27a   : > { %v3512_v26 = vadd.f32 %v22052_v14, %v22051_v11  ;;  %v3511_v7 = vadd.f32 %v22053_v30, %v18286_v61  ;;  %v3929_v9 = vadd.f32 %v22054_v13, %v3509_v54  ;;  %v4318_v58 = vadd.f32 %v14693_v38, %v3930_v57  ;;  %14826 = vmatprep.mubr.msk.f32.mxu0 %vm4923_vm3, %v5205_v63  ;;  %v18510_v51 = vld [vmem:[#allocation3 + $0x61] sm:$0xff]  ;;  %v14696_v54 = vpop.f32.mrf.mxu1  ;;  %v18522_v30 = vld [vmem:[#allocation3 + $0x69] sm:$0xff]  ;;  %v22063_v14 = vld [vmem:[#allocation129_spill] sm:$0xff] }
 0x27b   : > { %22055 = vst [vmem:[#allocation37_spill] sm:$0xff] %v18510_v51  ;;  %22056 = vst [vmem:[#allocation33_spill] sm:$0xff] %v18512_v41  ;;  %v18514_v6 = vld [vmem:[#allocation3 + $0x68] sm:$0xff]  ;;  %v4842_v37 = vmax.f32 %v4810_v27, 0.0  ;;  %v4809_v1 = vadd.f32 %v18281_v19, %v4771_v36  ;;  %v4774_v35 = vmul.f32 %v18265_v33, %v4736_v15  ;;  %v4735_v61 = vadd.f32 %v4648_v29, %v4315_v44  ;;  %v22058_v13 = vld [vmem:[#allocation130_spill] sm:$0xff]  ;;  %v14743_v63 = vpop.f32.mrf.mxu0 }
 0x27c   : > { %4976 = vst.msk [vmem:[#allocation3 + $0x81] sm:$0xff] %vm4923_vm3, %v4839_v56  ;;  %14827 = vmatmul.mubr.msk.f32.gmra.mxu0 %vm4923_vm3, %v5206_v47  ;;  %14779 = vmatprep.mubr.msk.f32.mxu1 %vm4923_vm3, %v18510_v51  ;;  %22057 = vst [vmem:[#allocation39_spill] sm:$0xff] %v18522_v30  ;;  %v3932_v38 = vadd.f32 %v22058_v13, %v3512_v26  ;;  %v4317_v57 = vadd.f32 %v4238_v34, %v3929_v9  ;;  %v22059_v56 = vld [vmem:[#allocation105_spill] sm:$0xff]  ;;  %v22060_v29 = vld [vmem:[#allocation107_spill] sm:$0xff]  ;;  %v4248_v26 = vpop.f32.mrf.mxu1  ;;  %v18534_v9 = vpop.permute.xlu1 %6060 }
 0x27d   : > { %14780 = vmatmul.mubr.msk.f32.gmra.mxu1 %vm4923_vm3, %v18522_v30  ;;  %v5207_v27 = vmul.f32 %v22059_v56, %v18512_v41  ;;  %v5208_v44 = vmul.f32 %v22060_v29, %v18514_v6  ;;  %4979 = vst.msk [vmem:[#allocation3 + $0x99] sm:$0xff] %vm4923_vm3, %v4842_v37  ;;  %v4841_v47 = vmax.f32 %v4809_v1, 0.0  ;;  %v4812_v36 = vadd.f32 %v18281_v19, %v4774_v35  ;;  %v22062_v34 = vld [vmem:[#allocation63_spill] sm:$0xff]  ;;  %v22065_v56 = vld [vmem:[#allocation133_spill] sm:$0xff]  ;;  %v4658_v37 = vpop.f32.mrf.mxu0  ;;  %v18544_v35 = vld [vmem:[#allocation3 + $0x70] sm:$0xff] }
 0x27e   : > { %v4773_v15 = vmul.f32 %v18265_v33, %v4735_v61  ;;  %v4738_v11 = vadd.f32 %v14743_v63, %v4318_v58  ;;  %22061 = vst [vmem:[#allocation86_spill] sm:$0xff] %v18534_v9  ;;  %v3514_v13 = vadd.f32 %v22063_v14, %v22062_v34  ;;  %v22064_v30 = vld [vmem:[#allocation131_spill] sm:$0xff]  ;;  %v3931_v41 = vadd.f32 %v22065_v56, %v3511_v7  ;;  %v18542_v1 = vld [vmem:[#allocation3 + $0x71] sm:$0xff]  ;;  %v18548_v61 = vpop.permute.xlu0 %6055 }
 0x27f   : > { %v3513_v51 = vadd.f32 %v22064_v30, %v18296_v43  ;;  %v4320_v29 = vadd.f32 %v14696_v54, %v3932_v38  ;;  %14829 = vmatprep.mubr.msk.f32.mxu0 %vm4923_vm3, %v5207_v27  ;;  %22066 = vst [vmem:[#allocation12_spill] sm:$0xff] %v18542_v1  ;;  %v18546_v58 = vld [vmem:[#allocation3 + $0x78] sm:$0xff]  ;;  %22067 = vst [vmem:[#allocation42_spill] sm:$0xff] %v18548_v61  ;;  %v4844_v63 = vmax.f32 %v4812_v36, 0.0  ;;  %14782 = vmatprep.mubr.msk.f32.mxu1 %vm4923_vm3, %v18542_v1  ;;  %v14699_v54 = vpop.f32.mrf.mxu1  ;;  %v22069_v38 = vld [vmem:[#allocation136_spill] sm:$0xff]  ;;  %v14746_v14 = vpop.f32.mrf.mxu0 }
 0x280   : > { %4978 = vst.msk [vmem:[#allocation3 + $0x91] sm:$0xff] %vm4923_vm3, %v4841_v47  ;;  %v4811_v34 = vadd.f32 %v18281_v19, %v4773_v15  ;;  %v4776_v43 = vmul.f32 %v18265_v33, %v4738_v11  ;;  %v4737_v7 = vadd.f32 %v4658_v37, %v4317_v57  ;;  %14830 = vmatmul.mubr.msk.f32.gmra.mxu0 %vm4923_vm3, %v5208_v44  ;;  %v18556_v30 = vld [vmem:[#allocation3 + $0x79] sm:$0xff] }
 0x281   : > { %22068 = vst [vmem:[#allocation45_spill] sm:$0xff] %v18556_v30  ;;  %v3934_v56 = vadd.f32 %v22069_v38, %v3514_v13  ;;  %v4319_v27 = vadd.f32 %v4248_v26, %v3931_v41  ;;  %14783 = vmatmul.mubr.msk.f32.gmra.mxu1 %vm4923_vm3, %v18556_v30  ;;  %v22070_v47 = vld [vmem:[#allocation118_spill] sm:$0xff]  ;;  %v22071_v57 = vld [vmem:[#allocation117_spill] sm:$0xff]  ;;  %4981 = vst.msk [vmem:[#allocation3 + $0xa9] sm:$0xff] %vm4923_vm3, %v4844_v63  ;;  %v4740_v1 = vadd.f32 %v14746_v14, %v4320_v29  ;;  %v4258_v13 = vpop.f32.mrf.mxu1 }
 0x282   : > { %v5209_v36 = vmul.f32 %v22070_v47, %v18544_v35  ;;  %v5210_v15 = vmul.f32 %v22071_v57, %v18546_v58  ;;  %v4843_v44 = vmax.f32 %v4811_v34, 0.0  ;;  %v4814_v11 = vadd.f32 %v18281_v19, %v4776_v43  ;;  %v22072_v41 = vld [vmem:[#allocation66_spill] sm:$0xff]  ;;  %v22073_v26 = vld [vmem:[#allocation135_spill] sm:$0xff]  ;;  %v22074_v30 = vld [vmem:[#allocation137_spill] sm:$0xff]  ;;  %v4668_v57 = vpop.f32.mrf.mxu0 }
 0x283   : > { %v4775_v37 = vmul.f32 %v18265_v33, %v4737_v7  ;;  %v3516_v38 = vadd.f32 %v22073_v26, %v22072_v41  ;;  %v3515_v9 = vadd.f32 %v22074_v30, %v18314_v0  ;;  %v3933_v61 = vadd.f32 %v18144_v59, %v3513_v51  ;;  %v18574_v63 = vld [vmem:[#allocation3 + $0x81] sm:$0xff]  ;;  %v14702_v59 = vpop.f32.mrf.mxu1  ;;  %v18586_v51 = vld [vmem:[#allocation3 + $0x89] sm:$0xff] }
 0x284   : > { %v4322_v47 = vadd.f32 %v14699_v54, %v3934_v56  ;;  %14832 = vmatprep.mubr.msk.f32.mxu0 %vm4923_vm3, %v5209_v36  ;;  %22075 = vst [vmem:[#allocation51_spill] sm:$0xff] %v18574_v63  ;;  %v18576_v34 = vld [vmem:[#allocation3 + $0x80] sm:$0xff]  ;;  %v18578_v43 = vld [vmem:[#allocation3 + $0x88] sm:$0xff]  ;;  %4980 = vst.msk [vmem:[#allocation3 + $0xa1] sm:$0xff] %vm4923_vm3, %v4843_v44  ;;  %v4846_v29 = vmax.f32 %v4814_v11, 0.0  ;;  %v4778_v14 = vmul.f32 %v18265_v33, %v4740_v1  ;;  %14785 = vmatprep.mubr.msk.f32.mxu1 %vm4923_vm3, %v18574_v63  ;;  %v18588_v54 = vpop.permute.xlu1 %5172  ;;  %v14749_v36 = vpop.f32.mrf.mxu0 }
 0x285   : > { %v4813_v7 = vadd.f32 %v18281_v19, %v4775_v37  ;;  %v4739_v0 = vadd.f32 %v4668_v57, %v4319_v27  ;;  %14833 = vmatmul.mubr.msk.f32.gmra.mxu0 %vm4923_vm3, %v5210_v15  ;;  %22076 = vst [vmem:[#allocation23_spill] sm:$0xff] %v18586_v51  ;;  %v3936_v30 = vadd.f32 %v18158_v62, %v3516_v38  ;;  %v22077_v1 = vld [vmem:[#allocation46_spill] sm:$0xff]  ;;  %v22078_v57 = vld [vmem:[#allocation123_spill] sm:$0xff]  ;;  %v18597_v44 = vpop.permute.xlu0 %5167  ;;  %v22080_v41 = vld [vmem:[#allocation80_spill] sm:$0xff] }
 0x286   : > { %v4321_v56 = vadd.f32 %v4258_v13, %v3933_v61  ;;  %14786 = vmatmul.mubr.msk.f32.gmra.mxu1 %vm4923_vm3, %v18586_v51  ;;  %v5211_v27 = vmul.f32 %v22077_v1, %v18576_v34  ;;  %v5212_v15 = vmul.f32 %v22078_v57, %v18578_v43  ;;  %22079 = vst [vmem:[#allocation88_spill] sm:$0xff] %v18597_v44  ;;  %4983 = vst.msk [vmem:[#allocation3 + $0xb9] sm:$0xff] %vm4923_vm3, %v4846_v29  ;;  %v4268_v13 = vpop.f32.mrf.mxu1  ;;  %v22081_v26 = vld [vmem:[#allocation40_spill] sm:$0xff]  ;;  %v4678_v1 = vpop.f32.mrf.mxu0 }
 0x287   : > { %v4845_v11 = vmax.f32 %v4813_v7, 0.0  ;;  %v4816_v37 = vadd.f32 %v18281_v19, %v4778_v14  ;;  %v4777_v62 = vmul.f32 %v18265_v33, %v4739_v0  ;;  %v4742_v61 = vadd.f32 %v14749_v36, %v4322_v47  ;;  %v18608_v29 = vld [vmem:[#allocation3 + $0x91] sm:$0xff] }
 0x288   : > { %v3518_v38 = vadd.f32 %v22081_v26, %v22080_v41  ;;  %v3517_v51 = vadd.f32 %v18168_v46, %v18335_v2  ;;  %v3935_v63 = vadd.f32 %v18177_v55, %v3515_v9  ;;  %v4324_v57 = vadd.f32 %v14702_v59, %v3936_v30  ;;  %14835 = vmatprep.mubr.msk.f32.mxu0 %vm4923_vm3, %v5211_v27  ;;  %v18610_v7 = vld [vmem:[#allocation3 + $0x90] sm:$0xff]  ;;  %v18612_v14 = vld [vmem:[#allocation3 + $0x98] sm:$0xff]  ;;  %v14705_v55 = vpop.f32.mrf.mxu1  ;;  %v14752_v30 = vpop.f32.mrf.mxu0 }
 0x289   : > { %22082 = vst [vmem:[#allocation11_spill] sm:$0xff] %v18608_v29  ;;  %4982 = vst.msk [vmem:[#allocation3 + $0xb1] sm:$0xff] %vm4923_vm3, %v4845_v11  ;;  %v4848_v47 = vmax.f32 %v4816_v37, 0.0  ;;  %v4815_v0 = vadd.f32 %v18281_v19, %v4777_v62  ;;  %v4780_v36 = vmul.f32 %v18265_v33, %v4742_v61  ;;  %v4741_v46 = vadd.f32 %v4678_v1, %v4321_v56  ;;  %v18620_v2 = vld [vmem:[#allocation3 + $0x99] sm:$0xff] }
 0x28a   : > { %14836 = vmatmul.mubr.msk.f32.gmra.mxu0 %vm4923_vm3, %v5212_v15  ;;  %14788 = vmatprep.mubr.msk.f32.mxu1 %vm4923_vm3, %v18608_v29  ;;  %22083 = vst [vmem:[#allocation54_spill] sm:$0xff] %v18620_v2  ;;  %v3938_v9 = vadd.f32 %v18192_v22, %v3518_v38  ;;  %v4323_v59 = vadd.f32 %v4268_v13, %v3935_v63  ;;  %v4278_v22 = vpop.f32.mrf.mxu1  ;;  %v18632_v63 = vpop.permute.xlu1 %6070  ;;  %v22085_v62 = vld [vmem:[#allocation81_spill] sm:$0xff] }
 0x28b   : > { %14789 = vmatmul.mubr.msk.f32.gmra.mxu1 %vm4923_vm3, %v18620_v2  ;;  %v5213_v27 = vmul.f32 %v18267_v49, %v18610_v7  ;;  %v5214_v56 = vmul.f32 %v18250_v17, %v18612_v14  ;;  %4985 = vst.msk [vmem:[#allocation3 + $0xc9] sm:$0xff] %vm4923_vm3, %v4848_v47  ;;  %v4847_v1 = vmax.f32 %v4815_v0, 0.0  ;;  %v4818_v15 = vadd.f32 %v18281_v19, %v4780_v36  ;;  %v4688_v38 = vpop.f32.mrf.mxu0  ;;  %v18640_v47 = vld [vmem:[#allocation3 + $0xa1] sm:$0xff]  ;;  %v18646_v36 = vpop.permute.xlu0 %6065 }
 0x28c   : > { %v4779_v11 = vmul.f32 %v18265_v33, %v4741_v46  ;;  %v4744_v37 = vadd.f32 %v14752_v30, %v4324_v57  ;;  %22084 = vst [vmem:[#allocation53_spill] sm:$0xff] %v18632_v63  ;;  %v3520_v61 = vadd.f32 %v18185_v50, %v22085_v62  ;;  %v3519_v13 = vadd.f32 %v18199_v32, %v18344_v42  ;;  %v18642_v0 = vld [vmem:[#allocation3 + $0xa0] sm:$0xff]  ;;  %v18644_v57 = vld [vmem:[#allocation3 + $0xa8] sm:$0xff]  ;;  %v14708_v42 = vpop.f32.mrf.mxu1 }
 0x28d   : > { %v3937_v41 = vadd.f32 %v18209_v3, %v3517_v51  ;;  %v4326_v26 = vadd.f32 %v14705_v55, %v3938_v9  ;;  %14838 = vmatprep.mubr.msk.f32.mxu0 %vm4923_vm3, %v5213_v27  ;;  %22086 = vst [vmem:[#allocation91_spill] sm:$0xff] %v18640_v47  ;;  %22087 = vst [vmem:[#allocation87_spill] sm:$0xff] %v18646_v36  ;;  %v4850_v50 = vmax.f32 %v4818_v15, 0.0  ;;  %14791 = vmatprep.mubr.msk.f32.mxu1 %vm4923_vm3, %v18640_v47  ;;  %v18654_v51 = vld [vmem:[#allocation3 + $0xa9] sm:$0xff]  ;;  %v14755_v30 = vpop.f32.mrf.mxu0  ;;  %v18798_v29 = vld [vmem:[#allocation3 + $0x1a] sm:$0xff] }
 0x28e   : > { %4984 = vst.msk [vmem:[#allocation3 + $0xc1] sm:$0xff] %vm4923_vm3, %v4847_v1  ;;  %v4817_v46 = vadd.f32 %v18281_v19, %v4779_v11  ;;  %v4782_v32 = vmul.f32 %v18265_v33, %v4744_v37  ;;  %v4743_v3 = vadd.f32 %v4688_v38, %v4323_v59  ;;  %14839 = vmatmul.mubr.msk.f32.gmra.mxu0 %vm4923_vm3, %v5214_v56  ;;  %22088 = vst [vmem:[#allocation65_spill] sm:$0xff] %v18654_v51  ;;  %v22106_v47 = vld [vmem:[#allocation43_spill] sm:$0xff] }
 0x28f   : > { %v3940_v55 = vadd.f32 %v18226_v25, %v3520_v61  ;;  %v4325_v9 = vadd.f32 %v4278_v22, %v3937_v41  ;;  %14792 = vmatmul.mubr.msk.f32.gmra.mxu1 %vm4923_vm3, %v18654_v51  ;;  %v5215_v27 = vmul.f32 %v18329_v12, %v18642_v0  ;;  %v5216_v59 = vmul.f32 %v18322_v45, %v18644_v57  ;;  %v4288_v25 = vpop.f32.mrf.mxu1  ;;  %v4698_v62 = vpop.f32.mrf.mxu0 }
 0x290   : > { %4987 = vst.msk [vmem:[#allocation3 + $0xd9] sm:$0xff] %vm4923_vm3, %v4850_v50  ;;  %v4849_v56 = vmax.f32 %v4817_v46, 0.0  ;;  %v4820_v1 = vadd.f32 %v18281_v19, %v4782_v32  ;;  %v4781_v15 = vmul.f32 %v18265_v33, %v4743_v3  ;;  %v4746_v11 = vadd.f32 %v14755_v30, %v4326_v26  ;;  %v18668_v61 = vld [vmem:[#allocation3 + $0xb1] sm:$0xff]  ;;  %v18688_v30 = vpop.permute.xlu1 %5182 }
 0x291   : > { %v3939_v37 = vadd.f32 %v18242_v40, %v3519_v13  ;;  %v4328_v22 = vadd.f32 %v14708_v42, %v3940_v55  ;;  %14841 = vmatprep.mubr.msk.f32.mxu0 %vm4923_vm3, %v5215_v27  ;;  %22089 = vst [vmem:[#allocation26_spill] sm:$0xff] %v18668_v61  ;;  %v18670_v41 = vld [vmem:[#allocation3 + $0xb0] sm:$0xff]  ;;  %v18672_v38 = vld [vmem:[#allocation3 + $0xb8] sm:$0xff]  ;;  %v4745_v32 = vadd.f32 %v4698_v62, %v4325_v9  ;;  %v14758_v3 = vpop.f32.mrf.mxu0  ;;  %v18690_v9 = vpop.permute.xlu0 %5177 }
 0x292   : > { %4986 = vst.msk [vmem:[#allocation3 + $0xd1] sm:$0xff] %vm4923_vm3, %v4849_v56  ;;  %v4852_v50 = vmax.f32 %v4820_v1, 0.0  ;;  %v4819_v46 = vadd.f32 %v18281_v19, %v4781_v15  ;;  %v4784_v26 = vmul.f32 %v18265_v33, %v4746_v11  ;;  %14842 = vmatmul.mubr.msk.f32.gmra.mxu0 %vm4923_vm3, %v5216_v59  ;;  %14794 = vmatprep.mubr.msk.f32.mxu1 %vm4923_vm3, %v18668_v61  ;;  %v18680_v40 = vld [vmem:[#allocation3 + $0xb9] sm:$0xff]  ;;  %22091 = vst [vmem:[#allocation92_spill] sm:$0xff] %v18690_v9 }
 0x293   : > { %22090 = vst [vmem:[#allocation120_spill] sm:$0xff] %v18680_v40  ;;  %v4327_v13 = vadd.f32 %v4288_v25, %v3939_v37  ;;  %14795 = vmatmul.mubr.msk.f32.gmra.mxu1 %vm4923_vm3, %v18680_v40  ;;  %v5217_v42 = vmul.f32 %v18407_v52, %v18670_v41  ;;  %v5218_v55 = vmul.f32 %v18399_v18, %v18672_v38  ;;  %v4708_v15 = vpop.f32.mrf.mxu0  ;;  %v14763_v25 = vpop.f32.mrf.mxu1  ;;  %v18788_v61 = vld [vmem:[#allocation3 + $0x12] sm:$0xff] }
 0x294   : > { %4989 = vst.msk [vmem:[#allocation3 + $0xe9] sm:$0xff] %vm4923_vm3, %v4852_v50  ;;  %v4851_v27 = vmax.f32 %v4819_v46, 0.0  ;;  %v4822_v59 = vadd.f32 %v18281_v19, %v4784_v26  ;;  %v4783_v56 = vmul.f32 %v18265_v33, %v4745_v32  ;;  %v4748_v1 = vadd.f32 %v14758_v3, %v4328_v22  ;;  %v18708_v22 = vld [vmem:[#allocation3 + $0xc9] sm:$0xff] }
 0x295   : > { %14844 = vmatprep.mubr.msk.f32.mxu0 %vm4923_vm3, %v5217_v42  ;;  %v18696_v11 = vld [vmem:[#allocation3 + $0xc1] sm:$0xff]  ;;  %v4747_v26 = vadd.f32 %v4708_v15, %v4327_v13  ;;  %22093 = vst [vmem:[#allocation14_spill] sm:$0xff] %v18708_v22  ;;  %v14813_v32 = vpop.f32.mrf.mxu0  ;;  %v6095_v2 = vmul.f32 %v22106_v47, %v18788_v61  ;;  %v18823_v47 = vld [vmem:[#allocation3 + $0x2a] sm:$0xff] }
 0x296   : > { %22092 = vst [vmem:[#allocation64_spill] sm:$0xff] %v18696_v11  ;;  %v18698_v37 = vld [vmem:[#allocation3 + $0xc0] sm:$0xff]  ;;  %v18700_v62 = vld [vmem:[#allocation3 + $0xc8] sm:$0xff]  ;;  %4988 = vst.msk [vmem:[#allocation3 + $0xe1] sm:$0xff] %vm4923_vm3, %v4851_v27  ;;  %v4854_v40 = vmax.f32 %v4822_v59, 0.0  ;;  %v4821_v50 = vadd.f32 %v18281_v19, %v4783_v56  ;;  %v4786_v46 = vmul.f32 %v18265_v33, %v4748_v1  ;;  %14845 = vmatmul.mubr.msk.f32.gmra.mxu0 %vm4923_vm3, %v5218_v55  ;;  %14797 = vmatprep.mubr.msk.f32.mxu1 %vm4923_vm3, %v18696_v11 }
 0x297   : > { %14798 = vmatmul.mubr.msk.f32.gmra.mxu1 %vm4923_vm3, %v18708_v22  ;;  %v5219_v3 = vmul.f32 %v18499_v5, %v18698_v37  ;;  %v5220_v42 = vmul.f32 %v18490_v53, %v18700_v62  ;;  %v4785_v27 = vmul.f32 %v18265_v33, %v4747_v26  ;;  %v18719_v59 = vadd.f32 %v14813_v32, %v14763_v25  ;;  %v18733_v33 = vld [vmem:[#allocation3 + $0xd9] sm:$0xff]  ;;  %v5902_v11 = vld [vmem:[#allocation3 + $0xa] sm:$0xff] }
 0x298   : > { %4991 = vst.msk [vmem:[#allocation3 + $0xf9] sm:$0xff] %vm4923_vm3, %v4854_v40  ;;  %v4853_v13 = vmax.f32 %v4821_v50, 0.0  ;;  %v4824_v55 = vadd.f32 %v18281_v19, %v4786_v46  ;;  %22096 = vst [vmem:[#allocation28_spill] sm:$0xff] %v18733_v33  ;;  %v18737_v50 = vpop.permute.xlu1 %6080  ;;  %v18739_v46 = vpop.permute.xlu0 %6075 }
 0x299   : > { %22094 = vst [vmem:[#allocation13_spill] sm:$0xff] %v18719_v59  ;;  %14847 = vmatprep.mubr.msk.f32.mxu0 %vm4923_vm3, %v5219_v3  ;;  %v18722_v56 = vld [vmem:[#allocation3 + $0xd1] sm:$0xff]  ;;  %v4823_v40 = vadd.f32 %v18281_v19, %v4785_v27  ;;  %22097 = vst [vmem:[#allocation94_spill] sm:$0xff] %v18737_v50  ;;  %v5901_v27 = vld [vmem:[#allocation3 + $0x2] sm:$0xff] }
 0x29a   : > { %22095 = vst [vmem:[#allocation72_spill] sm:$0xff] %v18722_v56  ;;  %v18724_v1 = vld [vmem:[#allocation3 + $0xd0] sm:$0xff]  ;;  %v18726_v15 = vld [vmem:[#allocation3 + $0xd8] sm:$0xff]  ;;  %4990 = vst.msk [vmem:[#allocation3 + $0xf1] sm:$0xff] %vm4923_vm3, %v4853_v13  ;;  %v4856_v22 = vmax.f32 %v4824_v55, 0.0  ;;  %14848 = vmatmul.mubr.msk.f32.gmra.mxu0 %vm4923_vm3, %v5220_v42  ;;  %14800 = vmatprep.mubr.msk.f32.mxu1 %vm4923_vm3, %v18722_v56 }
 0x29b   : > { %v5221_v25 = vmul.f32 %v18597_v44, %v18724_v1  ;;  %22098 = vst [vmem:[#allocation16_spill] sm:$0xff] %v18739_v46  ;;  %14801 = vmatmul.mubr.msk.f32.gmra.mxu1 %vm4923_vm3, %v18733_v33  ;;  %v5222_v19 = vmul.f32 %v18588_v54, %v18726_v15  ;;  %v4855_v26 = vmax.f32 %v4823_v40, 0.0  ;;  %v18757_v13 = vld [vmem:[#allocation3 + $0xe9] sm:$0xff] }
 0x29c   : > { %4993 = vst.msk [vmem:[#allocation3 + $0x109] sm:$0xff] %vm4923_vm3, %v4856_v22  ;;  %22100 = vst [vmem:[#allocation122_spill] sm:$0xff] %v18757_v13  ;;  %v18766_v40 = vpop.permute.xlu1 %5192 }
 0x29d   : > { %14850 = vmatprep.mubr.msk.f32.mxu0 %vm4923_vm3, %v5221_v25  ;;  %v18747_v32 = vld [vmem:[#allocation3 + $0xe1] sm:$0xff]  ;;  %4992 = vst.msk [vmem:[#allocation3 + $0x101] sm:$0xff] %vm4923_vm3, %v4855_v26  ;;  %v18768_v25 = vpop.permute.xlu0 %5187 }
 0x29e   : > { %22099 = vst [vmem:[#allocation82_spill] sm:$0xff] %v18747_v32  ;;  %v18749_v3 = vld [vmem:[#allocation3 + $0xe0] sm:$0xff]  ;;  %v18751_v42 = vld [vmem:[#allocation3 + $0xe8] sm:$0xff]  ;;  %14851 = vmatmul.mubr.msk.f32.gmra.mxu0 %vm4923_vm3, %v5222_v19  ;;  %14803 = vmatprep.mubr.msk.f32.mxu1 %vm4923_vm3, %v18747_v32 }
 0x29f   : > { %v5223_v22 = vmul.f32 %v18690_v9, %v18749_v3  ;;  %v5224_v55 = vmul.f32 %v18688_v30, %v18751_v42  ;;  %14804 = vmatmul.mubr.msk.f32.gmra.mxu1 %vm4923_vm3, %v18757_v13  ;;  %v22102_v32 = vld [vmem:[#allocation30_spill] sm:$0xff] }
 0x2a0   : > { %v6093_v33 = vmul.f32 %v22102_v32, %v5901_v27  ;;  %v18780_v13 = vld [vmem:[#allocation3 + $0xf9] sm:$0xff] }
 0x2a1   : > { %14853 = vmatprep.mubr.msk.f32.mxu0 %vm4923_vm3, %v5223_v22  ;;  %v18770_v19 = vld [vmem:[#allocation3 + $0xf1] sm:$0xff]  ;;  %22103 = vst [vmem:[#allocation76_spill] sm:$0xff] %v18780_v13 }
 0x2a2   : > { %22101 = vst [vmem:[#allocation97_spill] sm:$0xff] %v18770_v19  ;;  %v18772_v26 = vld [vmem:[#allocation3 + $0xf0] sm:$0xff]  ;;  %v18774_v59 = vld [vmem:[#allocation3 + $0xf8] sm:$0xff]  ;;  %14854 = vmatmul.mubr.msk.f32.gmra.mxu0 %vm4923_vm3, %v5224_v55  ;;  %14806 = vmatprep.mubr.msk.f32.mxu1 %vm4923_vm3, %v18770_v19  ;;  %v22105_v19 = vld [vmem:[#allocation27_spill] sm:$0xff] }
 0x2a3   : > { %v5225_v22 = vmul.f32 %v18768_v25, %v18772_v26  ;;  %v5226_v56 = vmul.f32 %v18766_v40, %v18774_v59  ;;  %14807 = vmatmul.mubr.msk.f32.gmra.mxu1 %vm4923_vm3, %v18780_v13  ;;  %v22104_v55 = vld [vmem:[#allocation24_spill] sm:$0xff]  ;;  %v6094_v51 = vmul.f32 %v22105_v19, %v5902_v11  ;;  %v18803_v13 = vld [vmem:[%s21701_s0 + $0x30] sm:$0xff] }
 0x2a4   : > { %14861 = vmatprep.mubr.msk.f32.mxu1 %vm4923_vm3, %v6093_v33  ;;  %v6510_v27 = vmul.f32 %v22104_v55, %v18365_v48  ;;  %v18807_v33 = vld [vmem:[#allocation3 + $0x22] sm:$0xff]  ;;  %v22108_v55 = vld [vmem:[#allocation36_spill] sm:$0xff] }
 0x2a5   : > { %14856 = vmatprep.mubr.msk.f32.mxu0 %vm4923_vm3, %v5225_v22  ;;  %v22107_v48 = vld [vmem:[#allocation35_spill] sm:$0xff]  ;;  %v6512_v22 = vmul.f32 %v22011_v8, %v18390_v39  ;;  %v18832_v39 = vld [vmem:[#allocation3 + $0x32] sm:$0xff]  ;;  %v22110_v8 = vld [vmem:[#allocation62_spill] sm:$0xff] }
 0x2a6   : > { %14857 = vmatmul.mubr.msk.f32.gmra.mxu0 %vm4923_vm3, %v5226_v56  ;;  %v6511_v11 = vmul.f32 %v22107_v48, %v18367_v24  ;;  %v15582_v56 = vld [vmem:[%s21701_s0 + $0x20] sm:$0xff]  ;;  %v18828_v24 = vld [vmem:[%s21701_s0 + $0x38] sm:$0xff]  ;;  %v6098_v48 = vmul.f32 %v22110_v8, %v18823_v47 }
 0x2a7   : > { %14911 = vmatprep.mubr.msk.f32.mxu0 %vm4923_vm3, %v6510_v27  ;;  %14862 = vmatmul.mubr.msk.f32.vlgmr.msra.gmra.mxu1 %vm4923_vm3, %v6094_v51  ;;  %v6096_v27 = vmul.f32 %v22108_v55, %v18798_v29 }
 0x2a8   : > { %14864 = vmatprep.mubr.msk.f32.mxu1 %vm4923_vm3, %v6095_v2  ;;  %14960 = vmatpush3.msra.mxu1 %v15582_v56  ;;  %v22109_v2 = vld [vmem:[#allocation73_spill] sm:$0xff]  ;;  %v6514_v56 = vmul.f32 %v22018_v28, %v18418_v4  ;;  %v6516_v4 = vmul.f32 %v22026_v60, %v18446_v23  ;;  %v22114_v28 = vld [vmem:[#allocation90_spill] sm:$0xff]  ;;  %v22118_v23 = vld [vmem:[#allocation75_spill] sm:$0xff] }
 0x2a9   : > { %15059 = vmatprep.subr.mxu1 %v18803_v13  ;;  %v6097_v51 = vmul.f32 %v22109_v2, %v18807_v33  ;;  %v18846_v2 = vld [vmem:[#allocation3 + $0x3a] sm:$0xff]  ;;  %v22119_v60 = vld [vmem:[#allocation83_spill] sm:$0xff] }
 0x2aa   : > { %14912 = vmatmul.mubr.msk.f32.vlgmr.msra.gmra.mxu0 %vm4923_vm3, %v6511_v11  ;;  %v6513_v11 = vmul.f32 %v22012_v21, %v18392_v31  ;;  %v6515_v31 = vmul.f32 %v22019_v10, %v18420_v20  ;;  %v18862_v21 = vld [vmem:[#allocation3 + $0x4a] sm:$0xff]  ;;  %v22120_v10 = vld [vmem:[#allocation89_spill] sm:$0xff] }
 0x2ab   : > { %14914 = vmatprep.mubr.msk.f32.mxu0 %vm4923_vm3, %v6512_v22  ;;  %14865 = vmatmul.mubr.msk.f32.gmra.mxu1 %vm4923_vm3, %v6096_v27  ;;  %v22111_v22 = vld [vmem:[#allocation85_spill] sm:$0xff]  ;;  %22115 = vst [vmem:[#allocation124_spill] sm:$0xff] %v18862_v21  ;;  %v22117_v20 = vld [vmem:[#allocation59_spill] sm:$0xff] }
 0x2ac   : > { %14867 = vmatprep.mubr.msk.f32.mxu1 %vm4923_vm3, %v6097_v51  ;;  %15010 = vmatpush3.msra.mxu0 %v18352_v16  ;;  %v6099_v27 = vmul.f32 %v22111_v22, %v18832_v39  ;;  %v18850_v16 = vld [vmem:[#allocation3 + $0x42] sm:$0xff]  ;;  %v22113_v51 = vld [vmem:[#allocation69_spill] sm:$0xff] }
 0x2ad   : > { %15109 = vmatprep.subr.mxu0 %v18828_v24  ;;  %22112 = vst [vmem:[#allocation41_spill] sm:$0xff] %v18850_v16 }
 0x2ae   : > { %14915 = vmatmul.mubr.msk.f32.gmra.mxu0 %vm4923_vm3, %v6513_v11  ;;  %v6100_v11 = vmul.f32 %v22113_v51, %v18846_v2  ;;  %v6518_v51 = vmul.f32 %v22120_v10, %v22119_v60  ;;  %v22124_v60 = vld [vmem:[#allocation9_spill] sm:$0xff] }
 0x2af   : > { %14917 = vmatprep.mubr.msk.f32.mxu0 %vm4923_vm3, %v6514_v56  ;;  %14868 = vmatmul.mubr.msk.f32.gmra.mxu1 %vm4923_vm3, %v6098_v48  ;;  %v6101_v56 = vmul.f32 %v22114_v28, %v18850_v16  ;;  %v18866_v48 = vld [vmem:[#allocation3 + $0x52] sm:$0xff]  ;;  %v18878_v16 = vld [vmem:[#allocation3 + $0x5a] sm:$0xff] }
 0x2b0   : > { %14870 = vmatprep.mubr.msk.f32.mxu1 %vm4923_vm3, %v6099_v27  ;;  %22116 = vst [vmem:[#allocation93_spill] sm:$0xff] %v18866_v48  ;;  %v6517_v27 = vmul.f32 %v22118_v23, %v22117_v20  ;;  %v22122_v28 = vld [vmem:[#allocation20_spill] sm:$0xff]  ;;  %v22125_v10 = vld [vmem:[#allocation33_spill] sm:$0xff]  ;;  %v22126_v23 = vld [vmem:[#allocation15_spill] sm:$0xff] }
 0x2b2   : > { %14918 = vmatmul.mubr.msk.f32.gmra.mxu0 %vm4923_vm3, %v6515_v31  ;;  %v22121_v31 = vld [vmem:[#allocation121_spill] sm:$0xff] }
 0x2b3   : > { %14920 = vmatprep.mubr.msk.f32.mxu0 %vm4923_vm3, %v6516_v4  ;;  %14871 = vmatmul.mubr.msk.f32.gmra.mxu1 %vm4923_vm3, %v6100_v11  ;;  %v6102_v22 = vmul.f32 %v22121_v31, %v18862_v21  ;;  %v6103_v4 = vmul.f32 %v22122_v28, %v18866_v48  ;;  %v18882_v11 = vld [vmem:[#allocation3 + $0x62] sm:$0xff]  ;;  %v6520_v31 = vmul.f32 %v22126_v23, %v22125_v10  ;;  %v22128_v28 = vld [vmem:[#allocation68_spill] sm:$0xff] }
 0x2b4   : > { %14873 = vmatprep.mubr.msk.f32.mxu1 %vm4923_vm3, %v6101_v56  ;;  %v22123_v56 = vld [vmem:[#allocation84_spill] sm:$0xff]  ;;  %v22129_v10 = vld [vmem:[#allocation95_spill] sm:$0xff] }
 0x2b5   : > { %v6519_v20 = vmul.f32 %v22124_v60, %v22123_v56  ;;  %v18894_v48 = vld [vmem:[#allocation3 + $0x6a] sm:$0xff]  ;;  %v22130_v56 = vld [vmem:[#allocation105_spill] sm:$0xff] }
 0x2b6   : > { %14921 = vmatmul.mubr.msk.f32.gmra.mxu0 %vm4923_vm3, %v6517_v27  ;;  %v22127_v27 = vld [vmem:[#allocation100_spill] sm:$0xff]  ;;  %v6522_v23 = vmul.f32 %v22130_v56, %v18544_v35 }
 0x2b7   : > { %14923 = vmatprep.mubr.msk.f32.mxu0 %vm4923_vm3, %v6518_v51  ;;  %14874 = vmatmul.mubr.msk.f32.gmra.mxu1 %vm4923_vm3, %v6102_v22  ;;  %v6104_v21 = vmul.f32 %v22127_v27, %v18878_v16  ;;  %v6105_v51 = vmul.f32 %v22128_v28, %v18882_v11  ;;  %v18898_v22 = vld [vmem:[#allocation3 + $0x72] sm:$0xff]  ;;  %v22132_v28 = vld [vmem:[#allocation134_spill] sm:$0xff] }
 0x2b8   : > { %14876 = vmatprep.mubr.msk.f32.mxu1 %vm4923_vm3, %v6103_v4  ;;  %v6521_v4 = vmul.f32 %v22129_v10, %v18514_v6  ;;  %v18910_v27 = vld [vmem:[#allocation3 + $0x7a] sm:$0xff]  ;;  %v22133_v6 = vld [vmem:[#allocation107_spill] sm:$0xff] }
 0x2b9   : > { %v6523_v35 = vmul.f32 %v22133_v6, %v18546_v58  ;;  %v22137_v58 = vld [vmem:[#allocation117_spill] sm:$0xff] }
 0x2ba   : > { %14924 = vmatmul.mubr.msk.f32.gmra.mxu0 %vm4923_vm3, %v6519_v20  ;;  %v22131_v20 = vld [vmem:[#allocation48_spill] sm:$0xff] }
 0x2bb   : > { %14926 = vmatprep.mubr.msk.f32.mxu0 %vm4923_vm3, %v6520_v31  ;;  %14877 = vmatmul.mubr.msk.f32.gmra.mxu1 %vm4923_vm3, %v6104_v21  ;;  %v6106_v60 = vmul.f32 %v22131_v20, %v18894_v48  ;;  %v6107_v31 = vmul.f32 %v22132_v28, %v18898_v22  ;;  %v18914_v21 = vld [vmem:[#allocation3 + $0x82] sm:$0xff]  ;;  %v22136_v28 = vld [vmem:[#allocation49_spill] sm:$0xff]  ;;  %v18926_v20 = vld [vmem:[#allocation3 + $0x8a] sm:$0xff] }
 0x2bc   : > { %14879 = vmatprep.mubr.msk.f32.mxu1 %vm4923_vm3, %v6105_v51  ;;  %v22134_v51 = vld [vmem:[#allocation118_spill] sm:$0xff] }
 0x2bd   : > { %v6524_v56 = vmul.f32 %v22134_v51, %v18576_v34  ;;  %v6525_v34 = vmul.f32 %v22137_v58, %v18578_v43  ;;  %v22141_v43 = vld [vmem:[#allocation123_spill] sm:$0xff]  ;;  %v22143_v58 = vld [vmem:[#allocation96_spill] sm:$0xff] }
 0x2be   : > { %14927 = vmatmul.mubr.msk.f32.gmra.mxu0 %vm4923_vm3, %v6521_v4  ;;  %v22135_v4 = vld [vmem:[#allocation132_spill] sm:$0xff] }
 0x2bf   : > { %14929 = vmatprep.mubr.msk.f32.mxu0 %vm4923_vm3, %v6522_v23  ;;  %14880 = vmatmul.mubr.msk.f32.gmra.mxu1 %vm4923_vm3, %v6106_v60  ;;  %v6108_v10 = vmul.f32 %v22135_v4, %v18910_v27  ;;  %v6109_v23 = vmul.f32 %v22136_v28, %v18914_v21  ;;  %v18930_v60 = vld [vmem:[#allocation3 + $0x92] sm:$0xff]  ;;  %v18942_v4 = vld [vmem:[#allocation3 + $0x9a] sm:$0xff] }
 0x2c0   : > { %14882 = vmatprep.mubr.msk.f32.mxu1 %vm4923_vm3, %v6107_v31  ;;  %v22138_v31 = vld [vmem:[#allocation46_spill] sm:$0xff]  ;;  %v22140_v28 = vld [vmem:[#allocation61_spill] sm:$0xff] }
 0x2c1   : > { %v6526_v51 = vmul.f32 %v22138_v31, %v18610_v7  ;;  %v6527_v7 = vmul.f32 %v22141_v43, %v18612_v14  ;;  %v6529_v14 = vmul.f32 %v18250_v17, %v18644_v57  ;;  %v18974_v43 = vld [vmem:[#allocation3 + $0xba] sm:$0xff]  ;;  %v6531_v57 = vmul.f32 %v18322_v45, %v18672_v38  ;;  %v18990_v17 = vld [vmem:[#allocation3 + $0xca] sm:$0xff] }
 0x2c2   : > { %14930 = vmatmul.mubr.msk.f32.gmra.mxu0 %vm4923_vm3, %v6523_v35  ;;  %v22139_v35 = vld [vmem:[#allocation126_spill] sm:$0xff]  ;;  %v6533_v38 = vmul.f32 %v18399_v18, %v18700_v62  ;;  %v6535_v62 = vmul.f32 %v18490_v53, %v18726_v15  ;;  %v6537_v15 = vmul.f32 %v18588_v54, %v18751_v42  ;;  %v19046_v42 = vpop.permute.xlu1 %6090 }
 0x2c3   : > { %14932 = vmatprep.mubr.msk.f32.mxu0 %vm4923_vm3, %v6524_v56  ;;  %14883 = vmatmul.mubr.msk.f32.gmra.mxu1 %vm4923_vm3, %v6108_v10  ;;  %v6110_v6 = vmul.f32 %v22139_v35, %v18926_v20  ;;  %v6111_v56 = vmul.f32 %v22140_v28, %v18930_v60  ;;  %v18946_v10 = vld [vmem:[#allocation3 + $0xa2] sm:$0xff]  ;;  %v18958_v28 = vld [vmem:[#allocation3 + $0xaa] sm:$0xff]  ;;  %22150 = vst [vmem:[#allocation125_spill] sm:$0xff] %v19046_v42 }
 0x2c4   : > { %14885 = vmatprep.mubr.msk.f32.mxu1 %vm4923_vm3, %v6109_v23  ;;  %v6528_v23 = vmul.f32 %v18267_v49, %v18642_v0  ;;  %v6530_v0 = vmul.f32 %v18329_v12, %v18670_v41  ;;  %v22145_v49 = vld [vmem:[#allocation10_spill] sm:$0xff]  ;;  %v6532_v41 = vmul.f32 %v18407_v52, %v18698_v37  ;;  %v6534_v37 = vmul.f32 %v18499_v5, %v18724_v1 }
 0x2c5   : > { %v22147_v12 = vld [vmem:[#allocation42_spill] sm:$0xff]  ;;  %v6536_v1 = vmul.f32 %v18597_v44, %v18749_v3  ;;  %v19031_v3 = vpop.permute.xlu0 %6085 }
 0x2c6   : > { %14933 = vmatmul.mubr.msk.f32.gmra.mxu0 %vm4923_vm3, %v6525_v34  ;;  %v22142_v34 = vld [vmem:[#allocation22_spill] sm:$0xff]  ;;  %22149 = vst [vmem:[#allocation78_spill] sm:$0xff] %v19031_v3 }
 0x2c7   : > { %14935 = vmatprep.mubr.msk.f32.mxu0 %vm4923_vm3, %v6526_v51  ;;  %14886 = vmatmul.mubr.msk.f32.gmra.mxu1 %vm4923_vm3, %v6110_v6  ;;  %v6112_v31 = vmul.f32 %v22142_v34, %v18942_v4  ;;  %v6113_v51 = vmul.f32 %v22143_v58, %v18946_v10  ;;  %v18962_v6 = vld [vmem:[#allocation3 + $0xb2] sm:$0xff]  ;;  %v19006_v52 = vld [vmem:[#allocation3 + $0xda] sm:$0xff] }
 0x2c8   : > { %14888 = vmatprep.mubr.msk.f32.mxu1 %vm4923_vm3, %v6111_v56  ;;  %v22144_v56 = vld [vmem:[#allocation79_spill] sm:$0xff]  ;;  %v19042_v44 = vld [vmem:[#allocation3 + $0xfa] sm:$0xff] }
 0x2ca   : > { %14936 = vmatmul.mubr.msk.f32.gmra.mxu0 %vm4923_vm3, %v6527_v7  ;;  %v6114_v7 = vmul.f32 %v22144_v56, %v18958_v28 }
 0x2cb   : > { %14938 = vmatprep.mubr.msk.f32.mxu0 %vm4923_vm3, %v6528_v23  ;;  %14889 = vmatmul.mubr.msk.f32.gmra.mxu1 %vm4923_vm3, %v6112_v31  ;;  %v6115_v23 = vmul.f32 %v22145_v49, %v18962_v6  ;;  %v18978_v31 = vld [vmem:[#allocation3 + $0xc2] sm:$0xff] }
 0x2cc   : > { %14891 = vmatprep.mubr.msk.f32.mxu1 %vm4923_vm3, %v6113_v51  ;;  %v22146_v51 = vld [vmem:[#allocation108_spill] sm:$0xff] }
 0x2ce   : > { %14939 = vmatmul.mubr.msk.f32.gmra.mxu0 %vm4923_vm3, %v6529_v14  ;;  %v6116_v14 = vmul.f32 %v22146_v51, %v18974_v43 }
 0x2cf   : > { %14941 = vmatprep.mubr.msk.f32.mxu0 %vm4923_vm3, %v6530_v0  ;;  %14892 = vmatmul.mubr.msk.f32.gmra.mxu1 %vm4923_vm3, %v6114_v7  ;;  %v6117_v0 = vmul.f32 %v22147_v12, %v18978_v31  ;;  %v18994_v7 = vld [vmem:[#allocation3 + $0xd2] sm:$0xff] }
 0x2d0   : > { %14894 = vmatprep.mubr.msk.f32.mxu1 %vm4923_vm3, %v6115_v23  ;;  %v22148_v23 = vld [vmem:[#allocation86_spill] sm:$0xff] }
 0x2d2   : > { %14942 = vmatmul.mubr.msk.f32.gmra.mxu0 %vm4923_vm3, %v6531_v57  ;;  %v6118_v57 = vmul.f32 %v22148_v23, %v18990_v17 }
 0x2d3   : > { %14944 = vmatprep.mubr.msk.f32.mxu0 %vm4923_vm3, %v6532_v41  ;;  %14895 = vmatmul.mubr.msk.f32.gmra.mxu1 %vm4923_vm3, %v6116_v14  ;;  %v6119_v41 = vmul.f32 %v18646_v36, %v18994_v7  ;;  %v19010_v14 = vld [vmem:[#allocation3 + $0xe2] sm:$0xff] }
 0x2d4   : > { %14897 = vmatprep.mubr.msk.f32.mxu1 %vm4923_vm3, %v6117_v0  ;;  %v6120_v0 = vmul.f32 %v18632_v63, %v19006_v52 }
 0x2d6   : > { %14945 = vmatmul.mubr.msk.f32.gmra.mxu0 %vm4923_vm3, %v6533_v38  ;;  %v6121_v38 = vmul.f32 %v18739_v46, %v19010_v14 }
 0x2d7   : > { %14947 = vmatprep.mubr.msk.f32.mxu0 %vm4923_vm3, %v6534_v37  ;;  %14898 = vmatmul.mubr.msk.f32.gmra.mxu1 %vm4923_vm3, %v6118_v57  ;;  %v19022_v37 = vld [vmem:[#allocation3 + $0xea] sm:$0xff]  ;;  %v19026_v57 = vld [vmem:[#allocation3 + $0xf2] sm:$0xff] }
 0x2d8   : > { %14900 = vmatprep.mubr.msk.f32.mxu1 %vm4923_vm3, %v6119_v41  ;;  %v6538_v41 = vmul.f32 %v18690_v9, %v18772_v26  ;;  %v6539_v26 = vmul.f32 %v18688_v30, %v18774_v59  ;;  %v19055_v9 = vld [vmem:[#allocation3 + $0x108] sm:$0xff] }
 0x2d9   : > { %v6541_v59 = vmul.f32 %v19055_v9, %v18766_v40 }
 0x2da   : > { %14948 = vmatmul.mubr.msk.f32.gmra.mxu0 %vm4923_vm3, %v6535_v62  ;;  %v6122_v62 = vmul.f32 %v18737_v50, %v19022_v37 }
 0x2db   : > { %14950 = vmatprep.mubr.msk.f32.mxu0 %vm4923_vm3, %v6536_v1  ;;  %14901 = vmatmul.mubr.msk.f32.gmra.mxu1 %vm4923_vm3, %v6120_v0  ;;  %v6123_v1 = vmul.f32 %v19031_v3, %v19026_v57  ;;  %v19040_v0 = vld [vmem:[#allocation3 + $0x100] sm:$0xff] }
 0x2dc   : > { %14903 = vmatprep.mubr.msk.f32.mxu1 %vm4923_vm3, %v6121_v38  ;;  %v6540_v38 = vmul.f32 %v19040_v0, %v18768_v25 }
 0x2de   : > { %14951 = vmatmul.mubr.msk.f32.gmra.mxu0 %vm4923_vm3, %v6537_v15  ;;  %v6124_v15 = vmul.f32 %v19046_v42, %v19042_v44 }
 0x2df   : > { %14953 = vmatprep.mubr.msk.f32.mxu0 %vm4923_vm3, %v6538_v41  ;;  %14904 = vmatmul.mubr.msk.f32.gmra.mxu1 %vm4923_vm3, %v6122_v62  ;;  %v6895_v41 = vld [vmem:[#allocation3 + $0x11] sm:$0xff]  ;;  %v7312_v62 = vmul.f32 %v22102_v32, %v18788_v61  ;;  %v22151_v61 = vld [vmem:[#allocation43_spill] sm:$0xff] }
 0x2e0   : > { %14906 = vmatprep.mubr.msk.f32.mxu1 %vm4923_vm3, %v6123_v1  ;;  %v6896_v1 = vld [vmem:[#allocation3 + $0x19] sm:$0xff] }
 0x2e2   : > { %14954 = vmatmul.mubr.msk.f32.gmra.mxu0 %vm4923_vm3, %v6539_v26  ;;  %v19069_v26 = vld [vmem:[%s21701_s0 + $0x40] sm:$0xff] }
 0x2e3   : > { %14956 = vmatprep.mubr.msk.f32.mxu0 %vm4923_vm3, %v6540_v38  ;;  %14907 = vmatmul.mubr.msk.f32.gmra.mxu1 %vm4923_vm3, %v6124_v15  ;;  %v15583_v38 = vld [vmem:[#allocation3 + $0x21] sm:$0xff]  ;;  %v7313_v15 = vmul.f32 %v22105_v19, %v18798_v29  ;;  %v7315_v29 = vmul.f32 %v22108_v55, %v18823_v47  ;;  %v22155_v47 = vld [vmem:[#allocation85_spill] sm:$0xff] }
 0x2e4   : > { %14961 = vmatprep.mubr.msk.f32.mxu1 %vm4923_vm3, %v6895_v41  ;;  %v7314_v41 = vmul.f32 %v22151_v61, %v18807_v33 }
 0x2e6   : > { %14957 = vmatmul.mubr.msk.f32.gmra.mxu0 %vm4923_vm3, %v6541_v59  ;;  %v15584_v59 = vld [vmem:[#allocation3 + $0x29] sm:$0xff] }
 0x2e7   : > { %15011 = vmatprep.mubr.msk.f32.mxu0 %vm4923_vm3, %v7312_v62  ;;  %14962 = vmatmul.mubr.msk.f32.vlgmr.msra.gmra.mxu1 %vm4923_vm3, %v6896_v1  ;;  %v15585_v62 = vld [vmem:[#allocation3 + $0x31] sm:$0xff]  ;;  %v15586_v1 = vld [vmem:[#allocation3 + $0x39] sm:$0xff] }
 0x2e8   : > { %14964 = vmatprep.mubr.msk.f32.mxu1 %vm4923_vm3, %v15583_v38  ;;  %15060 = vmatpush3.msra.mxu1 %v18803_v13  ;;  %v22152_v13 = vld [vmem:[#allocation73_spill] sm:$0xff]  ;;  %v22153_v38 = vld [vmem:[#allocation58_spill] sm:$0xff] }
 0x2e9   : > { %15159 = vmatprep.subr.mxu1 %v19069_v26  ;;  %v7316_v33 = vmul.f32 %v22152_v13, %v18832_v39  ;;  %v22157_v39 = vld [vmem:[#allocation21_spill] sm:$0xff] }
 0x2ea   : > { %15012 = vmatmul.mubr.msk.f32.vlgmr.msra.gmra.mxu0 %vm4923_vm3, %v7313_v15  ;;  %v7317_v15 = vmul.f32 %v22110_v8, %v18846_v2  ;;  %v22162_v2 = vld [vmem:[#allocation47_spill] sm:$0xff] }
 0x2eb   : > { %15014 = vmatprep.mubr.msk.f32.mxu0 %vm4923_vm3, %v7314_v41  ;;  %14965 = vmatmul.mubr.msk.f32.gmra.mxu1 %vm4923_vm3, %v15584_v59  ;;  %v22154_v41 = vld [vmem:[#allocation41_spill] sm:$0xff] }
 0x2ec   : > { %14967 = vmatprep.mubr.msk.f32.mxu1 %vm4923_vm3, %v15585_v62  ;;  %15110 = vmatpush3.msra.mxu0 %v18828_v24  ;;  %v7318_v59 = vmul.f32 %v22155_v47, %v22154_v41  ;;  %v22156_v24 = vld [vmem:[#allocation8_spill] sm:$0xff]  ;;  %v22164_v41 = vld [vmem:[#allocation121_spill] sm:$0xff] }
 0x2ed   : > { %v22158_v62 = vld [vmem:[#allocation124_spill] sm:$0xff] }
 0x2ee   : > { %15015 = vmatmul.mubr.msk.f32.gmra.mxu0 %vm4923_vm3, %v7315_v29  ;;  %v22159_v29 = vld [vmem:[#allocation69_spill] sm:$0xff] }
 0x2ef   : > { %15017 = vmatprep.mubr.msk.f32.mxu0 %vm4923_vm3, %v7316_v33  ;;  %14968 = vmatmul.mubr.msk.f32.gmra.mxu1 %vm4923_vm3, %v15586_v1  ;;  %v7319_v33 = vmul.f32 %v22159_v29, %v22158_v62  ;;  %v22160_v1 = vld [vmem:[#allocation93_spill] sm:$0xff]  ;;  %v22166_v62 = vld [vmem:[#allocation39_spill] sm:$0xff] }
 0x2f0   : > { %14970 = vmatprep.mubr.msk.f32.mxu1 %vm4923_vm3, %v22153_v38  ;;  %v22161_v38 = vld [vmem:[#allocation90_spill] sm:$0xff] }
 0x2f1   : > { %v7320_v13 = vmul.f32 %v22161_v38, %v22160_v1 }
 0x2f2   : > { %15018 = vmatmul.mubr.msk.f32.gmra.mxu0 %vm4923_vm3, %v7317_v15  ;;  %v22163_v15 = vld [vmem:[#allocation37_spill] sm:$0xff] }
 0x2f3   : > { %15020 = vmatprep.mubr.msk.f32.mxu0 %vm4923_vm3, %v7318_v59  ;;  %14971 = vmatmul.mubr.msk.f32.gmra.mxu1 %vm4923_vm3, %v22156_v24  ;;  %v7321_v59 = vmul.f32 %v22164_v41, %v18878_v16  ;;  %v22165_v24 = vld [vmem:[#allocation20_spill] sm:$0xff]  ;;  %v22170_v16 = vld [vmem:[#allocation45_spill] sm:$0xff] }
 0x2f4   : > { %14973 = vmatprep.mubr.msk.f32.mxu1 %vm4923_vm3, %v22157_v39  ;;  %v7322_v39 = vmul.f32 %v22165_v24, %v18882_v11  ;;  %v22171_v11 = vld [vmem:[#allocation51_spill] sm:$0xff] }
 0x2f6   : > { %15021 = vmatmul.mubr.msk.f32.gmra.mxu0 %vm4923_vm3, %v7319_v33  ;;  %v22168_v33 = vld [vmem:[#allocation100_spill] sm:$0xff] }
 0x2f7   : > { %15023 = vmatprep.mubr.msk.f32.mxu0 %vm4923_vm3, %v7320_v13  ;;  %14974 = vmatmul.mubr.msk.f32.gmra.mxu1 %vm4923_vm3, %v22162_v2  ;;  %v22167_v13 = vld [vmem:[#allocation12_spill] sm:$0xff]  ;;  %v7323_v1 = vmul.f32 %v22168_v33, %v18894_v48  ;;  %v22174_v48 = vld [vmem:[#allocation23_spill] sm:$0xff] }
 0x2f8   : > { %14976 = vmatprep.mubr.msk.f32.mxu1 %vm4923_vm3, %v22163_v15  ;;  %v22169_v2 = vld [vmem:[#allocation68_spill] sm:$0xff] }
 0x2f9   : > { %v7324_v15 = vmul.f32 %v22169_v2, %v18898_v22  ;;  %v22175_v22 = vld [vmem:[#allocation11_spill] sm:$0xff] }
 0x2fa   : > { %15024 = vmatmul.mubr.msk.f32.gmra.mxu0 %vm4923_vm3, %v7321_v59  ;;  %v22172_v59 = vld [vmem:[#allocation48_spill] sm:$0xff] }
 0x2fb   : > { %15026 = vmatprep.mubr.msk.f32.mxu0 %vm4923_vm3, %v7322_v39  ;;  %14977 = vmatmul.mubr.msk.f32.gmra.mxu1 %vm4923_vm3, %v22166_v62  ;;  %v7325_v39 = vmul.f32 %v22172_v59, %v18910_v27  ;;  %v22173_v62 = vld [vmem:[#allocation134_spill] sm:$0xff] }
 0x2fc   : > { %14979 = vmatprep.mubr.msk.f32.mxu1 %vm4923_vm3, %v22167_v13  ;;  %v7326_v13 = vmul.f32 %v22173_v62, %v18914_v21  ;;  %v22178_v27 = vld [vmem:[#allocation54_spill] sm:$0xff]  ;;  %v22179_v21 = vld [vmem:[#allocation91_spill] sm:$0xff] }
 0x2fe   : > { %15027 = vmatmul.mubr.msk.f32.gmra.mxu0 %vm4923_vm3, %v7323_v1  ;;  %v22176_v1 = vld [vmem:[#allocation132_spill] sm:$0xff] }
 0x2ff   : > { %15029 = vmatprep.mubr.msk.f32.mxu0 %vm4923_vm3, %v7324_v15  ;;  %14980 = vmatmul.mubr.msk.f32.gmra.mxu1 %vm4923_vm3, %v22170_v16  ;;  %v7327_v15 = vmul.f32 %v22176_v1, %v18926_v20  ;;  %v22177_v16 = vld [vmem:[#allocation49_spill] sm:$0xff] }
 0x300   : > { %14982 = vmatprep.mubr.msk.f32.mxu1 %vm4923_vm3, %v22171_v11  ;;  %v7328_v11 = vmul.f32 %v22177_v16, %v18930_v60  ;;  %v22181_v20 = vld [vmem:[#allocation65_spill] sm:$0xff]  ;;  %v22182_v60 = vld [vmem:[#allocation26_spill] sm:$0xff] }
 0x302   : > { %15030 = vmatmul.mubr.msk.f32.gmra.mxu0 %vm4923_vm3, %v7325_v39  ;;  %v7329_v39 = vmul.f32 %v22139_v35, %v18942_v4  ;;  %v22183_v4 = vld [vmem:[#allocation120_spill] sm:$0xff] }
 0x303   : > { %15032 = vmatprep.mubr.msk.f32.mxu0 %vm4923_vm3, %v7326_v13  ;;  %14983 = vmatmul.mubr.msk.f32.gmra.mxu1 %vm4923_vm3, %v22174_v48  ;;  %v22180_v13 = vld [vmem:[#allocation61_spill] sm:$0xff] }
 0x304   : > { %14985 = vmatprep.mubr.msk.f32.mxu1 %vm4923_vm3, %v22175_v22  ;;  %v7330_v48 = vmul.f32 %v22180_v13, %v18946_v10  ;;  %v7331_v22 = vmul.f32 %v22142_v34, %v18958_v28  ;;  %v22184_v10 = vld [vmem:[#allocation64_spill] sm:$0xff]  ;;  %v22185_v28 = vld [vmem:[#allocation14_spill] sm:$0xff] }
 0x306   : > { %15033 = vmatmul.mubr.msk.f32.gmra.mxu0 %vm4923_vm3, %v7327_v15  ;;  %v7332_v15 = vmul.f32 %v22143_v58, %v18962_v6  ;;  %v22186_v6 = vld [vmem:[#allocation72_spill] sm:$0xff] }
 0x307   : > { %15035 = vmatprep.mubr.msk.f32.mxu0 %vm4923_vm3, %v7328_v11  ;;  %14986 = vmatmul.mubr.msk.f32.gmra.mxu1 %vm4923_vm3, %v22178_v27  ;;  %v7333_v11 = vmul.f32 %v22144_v56, %v18974_v43  ;;  %v7334_v27 = vmul.f32 %v22145_v49, %v18978_v31  ;;  %v22187_v43 = vld [vmem:[#allocation28_spill] sm:$0xff]  ;;  %v22188_v31 = vld [vmem:[#allocation82_spill] sm:$0xff] }
 0x308   : > { %14988 = vmatprep.mubr.msk.f32.mxu1 %vm4923_vm3, %v22179_v21  ;;  %v7335_v21 = vmul.f32 %v22146_v51, %v18990_v17  ;;  %v22189_v17 = vld [vmem:[#allocation122_spill] sm:$0xff] }
 0x30a   : > { %15036 = vmatmul.mubr.msk.f32.gmra.mxu0 %vm4923_vm3, %v7329_v39  ;;  %v7336_v39 = vmul.f32 %v22147_v12, %v18994_v7  ;;  %v22190_v7 = vld [vmem:[#allocation97_spill] sm:$0xff] }
 0x30b   : > { %15038 = vmatprep.mubr.msk.f32.mxu0 %vm4923_vm3, %v7330_v48  ;;  %14989 = vmatmul.mubr.msk.f32.gmra.mxu1 %vm4923_vm3, %v22181_v20  ;;  %v7337_v48 = vmul.f32 %v22148_v23, %v19006_v52  ;;  %v7338_v20 = vmul.f32 %v18646_v36, %v19010_v14  ;;  %v19209_v52 = vld [vmem:[#allocation3 + $0x102] sm:$0xff]  ;;  %v22192_v14 = vld [vmem:[#allocation76_spill] sm:$0xff] }
 0x30c   : > { %14991 = vmatprep.mubr.msk.f32.mxu1 %vm4923_vm3, %v22182_v60  ;;  %v7339_v60 = vmul.f32 %v18632_v63, %v19022_v37  ;;  %22191 = vst [vmem:[#allocation127_spill] sm:$0xff] %v19209_v52  ;;  %v7341_v37 = vmul.f32 %v18737_v50, %v19042_v44 }
 0x30e   : > { %15039 = vmatmul.mubr.msk.f32.gmra.mxu0 %vm4923_vm3, %v7331_v22  ;;  %v7340_v22 = vmul.f32 %v18739_v46, %v19026_v57  ;;  %v7342_v57 = vmul.f32 %v19209_v52, %v19031_v3 }
 0x30f   : > { %15041 = vmatprep.mubr.msk.f32.mxu0 %vm4923_vm3, %v7332_v15  ;;  %14992 = vmatmul.mubr.msk.f32.gmra.mxu1 %vm4923_vm3, %v22183_v4  ;;  %v19214_v15 = vld [vmem:[#allocation3 + $0x101] sm:$0xff] }
 0x310   : > { %14994 = vmatprep.mubr.msk.f32.mxu1 %vm4923_vm3, %v22184_v10  ;;  %v7697_v4 = vld [vmem:[#allocation3 + $0x20] sm:$0xff]  ;;  %v19222_v10 = vld [vmem:[#allocation3 + $0x10a] sm:$0xff] }
 0x311   : > { %22193 = vst [vmem:[#allocation25_spill] sm:$0xff] %v19222_v10  ;;  %v7343_v44 = vmul.f32 %v19222_v10, %v19046_v42 }
 0x312   : > { %15042 = vmatmul.mubr.msk.f32.gmra.mxu0 %vm4923_vm3, %v7333_v11  ;;  %v19225_v11 = vld [vmem:[#allocation3 + $0x109] sm:$0xff] }
 0x313   : > { %15044 = vmatprep.mubr.msk.f32.mxu0 %vm4923_vm3, %v7334_v27  ;;  %14995 = vmatmul.mubr.msk.f32.gmra.mxu1 %vm4923_vm3, %v22185_v28  ;;  %v22194_v27 = vld [vmem:[#allocation24_spill] sm:$0xff] }
 0x314   : > { %14997 = vmatprep.mubr.msk.f32.mxu1 %vm4923_vm3, %v22186_v6  ;;  %v7729_v28 = vmul.f32 %v7697_v4, %v22194_v27  ;;  %v7698_v6 = vld [vmem:[#allocation3 + $0x28] sm:$0xff] }
 0x316   : > { %15045 = vmatmul.mubr.msk.f32.gmra.mxu0 %vm4923_vm3, %v7335_v21  ;;  %v7699_v21 = vld [vmem:[#allocation3 + $0x30] sm:$0xff] }
 0x317   : > { %15047 = vmatprep.mubr.msk.f32.mxu0 %vm4923_vm3, %v7336_v39  ;;  %14998 = vmatmul.mubr.msk.f32.gmra.mxu1 %vm4923_vm3, %v22187_v43  ;;  %v22195_v39 = vld [vmem:[#allocation35_spill] sm:$0xff] }
 0x318   : > { %15000 = vmatprep.mubr.msk.f32.mxu1 %vm4923_vm3, %v22188_v31  ;;  %v7730_v43 = vmul.f32 %v7698_v6, %v22195_v39  ;;  %v8114_v31 = vld [vmem:[#allocation3 + $0x21] sm:$0xff]  ;;  %v8117_v39 = vld [vmem:[#allocation3 + $0x39] sm:$0xff] }
 0x31a   : > { %15048 = vmatmul.mubr.msk.f32.gmra.mxu0 %vm4923_vm3, %v7337_v48  ;;  %v22196_v48 = vld [vmem:[#allocation31_spill] sm:$0xff] }
 0x31b   : > { %15050 = vmatprep.mubr.msk.f32.mxu0 %vm4923_vm3, %v7338_v20  ;;  %15001 = vmatmul.mubr.msk.f32.gmra.mxu1 %vm4923_vm3, %v22189_v17  ;;  %v7731_v20 = vmul.f32 %v7699_v21, %v22196_v48  ;;  %v7700_v17 = vld [vmem:[#allocation3 + $0x38] sm:$0xff]  ;;  %v7703_v21 = vld [vmem:[#allocation3 + $0x50] sm:$0xff] }
 0x31c   : > { %15003 = vmatprep.mubr.msk.f32.mxu1 %vm4923_vm3, %v22190_v7  ;;  %v7701_v7 = vld [vmem:[#allocation3 + $0x40] sm:$0xff] }
 0x31e   : > { %15051 = vmatmul.mubr.msk.f32.gmra.mxu0 %vm4923_vm3, %v7339_v60  ;;  %v19241_v60 = vpop.f32.mrf.mxu1 }
 0x31f   : > { %15053 = vmatprep.mubr.msk.f32.mxu0 %vm4923_vm3, %v7340_v22  ;;  %15004 = vmatmul.mubr.msk.f32.gmra.mxu1 %vm4923_vm3, %v22192_v14  ;;  %22197 = vst [vmem:[#allocation18_spill] sm:$0xff] %v19241_v60  ;;  %v8115_v22 = vld [vmem:[#allocation3 + $0x29] sm:$0xff]  ;;  %v22198_v14 = vld [vmem:[#allocation29_spill] sm:$0xff] }
 0x320   : > { %15006 = vmatprep.mubr.msk.f32.mxu1 %vm4923_vm3, %v19214_v15  ;;  %v7732_v4 = vmul.f32 %v7700_v17, %v22198_v14  ;;  %v22202_v17 = vld [vmem:[#allocation74_spill] sm:$0xff] }
 0x322   : > { %15054 = vmatmul.mubr.msk.f32.gmra.mxu0 %vm4923_vm3, %v7341_v37  ;;  %v8116_v37 = vld [vmem:[#allocation3 + $0x31] sm:$0xff] }
 0x323   : > { %15056 = vmatprep.mubr.msk.f32.mxu0 %vm4923_vm3, %v7342_v57  ;;  %15007 = vmatmul.mubr.msk.f32.gmra.mxu1 %vm4923_vm3, %v19225_v11  ;;  %v22199_v57 = vld [vmem:[#allocation56_spill] sm:$0xff] }
 0x324   : > { %15061 = vmatprep.mubr.msk.f32.mxu1 %vm4923_vm3, %v7729_v28  ;;  %v7733_v27 = vmul.f32 %v7701_v7, %v22199_v57  ;;  %v7702_v28 = vld [vmem:[#allocation3 + $0x48] sm:$0xff]  ;;  %v7735_v7 = vmul.f32 %v7703_v21, %v22202_v17  ;;  %v22204_v21 = vld [vmem:[#allocation89_spill] sm:$0xff] }
 0x326   : > { %15057 = vmatmul.mubr.msk.f32.gmra.mxu0 %vm4923_vm3, %v7343_v44  ;;  %v14766_v6 = vpop.f32.mrf.mxu1  ;;  %v19248_v44 = vpop.f32.mrf.mxu0 }
 0x327   : > { %15111 = vmatprep.mubr.msk.f32.mxu0 %vm4923_vm3, %v8114_v31  ;;  %15062 = vmatmul.mubr.msk.f32.vlgmr.msra.gmra.mxu1 %vm4923_vm3, %v7730_v43  ;;  %22200 = vst [vmem:[#allocation98_spill] sm:$0xff] %v19248_v44  ;;  %v22201_v43 = vld [vmem:[#allocation52_spill] sm:$0xff] }
 0x328   : > { %15064 = vmatprep.mubr.msk.f32.mxu1 %vm4923_vm3, %v7731_v20  ;;  %15160 = vmatpush3.msra.mxu1 %v19069_v26  ;;  %v5431_v26 = vpop.f32.mrf.mxu1  ;;  %v7734_v31 = vmul.f32 %v7702_v28, %v22201_v43  ;;  %v8118_v20 = vld [vmem:[#allocation3 + $0x41] sm:$0xff]  ;;  %v8119_v43 = vld [vmem:[#allocation3 + $0x49] sm:$0xff] }
 0x329   : > { %v14816_v48 = vpop.f32.mrf.mxu0 }
 0x32a   : > { %15112 = vmatmul.mubr.msk.f32.vlgmr.msra.gmra.mxu0 %vm4923_vm3, %v8115_v22  ;;  %v7704_v22 = vld [vmem:[#allocation3 + $0x58] sm:$0xff]  ;;  %v19254_v14 = vadd.f32 %v14816_v48, %v14766_v6 }
 0x32b   : > { %15114 = vmatprep.mubr.msk.f32.mxu0 %vm4923_vm3, %v8116_v37  ;;  %15065 = vmatmul.mubr.msk.f32.gmra.mxu1 %vm4923_vm3, %v7732_v4  ;;  %v14769_v4 = vpop.f32.mrf.mxu1  ;;  %v7705_v37 = vld [vmem:[#allocation3 + $0x60] sm:$0xff]  ;;  %v5752_v57 = vpop.f32.mrf.mxu0  ;;  %v8120_v6 = vld [vmem:[#allocation3 + $0x51] sm:$0xff] }
 0x32c   : > { %15067 = vmatprep.mubr.msk.f32.mxu1 %vm4923_vm3, %v7733_v27  ;;  %v19259_v27 = vadd.f32 %v5752_v57, %v5431_v26  ;;  %v7737_v48 = vmul.f32 %v7705_v37, %v22204_v21  ;;  %v7707_v26 = vld [vmem:[#allocation3 + $0x70] sm:$0xff] }
 0x32d   : > { %v5441_v28 = vpop.f32.mrf.mxu1 }
 0x32e   : > { %15115 = vmatmul.mubr.msk.f32.gmra.mxu0 %vm4923_vm3, %v8117_v39  ;;  %v22203_v39 = vld [vmem:[#allocation75_spill] sm:$0xff]  ;;  %v14819_v60 = vpop.f32.mrf.mxu0 }
 0x32f   : > { %15117 = vmatprep.mubr.msk.f32.mxu0 %vm4923_vm3, %v8118_v20  ;;  %15068 = vmatmul.mubr.msk.f32.gmra.mxu1 %vm4923_vm3, %v7734_v31  ;;  %v7736_v44 = vmul.f32 %v7704_v22, %v22203_v39  ;;  %v7706_v20 = vld [vmem:[#allocation3 + $0x68] sm:$0xff]  ;;  %v19264_v17 = vadd.f32 %v14819_v60, %v14769_v4  ;;  %v14772_v31 = vpop.f32.mrf.mxu1  ;;  %v8121_v39 = vld [vmem:[#allocation3 + $0x59] sm:$0xff] }
 0x330   : > { %15070 = vmatprep.mubr.msk.f32.mxu1 %vm4923_vm3, %v7735_v7  ;;  %v5762_v7 = vpop.f32.mrf.mxu0  ;;  %v8122_v60 = vld [vmem:[#allocation3 + $0x61] sm:$0xff] }
 0x331   : > { %v19269_v57 = vadd.f32 %v5762_v7, %v5441_v28  ;;  %v5451_v22 = vpop.f32.mrf.mxu1  ;;  %v22206_v4 = vld [vmem:[#allocation15_spill] sm:$0xff]  ;;  %v7709_v28 = vld [vmem:[#allocation3 + $0x80] sm:$0xff] }
 0x332   : > { %15118 = vmatmul.mubr.msk.f32.gmra.mxu0 %vm4923_vm3, %v8119_v43  ;;  %v22205_v43 = vld [vmem:[#allocation9_spill] sm:$0xff]  ;;  %v7739_v37 = vmul.f32 %v7707_v26, %v22206_v4 }
 0x333   : > { %15120 = vmatprep.mubr.msk.f32.mxu0 %vm4923_vm3, %v8120_v6  ;;  %15071 = vmatmul.mubr.msk.f32.gmra.mxu1 %vm4923_vm3, %v7736_v44  ;;  %v7738_v42 = vmul.f32 %v7706_v20, %v22205_v43  ;;  %v14822_v3 = vpop.f32.mrf.mxu0  ;;  %v7708_v6 = vld [vmem:[#allocation3 + $0x78] sm:$0xff]  ;;  %v14775_v44 = vpop.f32.mrf.mxu1  ;;  %v8123_v43 = vld [vmem:[#allocation3 + $0x69] sm:$0xff] }
 0x334   : > { %15073 = vmatprep.mubr.msk.f32.mxu1 %vm4923_vm3, %v7737_v48  ;;  %v19274_v21 = vadd.f32 %v14822_v3, %v14772_v31  ;;  %v8124_v3 = vld [vmem:[#allocation3 + $0x71] sm:$0xff] }
 0x335   : > { %v5772_v48 = vpop.f32.mrf.mxu0  ;;  %v5461_v20 = vpop.f32.mrf.mxu1  ;;  %v22208_v31 = vld [vmem:[#allocation105_spill] sm:$0xff] }
 0x336   : > { %15121 = vmatmul.mubr.msk.f32.gmra.mxu0 %vm4923_vm3, %v8121_v39  ;;  %v19279_v7 = vadd.f32 %v5772_v48, %v5451_v22  ;;  %v22207_v39 = vld [vmem:[#allocation95_spill] sm:$0xff]  ;;  %v7741_v26 = vmul.f32 %v7709_v28, %v22208_v31  ;;  %v7711_v22 = vld [vmem:[#allocation3 + $0x90] sm:$0xff] }
 0x337   : > { %15123 = vmatprep.mubr.msk.f32.mxu0 %vm4923_vm3, %v8122_v60  ;;  %15074 = vmatmul.mubr.msk.f32.gmra.mxu1 %vm4923_vm3, %v7738_v42  ;;  %v7740_v10 = vmul.f32 %v7708_v6, %v22207_v39  ;;  %v14825_v50 = vpop.f32.mrf.mxu0  ;;  %v7710_v60 = vld [vmem:[#allocation3 + $0x88] sm:$0xff]  ;;  %v8125_v39 = vld [vmem:[#allocation3 + $0x79] sm:$0xff] }
 0x338   : > { %15076 = vmatprep.mubr.msk.f32.mxu1 %vm4923_vm3, %v7739_v37  ;;  %v19284_v4 = vadd.f32 %v14825_v50, %v14775_v44  ;;  %v14778_v42 = vpop.f32.mrf.mxu1  ;;  %v8126_v50 = vld [vmem:[#allocation3 + $0x81] sm:$0xff] }
 0x339   : > { %v5782_v37 = vpop.f32.mrf.mxu0  ;;  %v22210_v44 = vld [vmem:[#allocation118_spill] sm:$0xff] }
 0x33a   : > { %15124 = vmatmul.mubr.msk.f32.gmra.mxu0 %vm4923_vm3, %v8123_v43  ;;  %v19289_v48 = vadd.f32 %v5782_v37, %v5461_v20  ;;  %v5471_v6 = vpop.f32.mrf.mxu1  ;;  %v22209_v43 = vld [vmem:[#allocation107_spill] sm:$0xff]  ;;  %v7743_v28 = vmul.f32 %v7711_v22, %v22210_v44  ;;  %v7713_v20 = vld [vmem:[#allocation3 + $0xa0] sm:$0xff] }
 0x33b   : > { %15126 = vmatprep.mubr.msk.f32.mxu0 %vm4923_vm3, %v8124_v3  ;;  %15077 = vmatmul.mubr.msk.f32.gmra.mxu1 %vm4923_vm3, %v7740_v10  ;;  %v7742_v52 = vmul.f32 %v7710_v60, %v22209_v43  ;;  %v7712_v3 = vld [vmem:[#allocation3 + $0x98] sm:$0xff]  ;;  %v8127_v43 = vld [vmem:[#allocation3 + $0x89] sm:$0xff] }
 0x33c   : > { %15079 = vmatprep.mubr.msk.f32.mxu1 %vm4923_vm3, %v7741_v26  ;;  %v14828_v46 = vpop.f32.mrf.mxu0 }
 0x33d   : > { %v19294_v31 = vadd.f32 %v14828_v46, %v14778_v42  ;;  %v14781_v10 = vpop.f32.mrf.mxu1  ;;  %v8128_v46 = vld [vmem:[#allocation3 + $0x91] sm:$0xff]  ;;  %v22212_v42 = vld [vmem:[#allocation46_spill] sm:$0xff] }
 0x33e   : > { %15127 = vmatmul.mubr.msk.f32.gmra.mxu0 %vm4923_vm3, %v8125_v39  ;;  %v5792_v26 = vpop.f32.mrf.mxu0  ;;  %v22211_v39 = vld [vmem:[#allocation117_spill] sm:$0xff]  ;;  %v7745_v22 = vmul.f32 %v7713_v20, %v22212_v42 }
 0x33f   : > { %15129 = vmatprep.mubr.msk.f32.mxu0 %vm4923_vm3, %v8126_v50  ;;  %15080 = vmatmul.mubr.msk.f32.gmra.mxu1 %vm4923_vm3, %v7742_v52  ;;  %v19299_v37 = vadd.f32 %v5792_v26, %v5471_v6  ;;  %v5481_v60 = vpop.f32.mrf.mxu1  ;;  %v7744_v63 = vmul.f32 %v7712_v3, %v22211_v39  ;;  %v7714_v50 = vld [vmem:[#allocation3 + $0xa8] sm:$0xff]  ;;  %v7715_v6 = vld [vmem:[#allocation3 + $0xb0] sm:$0xff]  ;;  %v8129_v39 = vld [vmem:[#allocation3 + $0x99] sm:$0xff] }
 0x340   : > { %15082 = vmatprep.mubr.msk.f32.mxu1 %vm4923_vm3, %v7743_v28  ;;  %v14831_v36 = vpop.f32.mrf.mxu0 }
 0x341   : > { %v19304_v44 = vadd.f32 %v14831_v36, %v14781_v10  ;;  %v14784_v52 = vpop.f32.mrf.mxu1  ;;  %v8130_v36 = vld [vmem:[#allocation3 + $0xa1] sm:$0xff] }
 0x342   : > { %15130 = vmatmul.mubr.msk.f32.gmra.mxu0 %vm4923_vm3, %v8127_v43  ;;  %v5802_v28 = vpop.f32.mrf.mxu0  ;;  %v22213_v43 = vld [vmem:[#allocation123_spill] sm:$0xff] }
 0x343   : > { %15132 = vmatprep.mubr.msk.f32.mxu0 %vm4923_vm3, %v8128_v46  ;;  %15083 = vmatmul.mubr.msk.f32.gmra.mxu1 %vm4923_vm3, %v7744_v63  ;;  %v19309_v26 = vadd.f32 %v5802_v28, %v5481_v60  ;;  %v5491_v3 = vpop.f32.mrf.mxu1  ;;  %v7746_v23 = vmul.f32 %v7714_v50, %v22213_v43  ;;  %v22214_v10 = vld [vmem:[#allocation55_spill] sm:$0xff]  ;;  %v7716_v46 = vld [vmem:[#allocation3 + $0xb8] sm:$0xff]  ;;  %v7717_v60 = vld [vmem:[#allocation3 + $0xc0] sm:$0xff] }
 0x344   : > { %15085 = vmatprep.mubr.msk.f32.mxu1 %vm4923_vm3, %v7745_v22  ;;  %v7747_v20 = vmul.f32 %v7715_v6, %v22214_v10  ;;  %v22215_v43 = vld [vmem:[#allocation19_spill] sm:$0xff] }
 0x345   : > { %v14834_v12 = vpop.f32.mrf.mxu0  ;;  %v7748_v51 = vmul.f32 %v7716_v46, %v22215_v43  ;;  %v7718_v10 = vld [vmem:[#allocation3 + $0xc8] sm:$0xff] }
 0x346   : > { %15133 = vmatmul.mubr.msk.f32.gmra.mxu0 %vm4923_vm3, %v8129_v39  ;;  %v19314_v42 = vadd.f32 %v14834_v12, %v14784_v52  ;;  %v14787_v63 = vpop.f32.mrf.mxu1  ;;  %v8131_v39 = vld [vmem:[#allocation3 + $0xa9] sm:$0xff]  ;;  %v8132_v12 = vld [vmem:[#allocation3 + $0xb1] sm:$0xff] }
 0x347   : > { %15135 = vmatprep.mubr.msk.f32.mxu0 %vm4923_vm3, %v8130_v36  ;;  %15086 = vmatmul.mubr.msk.f32.gmra.mxu1 %vm4923_vm3, %v7746_v23  ;;  %v5812_v22 = vpop.f32.mrf.mxu0  ;;  %v22216_v52 = vld [vmem:[#allocation71_spill] sm:$0xff] }
 0x348   : > { %15088 = vmatprep.mubr.msk.f32.mxu1 %vm4923_vm3, %v7747_v20  ;;  %v19319_v28 = vadd.f32 %v5812_v22, %v5491_v3  ;;  %v19321_v50 = vpop.f32.mrf.mxu1  ;;  %v7749_v36 = vmul.f32 %v7717_v60, %v22216_v52  ;;  %v7719_v3 = vld [vmem:[#allocation3 + $0xd0] sm:$0xff]  ;;  %v8133_v22 = vld [vmem:[#allocation3 + $0xb9] sm:$0xff] }
 0x349   : > { %v22219_v60 = vld [vmem:[#allocation102_spill] sm:$0xff] }
 0x34a   : > { %v14837_v6 = vpop.f32.mrf.mxu0  ;;  %15136 = vmatmul.mubr.msk.f32.gmra.mxu0 %vm4923_vm3, %v8131_v39  ;;  %v7750_v39 = vmul.f32 %v7718_v10, %v18322_v45  ;;  %v8135_v10 = vld [vmem:[#allocation3 + $0xc9] sm:$0xff] }
 0x34b   : > { %v19326_v49 = vadd.f32 %v14837_v6, %v14787_v63  ;;  %15138 = vmatprep.mubr.msk.f32.mxu0 %vm4923_vm3, %v8132_v12  ;;  %v14790_v23 = vpop.f32.mrf.mxu1  ;;  %15089 = vmatmul.mubr.msk.f32.gmra.mxu1 %vm4923_vm3, %v7748_v51  ;;  %v8134_v63 = vld [vmem:[#allocation3 + $0xc1] sm:$0xff]  ;;  %v7751_v6 = vmul.f32 %v7719_v3, %v22219_v60  ;;  %v7720_v12 = vld [vmem:[#allocation3 + $0xd8] sm:$0xff]  ;;  %v7723_v60 = vld [vmem:[#allocation3 + $0xf0] sm:$0xff] }
 0x34c   : > { %v19330_v20 = vpop.f32.mrf.mxu0  ;;  %15091 = vmatprep.mubr.msk.f32.mxu1 %vm4923_vm3, %v7749_v36  ;;  %v7721_v36 = vld [vmem:[#allocation3 + $0xe0] sm:$0xff] }
 0x34d   : > { %22217 = vst [vmem:[#allocation17_spill] sm:$0xff] %v19330_v20  ;;  %v19333_v46 = vpop.f32.mrf.mxu1  ;;  %v7753_v3 = vmul.f32 %v7721_v36, %v18499_v5  ;;  %v8138_v5 = vld [vmem:[#allocation3 + $0xe1] sm:$0xff]  ;;  %v7724_v36 = vld [vmem:[#allocation3 + $0xf8] sm:$0xff] }
 0x34e   : > { %22218 = vst [vmem:[#allocation103_spill] sm:$0xff] %v19333_v46  ;;  %v14840_v43 = vpop.f32.mrf.mxu0  ;;  %15139 = vmatmul.mubr.msk.f32.gmra.mxu0 %vm4923_vm3, %v8133_v22  ;;  %v7752_v22 = vmul.f32 %v7720_v12, %v18399_v18  ;;  %v8137_v12 = vld [vmem:[#allocation3 + $0xd9] sm:$0xff] }
 0x34f   : > { %v19338_v52 = vadd.f32 %v14840_v43, %v14790_v23  ;;  %15141 = vmatprep.mubr.msk.f32.mxu0 %vm4923_vm3, %v8134_v63  ;;  %v14793_v51 = vpop.f32.mrf.mxu1  ;;  %15092 = vmatmul.mubr.msk.f32.gmra.mxu1 %vm4923_vm3, %v7750_v39  ;;  %v8136_v23 = vld [vmem:[#allocation3 + $0xd1] sm:$0xff]  ;;  %v7722_v43 = vld [vmem:[#allocation3 + $0xe8] sm:$0xff] }
 0x350   : > { %v19342_v20 = vpop.f32.mrf.mxu0  ;;  %15094 = vmatprep.mubr.msk.f32.mxu1 %vm4923_vm3, %v7751_v6 }
 0x351   : > { %v19345_v45 = vpop.f32.mrf.mxu1 }
 0x352   : > { %22220 = vst [vmem:[#allocation32_spill] sm:$0xff] %v19345_v45  ;;  %v14843_v46 = vpop.f32.mrf.mxu0  ;;  %15142 = vmatmul.mubr.msk.f32.gmra.mxu0 %vm4923_vm3, %v8135_v10  ;;  %v7754_v10 = vmul.f32 %v7722_v43, %v18490_v53  ;;  %v8139_v53 = vld [vmem:[#allocation3 + $0xe9] sm:$0xff]  ;;  %v7756_v43 = vmul.f32 %v7724_v36, %v18588_v54  ;;  %v8141_v36 = vld [vmem:[#allocation3 + $0xf9] sm:$0xff] }
 0x353   : > { %v19350_v63 = vadd.f32 %v14843_v46, %v14793_v51  ;;  %15144 = vmatprep.mubr.msk.f32.mxu0 %vm4923_vm3, %v8136_v23  ;;  %v14796_v39 = vpop.f32.mrf.mxu1  ;;  %15095 = vmatmul.mubr.msk.f32.gmra.mxu1 %vm4923_vm3, %v7752_v22  ;;  %v22222_v46 = vld [vmem:[#allocation88_spill] sm:$0xff] }
 0x354   : > { %v19354_v6 = vpop.f32.mrf.mxu0  ;;  %15097 = vmatprep.mubr.msk.f32.mxu1 %vm4923_vm3, %v7753_v3  ;;  %v7755_v51 = vmul.f32 %v7723_v60, %v22222_v46  ;;  %v8140_v60 = vld [vmem:[#allocation3 + $0xf1] sm:$0xff] }
 0x355   : > { %v19357_v18 = vpop.f32.mrf.mxu1  ;;  %v7727_v46 = vld [vmem:[#allocation3 + $0x110] sm:$0xff] }
 0x356   : > { %22221 = vst [vmem:[#allocation101_spill] sm:$0xff] %v19357_v18  ;;  %v14846_v45 = vpop.f32.mrf.mxu0  ;;  %15145 = vmatmul.mubr.msk.f32.gmra.mxu0 %vm4923_vm3, %v8137_v12 }
 0x357   : > { %v19362_v23 = vadd.f32 %v14846_v45, %v14796_v39  ;;  %15147 = vmatprep.mubr.msk.f32.mxu0 %vm4923_vm3, %v8138_v5  ;;  %v14799_v22 = vpop.f32.mrf.mxu1  ;;  %15098 = vmatmul.mubr.msk.f32.gmra.mxu1 %vm4923_vm3, %v7754_v10  ;;  %v22224_v45 = vld [vmem:[#allocation92_spill] sm:$0xff] }
 0x358   : > { %v19366_v3 = vpop.f32.mrf.mxu0  ;;  %15100 = vmatprep.mubr.msk.f32.mxu1 %vm4923_vm3, %v7755_v51  ;;  %v7757_v39 = vmul.f32 %v19040_v0, %v22224_v45 }
 0x359   : > { %v19369_v18 = vpop.f32.mrf.mxu1 }
 0x35a   : > { %22223 = vst [vmem:[#allocation99_spill] sm:$0xff] %v19369_v18  ;;  %v14849_v12 = vpop.f32.mrf.mxu0  ;;  %15148 = vmatmul.mubr.msk.f32.gmra.mxu0 %vm4923_vm3, %v8139_v53  ;;  %v7758_v53 = vmul.f32 %v19055_v9, %v18688_v30  ;;  %v7728_v18 = vld [vmem:[#allocation3 + $0x118] sm:$0xff] }
 0x35b   : > { %v19375_v5 = vadd.f32 %v14849_v12, %v14799_v22  ;;  %15150 = vmatprep.mubr.msk.f32.mxu0 %vm4923_vm3, %v8140_v60  ;;  %v14802_v10 = vpop.f32.mrf.mxu1  ;;  %15101 = vmatmul.mubr.msk.f32.gmra.mxu1 %vm4923_vm3, %v7756_v43  ;;  %v7759_v22 = vmul.f32 %v7727_v46, %v18768_v25  ;;  %v8499_v60 = vld [vmem:[#allocation3 + $0x22] sm:$0xff]  ;;  %v8144_v30 = vld [vmem:[#allocation3 + $0x111] sm:$0xff]  ;;  %v7760_v9 = vmul.f32 %v7728_v18, %v18766_v40 }
 0x35c   : > { %v19379_v51 = vpop.f32.mrf.mxu0  ;;  %15103 = vmatprep.mubr.msk.f32.mxu1 %vm4923_vm3, %v7757_v39  ;;  %v8531_v25 = vmul.f32 %v8499_v60, %v22102_v32 }
 0x35d   : > { %v19382_v54 = vpop.f32.mrf.mxu1 }
 0x35e   : > { %v14852_v0 = vpop.f32.mrf.mxu0  ;;  %15151 = vmatmul.mubr.msk.f32.gmra.mxu0 %vm4923_vm3, %v8141_v36 }
 0x35f   : > { %v19388_v12 = vadd.f32 %v14852_v0, %v14802_v10  ;;  %15153 = vmatprep.mubr.msk.f32.mxu0 %vm4923_vm3, %v19214_v15  ;;  %v14805_v43 = vpop.f32.mrf.mxu1  ;;  %15104 = vmatmul.mubr.msk.f32.gmra.mxu1 %vm4923_vm3, %v7758_v53  ;;  %v8500_v15 = vld [vmem:[#allocation3 + $0x2a] sm:$0xff]  ;;  %v8145_v53 = vld [vmem:[#allocation3 + $0x119] sm:$0xff] }
 0x360   : > { %v19393_v45 = vpop.f32.mrf.mxu0  ;;  %15106 = vmatprep.mubr.msk.f32.mxu1 %vm4923_vm3, %v7759_v22  ;;  %v8501_v0 = vld [vmem:[#allocation3 + $0x32] sm:$0xff] }
 0x361   : > { %v19397_v39 = vpop.f32.mrf.mxu1  ;;  %v8533_v32 = vmul.f32 %v8501_v0, %v22151_v61  ;;  %v8504_v0 = vld [vmem:[#allocation3 + $0x4a] sm:$0xff] }
 0x362   : > { %22225 = vst [vmem:[#allocation104_spill] sm:$0xff] %v19397_v39  ;;  %v14855_v36 = vpop.f32.mrf.mxu0  ;;  %15154 = vmatmul.mubr.msk.f32.gmra.mxu0 %vm4923_vm3, %v19225_v11  ;;  %v8532_v11 = vmul.f32 %v8500_v15, %v22105_v19 }
 0x363   : > { %v19402_v10 = vadd.f32 %v14855_v36, %v14805_v43  ;;  %v14808_v46 = vpop.f32.mrf.mxu1  ;;  %15107 = vmatmul.mubr.msk.f32.gmra.mxu1 %vm4923_vm3, %v7760_v9  ;;  %15156 = vmatprep.mubr.msk.f32.mxu0 %vm4923_vm3, %v8144_v30  ;;  %v8502_v43 = vld [vmem:[#allocation3 + $0x3a] sm:$0xff]  ;;  %v8503_v30 = vld [vmem:[#allocation3 + $0x42] sm:$0xff] }
 0x364   : > { %v19406_v22 = vpop.f32.mrf.mxu0  ;;  %15161 = vmatprep.mubr.msk.f32.mxu1 %vm4923_vm3, %v8531_v25  ;;  %v8534_v19 = vmul.f32 %v8502_v43, %v22108_v55 }
 0x365   : > { %22226 = vst [vmem:[#allocation109_spill] sm:$0xff] %v19406_v22  ;;  %v19409_v40 = vpop.f32.mrf.mxu1  ;;  %v22229_v22 = vld [vmem:[#allocation13_spill] sm:$0xff] }
 0x366   : > { %22227 = vst [vmem:[#allocation34_spill] sm:$0xff] %v19409_v40  ;;  %v14858_v18 = vpop.f32.mrf.mxu0  ;;  %15157 = vmatmul.mubr.msk.f32.gmra.mxu0 %vm4923_vm3, %v8145_v53  ;;  %v22230_v53 = vld [vmem:[#allocation73_spill] sm:$0xff] }
 0x367   : > { %v19414_v60 = vadd.f32 %v14858_v18, %v14808_v46  ;;  %v14863_v9 = vpop.f32.mrf.mxu1  ;;  %15162 = vmatmul.mubr.msk.f32.vlgmr.msra.gmra.mxu1 %vm4923_vm3, %v8532_v11  ;;  %v8535_v61 = vmul.f32 %v8503_v30, %v22230_v53  ;;  %v8505_v11 = vld [vmem:[#allocation3 + $0x52] sm:$0xff]  ;;  %v8506_v30 = vld [vmem:[#allocation3 + $0x5a] sm:$0xff] }
 0x368   : > { %v19417_v36 = vpop.f32.mrf.mxu0  ;;  %v6447_v25 = vadd.f32 %v14863_v9, %v22229_v22  ;;  %15164 = vmatprep.mubr.msk.f32.mxu1 %vm4923_vm3, %v8533_v32  ;;  %v8536_v32 = vmul.f32 %v8504_v0, %v22110_v8  ;;  %v8537_v9 = vmul.f32 %v8505_v11, %v22155_v47  ;;  %v8508_v0 = vld [vmem:[#allocation3 + $0x6a] sm:$0xff] }
 0x369   : > { %22228 = vst [vmem:[#allocation106_spill] sm:$0xff] %v19417_v36  ;;  %v19421_v40 = vpop.f32.mrf.mxu1 }
 0x36a   : > { %v14913_v15 = vpop.f32.mrf.mxu0 }
 0x36b   : > { %v19425_v46 = vadd.f32 %v14913_v15, %v6447_v25  ;;  %v14866_v18 = vpop.f32.mrf.mxu1  ;;  %15165 = vmatmul.mubr.msk.f32.gmra.mxu1 %vm4923_vm3, %v8534_v19 }
 0x36c   : > { %v6449_v36 = vadd.f32 %v14866_v18, %v19254_v14  ;;  %v19429_v39 = vpop.f32.mrf.mxu0  ;;  %15167 = vmatprep.mubr.msk.f32.mxu1 %vm4923_vm3, %v8535_v61  ;;  %v8507_v14 = vld [vmem:[#allocation3 + $0x62] sm:$0xff] }
 0x36d   : > { %v6297_v22 = vpop.f32.mrf.mxu1 }
 0x36e   : > { %v19434_v55 = vadd.f32 %v6297_v22, %v19259_v27  ;;  %v14916_v43 = vpop.f32.mrf.mxu0  ;;  %v8538_v27 = vmul.f32 %v8506_v30, %v22159_v29  ;;  %v8510_v30 = vld [vmem:[#allocation3 + $0x7a] sm:$0xff] }
 0x36f   : > { %v19437_v25 = vadd.f32 %v14916_v43, %v6449_v36  ;;  %v14869_v19 = vpop.f32.mrf.mxu1  ;;  %15168 = vmatmul.mubr.msk.f32.gmra.mxu1 %vm4923_vm3, %v8536_v32  ;;  %v8539_v36 = vmul.f32 %v8507_v14, %v22161_v38 }
 0x370   : > { %v6451_v15 = vadd.f32 %v14869_v19, %v19264_v17  ;;  %v19441_v53 = vpop.f32.mrf.mxu0  ;;  %15170 = vmatprep.mubr.msk.f32.mxu1 %vm4923_vm3, %v8537_v9  ;;  %v8509_v17 = vld [vmem:[#allocation3 + $0x72] sm:$0xff] }
 0x371   : > { %v6307_v8 = vpop.f32.mrf.mxu1  ;;  %v8541_v9 = vmul.f32 %v8509_v17, %v22165_v24 }
 0x372   : > { %v19446_v61 = vadd.f32 %v6307_v8, %v19269_v57  ;;  %v14919_v47 = vpop.f32.mrf.mxu0  ;;  %v8540_v57 = vmul.f32 %v8508_v0, %v22164_v41 }
 0x373   : > { %v19449_v18 = vadd.f32 %v14919_v47, %v6451_v15  ;;  %v14872_v11 = vpop.f32.mrf.mxu1  ;;  %15171 = vmatmul.mubr.msk.f32.gmra.mxu1 %vm4923_vm3, %v8538_v27 }
 0x374   : > { %v6453_v22 = vadd.f32 %v14872_v11, %v19274_v21  ;;  %v19453_v32 = vpop.f32.mrf.mxu0  ;;  %15173 = vmatprep.mubr.msk.f32.mxu1 %vm4923_vm3, %v8539_v36  ;;  %v8511_v21 = vld [vmem:[#allocation3 + $0x82] sm:$0xff]  ;;  %v8512_v36 = vld [vmem:[#allocation3 + $0x8a] sm:$0xff] }
 0x375   : > { %v6317_v29 = vpop.f32.mrf.mxu1  ;;  %v8543_v47 = vmul.f32 %v8511_v21, %v22169_v2 }
 0x376   : > { %v19458_v43 = vadd.f32 %v6317_v29, %v19279_v7  ;;  %v14922_v38 = vpop.f32.mrf.mxu0  ;;  %v8542_v7 = vmul.f32 %v8510_v30, %v22168_v33 }
 0x377   : > { %v19461_v19 = vadd.f32 %v14922_v38, %v6453_v22  ;;  %v14875_v14 = vpop.f32.mrf.mxu1  ;;  %15174 = vmatmul.mubr.msk.f32.gmra.mxu1 %vm4923_vm3, %v8540_v57  ;;  %v8514_v38 = vld [vmem:[#allocation3 + $0x9a] sm:$0xff] }
 0x378   : > { %v6455_v15 = vadd.f32 %v14875_v14, %v19284_v4  ;;  %v19465_v8 = vpop.f32.mrf.mxu0  ;;  %15176 = vmatprep.mubr.msk.f32.mxu1 %vm4923_vm3, %v8541_v9  ;;  %v8513_v4 = vld [vmem:[#allocation3 + $0x92] sm:$0xff] }
 0x379   : > { %v6327_v41 = vpop.f32.mrf.mxu1  ;;  %v8545_v57 = vmul.f32 %v8513_v4, %v22173_v62 }
 0x37a   : > { %v19470_v27 = vadd.f32 %v6327_v41, %v19289_v48  ;;  %v14925_v24 = vpop.f32.mrf.mxu0  ;;  %v8544_v48 = vmul.f32 %v8512_v36, %v22172_v59 }
 0x37b   : > { %v19473_v0 = vadd.f32 %v14925_v24, %v6455_v15  ;;  %v14878_v11 = vpop.f32.mrf.mxu1  ;;  %15177 = vmatmul.mubr.msk.f32.gmra.mxu1 %vm4923_vm3, %v8542_v7  ;;  %v8516_v7 = vld [vmem:[#allocation3 + $0xaa] sm:$0xff] }
 0x37c   : > { %v6457_v17 = vadd.f32 %v14878_v11, %v19294_v31  ;;  %v19477_v22 = vpop.f32.mrf.mxu0  ;;  %15179 = vmatprep.mubr.msk.f32.mxu1 %vm4923_vm3, %v8543_v47  ;;  %v8515_v31 = vld [vmem:[#allocation3 + $0xa2] sm:$0xff] }
 0x37d   : > { %v6337_v33 = vpop.f32.mrf.mxu1  ;;  %v8547_v41 = vmul.f32 %v8515_v31, %v22177_v16  ;;  %v8520_v31 = vld [vmem:[#allocation3 + $0xca] sm:$0xff] }
 0x37e   : > { %v19482_v29 = vadd.f32 %v6337_v33, %v19299_v37  ;;  %v14928_v2 = vpop.f32.mrf.mxu0  ;;  %v8546_v37 = vmul.f32 %v8514_v38, %v22176_v1  ;;  %v8518_v33 = vld [vmem:[#allocation3 + $0xba] sm:$0xff] }
 0x37f   : > { %v19485_v9 = vadd.f32 %v14928_v2, %v6457_v17  ;;  %v14881_v30 = vpop.f32.mrf.mxu1  ;;  %15180 = vmatmul.mubr.msk.f32.gmra.mxu1 %vm4923_vm3, %v8544_v48 }
 0x380   : > { %v6459_v14 = vadd.f32 %v14881_v30, %v19304_v44  ;;  %v19489_v21 = vpop.f32.mrf.mxu0  ;;  %15182 = vmatprep.mubr.msk.f32.mxu1 %vm4923_vm3, %v8545_v57  ;;  %v8517_v44 = vld [vmem:[#allocation3 + $0xb2] sm:$0xff] }
 0x381   : > { %v6347_v59 = vpop.f32.mrf.mxu1  ;;  %v8549_v17 = vmul.f32 %v8517_v44, %v22180_v13  ;;  %v8522_v44 = vld [vmem:[#allocation3 + $0xda] sm:$0xff] }
 0x382   : > { %v19494_v15 = vadd.f32 %v6347_v59, %v19309_v26  ;;  %v14931_v62 = vpop.f32.mrf.mxu0  ;;  %v8548_v26 = vmul.f32 %v8516_v7, %v22139_v35 }
 0x383   : > { %v19497_v24 = vadd.f32 %v14931_v62, %v6459_v14  ;;  %v14884_v47 = vpop.f32.mrf.mxu1  ;;  %15183 = vmatmul.mubr.msk.f32.gmra.mxu1 %vm4923_vm3, %v8546_v37  ;;  %v8521_v37 = vld [vmem:[#allocation3 + $0xd2] sm:$0xff] }
 0x384   : > { %v6461_v36 = vadd.f32 %v14884_v47, %v19314_v42  ;;  %v19501_v11 = vpop.f32.mrf.mxu0  ;;  %15185 = vmatprep.mubr.msk.f32.mxu1 %vm4923_vm3, %v8547_v41  ;;  %v8519_v42 = vld [vmem:[#allocation3 + $0xc2] sm:$0xff] }
 0x385   : > { %v6357_v1 = vpop.f32.mrf.mxu1  ;;  %v8551_v13 = vmul.f32 %v8519_v42, %v22143_v58  ;;  %v22231_v47 = vld [vmem:[#allocation10_spill] sm:$0xff] }
 0x386   : > { %v19506_v4 = vadd.f32 %v6357_v1, %v19319_v28  ;;  %v14934_v16 = vpop.f32.mrf.mxu0  ;;  %v8550_v28 = vmul.f32 %v8518_v33, %v22142_v34  ;;  %v8552_v34 = vmul.f32 %v8520_v31, %v22144_v56  ;;  %v8553_v58 = vmul.f32 %v8521_v37, %v22231_v47  ;;  %v22232_v33 = vld [vmem:[#allocation108_spill] sm:$0xff]  ;;  %v22233_v42 = vld [vmem:[#allocation42_spill] sm:$0xff]  ;;  %v22236_v47 = vld [vmem:[#allocation87_spill] sm:$0xff] }
 0x387   : > { %v19509_v48 = vadd.f32 %v14934_v16, %v6461_v36  ;;  %v14887_v2 = vpop.f32.mrf.mxu1  ;;  %15186 = vmatmul.mubr.msk.f32.gmra.mxu1 %vm4923_vm3, %v8548_v26  ;;  %v8523_v26 = vld [vmem:[#allocation3 + $0xe2] sm:$0xff]  ;;  %v8554_v56 = vmul.f32 %v8522_v44, %v22232_v33  ;;  %v8525_v31 = vld [vmem:[#allocation3 + $0xf2] sm:$0xff]  ;;  %v8526_v44 = vld [vmem:[#allocation3 + $0xfa] sm:$0xff] }
 0x388   : > { %v6463_v57 = vadd.f32 %v14887_v2, %v19326_v49  ;;  %v19513_v38 = vpop.f32.mrf.mxu0  ;;  %15188 = vmatprep.mubr.msk.f32.mxu1 %vm4923_vm3, %v8549_v17 }
 0x389   : > { %v19516_v35 = vpop.f32.mrf.mxu1 }
 0x38a   : > { %v14937_v30 = vpop.f32.mrf.mxu0 }
 0x38b   : > { %v19520_v14 = vadd.f32 %v14937_v30, %v6463_v57  ;;  %v14890_v59 = vpop.f32.mrf.mxu1  ;;  %15189 = vmatmul.mubr.msk.f32.gmra.mxu1 %vm4923_vm3, %v8550_v28  ;;  %v8555_v57 = vmul.f32 %v8523_v26, %v22233_v42  ;;  %v8524_v28 = vld [vmem:[#allocation3 + $0xea] sm:$0xff] }
 0x38c   : > { %v6465_v49 = vadd.f32 %v14890_v59, %v19338_v52  ;;  %v19524_v62 = vpop.f32.mrf.mxu0  ;;  %15191 = vmatprep.mubr.msk.f32.mxu1 %vm4923_vm3, %v8551_v13 }
 0x38d   : > { %v19527_v41 = vpop.f32.mrf.mxu1 }
 0x38e   : > { %v14940_v7 = vpop.f32.mrf.mxu0 }
 0x38f   : > { %v19531_v36 = vadd.f32 %v14940_v7, %v6465_v49  ;;  %v14893_v1 = vpop.f32.mrf.mxu1  ;;  %15192 = vmatmul.mubr.msk.f32.gmra.mxu1 %vm4923_vm3, %v8552_v34  ;;  %v22235_v49 = vld [vmem:[#allocation86_spill] sm:$0xff] }
 0x390   : > { %v6467_v52 = vadd.f32 %v14893_v1, %v19350_v63  ;;  %v19535_v16 = vpop.f32.mrf.mxu0  ;;  %15194 = vmatprep.mubr.msk.f32.mxu1 %vm4923_vm3, %v8553_v58  ;;  %v8556_v34 = vmul.f32 %v8524_v28, %v22235_v49  ;;  %v8557_v58 = vmul.f32 %v8525_v31, %v22236_v47  ;;  %v22240_v28 = vld [vmem:[#allocation127_spill] sm:$0xff]  ;;  %v8529_v31 = vld [vmem:[#allocation3 + $0x112] sm:$0xff]  ;;  %v22242_v47 = vld [vmem:[#allocation94_spill] sm:$0xff] }
 0x391   : > { %v19538_v17 = vpop.f32.mrf.mxu1 }
 0x392   : > { %v14943_v2 = vpop.f32.mrf.mxu0 }
 0x393   : > { %v19542_v30 = vadd.f32 %v14943_v2, %v6467_v52  ;;  %v14896_v13 = vpop.f32.mrf.mxu1  ;;  %15195 = vmatmul.mubr.msk.f32.gmra.mxu1 %vm4923_vm3, %v8554_v56  ;;  %v22238_v56 = vld [vmem:[#allocation53_spill] sm:$0xff] }
 0x394   : > { %v6469_v63 = vadd.f32 %v14896_v13, %v19362_v23  ;;  %v19546_v59 = vpop.f32.mrf.mxu0  ;;  %15197 = vmatprep.mubr.msk.f32.mxu1 %vm4923_vm3, %v8555_v57  ;;  %v8558_v2 = vmul.f32 %v8526_v44, %v22238_v56  ;;  %v22239_v57 = vld [vmem:[#allocation16_spill] sm:$0xff]  ;;  %v22244_v56 = vld [vmem:[#allocation78_spill] sm:$0xff] }
 0x395   : > { %22234 = vst [vmem:[#allocation110_spill] sm:$0xff] %v19546_v59  ;;  %v19549_v37 = vpop.f32.mrf.mxu1  ;;  %v8559_v13 = vmul.f32 %v22240_v28, %v22239_v57  ;;  %v8561_v57 = vmul.f32 %v8529_v31, %v22244_v56 }
 0x396   : > { %v14946_v7 = vpop.f32.mrf.mxu0 }
 0x397   : > { %v19553_v1 = vadd.f32 %v14946_v7, %v6469_v63  ;;  %v14899_v26 = vpop.f32.mrf.mxu1  ;;  %15198 = vmatmul.mubr.msk.f32.gmra.mxu1 %vm4923_vm3, %v8556_v34 }
 0x398   : > { %v6471_v52 = vadd.f32 %v14899_v26, %v19375_v5  ;;  %v19557_v23 = vpop.f32.mrf.mxu0  ;;  %15200 = vmatprep.mubr.msk.f32.mxu1 %vm4923_vm3, %v8557_v58  ;;  %v22243_v58 = vld [vmem:[#allocation25_spill] sm:$0xff] }
 0x399   : > { %22237 = vst [vmem:[#allocation112_spill] sm:$0xff] %v19557_v23  ;;  %v19560_v33 = vpop.f32.mrf.mxu1  ;;  %v8560_v44 = vmul.f32 %v22243_v58, %v22242_v47  ;;  %v8530_v26 = vld [vmem:[#allocation3 + $0x11a] sm:$0xff] }
 0x39a   : > { %v14949_v42 = vpop.f32.mrf.mxu0 }
 0x39b   : > { %v19565_v63 = vadd.f32 %v14949_v42, %v6471_v52  ;;  %v14902_v49 = vpop.f32.mrf.mxu1  ;;  %15201 = vmatmul.mubr.msk.f32.gmra.mxu1 %vm4923_vm3, %v8558_v2 }
 0x39c   : > { %v6473_v5 = vadd.f32 %v14902_v49, %v19388_v12  ;;  %v19569_v34 = vpop.f32.mrf.mxu0  ;;  %15203 = vmatprep.mubr.msk.f32.mxu1 %vm4923_vm3, %v8559_v13  ;;  %v22246_v13 = vld [vmem:[#allocation125_spill] sm:$0xff] }
 0x39d   : > { %22241 = vst [vmem:[#allocation114_spill] sm:$0xff] %v19569_v34  ;;  %v19572_v7 = vpop.f32.mrf.mxu1  ;;  %v8562_v49 = vmul.f32 %v8530_v26, %v22246_v13 }
 0x39e   : > { %v14952_v28 = vpop.f32.mrf.mxu0 }
 0x39f   : > { %v19577_v52 = vadd.f32 %v14952_v28, %v6473_v5  ;;  %v14905_v42 = vpop.f32.mrf.mxu1  ;;  %15204 = vmatmul.mubr.msk.f32.gmra.mxu1 %vm4923_vm3, %v8560_v44 }
 0x3a0   : > { %v6475_v12 = vadd.f32 %v14905_v42, %v19402_v10  ;;  %v19581_v2 = vpop.f32.mrf.mxu0  ;;  %15206 = vmatprep.mubr.msk.f32.mxu1 %vm4923_vm3, %v8561_v57 }
 0x3a1   : > { %22245 = vst [vmem:[#allocation50_spill] sm:$0xff] %v19581_v2  ;;  %v19585_v34 = vpop.f32.mrf.mxu1 }
 0x3a2   : > { %v14955_v47 = vpop.f32.mrf.mxu0 }
 0x3a3   : > { %v19587_v58 = vadd.f32 %v14955_v47, %v6475_v12  ;;  %v14908_v31 = vpop.f32.mrf.mxu1  ;;  %15207 = vmatmul.mubr.msk.f32.gmra.mxu1 %vm4923_vm3, %v8562_v49 }
 0x3a4   : > { %v6477_v5 = vadd.f32 %v14908_v31, %v19414_v60  ;;  %v19591_v56 = vpop.f32.mrf.mxu0 }
 0x3a5   : > { %22247 = vst [vmem:[#allocation113_spill] sm:$0xff] %v19591_v56  ;;  %v19593_v44 = vpop.f32.mrf.mxu1 }
 0x3a6   : > { %22248 = vst [vmem:[#allocation111_spill] sm:$0xff] %v19593_v44  ;;  %v14958_v10 = vpop.f32.mrf.mxu0 }
 0x3a7   : > { %v19595_v28 = vadd.f32 %v14958_v10, %v6477_v5  ;;  %v14963_v57 = vpop.f32.mrf.mxu1 }
 0x3a8   : > { %v19597_v42 = vpop.f32.mrf.mxu0  ;;  %v19600_v26 = vadd.f32 %v14963_v57, %v19425_v46 }
 0x3a9   : > { %22249 = vst [vmem:[#allocation60_spill] sm:$0xff] %v19597_v42  ;;  %v19602_v12 = vpop.f32.mrf.mxu1 }
 0x3aa   : > { %v19604_v13 = vpop.f32.mrf.mxu0 }
 0x3ab   : > { %v14966_v49 = vpop.f32.mrf.mxu1 }
 0x3ac   : > { %v19607_v60 = vadd.f32 %v14966_v49, %v19437_v25  ;;  %v19609_v47 = vpop.f32.mrf.mxu0 }
 0x3ad   : > { %v19611_v31 = vpop.f32.mrf.mxu1 }
 0x3ae   : > { %v19613_v5 = vpop.f32.mrf.mxu0 }
 0x3af   : > { %v14969_v10 = vpop.f32.mrf.mxu1 }
 0x3b0   : > { %v19616_v42 = vadd.f32 %v14969_v10, %v19449_v18  ;;  %v19618_v46 = vpop.f32.mrf.mxu0 }
 0x3b1   : > { %22251 = vst [vmem:[#allocation38_spill] sm:$0xff] %v19618_v46  ;;  %v19620_v57 = vpop.f32.mrf.mxu1 }
 0x3b2   : > { %22250 = vst [vmem:[#allocation57_spill] sm:$0xff] %v19616_v42  ;;  %v19622_v56 = vpop.f32.mrf.mxu0 }
 0x3b3   : > { %22252 = vst [vmem:[#allocation67_spill] sm:$0xff] %v19622_v56  ;;  %v14972_v2 = vpop.f32.mrf.mxu1 }
 0x3b4   : > { %v19625_v25 = vadd.f32 %v14972_v2, %v19461_v19  ;;  %v19627_v49 = vpop.f32.mrf.mxu0 }
 0x3b5   : > { %22254 = vst [vmem:[#allocation116_spill] sm:$0xff] %v19627_v49  ;;  %v19629_v23 = vpop.f32.mrf.mxu1 }
 0x3b6   : > { %22253 = vst [vmem:[#allocation70_spill] sm:$0xff] %v19625_v25  ;;  %v19631_v44 = vpop.f32.mrf.mxu0 }
 0x3b7   : > { %22255 = vst [vmem:[#allocation115_spill] sm:$0xff] %v19631_v44  ;;  %v14975_v59 = vpop.f32.mrf.mxu1 }
 0x3b8   : > { %v19634_v18 = vadd.f32 %v14975_v59, %v19473_v0  ;;  %v19636_v10 = vpop.f32.mrf.mxu0 }
 0x3b9   : > { %22257 = vst [vmem:[#allocation77_spill] sm:$0xff] %v19636_v10  ;;  %v19638_v42 = vpop.f32.mrf.mxu1 }
 0x3ba   : > { %22256 = vst [vmem:[#allocation44_spill] sm:$0xff] %v19634_v18  ;;  %v19640_v46 = vpop.f32.mrf.mxu0 }
 0x3bb   : > { %22258 = vst [vmem:[#allocation119_spill] sm:$0xff] %v19640_v46  ;;  %v14978_v56 = vpop.f32.mrf.mxu1 }
 0x3bc   : > { %v19643_v19 = vadd.f32 %v14978_v56, %v19485_v9  ;;  %v19645_v2 = vpop.f32.mrf.mxu0 }
 0x3bd   : > { %22260 = vst [vmem:[#allocation130_spill] sm:$0xff] %v19645_v2  ;;  %v19647_v25 = vpop.f32.mrf.mxu1 }
 0x3be   : > { %22259 = vst [vmem:[#allocation128_spill] sm:$0xff] %v19643_v19  ;;  %v19649_v49 = vpop.f32.mrf.mxu0 }
 0x3bf   : > { %22261 = vst [vmem:[#allocation63_spill] sm:$0xff] %v19649_v49  ;;  %v14981_v44 = vpop.f32.mrf.mxu1 }
 0x3c0   : > { %v19652_v0 = vadd.f32 %v14981_v44, %v19497_v24  ;;  %v19654_v59 = vpop.f32.mrf.mxu0 }
 0x3c1   : > { %22263 = vst [vmem:[#allocation131_spill] sm:$0xff] %v19654_v59  ;;  %v19656_v18 = vpop.f32.mrf.mxu1 }
 0x3c2   : > { %22262 = vst [vmem:[#allocation129_spill] sm:$0xff] %v19652_v0  ;;  %22264 = vst [vmem:[#allocation133_spill] sm:$0xff] %v19656_v18  ;;  %v19658_v10 = vpop.f32.mrf.mxu0 }
 0x3c3   : > { %22265 = vst [vmem:[#allocation136_spill] sm:$0xff] %v19658_v10  ;;  %v14984_v46 = vpop.f32.mrf.mxu1 }
 0x3c4   : > { %v19661_v9 = vadd.f32 %v14984_v46, %v19509_v48  ;;  %v19663_v56 = vpop.f32.mrf.mxu0 }
 0x3c5   : > { %22267 = vst [vmem:[#allocation135_spill] sm:$0xff] %v19663_v56  ;;  %v19665_v19 = vpop.f32.mrf.mxu1 }
 0x3c6   : > { %22266 = vst [vmem:[#allocation66_spill] sm:$0xff] %v19661_v9  ;;  %22268 = vst [vmem:[#allocation137_spill] sm:$0xff] %v19665_v19  ;;  %v19667_v2 = vpop.f32.mrf.mxu0 }
 0x3c7   : > { %22269 = vst [vmem:[#allocation80_spill] sm:$0xff] %v19667_v2  ;;  %v14987_v49 = vpop.f32.mrf.mxu1 }
 0x3c8   : > { %v19670_v24 = vadd.f32 %v14987_v49, %v19520_v14  ;;  %v19672_v44 = vpop.f32.mrf.mxu0 }
 0x3c9   : > { %22271 = vst [vmem:[#allocation81_spill] sm:$0xff] %v19672_v44  ;;  %v19674_v0 = vpop.f32.mrf.mxu1 }
 0x3ca   : > { %22270 = vst [vmem:[#allocation40_spill] sm:$0xff] %v19670_v24  ;;  %22272 = vst [vmem:[#allocation30_spill] sm:$0xff] %v19674_v0  ;;  %v19676_v18 = vpop.f32.mrf.mxu0 }
 0x3cb   : > { %22273 = vst [vmem:[#allocation27_spill] sm:$0xff] %v19676_v18  ;;  %v14990_v10 = vpop.f32.mrf.mxu1 }
 0x3cc   : > { %v19679_v48 = vadd.f32 %v14990_v10, %v19531_v36  ;;  %v19681_v46 = vpop.f32.mrf.mxu0 }
 0x3cd   : > { %22275 = vst [vmem:[#allocation62_spill] sm:$0xff] %v19681_v46  ;;  %v19683_v9 = vpop.f32.mrf.mxu1 }
 0x3ce   : > { %22274 = vst [vmem:[#allocation36_spill] sm:$0xff] %v19679_v48  ;;  %22276 = vst [vmem:[#allocation59_spill] sm:$0xff] %v19683_v9  ;;  %v19685_v56 = vpop.f32.mrf.mxu0 }
 0x3cf   : > { %22277 = vst [vmem:[#allocation83_spill] sm:$0xff] %v19685_v56  ;;  %v14993_v2 = vpop.f32.mrf.mxu1 }
 0x3d0   : > { %v19688_v14 = vadd.f32 %v14993_v2, %v19542_v30  ;;  %v19690_v49 = vpop.f32.mrf.mxu0 }
 0x3d1   : > { %22279 = vst [vmem:[#allocation33_spill] sm:$0xff] %v19690_v49  ;;  %v19692_v24 = vpop.f32.mrf.mxu1 }
 0x3d2   : > { %22278 = vst [vmem:[#allocation84_spill] sm:$0xff] %v19688_v14  ;;  %22280 = vst [vmem:[#allocation126_spill] sm:$0xff] %v19692_v24  ;;  %v19694_v44 = vpop.f32.mrf.mxu0 }
 0x3d3   : > { %22281 = vst [vmem:[#allocation22_spill] sm:$0xff] %v19694_v44  ;;  %v14996_v18 = vpop.f32.mrf.mxu1 }
 0x3d4   : > { %v19697_v36 = vadd.f32 %v14996_v18, %v19553_v1  ;;  %v19699_v10 = vpop.f32.mrf.mxu0 }
 0x3d5   : > { %22283 = vst [vmem:[#allocation79_spill] sm:$0xff] %v19699_v10  ;;  %v19701_v48 = vpop.f32.mrf.mxu1 }
 0x3d6   : > { %22282 = vst [vmem:[#allocation96_spill] sm:$0xff] %v19697_v36  ;;  %22284 = vst [vmem:[#allocation43_spill] sm:$0xff] %v19701_v48  ;;  %v19703_v9 = vpop.f32.mrf.mxu0 }
 0x3d7   : > { %22285 = vst [vmem:[#allocation58_spill] sm:$0xff] %v19703_v9  ;;  %v14999_v56 = vpop.f32.mrf.mxu1 }
 0x3d8   : > { %v19706_v30 = vadd.f32 %v14999_v56, %v19565_v63  ;;  %v19708_v2 = vpop.f32.mrf.mxu0 }
 0x3d9   : > { %22287 = vst [vmem:[#allocation85_spill] sm:$0xff] %v19708_v2  ;;  %v19710_v14 = vpop.f32.mrf.mxu1 }
 0x3da   : > { %22286 = vst [vmem:[#allocation41_spill] sm:$0xff] %v19706_v30  ;;  %22288 = vst [vmem:[#allocation8_spill] sm:$0xff] %v19710_v14  ;;  %v19712_v24 = vpop.f32.mrf.mxu0 }
 0x3db   : > { %22289 = vst [vmem:[#allocation21_spill] sm:$0xff] %v19712_v24  ;;  %v15002_v44 = vpop.f32.mrf.mxu1 }
 0x3dc   : > { %v19715_v1 = vadd.f32 %v15002_v44, %v19577_v52  ;;  %v19717_v18 = vpop.f32.mrf.mxu0 }
 0x3dd   : > { %22291 = vst [vmem:[#allocation69_spill] sm:$0xff] %v19717_v18  ;;  %v19719_v36 = vpop.f32.mrf.mxu1 }
 0x3de   : > { %22290 = vst [vmem:[#allocation124_spill] sm:$0xff] %v19715_v1  ;;  %22292 = vst [vmem:[#allocation93_spill] sm:$0xff] %v19719_v36  ;;  %v19721_v48 = vpop.f32.mrf.mxu0 }
 0x3df   : > { %22293 = vst [vmem:[#allocation90_spill] sm:$0xff] %v19721_v48  ;;  %v15005_v9 = vpop.f32.mrf.mxu1 }
 0x3e0   : > { %v19724_v63 = vadd.f32 %v15005_v9, %v19587_v58  ;;  %v19726_v56 = vpop.f32.mrf.mxu0 }
 0x3e1   : > { %22295 = vst [vmem:[#allocation37_spill] sm:$0xff] %v19726_v56  ;;  %v19728_v30 = vpop.f32.mrf.mxu1 }
 0x3e2   : > { %22294 = vst [vmem:[#allocation47_spill] sm:$0xff] %v19724_v63  ;;  %22296 = vst [vmem:[#allocation121_spill] sm:$0xff] %v19728_v30  ;;  %v19730_v14 = vpop.f32.mrf.mxu0 }
 0x3e3   : > { %22297 = vst [vmem:[#allocation20_spill] sm:$0xff] %v19730_v14  ;;  %v15008_v24 = vpop.f32.mrf.mxu1 }
 0x3e4   : > { %v19733_v52 = vadd.f32 %v15008_v24, %v19595_v28  ;;  %v19735_v44 = vpop.f32.mrf.mxu0 }
 0x3e5   : > { %22299 = vst [vmem:[#allocation12_spill] sm:$0xff] %v19735_v44  ;;  %v19737_v1 = vpop.f32.mrf.mxu1 }
 0x3e6   : > { %22298 = vst [vmem:[#allocation39_spill] sm:$0xff] %v19733_v52  ;;  %22300 = vst [vmem:[#allocation100_spill] sm:$0xff] %v19737_v1  ;;  %v19739_v18 = vpop.f32.mrf.mxu0 }
 0x3e7   : > { %22301 = vst [vmem:[#allocation68_spill] sm:$0xff] %v19739_v18  ;;  %v19741_v48 = vpop.f32.mrf.mxu1 }
 0x3e8   : > { %v19743_v58 = vpop.f32.mrf.mxu0 }
 0x3e9   : > { %22302 = vst [vmem:[#allocation45_spill] sm:$0xff] %v19743_v58  ;;  %v19745_v9 = vpop.f32.mrf.mxu1 }
 0x3ea   : > { %v19747_v63 = vpop.f32.mrf.mxu0 }
 0x3eb   : > { %v19749_v30 = vpop.f32.mrf.mxu1 }
 0x3ec   : > { %v19751_v14 = vpop.f32.mrf.mxu0 }
 0x3ed   : > { %v19753_v28 = vpop.f32.mrf.mxu1 }
 0x3ee   : > { %v19755_v24 = vpop.f32.mrf.mxu0 }
 0x3ef   : > { %v19757_v52 = vpop.f32.mrf.mxu1 }
 0x3f0   : > { %v19759_v1 = vpop.f32.mrf.mxu0 }
 0x3f1   : > { %22303 = vst [vmem:[#allocation51_spill] sm:$0xff] %v19759_v1  ;;  %v19761_v18 = vpop.f32.mrf.mxu1 }
 0x3f2   : > { %22304 = vst [vmem:[#allocation48_spill] sm:$0xff] %v19761_v18  ;;  %v19765_v58 = vpop.f32.mrf.mxu0  ;;  %v22344_v18 = vld [vmem:[#allocation99_spill] sm:$0xff] }
 0x3f3   : > { %v19763_v44 = vpop.f32.mrf.mxu1  ;;  %22306 = vst [vmem:[#allocation23_spill] sm:$0xff] %v19765_v58 }
 0x3f4   : > { %22305 = vst [vmem:[#allocation134_spill] sm:$0xff] %v19763_v44  ;;  %v19771_v2 = vpop.f32.mrf.mxu0 }
 0x3f5   : > { %v19767_v56 = vpop.f32.mrf.mxu1  ;;  %22309 = vst [vmem:[#allocation49_spill] sm:$0xff] %v19771_v2 }
 0x3f6   : > { %22307 = vst [vmem:[#allocation11_spill] sm:$0xff] %v19767_v56  ;;  %v19777_v46 = vpop.f32.mrf.mxu0 }
 0x3f7   : > { %v19769_v36 = vpop.f32.mrf.mxu1  ;;  %22312 = vst [vmem:[#allocation61_spill] sm:$0xff] %v19777_v46 }
 0x3f8   : > { %22308 = vst [vmem:[#allocation132_spill] sm:$0xff] %v19769_v36  ;;  %v19783_v59 = vpop.f32.mrf.mxu0 }
 0x3f9   : > { %v19773_v10 = vpop.f32.mrf.mxu1  ;;  %22315 = vst [vmem:[#allocation120_spill] sm:$0xff] %v19783_v59 }
 0x3fa   : > { %22310 = vst [vmem:[#allocation54_spill] sm:$0xff] %v19773_v10  ;;  %v19789_v56 = vpop.f32.mrf.mxu0 }
 0x3fb   : > { %v19775_v49 = vpop.f32.mrf.mxu1  ;;  %22318 = vst [vmem:[#allocation72_spill] sm:$0xff] %v19789_v56 }
 0x3fc   : > { %22311 = vst [vmem:[#allocation91_spill] sm:$0xff] %v19775_v49  ;;  %v19795_v10 = vpop.f32.mrf.mxu0 }
 0x3fd   : > { %v19779_v0 = vpop.f32.mrf.mxu1  ;;  %22321 = vst [vmem:[#allocation122_spill] sm:$0xff] %v19795_v10  ;;  %v22332_v10 = vld [vmem:[#allocation18_spill] sm:$0xff] }
 0x3fe   : > { %22313 = vst [vmem:[#allocation65_spill] sm:$0xff] %v19779_v0  ;;  %v19801_v0 = vpop.f32.mrf.mxu0 }
 0x3ff   : > { %v19781_v19 = vpop.f32.mrf.mxu1  ;;  %22324 = vst [vmem:[#allocation24_spill] sm:$0xff] %v19801_v0 }
 0x400   : > { %22314 = vst [vmem:[#allocation26_spill] sm:$0xff] %v19781_v19 }
 0x401   : > { %v19785_v44 = vpop.f32.mrf.mxu1 }
 0x402   : > { %22316 = vst [vmem:[#allocation64_spill] sm:$0xff] %v19785_v44  ;;  %v19807_v44 = vpop.f32.mrf.mxu0 }
 0x403   : > { %v19787_v58 = vpop.f32.mrf.mxu1  ;;  %22327 = vst [vmem:[#allocation29_spill] sm:$0xff] %v19807_v44 }
 0x404   : > { %22317 = vst [vmem:[#allocation14_spill] sm:$0xff] %v19787_v58 }
 0x405   : > { %v19791_v36 = vpop.f32.mrf.mxu1 }
 0x406   : > { %22319 = vst [vmem:[#allocation28_spill] sm:$0xff] %v19791_v36  ;;  %v19813_v36 = vpop.f32.mrf.mxu0 }
 0x407   : > { %v19793_v2 = vpop.f32.mrf.mxu1  ;;  %22330 = vst [vmem:[#allocation74_spill] sm:$0xff] %v19813_v36 }
 0x408   : > { %22320 = vst [vmem:[#allocation82_spill] sm:$0xff] %v19793_v2 }
 0x409   : > { %v19797_v49 = vpop.f32.mrf.mxu1 }
 0x40a   : > { %22322 = vst [vmem:[#allocation97_spill] sm:$0xff] %v19797_v49  ;;  %v22333_v49 = vld [vmem:[#allocation98_spill] sm:$0xff] }
 0x40b   : > { %v19799_v46 = vpop.f32.mrf.mxu1  ;;  %v5743_v1 = vadd.f32 %v22333_v49, %v22332_v10  ;;  %v22339_v49 = vld [vmem:[#allocation17_spill] sm:$0xff] }
 0x40c   : > { %22323 = vst [vmem:[#allocation76_spill] sm:$0xff] %v19799_v46  ;;  %v5823_v10 = vadd.f32 %v22339_v49, %v19321_v50  ;;  %v22345_v50 = vld [vmem:[#allocation104_spill] sm:$0xff]  ;;  %v22346_v49 = vld [vmem:[#allocation109_spill] sm:$0xff] }
 0x40d   : > { %v19803_v19 = vpop.f32.mrf.mxu1  ;;  %v6446_v0 = vadd.f32 %v19421_v40, %v5743_v1 }
 0x40e   : > { %22325 = vst [vmem:[#allocation35_spill] sm:$0xff] %v19803_v19  ;;  %v19822_v19 = vpop.f32.mrf.mxu0 }
 0x40f   : > { %v19805_v59 = vpop.f32.mrf.mxu1  ;;  %22335 = vst [vmem:[#allocation9_spill] sm:$0xff] %v19822_v19  ;;  %v22343_v19 = vld [vmem:[#allocation101_spill] sm:$0xff] }
 0x410   : > { %22326 = vst [vmem:[#allocation31_spill] sm:$0xff] %v19805_v59  ;;  %v5853_v36 = vadd.f32 %v19366_v3, %v22343_v19  ;;  %v6867_v3 = vadd.f32 %v19453_v32, %v19446_v61  ;;  %v6871_v19 = vadd.f32 %v19477_v22, %v19470_v27  ;;  %v6875_v27 = vadd.f32 %v19501_v11, %v19494_v15 }
 0x411   : > { %v19809_v58 = vpop.f32.mrf.mxu1  ;;  %v19882_v22 = vadd.f32 %v19513_v38, %v19506_v4  ;;  %v22349_v38 = vld [vmem:[#allocation110_spill] sm:$0xff] }
 0x412   : > { %22328 = vst [vmem:[#allocation56_spill] sm:$0xff] %v19809_v58  ;;  %v6863_v58 = vadd.f32 %v19429_v39, %v6446_v0  ;;  %v5863_v39 = vadd.f32 %v19379_v51, %v22344_v18  ;;  %v6869_v51 = vadd.f32 %v19465_v8, %v19458_v43  ;;  %v6468_v43 = vadd.f32 %v19549_v37, %v5853_v36 }
 0x413   : > { %v19811_v56 = vpop.f32.mrf.mxu1 }
 0x414   : > { %22329 = vst [vmem:[#allocation52_spill] sm:$0xff] %v19811_v56  ;;  %v9025_v56 = vld [vmem:[%s21297_s15 + $0x8] sm:$0xff]  ;;  %v7248_v0 = vadd.f32 %v19602_v12, %v6863_v58  ;;  %v6462_v12 = vadd.f32 %v19516_v35, %v5823_v10  ;;  %v22356_v10 = vld [vmem:[#allocation67_spill] sm:$0xff] }
 0x415   : > { %v19815_v2 = vpop.f32.mrf.mxu1  ;;  %9330 = vmatprep.mubr.f32.mxu0 %v9025_v56  ;;  %v5873_v56 = vadd.f32 %v19393_v45, %v19382_v54  ;;  %v7666_v54 = vadd.f32 %v19604_v13, %v19600_v26  ;;  %v7668_v13 = vadd.f32 %v19613_v5, %v19607_v60  ;;  %v22352_v60 = vld [vmem:[#allocation38_spill] sm:$0xff] }
 0x416   : > { %22331 = vst [vmem:[#allocation75_spill] sm:$0xff] %v19815_v2  ;;  %v19832_v2 = vpop.f32.mrf.mxu0  ;;  %v7665_v8 = vadd.f32 %v19609_v47, %v7248_v0 }
 0x417   : > { %v19819_v46 = vpop.f32.mrf.mxu1  ;;  %22338 = vst [vmem:[#allocation105_spill] sm:$0xff] %v19832_v2  ;;  %v5883_v2 = vadd.f32 %v22346_v49, %v22345_v50  ;;  %v8083_v26 = vadd.f32 %v19741_v48, %v7666_v54  ;;  %v22360_v54 = vld [vmem:[#allocation70_spill] sm:$0xff] }
 0x418   : > { %22334 = vst [vmem:[#allocation89_spill] sm:$0xff] %v19819_v46  ;;  %v22340_v46 = vld [vmem:[#allocation103_spill] sm:$0xff]  ;;  %v19864_v45 = vpop.f32.mrf.mxu0  ;;  %v8082_v15 = vadd.f32 %v19745_v9, %v7665_v8  ;;  %v22355_v9 = vld [vmem:[#allocation57_spill] sm:$0xff] }
 0x419   : > { %v19824_v59 = vpop.f32.mrf.mxu1  ;;  %v5833_v40 = vadd.f32 %v19342_v20, %v22340_v46  ;;  %v22347_v20 = vld [vmem:[#allocation34_spill] sm:$0xff]  ;;  %v6474_v37 = vadd.f32 %v19585_v34, %v5883_v2  ;;  %v22351_v34 = vld [vmem:[#allocation112_spill] sm:$0xff]  ;;  %v8468_v36 = vadd.f32 %v19747_v63, %v8083_v26  ;;  %v8085_v2 = vadd.f32 %v19749_v30, %v7668_v13  ;;  %v22357_v63 = vld [vmem:[#allocation113_spill] sm:$0xff] }
 0x41a   : > { %22336 = vst [vmem:[#allocation15_spill] sm:$0xff] %v19824_v59  ;;  %v22342_v59 = vld [vmem:[#allocation32_spill] sm:$0xff]  ;;  %v22348_v46 = vld [vmem:[#allocation106_spill] sm:$0xff]  ;;  %v19895_v11 = vpop.f32.mrf.mxu0  ;;  %v19908_v48 = vadd.f32 %v22351_v34, %v6468_v43  ;;  %v8467_v30 = vadd.f32 %v19751_v14, %v8082_v15  ;;  %v22366_v15 = vld [vmem:[#allocation51_spill] sm:$0xff] }
 0x41b   : > { %v19826_v44 = vpop.f32.mrf.mxu1  ;;  %v19928_v0 = vadd.f32 %v22357_v63, %v6474_v37  ;;  %v22367_v34 = vld [vmem:[#allocation130_spill] sm:$0xff]  ;;  %v22372_v63 = vld [vmem:[#allocation131_spill] sm:$0xff] }
 0x41c   : > { %22337 = vst [vmem:[#allocation95_spill] sm:$0xff] %v19826_v44  ;;  %v5843_v44 = vadd.f32 %v19354_v6, %v22342_v59  ;;  %v6865_v6 = vadd.f32 %v19441_v53, %v19434_v55  ;;  %v6873_v55 = vadd.f32 %v19489_v21, %v19482_v29  ;;  %v6464_v53 = vadd.f32 %v19527_v41, %v5833_v40  ;;  %v19932_v50 = vpop.f32.mrf.mxu0 }
 0x41d   : > { %v19838_v1 = vpop.f32.mrf.mxu1  ;;  %v6470_v29 = vadd.f32 %v19560_v33, %v5863_v39  ;;  %v6472_v21 = vadd.f32 %v19572_v7, %v5873_v56  ;;  %v22350_v7 = vld [vmem:[#allocation111_spill] sm:$0xff]  ;;  %v7254_v40 = vadd.f32 %v19629_v23, %v6869_v51  ;;  %v22359_v23 = vld [vmem:[#allocation116_spill] sm:$0xff] }
 0x41e   : > { %22341 = vst [vmem:[#allocation107_spill] sm:$0xff] %v19838_v1  ;;  %v5893_v1 = vadd.f32 %v22348_v46, %v22347_v20  ;;  %v6466_v61 = vadd.f32 %v19538_v17, %v5843_v44  ;;  %v7250_v35 = vadd.f32 %v19611_v31, %v6865_v6  ;;  %v19889_v17 = vadd.f32 %v19524_v62, %v6462_v12  ;;  %v22354_v44 = vld [vmem:[#allocation50_spill] sm:$0xff]  ;;  %v22358_v20 = vld [vmem:[#allocation60_spill] sm:$0xff]  ;;  %v19943_v12 = vld [vmem:[%s21288_s6] ss:$0 sm:$0xff] }
 0x41f   : > { %v19855_v59 = vpop.f32.mrf.mxu1  ;;  %v19898_v4 = vadd.f32 %v19535_v16, %v6464_v53  ;;  %v7252_v62 = vadd.f32 %v19620_v57, %v6867_v3  ;;  %v22353_v16 = vld [vmem:[#allocation114_spill] sm:$0xff]  ;;  %v19917_v58 = vadd.f32 %v22354_v44, %v6472_v21  ;;  %v7670_v57 = vadd.f32 %v22356_v10, %v22355_v9  ;;  %v22365_v21 = vld [vmem:[#allocation48_spill] sm:$0xff] }
 0x420   : > { %v19901_v33 = vadd.f32 %v22349_v38, %v6466_v61  ;;  %v6476_v47 = vadd.f32 %v22350_v7, %v5893_v1  ;;  %v7667_v5 = vadd.f32 %v22352_v60, %v7250_v35  ;;  %v19914_v18 = vadd.f32 %v22353_v16, %v6470_v29  ;;  %v19925_v1 = vld [vmem:[%s21287_s5] ss:$0 sm:$0xff]  ;;  %v22363_v29 = vld [vmem:[#allocation44_spill] sm:$0xff]  ;;  %v19955_v7 = vpop.f32.mrf.mxu0  ;;  %v22370_v16 = vld [vmem:[#allocation23_spill] sm:$0xff] }
 0x421   : > { %v19872_v32 = vpop.f32.mrf.mxu1  ;;  %v7669_v6 = vadd.f32 %v22359_v23, %v7252_v62  ;;  %v7256_v3 = vadd.f32 %v19638_v42, %v6871_v19  ;;  %v8087_v51 = vadd.f32 %v19757_v52, %v7670_v57  ;;  %v8470_v61 = vadd.f32 %v19755_v24, %v8085_v2  ;;  %v22362_v35 = vld [vmem:[#allocation77_spill] sm:$0xff]  ;;  %v22364_v42 = vld [vmem:[#allocation119_spill] sm:$0xff] }
 0x422   : > { %v8084_v56 = vadd.f32 %v19753_v28, %v7667_v5  ;;  %v19935_v46 = vadd.f32 %v22358_v20, %v6476_v47  ;;  %v22361_v28 = vld [vmem:[#allocation115_spill] sm:$0xff]  ;;  %v7671_v26 = vadd.f32 %v22362_v35, %v7254_v40  ;;  %v7674_v19 = vadd.f32 %v22364_v42, %v22363_v29  ;;  %v22368_v5 = vld [vmem:[#allocation128_spill] sm:$0xff]  ;;  %v22374_v20 = vld [vmem:[#allocation49_spill] sm:$0xff] }
 0x423   : > { %v19886_v41 = vpop.f32.mrf.mxu1  ;;  %v7672_v53 = vadd.f32 %v22361_v28, %v22360_v54  ;;  %v7258_v52 = vadd.f32 %v19647_v25, %v6873_v55  ;;  %v8086_v37 = vadd.f32 %v22365_v21, %v7669_v6  ;;  %v7673_v60 = vadd.f32 %v22367_v34, %v7256_v3  ;;  %v22371_v55 = vld [vmem:[#allocation134_spill] sm:$0xff]  ;;  %v22375_v6 = vld [vmem:[#allocation11_spill] sm:$0xff]  ;;  %v22378_v35 = vld [vmem:[#allocation137_spill] sm:$0xff] }
 0x424   : > { %v8469_v38 = vadd.f32 %v22366_v15, %v8084_v56  ;;  %v8472_v25 = vadd.f32 %v22370_v16, %v8087_v51  ;;  %v22373_v56 = vld [vmem:[#allocation133_spill] sm:$0xff]  ;;  %v8088_v3 = vadd.f32 %v22375_v6, %v7671_v26  ;;  %v7262_v26 = vadd.f32 %v22378_v35, %v19882_v22  ;;  %v22384_v16 = vld [vmem:[#allocation30_spill] sm:$0xff] }
 0x425   : > { %v19905_v31 = vpop.f32.mrf.mxu1  ;;  %v8089_v44 = vadd.f32 %v22371_v55, %v7672_v53  ;;  %v8471_v23 = vadd.f32 %v22374_v20, %v8086_v37  ;;  %v22379_v29 = vld [vmem:[#allocation61_spill] sm:$0xff] }
 0x427   : > { %v15163_v39 = vpop.f32.mrf.mxu1  ;;  %v8474_v42 = vadd.f32 %v22379_v29, %v8089_v44  ;;  %v22390_v29 = vld [vmem:[#allocation40_spill] sm:$0xff] }
 0x428   : > { %v8885_v49 = vadd.f32 %v15163_v39, %v8468_v36  ;;  %v22369_v36 = vld [vmem:[#allocation63_spill] sm:$0xff] }
 0x429   : > { %v8725_v14 = vpop.f32.mrf.mxu1  ;;  %v7676_v2 = vadd.f32 %v22369_v36, %v22368_v5  ;;  %v22382_v5 = vld [vmem:[#allocation66_spill] sm:$0xff]  ;;  %v22383_v36 = vld [vmem:[#allocation80_spill] sm:$0xff] }
 0x42a   : > { %v8923_v43 = vmul.f32 %v19925_v1, %v8885_v49  ;;  %v8884_v8 = vadd.f32 %v8725_v14, %v8467_v30  ;;  %v7675_v30 = vadd.f32 %v22372_v63, %v7258_v52  ;;  %v7260_v49 = vadd.f32 %v22373_v56, %v6875_v27  ;;  %v19975_v14 = vpop.f32.mrf.mxu0  ;;  %v22376_v27 = vld [vmem:[#allocation129_spill] sm:$0xff]  ;;  %v22380_v52 = vld [vmem:[#allocation132_spill] sm:$0xff] }
 0x42b   : > { %v15166_v13 = vpop.f32.mrf.mxu1  ;;  %v8091_v21 = vadd.f32 %v22380_v52, %v7674_v19  ;;  %v7680_v22 = vadd.f32 %v22383_v36, %v22382_v5  ;;  %v22385_v19 = vld [vmem:[#allocation120_spill] sm:$0xff]  ;;  %v22386_v56 = vld [vmem:[#allocation81_spill] sm:$0xff] }
 0x42c   : > { %v19958_v47 = vadd.f32 %v19943_v12, %v8923_v43  ;;  %v8922_v24 = vmul.f32 %v19925_v1, %v8884_v8  ;;  %v8887_v62 = vadd.f32 %v15166_v13, %v8470_v61  ;;  %v22377_v43 = vld [vmem:[#allocation136_spill] sm:$0xff]  ;;  %v8473_v55 = vadd.f32 %v22385_v19, %v8088_v3  ;;  %v22389_v3 = vld [vmem:[#allocation91_spill] sm:$0xff] }
 0x42d   : > { %v8735_v9 = vpop.f32.mrf.mxu1  ;;  %v7678_v8 = vadd.f32 %v22377_v43, %v22376_v27 }
 0x42e   : > { %v8993_v10 = vmax.f32 %v19958_v47, 0.0  ;;  %v19968_v57 = vadd.f32 %v19943_v12, %v8922_v24  ;;  %v8925_v40 = vmul.f32 %v19925_v1, %v8887_v62  ;;  %v8886_v39 = vadd.f32 %v8735_v9, %v8469_v38  ;;  %v22381_v62 = vld [vmem:[#allocation135_spill] sm:$0xff]  ;;  %v20003_v9 = vpop.f32.mrf.mxu0  ;;  %v22411_v47 = vld [vmem:[#allocation9_spill] sm:$0xff] }
 0x42f   : > { %v15169_v51 = vpop.f32.mrf.mxu1  ;;  %v7677_v34 = vadd.f32 %v22381_v62, %v7260_v49  ;;  %v7679_v49 = vadd.f32 %v22386_v56, %v7262_v26  ;;  %v22399_v56 = vld [vmem:[#allocation26_spill] sm:$0xff] }
 0x430   : > { %9075 = vst.msk [vmem:[#allocation4 + $0x8] sm:$0xff] %vm4923_vm3, %v8993_v10  ;;  %v8992_v54 = vmax.f32 %v19968_v57, 0.0  ;;  %v19982_v28 = vadd.f32 %v19943_v12, %v8925_v40  ;;  %v8924_v53 = vmul.f32 %v19925_v1, %v8886_v39  ;;  %v8889_v61 = vadd.f32 %v15169_v51, %v8472_v25 }
 0x431   : > { %v8745_v37 = vpop.f32.mrf.mxu1  ;;  %v7264_v25 = vadd.f32 %v22384_v16, %v19889_v17  ;;  %v22387_v17 = vld [vmem:[#allocation54_spill] sm:$0xff]  ;;  %v8093_v51 = vadd.f32 %v22389_v3, %v7676_v2  ;;  %v22393_v2 = vld [vmem:[#allocation59_spill] sm:$0xff] }
 0x432   : > { %9074 = vst.msk [vmem:[#allocation4] sm:$0xff] %vm4923_vm3, %v8992_v54  ;;  %v8995_v13 = vmax.f32 %v19982_v28, 0.0  ;;  %v19994_v15 = vadd.f32 %v19943_v12, %v8924_v53  ;;  %v8927_v38 = vmul.f32 %v19925_v1, %v8889_v61  ;;  %v8888_v24 = vadd.f32 %v8745_v37, %v8471_v23  ;;  %v22388_v23 = vld [vmem:[#allocation72_spill] sm:$0xff]  ;;  %v22394_v37 = vld [vmem:[#allocation65_spill] sm:$0xff] }
 0x433   : > { %v15172_v44 = vpop.f32.mrf.mxu1  ;;  %v8090_v20 = vadd.f32 %v22387_v17, %v7673_v60  ;;  %v8476_v6 = vadd.f32 %v22388_v23, %v8091_v21  ;;  %v22392_v60 = vld [vmem:[#allocation62_spill] sm:$0xff]  ;;  %v7266_v21 = vadd.f32 %v22393_v2, %v19898_v4  ;;  %v8095_v17 = vadd.f32 %v22399_v56, %v7678_v8  ;;  %v22417_v28 = vld [vmem:[#allocation85_spill] sm:$0xff] }
 0x434   : > { %9077 = vst.msk [vmem:[#allocation4 + $0x18] sm:$0xff] %vm4923_vm3, %v8995_v13  ;;  %v8994_v57 = vmax.f32 %v19994_v15, 0.0  ;;  %v20010_v40 = vadd.f32 %v19943_v12, %v8927_v38  ;;  %v8926_v39 = vmul.f32 %v19925_v1, %v8888_v24  ;;  %v8891_v63 = vadd.f32 %v15172_v44, %v8474_v42  ;;  %v22391_v42 = vld [vmem:[#allocation27_spill] sm:$0xff]  ;;  %v20033_v24 = vpop.f32.mrf.mxu0  ;;  %v9409_v4 = vld [vmem:[%s21289_s7 + $0x8] sm:$0xff] }
 0x435   : > { %v8755_v53 = vpop.f32.mrf.mxu1  ;;  %v20025_v26 = vadd.f32 %v22391_v42, %v22390_v29  ;;  %v20028_v52 = vadd.f32 %v22392_v60, %v7264_v25  ;;  %v8092_v15 = vadd.f32 %v22394_v37, %v7675_v30  ;;  %v22395_v30 = vld [vmem:[#allocation36_spill] sm:$0xff]  ;;  %v22396_v25 = vld [vmem:[#allocation83_spill] sm:$0xff]  ;;  %15209 = vmatprep.subr.mxu1 %v9409_v4  ;;  %v22401_v8 = vld [vmem:[#allocation126_spill] sm:$0xff] }
 0x436   : > { %9076 = vst.msk [vmem:[#allocation4 + $0x10] sm:$0xff] %vm4923_vm3, %v8994_v57  ;;  %v8997_v61 = vmax.f32 %v20010_v40, 0.0  ;;  %v20020_v27 = vadd.f32 %v19943_v12, %v8926_v39  ;;  %v8929_v43 = vmul.f32 %v19925_v1, %v8891_v63  ;;  %v8890_v35 = vadd.f32 %v8755_v53, %v8473_v55  ;;  %v22397_v55 = vld [vmem:[#allocation122_spill] sm:$0xff]  ;;  %v22398_v39 = vld [vmem:[#allocation24_spill] sm:$0xff]  ;;  %15210 = vmatpush3.msra.mxu1 %v9409_v4  ;;  %v22404_v37 = vld [vmem:[#allocation29_spill] sm:$0xff] }
 0x437   : > { %v15175_v38 = vpop.f32.mrf.mxu1  ;;  %v20048_v19 = vadd.f32 %v22396_v25, %v22395_v30  ;;  %v8475_v44 = vadd.f32 %v22397_v55, %v8090_v20  ;;  %v8478_v63 = vadd.f32 %v22398_v39, %v8093_v51  ;;  %v22400_v20 = vld [vmem:[#allocation33_spill] sm:$0xff]  ;;  %v7268_v51 = vadd.f32 %v22401_v8, %v19901_v33  ;;  %v22402_v29 = vld [vmem:[#allocation84_spill] sm:$0xff]  ;;  %v22403_v42 = vld [vmem:[#allocation22_spill] sm:$0xff]  ;;  %v20071_v30 = vpop.f32.mrf.mxu0 }
 0x438   : > { %9079 = vst.msk [vmem:[#allocation4 + $0x28] sm:$0xff] %vm4923_vm3, %v8997_v61  ;;  %v8996_v62 = vmax.f32 %v20020_v27, 0.0  ;;  %v20040_v5 = vadd.f32 %v19943_v12, %v8929_v43  ;;  %v8928_v36 = vmul.f32 %v19925_v1, %v8890_v35  ;;  %v8893_v16 = vadd.f32 %v15175_v38, %v8476_v6  ;;  %v22406_v25 = vld [vmem:[#allocation74_spill] sm:$0xff]  ;;  %v22408_v8 = vld [vmem:[#allocation79_spill] sm:$0xff] }
 0x439   : > { %v9106_v23 = vld [vmem:[#allocation4 + $0x1] sm:$0xff]  ;;  %v8765_v3 = vpop.f32.mrf.mxu1  ;;  %v20062_v35 = vadd.f32 %v22400_v20, %v7266_v21  ;;  %v8477_v38 = vadd.f32 %v22404_v37, %v8092_v15  ;;  %v8480_v55 = vadd.f32 %v22406_v25, %v8095_v17  ;;  %v22407_v15 = vld [vmem:[#allocation14_spill] sm:$0xff]  ;;  %v20104_v37 = vpop.f32.mrf.mxu0 }
 0x43a   : > { %v20053_v53 = vmax.f32 %v8992_v54, %v9106_v23  ;;  %9078 = vst.msk [vmem:[#allocation4 + $0x20] sm:$0xff] %vm4923_vm3, %v8996_v62  ;;  %v8999_v6 = vmax.f32 %v20040_v5, 0.0  ;;  %v20058_v27 = vadd.f32 %v19943_v12, %v8928_v36  ;;  %v8931_v43 = vmul.f32 %v19925_v1, %v8893_v16  ;;  %v22405_v16 = vld [vmem:[#allocation64_spill] sm:$0xff]  ;;  %v22422_v40 = vld [vmem:[#allocation35_spill] sm:$0xff] }
 0x43b   : > { %v20068_v54 = vadd.f32 %v22403_v42, %v22402_v29  ;;  %v8892_v60 = vadd.f32 %v8765_v3, %v8475_v44  ;;  %v15178_v2 = vpop.f32.mrf.mxu1  ;;  %v8094_v4 = vadd.f32 %v22405_v16, %v7677_v34  ;;  %v8097_v44 = vadd.f32 %v22407_v15, %v7680_v22  ;;  %v22409_v17 = vld [vmem:[#allocation28_spill] sm:$0xff] }
 0x43c   : > { %9170 = vst.msk [vmem:[#allocation4] sm:$0xff] %vm4923_vm3, %v20053_v53  ;;  %9081 = vst.msk [vmem:[#allocation4 + $0x38] sm:$0xff] %vm4923_vm3, %v8999_v6  ;;  %v8998_v21 = vmax.f32 %v20058_v27, 0.0  ;;  %v20080_v33 = vadd.f32 %v19943_v12, %v8931_v43  ;;  %v8895_v36 = vadd.f32 %v15178_v2, %v8478_v63  ;;  %v20092_v34 = vadd.f32 %v22408_v8, %v7268_v51 }
 0x43d   : > { %v9108_v39 = vld [vmem:[#allocation4 + $0x11] sm:$0xff]  ;;  %v8930_v56 = vmul.f32 %v19925_v1, %v8892_v60  ;;  %v8775_v23 = vpop.f32.mrf.mxu1  ;;  %v9107_v3 = vld [vmem:[#allocation4 + $0x9] sm:$0xff]  ;;  %v8096_v29 = vadd.f32 %v22409_v17, %v7679_v49  ;;  %v22410_v60 = vld [vmem:[#allocation43_spill] sm:$0xff] }
 0x43e   : > { %v20086_v20 = vmax.f32 %v8994_v57, %v9108_v39  ;;  %9080 = vst.msk [vmem:[#allocation4 + $0x30] sm:$0xff] %vm4923_vm3, %v8998_v21  ;;  %v9001_v27 = vmax.f32 %v20080_v33, 0.0  ;;  %v8933_v43 = vmul.f32 %v19925_v1, %v8895_v36  ;;  %v8894_v63 = vadd.f32 %v8775_v23, %v8477_v38  ;;  %v22412_v36 = vld [vmem:[#allocation105_spill] sm:$0xff] }
 0x43f   : > { %v20096_v22 = vadd.f32 %v19943_v12, %v8930_v56  ;;  %v15181_v42 = vpop.f32.mrf.mxu1  ;;  %v20100_v57 = vmax.f32 %v8993_v10, %v9107_v3  ;;  %v7270_v2 = vadd.f32 %v22410_v60, %v19908_v48  ;;  %v8479_v10 = vadd.f32 %v22411_v47, %v8094_v4  ;;  %v22413_v48 = vld [vmem:[#allocation82_spill] sm:$0xff]  ;;  %v22418_v47 = vld [vmem:[#allocation76_spill] sm:$0xff]  ;;  %v22431_v33 = vld [vmem:[#allocation121_spill] sm:$0xff] }
 0x440   : > { %9083 = vst.msk [vmem:[#allocation4 + $0x48] sm:$0xff] %vm4923_vm3, %v9001_v27  ;;  %v20110_v51 = vadd.f32 %v19943_v12, %v8933_v43  ;;  %v8932_v49 = vmul.f32 %v19925_v1, %v8894_v63  ;;  %v8897_v38 = vadd.f32 %v15181_v42, %v8480_v55  ;;  %9172 = vst.msk [vmem:[#allocation4 + $0x10] sm:$0xff] %vm4923_vm3, %v20086_v20  ;;  %v22415_v63 = vld [vmem:[#allocation58_spill] sm:$0xff]  ;;  %v22416_v42 = vld [vmem:[#allocation97_spill] sm:$0xff] }
 0x441   : > { %v8482_v16 = vadd.f32 %v22412_v36, %v8097_v44  ;;  %v8099_v25 = vadd.f32 %v22413_v48, %v20025_v26  ;;  %v9110_v15 = vld [vmem:[#allocation4 + $0x21] sm:$0xff]  ;;  %v9000_v39 = vmax.f32 %v20096_v22, 0.0  ;;  %v8785_v56 = vpop.f32.mrf.mxu1  ;;  %v9109_v23 = vld [vmem:[#allocation4 + $0x19] sm:$0xff]  ;;  %9171 = vst.msk [vmem:[#allocation4 + $0x8] sm:$0xff] %vm4923_vm3, %v20100_v57  ;;  %v8481_v8 = vadd.f32 %v19864_v45, %v8096_v29 }
 0x442   : > { %v20122_v3 = vmax.f32 %v8996_v62, %v9110_v15  ;;  %v9003_v55 = vmax.f32 %v20110_v51, 0.0  ;;  %v20126_v43 = vadd.f32 %v19943_v12, %v8932_v49  ;;  %v8935_v4 = vmul.f32 %v19925_v1, %v8897_v38  ;;  %v22414_v44 = vld [vmem:[#allocation96_spill] sm:$0xff]  ;;  %v20141_v49 = vpop.f32.mrf.mxu0 }
 0x443   : > { %v20131_v26 = vadd.f32 %v22415_v63, %v22414_v44  ;;  %9082 = vst.msk [vmem:[#allocation4 + $0x40] sm:$0xff] %vm4923_vm3, %v9000_v39  ;;  %v8896_v17 = vadd.f32 %v8785_v56, %v8479_v10  ;;  %v15184_v22 = vpop.f32.mrf.mxu1  ;;  %v20137_v62 = vmax.f32 %v8995_v13, %v9109_v23  ;;  %v8098_v60 = vadd.f32 %v22416_v42, %v20028_v52 }
 0x444   : > { %9085 = vst.msk [vmem:[#allocation4 + $0x58] sm:$0xff] %vm4923_vm3, %v9003_v55  ;;  %v9002_v38 = vmax.f32 %v20126_v43, 0.0  ;;  %v20148_v45 = vadd.f32 %v19943_v12, %v8935_v4  ;;  %v8899_v29 = vadd.f32 %v15184_v22, %v8482_v16  ;;  %9174 = vst.msk [vmem:[#allocation4 + $0x20] sm:$0xff] %vm4923_vm3, %v20122_v3  ;;  %v20153_v13 = vadd.f32 %v22417_v28, %v7270_v2  ;;  %v22420_v43 = vld [vmem:[#allocation41_spill] sm:$0xff]  ;;  %v20180_v42 = vpop.f32.mrf.mxu0 }
 0x445   : > { %v8484_v52 = vadd.f32 %v19895_v11, %v8099_v25  ;;  %v8101_v10 = vadd.f32 %v22418_v47, %v20048_v19  ;;  %v9112_v36 = vld [vmem:[#allocation4 + $0x31] sm:$0xff]  ;;  %v8934_v48 = vmul.f32 %v19925_v1, %v8896_v17  ;;  %v8795_v15 = vpop.f32.mrf.mxu1  ;;  %v9111_v56 = vld [vmem:[#allocation4 + $0x29] sm:$0xff]  ;;  %9173 = vst.msk [vmem:[#allocation4 + $0x18] sm:$0xff] %vm4923_vm3, %v20137_v62  ;;  %v8483_v22 = vadd.f32 %v19932_v50, %v8098_v60  ;;  %v22423_v60 = vld [vmem:[#allocation31_spill] sm:$0xff] }
 0x446   : > { %v20161_v16 = vmax.f32 %v8998_v21, %v9112_v36  ;;  %9084 = vst.msk [vmem:[#allocation4 + $0x50] sm:$0xff] %vm4923_vm3, %v9002_v38  ;;  %v9005_v2 = vmax.f32 %v20148_v45, 0.0  ;;  %v8937_v23 = vmul.f32 %v19925_v1, %v8899_v29  ;;  %v8898_v11 = vadd.f32 %v8795_v15, %v8481_v8  ;;  %v22419_v25 = vld [vmem:[#allocation8_spill] sm:$0xff]  ;;  %v22421_v4 = vld [vmem:[#allocation21_spill] sm:$0xff] }
 0x447   : > { %v7272_v19 = vadd.f32 %v22419_v25, %v19914_v18  ;;  %v20170_v44 = vadd.f32 %v22421_v4, %v22420_v43  ;;  %v20173_v63 = vadd.f32 %v19943_v12, %v8934_v48  ;;  %v15187_v17 = vpop.f32.mrf.mxu1  ;;  %v20177_v21 = vmax.f32 %v8997_v61, %v9111_v56  ;;  %v22440_v45 = vld [vmem:[#allocation100_spill] sm:$0xff] }
 0x448   : > { %9087 = vst.msk [vmem:[#allocation4 + $0x68] sm:$0xff] %vm4923_vm3, %v9005_v2  ;;  %v20186_v18 = vadd.f32 %v19943_v12, %v8937_v23  ;;  %v8936_v8 = vmul.f32 %v19925_v1, %v8898_v11  ;;  %v8901_v29 = vadd.f32 %v15187_v17, %v8484_v52  ;;  %9176 = vst.msk [vmem:[#allocation4 + $0x30] sm:$0xff] %vm4923_vm3, %v20161_v16 }
 0x449   : > { %v8100_v61 = vadd.f32 %v22422_v40, %v20062_v35  ;;  %v8486_v50 = vadd.f32 %v19955_v7, %v8101_v10  ;;  %v8103_v28 = vadd.f32 %v22423_v60, %v20068_v54  ;;  %v9004_v47 = vmax.f32 %v20173_v63, 0.0  ;;  %v8805_v36 = vpop.f32.mrf.mxu1  ;;  %9175 = vst.msk [vmem:[#allocation4 + $0x28] sm:$0xff] %vm4923_vm3, %v20177_v21  ;;  %v22424_v7 = vld [vmem:[#allocation93_spill] sm:$0xff]  ;;  %v22425_v54 = vld [vmem:[#allocation56_spill] sm:$0xff]  ;;  %v20215_v63 = vpop.f32.mrf.mxu0 }
 0x44a   : > { %v9114_v48 = vld [vmem:[#allocation4 + $0x41] sm:$0xff]  ;;  %v9007_v52 = vmax.f32 %v20186_v18, 0.0  ;;  %v20201_v15 = vadd.f32 %v19943_v12, %v8936_v8  ;;  %v8939_v56 = vmul.f32 %v19925_v1, %v8901_v29  ;;  %v8900_v35 = vadd.f32 %v8805_v36, %v8483_v22  ;;  %v9113_v23 = vld [vmem:[#allocation4 + $0x39] sm:$0xff]  ;;  %v22426_v22 = vld [vmem:[#allocation69_spill] sm:$0xff] }
 0x44b   : > { %v7274_v10 = vadd.f32 %v22424_v7, %v19917_v58  ;;  %v8102_v11 = vadd.f32 %v22425_v54, %v20092_v34  ;;  %v20208_v25 = vmax.f32 %v9000_v39, %v9114_v48  ;;  %9086 = vst.msk [vmem:[#allocation4 + $0x60] sm:$0xff] %vm4923_vm3, %v9004_v47  ;;  %v15190_v43 = vpop.f32.mrf.mxu1  ;;  %v20213_v4 = vmax.f32 %v8999_v6, %v9113_v23  ;;  %v22427_v29 = vld [vmem:[#allocation52_spill] sm:$0xff] }
 0x44c   : > { %9089 = vst.msk [vmem:[#allocation4 + $0x78] sm:$0xff] %vm4923_vm3, %v9007_v52  ;;  %v9006_v58 = vmax.f32 %v20201_v15, 0.0  ;;  %v20222_v17 = vadd.f32 %v19943_v12, %v8939_v56  ;;  %v8938_v34 = vmul.f32 %v19925_v1, %v8900_v35  ;;  %v8903_v39 = vadd.f32 %v15190_v43, %v8486_v50  ;;  %v20252_v43 = vpop.f32.mrf.mxu0 }
 0x44d   : > { %v7689_v8 = vadd.f32 %v22426_v22, %v7272_v19  ;;  %v8485_v5 = vadd.f32 %v19975_v14, %v8100_v61  ;;  %v8488_v6 = vadd.f32 %v20003_v9, %v8103_v28  ;;  %v8105_v40 = vadd.f32 %v22427_v29, %v20131_v26  ;;  %v9116_v60 = vld [vmem:[#allocation4 + $0x51] sm:$0xff]  ;;  %v8815_v36 = vpop.f32.mrf.mxu1  ;;  %v9115_v48 = vld [vmem:[#allocation4 + $0x49] sm:$0xff]  ;;  %9177 = vst.msk [vmem:[#allocation4 + $0x38] sm:$0xff] %vm4923_vm3, %v20213_v4 }
 0x44e   : > { %9178 = vst.msk [vmem:[#allocation4 + $0x40] sm:$0xff] %vm4923_vm3, %v20208_v25  ;;  %v20234_v56 = vmax.f32 %v9002_v38, %v9116_v60  ;;  %9088 = vst.msk [vmem:[#allocation4 + $0x70] sm:$0xff] %vm4923_vm3, %v9006_v58  ;;  %v9009_v14 = vmax.f32 %v20222_v17, 0.0  ;;  %v20241_v9 = vadd.f32 %v19943_v12, %v8938_v34  ;;  %v8941_v26 = vmul.f32 %v19925_v1, %v8903_v39  ;;  %v22428_v19 = vld [vmem:[#allocation124_spill] sm:$0xff]  ;;  %v22429_v61 = vld [vmem:[#allocation90_spill] sm:$0xff] }
 0x44f   : > { %v7692_v50 = vadd.f32 %v22429_v61, %v22428_v19  ;;  %v22430_v28 = vld [vmem:[#allocation37_spill] sm:$0xff]  ;;  %v8902_v23 = vadd.f32 %v8815_v36, %v8485_v5  ;;  %v15193_v7 = vpop.f32.mrf.mxu1  ;;  %v20249_v38 = vmax.f32 %v9001_v27, %v9115_v48  ;;  %v8487_v54 = vadd.f32 %v20033_v24, %v8102_v11  ;;  %v22432_v24 = vld [vmem:[#allocation75_spill] sm:$0xff] }
 0x450   : > { %v7691_v35 = vadd.f32 %v22430_v28, %v7274_v10  ;;  %9091 = vst.msk [vmem:[#allocation4 + $0x88] sm:$0xff] %vm4923_vm3, %v9009_v14  ;;  %v9008_v34 = vmax.f32 %v20241_v9, 0.0  ;;  %v20259_v39 = vadd.f32 %v19943_v12, %v8941_v26  ;;  %v8905_v10 = vadd.f32 %v15193_v7, %v8488_v6  ;;  %9180 = vst.msk [vmem:[#allocation4 + $0x50] sm:$0xff] %vm4923_vm3, %v20234_v56  ;;  %v22433_v22 = vld [vmem:[#allocation89_spill] sm:$0xff]  ;;  %v22434_v26 = vld [vmem:[#allocation15_spill] sm:$0xff] }
 0x451   : > { %v7276_v27 = vadd.f32 %v22431_v33, %v19928_v0  ;;  %v8104_v11 = vadd.f32 %v22432_v24, %v20153_v13  ;;  %v8107_v5 = vadd.f32 %v22433_v22, %v20170_v44  ;;  %v8940_v29 = vmul.f32 %v19925_v1, %v8902_v23  ;;  %v8825_v60 = vpop.f32.mrf.mxu1  ;;  %9179 = vst.msk [vmem:[#allocation4 + $0x48] sm:$0xff] %vm4923_vm3, %v20249_v38  ;;  %v22436_v23 = vld [vmem:[#allocation20_spill] sm:$0xff]  ;;  %v15155_v33 = vpop.f32.mrf.mxu0 }
 0x452   : > { %v8490_v6 = vadd.f32 %v20071_v30, %v8105_v40  ;;  %v9118_v36 = vld [vmem:[#allocation4 + $0x61] sm:$0xff]  ;;  %9090 = vst.msk [vmem:[#allocation4 + $0x80] sm:$0xff] %vm4923_vm3, %v9008_v34  ;;  %v9011_v48 = vmax.f32 %v20259_v39, 0.0  ;;  %v8943_v0 = vmul.f32 %v19925_v1, %v8905_v10  ;;  %v8904_v9 = vadd.f32 %v8825_v60, %v8487_v54  ;;  %v9117_v13 = vld [vmem:[#allocation4 + $0x59] sm:$0xff] }
 0x453   : > { %v8106_v19 = vadd.f32 %v22434_v26, %v7689_v8  ;;  %v20277_v44 = vmax.f32 %v9004_v47, %v9118_v36  ;;  %v20280_v61 = vadd.f32 %v19943_v12, %v8940_v29  ;;  %v15196_v28 = vpop.f32.mrf.mxu1  ;;  %v20284_v30 = vmax.f32 %v9003_v55, %v9117_v13  ;;  %v22435_v40 = vld [vmem:[#allocation47_spill] sm:$0xff] }
 0x454   : > { %v7694_v7 = vadd.f32 %v22436_v23, %v22435_v40  ;;  %9093 = vst.msk [vmem:[#allocation4 + $0x98] sm:$0xff] %vm4923_vm3, %v9011_v48  ;;  %v20292_v8 = vadd.f32 %v19943_v12, %v8943_v0  ;;  %v8942_v47 = vmul.f32 %v19925_v1, %v8904_v9  ;;  %v8907_v54 = vadd.f32 %v15196_v28, %v8490_v6  ;;  %v22437_v55 = vld [vmem:[#allocation95_spill] sm:$0xff]  ;;  %v8448_v28 = vpop.f32.mrf.mxu0 }
 0x455   : > { %v8489_v10 = vadd.f32 %v20104_v37, %v8104_v11  ;;  %v8492_v51 = vadd.f32 %v20141_v49, %v8107_v5  ;;  %v8109_v24 = vadd.f32 %v22437_v55, %v7692_v50  ;;  %v9120_v22 = vld [vmem:[#allocation4 + $0x71] sm:$0xff]  ;;  %v9010_v29 = vmax.f32 %v20280_v61, 0.0  ;;  %v8835_v60 = vpop.f32.mrf.mxu1  ;;  %v9119_v36 = vld [vmem:[#allocation4 + $0x69] sm:$0xff]  ;;  %9181 = vst.msk [vmem:[#allocation4 + $0x58] sm:$0xff] %vm4923_vm3, %v20284_v30  ;;  %9182 = vst.msk [vmem:[#allocation4 + $0x60] sm:$0xff] %vm4923_vm3, %v20277_v44 }
 0x456   : > { %v20305_v6 = vmax.f32 %v9006_v58, %v9120_v22  ;;  %v9013_v37 = vmax.f32 %v20292_v8, 0.0  ;;  %v20309_v49 = vadd.f32 %v19943_v12, %v8942_v47  ;;  %v8945_v50 = vmul.f32 %v19925_v1, %v8907_v54  ;;  %v22438_v11 = vld [vmem:[#allocation12_spill] sm:$0xff]  ;;  %v22439_v58 = vld [vmem:[#allocation107_spill] sm:$0xff] }
 0x457   : > { %v7693_v5 = vadd.f32 %v22438_v11, %v7276_v27  ;;  %v8491_v0 = vadd.f32 %v20180_v42, %v8106_v19  ;;  %9092 = vst.msk [vmem:[#allocation4 + $0x90] sm:$0xff] %vm4923_vm3, %v9010_v29  ;;  %v8906_v9 = vadd.f32 %v8835_v60, %v8489_v10  ;;  %v15199_v13 = vpop.f32.mrf.mxu1  ;;  %v20319_v15 = vmax.f32 %v9005_v2, %v9119_v36  ;;  %v15158_v11 = vpop.f32.mrf.mxu0 }
 0x458   : > { %v8108_v26 = vadd.f32 %v22439_v58, %v7691_v35  ;;  %9095 = vst.msk [vmem:[#allocation4 + $0xa8] sm:$0xff] %vm4923_vm3, %v9013_v37  ;;  %v9012_v27 = vmax.f32 %v20309_v49, 0.0  ;;  %v20327_v42 = vadd.f32 %v19943_v12, %v8945_v50  ;;  %v8909_v19 = vadd.f32 %v15199_v13, %v8492_v51  ;;  %9184 = vst.msk [vmem:[#allocation4 + $0x70] sm:$0xff] %vm4923_vm3, %v20305_v6 }
 0x459   : > { %v7278_v2 = vadd.f32 %v22440_v45, %v19935_v46  ;;  %v8494_v40 = vadd.f32 %v20215_v63, %v8109_v24  ;;  %v8111_v35 = vadd.f32 %v19855_v59, %v7694_v7  ;;  %v9122_v23 = vld [vmem:[#allocation4 + $0x81] sm:$0xff]  ;;  %v8944_v47 = vmul.f32 %v19925_v1, %v8906_v9  ;;  %v8845_v54 = vpop.f32.mrf.mxu1  ;;  %v9121_v10 = vld [vmem:[#allocation4 + $0x79] sm:$0xff]  ;;  %9183 = vst.msk [vmem:[#allocation4 + $0x68] sm:$0xff] %vm4923_vm3, %v20319_v15  ;;  %v22443_v9 = vld [vmem:[#allocation45_spill] sm:$0xff] }
 0x45a   : > { %v20338_v55 = vmax.f32 %v9008_v34, %v9122_v23  ;;  %9094 = vst.msk [vmem:[#allocation4 + $0xa0] sm:$0xff] %vm4923_vm3, %v9012_v27  ;;  %v9015_v46 = vmax.f32 %v20327_v42, 0.0  ;;  %v8947_v63 = vmul.f32 %v19925_v1, %v8909_v19  ;;  %v8908_v51 = vadd.f32 %v8845_v54, %v8491_v0  ;;  %v22441_v59 = vld [vmem:[#allocation39_spill] sm:$0xff]  ;;  %v22442_v7 = vld [vmem:[#allocation68_spill] sm:$0xff] }
 0x45b   : > { %v7696_v24 = vadd.f32 %v22442_v7, %v22441_v59  ;;  %v8110_v22 = vadd.f32 %v19872_v32, %v7693_v5  ;;  %v20349_v60 = vadd.f32 %v19943_v12, %v8944_v47  ;;  %v15202_v36 = vpop.f32.mrf.mxu1  ;;  %v20353_v34 = vmax.f32 %v9007_v52, %v9121_v10  ;;  %v8458_v10 = vpop.f32.mrf.mxu0 }
 0x45c   : > { %v8493_v50 = vadd.f32 %v20252_v43, %v8108_v26  ;;  %9097 = vst.msk [vmem:[#allocation4 + $0xb8] sm:$0xff] %vm4923_vm3, %v9015_v46  ;;  %v20360_v0 = vadd.f32 %v19943_v12, %v8947_v63  ;;  %v8946_v32 = vmul.f32 %v19925_v1, %v8908_v51  ;;  %v8911_v5 = vadd.f32 %v15202_v36, %v8494_v40 }
 0x45d   : > { %9186 = vst.msk [vmem:[#allocation4 + $0x80] sm:$0xff] %vm4923_vm3, %v20338_v55  ;;  %v7695_v18 = vadd.f32 %v22443_v9, %v7278_v2  ;;  %v8496_v52 = vadd.f32 %v15155_v33, %v8111_v35  ;;  %v8113_v13 = vadd.f32 %v19886_v41, %v7696_v24  ;;  %v9014_v43 = vmax.f32 %v20349_v60, 0.0  ;;  %v8855_v58 = vpop.f32.mrf.mxu1  ;;  %9185 = vst.msk [vmem:[#allocation4 + $0x78] sm:$0xff] %vm4923_vm3, %v20353_v34 }
 0x45e   : > { %v9123_v26 = vld [vmem:[#allocation4 + $0x89] sm:$0xff]  ;;  %v9017_v19 = vmax.f32 %v20360_v0, 0.0  ;;  %v8984_v45 = vadd.f32 %v19943_v12, %v8946_v32  ;;  %v8949_v40 = vmul.f32 %v19925_v1, %v8911_v5  ;;  %v8910_v23 = vadd.f32 %v8855_v58, %v8493_v50  ;;  %v9124_v47 = vld [vmem:[#allocation4 + $0x91] sm:$0xff] }
 0x45f   : > { %v8495_v54 = vadd.f32 %v8448_v28, %v8110_v22  ;;  %v8112_v33 = vadd.f32 %v19905_v31, %v7695_v18  ;;  %v20376_v41 = vmax.f32 %v9009_v14, %v9123_v26  ;;  %9096 = vst.msk [vmem:[#allocation4 + $0xb0] sm:$0xff] %vm4923_vm3, %v9014_v43  ;;  %v15205_v2 = vpop.f32.mrf.mxu1  ;;  %v20381_v35 = vmax.f32 %v9010_v29, %v9124_v47 }
 0x460   : > { %9099 = vst.msk [vmem:[#allocation4 + $0xc8] sm:$0xff] %vm4923_vm3, %v9017_v19  ;;  %v9016_v63 = vmax.f32 %v8984_v45, 0.0  ;;  %v20387_v28 = vadd.f32 %v19943_v12, %v8949_v40  ;;  %v8948_v31 = vmul.f32 %v19925_v1, %v8910_v23  ;;  %v8913_v17 = vadd.f32 %v15205_v2, %v8496_v52 }
 0x461   : > { %v8498_v14 = vadd.f32 %v15158_v11, %v8113_v13  ;;  %9187 = vst.msk [vmem:[#allocation4 + $0x88] sm:$0xff] %vm4923_vm3, %v20376_v41  ;;  %v8865_v51 = vpop.f32.mrf.mxu1  ;;  %v9126_v61 = vld [vmem:[#allocation4 + $0xa1] sm:$0xff]  ;;  %v9125_v29 = vld [vmem:[#allocation4 + $0x99] sm:$0xff]  ;;  %9188 = vst.msk [vmem:[#allocation4 + $0x90] sm:$0xff] %vm4923_vm3, %v20381_v35  ;;  %v8497_v60 = vadd.f32 %v8458_v10, %v8112_v33 }
 0x462   : > { %9098 = vst.msk [vmem:[#allocation4 + $0xc0] sm:$0xff] %vm4923_vm3, %v9016_v63  ;;  %v9019_v59 = vmax.f32 %v20387_v28, 0.0  ;;  %v8986_v7 = vadd.f32 %v19943_v12, %v8948_v31  ;;  %v8951_v24 = vmul.f32 %v19925_v1, %v8913_v17  ;;  %v8912_v22 = vadd.f32 %v8865_v51, %v8495_v54  ;;  %v9233_v51 = vld [vmem:[#allocation4 + $0x108] sm:$0xff] }
 0x463   : > { %v15208_v36 = vpop.f32.mrf.mxu1  ;;  %v20400_v50 = vmax.f32 %v9012_v27, %v9126_v61  ;;  %v20404_v11 = vmax.f32 %v9011_v48, %v9125_v29 }
 0x464   : > { %9101 = vst.msk [vmem:[#allocation4 + $0xd8] sm:$0xff] %vm4923_vm3, %v9019_v59  ;;  %v9018_v32 = vmax.f32 %v8986_v7, 0.0  ;;  %v8989_v5 = vadd.f32 %v19943_v12, %v8951_v24  ;;  %v8950_v9 = vmul.f32 %v19925_v1, %v8912_v22  ;;  %v8915_v18 = vadd.f32 %v15208_v36, %v8498_v14  ;;  %v9232_v24 = vld [vmem:[#allocation4 + $0x100] sm:$0xff] }
 0x465   : > { %v8875_v52 = vpop.f32.mrf.mxu1  ;;  %9190 = vst.msk [vmem:[#allocation4 + $0xa0] sm:$0xff] %vm4923_vm3, %v20400_v50  ;;  %9189 = vst.msk [vmem:[#allocation4 + $0x98] sm:$0xff] %vm4923_vm3, %v20404_v11 }
 0x466   : > { %9100 = vst.msk [vmem:[#allocation4 + $0xd0] sm:$0xff] %vm4923_vm3, %v9018_v32  ;;  %v9021_v39 = vmax.f32 %v8989_v5, 0.0  ;;  %v8988_v48 = vadd.f32 %v19943_v12, %v8950_v9  ;;  %v8953_v49 = vmul.f32 %v19925_v1, %v8915_v18  ;;  %v8914_v27 = vadd.f32 %v8875_v52, %v8497_v60  ;;  %v9128_v13 = vld [vmem:[#allocation4 + $0xb1] sm:$0xff]  ;;  %v9127_v58 = vld [vmem:[#allocation4 + $0xa9] sm:$0xff]  ;;  %v9216_v60 = vld [vmem:[#allocation4 + $0x80] sm:$0xff] }
 0x467   : > { %v20416_v26 = vmax.f32 %v9014_v43, %v9128_v13  ;;  %v20420_v45 = vmax.f32 %v9013_v37, %v9127_v58  ;;  %v9248_v5 = vmax.f32 %v20305_v6, %v9216_v60  ;;  %v9215_v9 = vld [vmem:[#allocation4 + $0x78] sm:$0xff]  ;;  %v9213_v13 = vld [vmem:[#allocation4 + $0x68] sm:$0xff]  ;;  %v9212_v6 = vld [vmem:[#allocation4 + $0x60] sm:$0xff] }
 0x468   : > { %9103 = vst.msk [vmem:[#allocation4 + $0xe8] sm:$0xff] %vm4923_vm3, %v9021_v39  ;;  %v9020_v40 = vmax.f32 %v8988_v48, 0.0  ;;  %v8991_v23 = vadd.f32 %v19943_v12, %v8953_v49  ;;  %v8952_v47 = vmul.f32 %v19925_v1, %v8914_v27  ;;  %v9217_v29 = vld [vmem:[#allocation4 + $0x88] sm:$0xff]  ;;  %v9214_v48 = vld [vmem:[#allocation4 + $0x70] sm:$0xff]  ;;  %v9247_v49 = vmax.f32 %v20319_v15, %v9215_v9 }
 0x469   : > { %v9130_v54 = vld [vmem:[#allocation4 + $0xc1] sm:$0xff]  ;;  %v9129_v33 = vld [vmem:[#allocation4 + $0xb9] sm:$0xff]  ;;  %9192 = vst.msk [vmem:[#allocation4 + $0xb0] sm:$0xff] %vm4923_vm3, %v20416_v26  ;;  %9191 = vst.msk [vmem:[#allocation4 + $0xa8] sm:$0xff] %vm4923_vm3, %v20420_v45  ;;  %v9246_v58 = vmax.f32 %v20277_v44, %v9214_v48  ;;  %v9244_v15 = vmax.f32 %v20234_v56, %v9212_v6  ;;  %v20534_v6 = vpop.permute.xlu1 %9432 }
 0x46a   : > { %9102 = vst.msk [vmem:[#allocation4 + $0xe0] sm:$0xff] %vm4923_vm3, %v9020_v40  ;;  %v9023_v8 = vmax.f32 %v8991_v23, 0.0  ;;  %v8990_v37 = vadd.f32 %v19943_v12, %v8952_v47  ;;  %v20431_v43 = vmax.f32 %v9016_v63, %v9130_v54  ;;  %v20435_v2 = vmax.f32 %v9015_v46, %v9129_v33  ;;  %v9208_v56 = vld [vmem:[#allocation4 + $0x40] sm:$0xff]  ;;  %v9218_v60 = vld [vmem:[#allocation4 + $0x90] sm:$0xff]  ;;  %v9037_v48 = vld [vmem:[%s21297_s15 + $0x68] sm:$0xff] }
 0x46b   : > { %v9245_v47 = vmax.f32 %v20284_v30, %v9213_v13  ;;  %v9032_v9 = vld [vmem:[%s21297_s15 + $0x40] sm:$0xff] }
 0x46c   : > { %9105 = vst.msk [vmem:[#allocation4 + $0xf8] sm:$0xff] %vm4923_vm3, %v9023_v8  ;;  %v9022_v1 = vmax.f32 %v8990_v37, 0.0  ;;  %9194 = vst.msk [vmem:[#allocation4 + $0xc0] sm:$0xff] %vm4923_vm3, %v20431_v43  ;;  %v9473_v13 = vld [vmem:[#allocation5 + $0x1] sm:$0xff] }
 0x46d   : > { %9193 = vst.msk [vmem:[#allocation4 + $0xb8] sm:$0xff] %vm4923_vm3, %v20435_v2  ;;  %v9132_v10 = vld [vmem:[#allocation4 + $0xd1] sm:$0xff]  ;;  %v9131_v28 = vld [vmem:[#allocation4 + $0xc9] sm:$0xff]  ;;  %15211 = vmatprep.mubr.msk.f32.mxu1 %vm4923_vm3, %v9473_v13 }
 0x46e   : > { %9104 = vst.msk [vmem:[#allocation4 + $0xf0] sm:$0xff] %vm4923_vm3, %v9022_v1  ;;  %v9164_v12 = vmax.f32 %v9018_v32, %v9132_v10  ;;  %v9163_v63 = vmax.f32 %v9017_v19, %v9131_v28  ;;  %v9249_v32 = vmax.f32 %v20353_v34, %v9217_v29  ;;  %v9210_v10 = vld [vmem:[#allocation4 + $0x50] sm:$0xff] }
 0x46f   : > { %v9242_v30 = vmax.f32 %v20208_v25, %v9210_v10 }
 0x470   : > { %9196 = vst.msk [vmem:[#allocation4 + $0xd0] sm:$0xff] %vm4923_vm3, %v9164_v12  ;;  %9195 = vst.msk [vmem:[#allocation4 + $0xc8] sm:$0xff] %vm4923_vm3, %v9163_v63  ;;  %v9221_v29 = vld [vmem:[#allocation4 + $0xa8] sm:$0xff] }
 0x471   : > { %v9134_v42 = vld [vmem:[#allocation4 + $0xe1] sm:$0xff]  ;;  %v9133_v46 = vld [vmem:[#allocation4 + $0xd9] sm:$0xff] }
 0x472   : > { %v9166_v31 = vmax.f32 %v9020_v40, %v9134_v42  ;;  %v9165_v17 = vmax.f32 %v9019_v59, %v9133_v46  ;;  %v9209_v46 = vld [vmem:[#allocation4 + $0x48] sm:$0xff] }
 0x473   : > { %v9137_v14 = vld [vmem:[#allocation4 + $0xf9] sm:$0xff] }
 0x474   : > { %v9169_v61 = vmax.f32 %v9023_v8, %v9137_v14  ;;  %9198 = vst.msk [vmem:[#allocation4 + $0xe0] sm:$0xff] %vm4923_vm3, %v9166_v31  ;;  %9197 = vst.msk [vmem:[#allocation4 + $0xd8] sm:$0xff] %vm4923_vm3, %v9165_v17  ;;  %v9211_v8 = vld [vmem:[#allocation4 + $0x58] sm:$0xff] }
 0x475   : > { %v9136_v7 = vld [vmem:[#allocation4 + $0xf1] sm:$0xff]  ;;  %v9135_v0 = vld [vmem:[#allocation4 + $0xe9] sm:$0xff]  ;;  %v9243_v44 = vmax.f32 %v20249_v38, %v9211_v8 }
 0x476   : > { %v9265_v19 = vmax.f32 %v9169_v61, %v9233_v51  ;;  %v9168_v22 = vmax.f32 %v9022_v1, %v9136_v7  ;;  %9201 = vst.msk [vmem:[#allocation4 + $0xf8] sm:$0xff] %vm4923_vm3, %v9169_v61  ;;  %v9167_v36 = vmax.f32 %v9021_v39, %v9135_v0  ;;  %v9207_v14 = vld [vmem:[#allocation4 + $0x38] sm:$0xff]  ;;  %v9222_v51 = vld [vmem:[#allocation4 + $0xb0] sm:$0xff]  ;;  %v9205_v7 = vld [vmem:[#allocation4 + $0x28] sm:$0xff] }
 0x477   : > { %v9226_v37 = vld [vmem:[#allocation4 + $0xd0] sm:$0xff]  ;;  %v9225_v28 = vld [vmem:[#allocation4 + $0xc8] sm:$0xff]  ;;  %v9204_v0 = vld [vmem:[#allocation4 + $0x20] sm:$0xff] }
 0x478   : > { %14063 = vmatprep.subr.mxu0 %v9265_v19  ;;  %v9264_v59 = vmax.f32 %v9168_v22, %v9232_v24  ;;  %9200 = vst.msk [vmem:[#allocation4 + $0xf0] sm:$0xff] %vm4923_vm3, %v9168_v22  ;;  %9199 = vst.msk [vmem:[#allocation4 + $0xe8] sm:$0xff] %vm4923_vm3, %v9167_v36  ;;  %v9258_v42 = vmax.f32 %v20431_v43, %v9226_v37  ;;  %v9240_v43 = vmax.f32 %v20161_v16, %v9208_v56  ;;  %v9206_v61 = vld [vmem:[#allocation4 + $0x30] sm:$0xff]  ;;  %v9220_v24 = vld [vmem:[#allocation4 + $0xa0] sm:$0xff] }
 0x479   : > { %14064 = vmatpush3.msra.mxu0 %v9249_v32  ;;  %v9253_v16 = vmax.f32 %v20404_v11, %v9221_v29  ;;  %v9219_v19 = vld [vmem:[#allocation4 + $0x98] sm:$0xff]  ;;  %v9250_v32 = vmax.f32 %v20338_v55, %v9218_v60  ;;  %v9028_v55 = vld [vmem:[%s21297_s15 + $0x20] sm:$0xff] }
 0x47a   : > { %14065 = vmatprep.subr.mxu0 %v9264_v59  ;;  %v9203_v22 = vld [vmem:[#allocation4 + $0x18] sm:$0xff]  ;;  %v9030_v59 = vld [vmem:[%s21297_s15 + $0x30] sm:$0xff] }
 0x47b   : > { %14066 = vmatpush3.msra.mxu0 %v9248_v5  ;;  %v9228_v40 = vld [vmem:[#allocation4 + $0xe0] sm:$0xff]  ;;  %v9227_v54 = vld [vmem:[#allocation4 + $0xd8] sm:$0xff]  ;;  %v9235_v11 = vmax.f32 %v20100_v57, %v9203_v22 }
 0x47c   : > { %v9260_v33 = vmax.f32 %v9164_v12, %v9228_v40  ;;  %v9259_v1 = vmax.f32 %v9163_v63, %v9227_v54  ;;  %v9224_v12 = vld [vmem:[#allocation4 + $0xc0] sm:$0xff]  ;;  %v9241_v63 = vmax.f32 %v20213_v4, %v9209_v46  ;;  %v9254_v4 = vmax.f32 %v20400_v50, %v9222_v51  ;;  %v9033_v5 = vld [vmem:[%s21297_s15 + $0x48] sm:$0xff]  ;;  %v9412_v40 = vld [vmem:[%s21289_s7 + $0x20] sm:$0xff] }
 0x47d   : > { %v9231_v18 = vld [vmem:[#allocation4 + $0xf8] sm:$0xff]  ;;  %v9256_v38 = vmax.f32 %v20416_v26, %v9224_v12  ;;  %v9238_v26 = vmax.f32 %v20122_v3, %v9206_v61  ;;  %v9236_v50 = vmax.f32 %v20086_v20, %v9204_v0  ;;  %v9251_v3 = vmax.f32 %v20376_v41, %v9219_v19  ;;  %v9027_v20 = vld [vmem:[%s21297_s15 + $0x18] sm:$0xff]  ;;  %v9026_v57 = vld [vmem:[%s21297_s15 + $0x10] sm:$0xff] }
 0x47e   : > { %v9263_v52 = vmax.f32 %v9167_v36, %v9231_v18  ;;  %v9202_v36 = vld [vmem:[#allocation4 + $0x10] sm:$0xff]  ;;  %v9031_v41 = vld [vmem:[%s21297_s15 + $0x38] sm:$0xff] }
 0x47f   : > { %v9230_v39 = vld [vmem:[#allocation4 + $0xf0] sm:$0xff]  ;;  %v9229_v27 = vld [vmem:[#allocation4 + $0xe8] sm:$0xff] }
 0x480   : > { %14067 = vmatprep.subr.mxu0 %v9263_v52  ;;  %v9262_v34 = vmax.f32 %v9166_v31, %v9230_v39  ;;  %v9261_v23 = vmax.f32 %v9165_v17, %v9229_v27  ;;  %v9257_v31 = vmax.f32 %v20435_v2, %v9225_v28  ;;  %v9223_v17 = vld [vmem:[#allocation4 + $0xb8] sm:$0xff]  ;;  %v9239_v2 = vmax.f32 %v20177_v21, %v9207_v14  ;;  %v9035_v18 = vld [vmem:[%s21297_s15 + $0x58] sm:$0xff]  ;;  %v9034_v52 = vld [vmem:[%s21297_s15 + $0x50] sm:$0xff] }
 0x481   : > { %14068 = vmatpush3.msra.mxu0 %v9247_v49  ;;  %v9255_v25 = vmax.f32 %v20420_v45, %v9223_v17  ;;  %v9237_v45 = vmax.f32 %v20137_v62, %v9205_v7  ;;  %v9252_v21 = vmax.f32 %v20381_v35, %v9220_v24  ;;  %v9234_v62 = vmax.f32 %v20053_v53, %v9202_v36  ;;  %v9024_v35 = vld [vmem:[%s21297_s15] sm:$0xff]  ;;  %v9029_v53 = vld [vmem:[%s21297_s15 + $0x28] sm:$0xff]  ;;  %v9039_v39 = vld [vmem:[%s21297_s15 + $0x78] sm:$0xff] }
 0x482   : > { %14069 = vmatprep.subr.mxu0 %v9262_v34  ;;  %v9036_v49 = vld [vmem:[%s21297_s15 + $0x60] sm:$0xff]  ;;  %v9038_v27 = vld [vmem:[%s21297_s15 + $0x70] sm:$0xff]  ;;  %v20553_v17 = vld [vmem:[%s21289_s7 + $0x18] sm:$0xff] }
 0x483   : > { %14070 = vmatpush3.msra.mxu0 %v9246_v58  ;;  %v9410_v34 = vld [vmem:[%s21289_s7 + $0x10] sm:$0xff]  ;;  %v9408_v58 = vld [vmem:[%s21289_s7] sm:$0xff] }
 0x484   : > { %14071 = vmatprep.subr.mxu0 %v9261_v23  ;;  %15223 = vmatprep.subr.mxu1 %v9408_v58  ;;  %v20532_v23 = vpop.permute.xlu0 %9427 }
 0x485   : > { %14072 = vmatpush3.msra.mxu0 %v9245_v47 }
 0x486   : > { %14073 = vmatprep.subr.mxu0 %v9260_v33 }
 0x487   : > { %14074 = vmatpush3.msra.mxu0 %v9244_v15  ;;  %v20538_v15 = vpop.permute.xlu1 %9754 }
 0x488   : > { %14075 = vmatprep.subr.mxu0 %v9259_v1  ;;  %v20536_v47 = vpop.permute.xlu0 %9749 }
 0x489   : > { %14076 = vmatpush3.msra.mxu0 %v9243_v44 }
 0x48a   : > { %14077 = vmatprep.subr.mxu0 %v9258_v42 }
 0x48b   : > { %14078 = vmatpush3.msra.mxu0 %v9242_v30  ;;  %v20544_v42 = vpop.permute.xlu1 %9442 }
 0x48c   : > { %14079 = vmatprep.subr.mxu0 %v9257_v31  ;;  %v20541_v1 = vpop.permute.xlu0 %9437 }
 0x48d   : > { %14080 = vmatpush3.msra.mxu0 %v9241_v63 }
 0x48e   : > { %14081 = vmatprep.subr.mxu0 %v9256_v38 }
 0x48f   : > { %14082 = vmatpush3.msra.mxu0 %v9240_v43  ;;  %v20561_v51 = vpop.permute.xlu1 %9764 }
 0x490   : > { %14083 = vmatprep.subr.mxu0 %v9255_v25  ;;  %v20546_v12 = vpop.permute.xlu0 %9759 }
 0x491   : > { %14084 = vmatpush3.msra.mxu0 %v9239_v2 }
 0x492   : > { %14085 = vmatprep.subr.mxu0 %v9254_v4 }
 0x493   : > { %14086 = vmatpush3.msra.mxu0 %v9238_v26  ;;  %v20577_v26 = vld [vmem:[%s21289_s7 + $0x30] sm:$0xff] }
 0x494   : > { %14087 = vmatprep.subr.mxu0 %v9253_v16  ;;  %v20572_v4 = vpop.permute.xlu0 %9447 }
 0x495   : > { %14088 = vmatpush3.msra.mxu0 %v9237_v45 }
 0x496   : > { %14089 = vmatprep.subr.mxu0 %v9252_v21  ;;  %v20590_v21 = vpop.permute.xlu1 %9452 }
 0x497   : > { %14090 = vmatpush3.msra.mxu0 %v9236_v50 }
 0x498   : > { %14091 = vmatprep.subr.mxu0 %v9251_v3  ;;  %v20593_v60 = vpop.permute.xlu0 %9769 }
 0x499   : > { %14092 = vmatpush3.msra.mxu0 %v9235_v11 }
 0x49a   : > { %14093 = vmatprep.subr.mxu0 %v9250_v32 }
 0x49b   : > { %14094 = vmatpush3.msra.mxu0 %v9234_v62 }
 0x49c   : > { %9331 = vmatmul.mubr.f32.vlgmr.msra.gmra.mxu0 %v9024_v35  ;;  %15237 = vmatprep.subr.mxu0 %v9410_v34 }
 0x49d   : > { %9335 = vmatprep.mubr.f32.mxu0 %v9027_v20  ;;  %15238 = vmatpush3.msra.mxu0 %v9410_v34  ;;  %v20605_v20 = vpop.permute.xlu1 %9774 }
 0x49e   : > { %15265 = vmatprep.subr.mxu0 %v9412_v40 }
 0x4a0   : > { %9336 = vmatmul.mubr.f32.gmra.mxu0 %v9026_v57 }
 0x4a1   : > { %9340 = vmatprep.mubr.f32.mxu0 %v9029_v53 }
 0x4a4   : > { %9341 = vmatmul.mubr.f32.gmra.mxu0 %v9028_v55 }
 0x4a5   : > { %9345 = vmatprep.mubr.f32.mxu0 %v9031_v41 }
 0x4a8   : > { %9346 = vmatmul.mubr.f32.gmra.mxu0 %v9030_v59  ;;  %v20616_v59 = vpop.permute.xlu0 %9457 }
 0x4a9   : > { %9350 = vmatprep.mubr.f32.mxu0 %v9033_v5 }
 0x4ac   : > { %9351 = vmatmul.mubr.f32.gmra.mxu0 %v9032_v9  ;;  %v20632_v34 = vpop.permute.xlu0 %9779 }
 0x4ad   : > { %9355 = vmatprep.mubr.f32.mxu0 %v9035_v18 }
 0x4b0   : > { %9356 = vmatmul.mubr.f32.gmra.mxu0 %v9034_v52 }
 0x4b1   : > { %9360 = vmatprep.mubr.f32.mxu0 %v9037_v48  ;;  %v9417_v48 = vld [vmem:[#allocation5] sm:$0xff] }
 0x4b4   : > { %9361 = vmatmul.mubr.f32.gmra.mxu0 %v9036_v49 }
 0x4b5   : > { %9365 = vmatprep.mubr.f32.mxu0 %v9039_v39  ;;  %v20628_v39 = vpop.permute.xlu1 %9462 }
 0x4b8   : > { %9366 = vmatmul.mubr.f32.gmra.mxu0 %v9038_v27  ;;  %v9465_v27 = vmul.f32 %v20532_v23, %v9417_v48 }
 0x55c   : > { %v14095_v54 = vpop.f32.mrf.mxu0 }
 0x55e   : > { %v14096_v33 = vpop.f32.mrf.mxu0 }
 0x55f   : > { %v14097_v8 = vadd.f32 %v14096_v33, %v14095_v54 }
 0x560   : > { %v14098_v37 = vpop.f32.mrf.mxu0 }
 0x561   : > { %9400 = vst.msk [vmem:[#allocation5 + $0x9] sm:$0xff] %vm4923_vm3, %v14097_v8 }
 0x562   : > { %v14099_v10 = vpop.f32.mrf.mxu0 }
 0x563   : > { %v14100_v44 = vadd.f32 %v14099_v10, %v14098_v37  ;;  %v20645_v37 = vpop.permute.xlu1 %9784 }
 0x564   : > { %v14101_v28 = vpop.f32.mrf.mxu0 }
 0x565   : > { %9401 = vst.msk [vmem:[#allocation5 + $0x11] sm:$0xff] %vm4923_vm3, %v14100_v44 }
 0x566   : > { %v14102_v46 = vpop.f32.mrf.mxu0 }
 0x567   : > { %v14103_v30 = vadd.f32 %v14102_v46, %v14101_v28  ;;  %v9413_v46 = vld [vmem:[%s21289_s7 + $0x28] sm:$0xff] }
 0x568   : > { %v14104_v31 = vpop.f32.mrf.mxu0  ;;  %v9739_v56 = vld [vmem:[#allocation5 + $0x2] sm:$0xff] }
 0x569   : > { %v20548_v63 = vld [vmem:[#allocation5 + $0x9] sm:$0xff]  ;;  %9402 = vst.msk [vmem:[#allocation5 + $0x19] sm:$0xff] %vm4923_vm3, %v14103_v30  ;;  %v9787_v38 = vmul.f32 %v20536_v47, %v9739_v56 }
 0x56a   : > { %15212 = vmatmul.mubr.msk.f32.vlgmr.msra.gmra.mxu1 %vm4923_vm3, %v20548_v63  ;;  %v14105_v14 = vpop.f32.mrf.mxu0 }
 0x56b   : > { %15224 = vmatpush3.msra.mxu1 %v9408_v58  ;;  %v14106_v43 = vadd.f32 %v14105_v14, %v14104_v31  ;;  %15239 = vmatprep.mubr.msk.f32.mxu0 %vm4923_vm3, %v9787_v38 }
 0x56c   : > { %15251 = vmatprep.subr.mxu1 %v20553_v17  ;;  %v14107_v25 = vpop.f32.mrf.mxu0  ;;  %v20563_v61 = vld [vmem:[#allocation5 + $0xa] sm:$0xff] }
 0x56d   : > { %v20565_v2 = vld [vmem:[#allocation5 + $0x11] sm:$0xff]  ;;  %9403 = vst.msk [vmem:[#allocation5 + $0x21] sm:$0xff] %vm4923_vm3, %v14106_v43  ;;  %v9788_v29 = vmul.f32 %v20538_v15, %v20563_v61 }
 0x56e   : > { %15214 = vmatprep.mubr.msk.f32.mxu1 %vm4923_vm3, %v20565_v2  ;;  %v14108_v7 = vpop.f32.mrf.mxu0  ;;  %v9419_v33 = vld [vmem:[#allocation5 + $0x10] sm:$0xff] }
 0x56f   : > { %v14109_v24 = vadd.f32 %v14108_v7, %v14107_v25  ;;  %15240 = vmatmul.mubr.msk.f32.vlgmr.msra.gmra.mxu0 %vm4923_vm3, %v9788_v29  ;;  %v9467_v10 = vmul.f32 %v20541_v1, %v9419_v33 }
 0x570   : > { %v14110_v16 = vpop.f32.mrf.mxu0  ;;  %v20580_v0 = vld [vmem:[#allocation5 + $0x12] sm:$0xff]  ;;  %15266 = vmatpush3.msra.mxu0 %v9412_v40  ;;  %v9418_v40 = vld [vmem:[#allocation5 + $0x8] sm:$0xff] }
 0x571   : > { %v20582_v45 = vld [vmem:[#allocation5 + $0x19] sm:$0xff]  ;;  %9404 = vst.msk [vmem:[#allocation5 + $0x29] sm:$0xff] %vm4923_vm3, %v14109_v24  ;;  %v9789_v19 = vmul.f32 %v20546_v12, %v20580_v0  ;;  %15293 = vmatprep.subr.mxu0 %v20577_v26  ;;  %v9466_v8 = vmul.f32 %v20534_v6, %v9418_v40  ;;  %v9940_v24 = vmul.f32 %v20532_v23, %v9418_v40 }
 0x572   : > { %15215 = vmatmul.mubr.msk.f32.gmra.mxu1 %vm4923_vm3, %v20582_v45  ;;  %v14111_v22 = vpop.f32.mrf.mxu0  ;;  %v9420_v28 = vld [vmem:[#allocation5 + $0x18] sm:$0xff] }
 0x573   : > { %v14112_v50 = vadd.f32 %v14111_v22, %v14110_v16  ;;  %15242 = vmatprep.mubr.msk.f32.mxu0 %vm4923_vm3, %v9789_v19  ;;  %v9468_v56 = vmul.f32 %v20544_v42, %v9420_v28  ;;  %v9942_v16 = vmul.f32 %v20541_v1, %v9420_v28  ;;  %v9415_v19 = vld [vmem:[%s21289_s7 + $0x38] sm:$0xff] }
 0x574   : > { %v14113_v3 = vpop.f32.mrf.mxu0  ;;  %v20595_v36 = vld [vmem:[#allocation5 + $0x1a] sm:$0xff] }
 0x575   : > { %v20597_v11 = vld [vmem:[#allocation5 + $0x21] sm:$0xff]  ;;  %9405 = vst.msk [vmem:[#allocation5 + $0x31] sm:$0xff] %vm4923_vm3, %v14112_v50  ;;  %v9790_v32 = vmul.f32 %v20561_v51, %v20595_v36  ;;  %v10391_v50 = vmul.f32 %v20532_v23, %v9419_v33 }
 0x576   : > { %15217 = vmatprep.mubr.msk.f32.mxu1 %vm4923_vm3, %v20597_v11  ;;  %v14114_v62 = vpop.f32.mrf.mxu0  ;;  %v9421_v31 = vld [vmem:[#allocation5 + $0x20] sm:$0xff] }
 0x577   : > { %v14115_v35 = vadd.f32 %v14114_v62, %v14113_v3  ;;  %15243 = vmatmul.mubr.msk.f32.gmra.mxu0 %vm4923_vm3, %v9790_v32  ;;  %v9469_v38 = vmul.f32 %v20572_v4, %v9421_v31  ;;  %v9943_v3 = vmul.f32 %v20544_v42, %v9421_v31  ;;  %v10392_v62 = vmul.f32 %v20534_v6, %v9420_v28 }
 0x578   : > { %v14116_v57 = vpop.f32.mrf.mxu0  ;;  %v20607_v53 = vld [vmem:[#allocation5 + $0x22] sm:$0xff] }
 0x579   : > { %v20609_v55 = vld [vmem:[#allocation5 + $0x29] sm:$0xff]  ;;  %9406 = vst.msk [vmem:[#allocation5 + $0x39] sm:$0xff] %vm4923_vm3, %v14115_v35  ;;  %v9791_v41 = vmul.f32 %v20593_v60, %v20607_v53  ;;  %v10393_v35 = vmul.f32 %v20541_v1, %v9421_v31 }
 0x57a   : > { %15218 = vmatmul.mubr.msk.f32.gmra.mxu1 %vm4923_vm3, %v20609_v55  ;;  %v14117_v5 = vpop.f32.mrf.mxu0  ;;  %v9422_v14 = vld [vmem:[#allocation5 + $0x28] sm:$0xff] }
 0x57b   : > { %v14118_v9 = vadd.f32 %v14117_v5, %v14116_v57  ;;  %15245 = vmatprep.mubr.msk.f32.mxu0 %vm4923_vm3, %v9791_v41  ;;  %v9470_v25 = vmul.f32 %v20590_v21, %v9422_v14  ;;  %v9944_v32 = vmul.f32 %v20572_v4, %v9422_v14  ;;  %v10394_v5 = vmul.f32 %v20544_v42, %v9422_v14 }
 0x57c   : > { %v20619_v18 = vld [vmem:[#allocation5 + $0x2a] sm:$0xff] }
 0x57d   : > { %v20621_v52 = vld [vmem:[#allocation5 + $0x31] sm:$0xff]  ;;  %9407 = vst.msk [vmem:[#allocation5 + $0x41] sm:$0xff] %vm4923_vm3, %v14118_v9  ;;  %v9792_v49 = vmul.f32 %v20605_v20, %v20619_v18  ;;  %v10238_v9 = vmul.f32 %v20536_v47, %v20563_v61  ;;  %v10242_v40 = vmul.f32 %v20593_v60, %v20619_v18 }
 0x57e   : > { %15220 = vmatprep.mubr.msk.f32.mxu1 %vm4923_vm3, %v20621_v52  ;;  %v9423_v43 = vld [vmem:[#allocation5 + $0x30] sm:$0xff] }
 0x57f   : > { %15246 = vmatmul.mubr.msk.f32.gmra.mxu0 %vm4923_vm3, %v9792_v49  ;;  %v9945_v23 = vmul.f32 %v20590_v21, %v9423_v43 }
 0x580   : > { %v20634_v13 = vld [vmem:[#allocation5 + $0x39] sm:$0xff] }
 0x581   : > { %v20636_v58 = vld [vmem:[#allocation5 + $0x32] sm:$0xff]  ;;  %15221 = vmatmul.mubr.msk.f32.gmra.mxu1 %vm4923_vm3, %v20634_v13 }
 0x582   : > { %v9793_v54 = vmul.f32 %v20632_v34, %v20636_v58  ;;  %15225 = vmatprep.mubr.msk.f32.mxu1 %vm4923_vm3, %v9465_v27  ;;  %v9424_v29 = vld [vmem:[#allocation5 + $0x38] sm:$0xff]  ;;  %v10240_v27 = vmul.f32 %v20546_v12, %v20595_v36 }
 0x583   : > { %v9472_v7 = vmul.f32 %v20628_v39, %v9424_v29  ;;  %v9946_v57 = vmul.f32 %v20616_v59, %v9424_v29  ;;  %v10396_v48 = vmul.f32 %v20590_v21, %v9424_v29  ;;  %v10689_v21 = vmul.f32 %v20536_v47, %v20580_v0 }
 0x584   : > { %15248 = vmatprep.mubr.msk.f32.mxu0 %vm4923_vm3, %v9793_v54  ;;  %v20648_v44 = vld [vmem:[#allocation5 + $0x3a] sm:$0xff]  ;;  %v10390_v49 = vld [vmem:[#allocation5 + $0x48] sm:$0xff]  ;;  %v10691_v47 = vmul.f32 %v20546_v12, %v20607_v53  ;;  %v10693_v12 = vmul.f32 %v20593_v60, %v20636_v58 }
 0x585   : > { %15226 = vmatmul.mubr.msk.f32.vlgmr.msra.gmra.mxu1 %vm4923_vm3, %v9466_v8  ;;  %v9794_v30 = vmul.f32 %v20645_v37, %v20648_v44  ;;  %v20696_v22 = vld [vmem:[#allocation5 + $0x41] sm:$0xff]  ;;  %v10398_v61 = vmul.f32 %v10390_v49, %v20628_v39  ;;  %v10244_v54 = vmul.f32 %v20632_v34, %v20648_v44  ;;  %v10688_v8 = vld [vmem:[#allocation5 + $0x4a] sm:$0xff] }
 0x586   : > { %15228 = vmatprep.mubr.msk.f32.mxu1 %vm4923_vm3, %v9467_v10  ;;  %15252 = vmatpush3.msra.mxu1 %v20553_v17  ;;  %v9416_v17 = vld [vmem:[%s21289_s7 + $0x40] sm:$0xff]  ;;  %v20769_v10 = vpop.permute.xlu0 %10937  ;;  %v10696_v60 = vmul.f32 %v10688_v8, %v20645_v37 }
 0x587   : > { %15249 = vmatmul.mubr.msk.f32.gmra.mxu0 %vm4923_vm3, %v9794_v30  ;;  %15279 = vmatprep.subr.mxu1 %v9413_v46  ;;  %v9939_v41 = vld [vmem:[#allocation5 + $0x40] sm:$0xff]  ;;  %22444 = vst [vmem:[#allocation118_spill] sm:$0xff] %v20769_v10 }
 0x588   : > { %15267 = vmatprep.mubr.msk.f32.mxu0 %vm4923_vm3, %v20548_v63  ;;  %v9471_v63 = vmul.f32 %v20616_v59, %v9423_v43  ;;  %v9947_v1 = vmul.f32 %v9939_v41, %v20628_v39  ;;  %v10397_v42 = vmul.f32 %v9939_v41, %v20616_v59  ;;  %v10241_v59 = vmul.f32 %v20561_v51, %v20607_v53 }
 0x589   : > { %15229 = vmatmul.mubr.msk.f32.gmra.mxu1 %vm4923_vm3, %v9468_v56  ;;  %v10690_v39 = vmul.f32 %v20538_v15, %v20595_v36  ;;  %v10694_v53 = vmul.f32 %v20605_v20, %v20648_v44 }
 0x58a   : > { %15231 = vmatprep.mubr.msk.f32.mxu1 %vm4923_vm3, %v9469_v38 }
 0x58b   : > { %15268 = vmatmul.mubr.msk.f32.vlgmr.msra.gmra.mxu0 %vm4923_vm3, %v20565_v2 }
 0x58c   : > { %15270 = vmatprep.mubr.msk.f32.mxu0 %vm4923_vm3, %v20582_v45  ;;  %15294 = vmatpush3.msra.mxu0 %v20577_v26  ;;  %v9941_v26 = vmul.f32 %v20534_v6, %v9419_v33  ;;  %v10395_v6 = vmul.f32 %v20572_v4, %v9423_v43  ;;  %v10239_v4 = vmul.f32 %v20538_v15, %v20580_v0  ;;  %v10237_v33 = vld [vmem:[#allocation5 + $0x42] sm:$0xff] }
 0x58d   : > { %15232 = vmatmul.mubr.msk.f32.gmra.mxu1 %vm4923_vm3, %v9470_v25  ;;  %15321 = vmatprep.subr.mxu0 %v9416_v17  ;;  %v10243_v0 = vmul.f32 %v20605_v20, %v20636_v58  ;;  %v10692_v15 = vmul.f32 %v20561_v51, %v20619_v18  ;;  %v10245_v36 = vmul.f32 %v10237_v33, %v20645_v37  ;;  %v10927_v18 = vld [vmem:[#allocation6] sm:$0xff] }
 0x58e   : > { %15234 = vmatprep.mubr.msk.f32.mxu1 %vm4923_vm3, %v9471_v63  ;;  %v10695_v51 = vmul.f32 %v10237_v33, %v20632_v34  ;;  %v10975_v20 = vmul.f32 %v20769_v10, %v10927_v18  ;;  %v10909_v34 = vld [vmem:[%s21292_s10] sm:$0xff]  ;;  %v20812_v58 = vld [vmem:[%s21292_s10 + $0x38] sm:$0xff] }
 0x58f   : > { %15271 = vmatmul.mubr.msk.f32.gmra.mxu0 %vm4923_vm3, %v20597_v11  ;;  %22446 = vst [vmem:[#allocation46_spill] sm:$0xff] %v20812_v58 }
 0x590   : > { %15273 = vmatprep.mubr.msk.f32.mxu0 %vm4923_vm3, %v20609_v55 }
 0x591   : > { %15235 = vmatmul.mubr.msk.f32.gmra.mxu1 %vm4923_vm3, %v9472_v7 }
 0x592   : > { %15253 = vmatprep.mubr.msk.f32.mxu1 %vm4923_vm3, %v9940_v24 }
 0x593   : > { %15274 = vmatmul.mubr.msk.f32.gmra.mxu0 %vm4923_vm3, %v20621_v52 }
 0x594   : > { %15276 = vmatprep.mubr.msk.f32.mxu0 %vm4923_vm3, %v20634_v13 }
 0x595   : > { %15254 = vmatmul.mubr.msk.f32.vlgmr.msra.gmra.mxu1 %vm4923_vm3, %v9941_v26 }
 0x596   : > { %15256 = vmatprep.mubr.msk.f32.mxu1 %vm4923_vm3, %v9942_v16  ;;  %15280 = vmatpush3.msra.mxu1 %v9413_v46 }
 0x597   : > { %15277 = vmatmul.mubr.msk.f32.gmra.mxu0 %vm4923_vm3, %v20696_v22  ;;  %15307 = vmatprep.subr.mxu1 %v9415_v19 }
 0x598   : > { %15295 = vmatprep.mubr.msk.f32.mxu0 %vm4923_vm3, %v10391_v50 }
 0x599   : > { %15257 = vmatmul.mubr.msk.f32.gmra.mxu1 %vm4923_vm3, %v9943_v3 }
 0x59a   : > { %15259 = vmatprep.mubr.msk.f32.mxu1 %vm4923_vm3, %v9944_v32 }
 0x59b   : > { %15296 = vmatmul.mubr.msk.f32.vlgmr.msra.gmra.mxu0 %vm4923_vm3, %v10392_v62 }
 0x59c   : > { %15298 = vmatprep.mubr.msk.f32.mxu0 %vm4923_vm3, %v10393_v35  ;;  %15322 = vmatpush3.msra.mxu0 %v9416_v17 }
 0x59d   : > { %15260 = vmatmul.mubr.msk.f32.gmra.mxu1 %vm4923_vm3, %v9945_v23 }
 0x59e   : > { %15262 = vmatprep.mubr.msk.f32.mxu1 %vm4923_vm3, %v9946_v57 }
 0x59f   : > { %15299 = vmatmul.mubr.msk.f32.gmra.mxu0 %vm4923_vm3, %v10394_v5 }
 0x5a0   : > { %15301 = vmatprep.mubr.msk.f32.mxu0 %vm4923_vm3, %v10395_v6 }
 0x5a1   : > { %15263 = vmatmul.mubr.msk.f32.gmra.mxu1 %vm4923_vm3, %v9947_v1 }
 0x5a2   : > { %15281 = vmatprep.mubr.msk.f32.mxu1 %vm4923_vm3, %v10238_v9 }
 0x5a3   : > { %15302 = vmatmul.mubr.msk.f32.gmra.mxu0 %vm4923_vm3, %v10396_v48 }
 0x5a4   : > { %15304 = vmatprep.mubr.msk.f32.mxu0 %vm4923_vm3, %v10397_v42 }
 0x5a5   : > { %15282 = vmatmul.mubr.msk.f32.vlgmr.msra.gmra.mxu1 %vm4923_vm3, %v10239_v4 }
 0x5a6   : > { %15284 = vmatprep.mubr.msk.f32.mxu1 %vm4923_vm3, %v10240_v27  ;;  %15308 = vmatpush3.msra.mxu1 %v9415_v19 }
 0x5a7   : > { %15305 = vmatmul.mubr.msk.f32.gmra.mxu0 %vm4923_vm3, %v10398_v61 }
 0x5a8   : > { %15323 = vmatprep.mubr.msk.f32.mxu0 %vm4923_vm3, %v10689_v21 }
 0x5a9   : > { %15285 = vmatmul.mubr.msk.f32.gmra.mxu1 %vm4923_vm3, %v10241_v59 }
 0x5aa   : > { %15287 = vmatprep.mubr.msk.f32.mxu1 %vm4923_vm3, %v10242_v40 }
 0x5ab   : > { %15324 = vmatmul.mubr.msk.f32.vlgmr.msra.gmra.mxu0 %vm4923_vm3, %v10690_v39 }
 0x5ac   : > { %15326 = vmatprep.mubr.msk.f32.mxu0 %vm4923_vm3, %v10691_v47 }
 0x5ad   : > { %15288 = vmatmul.mubr.msk.f32.gmra.mxu1 %vm4923_vm3, %v10243_v0 }
 0x5ae   : > { %15290 = vmatprep.mubr.msk.f32.mxu1 %vm4923_vm3, %v10244_v54 }
 0x5af   : > { %15327 = vmatmul.mubr.msk.f32.gmra.mxu0 %vm4923_vm3, %v10692_v15 }
 0x5b0   : > { %15329 = vmatprep.mubr.msk.f32.mxu0 %vm4923_vm3, %v10693_v12 }
 0x5b1   : > { %15291 = vmatmul.mubr.msk.f32.gmra.mxu1 %vm4923_vm3, %v10245_v36 }
 0x5b2   : > { %15309 = vmatprep.mubr.msk.f32.mxu1 %vm4923_vm3, %v20565_v2  ;;  %v10543_v2 = vld [vmem:[#allocation5 + $0x49] sm:$0xff] }
 0x5b3   : > { %15330 = vmatmul.mubr.msk.f32.gmra.mxu0 %vm4923_vm3, %v10694_v53 }
 0x5b4   : > { %15332 = vmatprep.mubr.msk.f32.mxu0 %vm4923_vm3, %v10695_v51 }
 0x5b5   : > { %15310 = vmatmul.mubr.msk.f32.vlgmr.msra.gmra.mxu1 %vm4923_vm3, %v20582_v45  ;;  %v10912_v45 = vld [vmem:[%s21292_s10 + $0x18] sm:$0xff] }
 0x5b6   : > { %15312 = vmatprep.mubr.msk.f32.mxu1 %vm4923_vm3, %v20597_v11  ;;  %v10911_v11 = vld [vmem:[%s21292_s10 + $0x10] sm:$0xff]  ;;  %15335 = vmatprep.subr.mxu1 %v10912_v45 }
 0x5b7   : > { %15333 = vmatmul.mubr.msk.f32.gmra.mxu0 %vm4923_vm3, %v10696_v60  ;;  %15336 = vmatpush3.msra.mxu1 %v10912_v45 }
 0x5b8   : > { %15355 = vmatprep.mubr.msk.f32.mxu0 %vm10888_vm5, %v10975_v20  ;;  %15337 = vmatprep.subr.mxu1 %v10911_v11 }
 0x5b9   : > { %15313 = vmatmul.mubr.msk.f32.gmra.mxu1 %vm4923_vm3, %v20609_v55  ;;  %v10910_v55 = vld [vmem:[%s21292_s10 + $0x8] sm:$0xff] }
 0x5ba   : > { %15315 = vmatprep.mubr.msk.f32.mxu1 %vm4923_vm3, %v20621_v52  ;;  %15351 = vmatprep.subr.mxu0 %v10910_v55  ;;  %v10983_v52 = vld [vmem:[#allocation6 + $0x1] sm:$0xff] }
 0x5bb   : > { %15352 = vmatpush3.msra.mxu0 %v10910_v55  ;;  %15338 = vmatpush3.msra.mxu1 %v10911_v11 }
 0x5bc   : > { %15353 = vmatprep.subr.mxu0 %v10909_v34 }
 0x5bd   : > { %15316 = vmatmul.mubr.msk.f32.gmra.mxu1 %vm4923_vm3, %v20634_v13  ;;  %15354 = vmatpush3.msra.mxu0 %v10909_v34  ;;  %v20806_v13 = vld [vmem:[%s21292_s10 + $0x28] sm:$0xff] }
 0x5be   : > { %15318 = vmatprep.mubr.msk.f32.mxu1 %vm4923_vm3, %v20696_v22  ;;  %22445 = vst [vmem:[#allocation117_spill] sm:$0xff] %v20806_v13  ;;  %15367 = vmatprep.subr.mxu1 %v20806_v13 }
 0x5bf   : > { %15383 = vmatprep.subr.mxu0 %v20812_v58 }
 0x5c1   : > { %15319 = vmatmul.mubr.msk.f32.gmra.mxu1 %vm4923_vm3, %v10543_v2 }
 0x5c2   : > { %15339 = vmatprep.mubr.msk.f32.mxu1 %vm10888_vm5, %v10983_v52 }
 0x62a   : > { %v15213_v37 = vpop.f32.mrf.mxu1 }
 0x62c   : > { %v9571_v44 = vpop.f32.mrf.mxu1 }
 0x62f   : > { %v15241_v28 = vpop.f32.mrf.mxu0 }
 0x631   : > { %v9885_v30 = vpop.f32.mrf.mxu0 }
 0x632   : > { %v15216_v46 = vpop.f32.mrf.mxu1 }
 0x634   : > { %v9581_v31 = vpop.f32.mrf.mxu1 }
 0x637   : > { %v15244_v56 = vpop.f32.mrf.mxu0 }
 0x639   : > { %v9895_v14 = vpop.f32.mrf.mxu0 }
 0x63a   : > { %v15219_v38 = vpop.f32.mrf.mxu1 }
 0x63c   : > { %v9591_v43 = vpop.f32.mrf.mxu1 }
 0x63f   : > { %v20815_v17 = vpop.f32.mrf.mxu0 }
 0x641   : > { %v15222_v25 = vpop.f32.mrf.mxu1  ;;  %v20819_v29 = vpop.f32.mrf.mxu0 }
 0x643   : > { %v20817_v63 = vpop.f32.mrf.mxu1 }
 0x645   : > { %v15227_v7 = vpop.f32.mrf.mxu1 }
 0x646   : > { %v9706_v33 = vadd.f32 %v15227_v7, %v15213_v37 }
 0x647   : > { %v9700_v24 = vpop.f32.mrf.mxu1  ;;  %v20821_v26 = vpop.f32.mrf.mxu0 }
 0x648   : > { %v9701_v36 = vadd.f32 %v9700_v24, %v9571_v44  ;;  %v9925_v18 = vadd.f32 %v15241_v28, %v9706_v33  ;;  %v20845_v28 = vpop.permute.xlu1 %10942 }
 0x649   : > { %v15230_v16 = vpop.f32.mrf.mxu1  ;;  %v20823_v19 = vpop.f32.mrf.mxu0 }
 0x64a   : > { %v9716_v51 = vadd.f32 %v15230_v16, %v15216_v46  ;;  %v9924_v11 = vadd.f32 %v9885_v30, %v9701_v36 }
 0x64b   : > { %v9710_v22 = vpop.f32.mrf.mxu1  ;;  %v15269_v50 = vpop.f32.mrf.mxu0 }
 0x64c   : > { %v9711_v2 = vadd.f32 %v9710_v22, %v9581_v31  ;;  %v9927_v10 = vadd.f32 %v15244_v56, %v9716_v51 }
 0x64d   : > { %v15233_v3 = vpop.f32.mrf.mxu1  ;;  %v10183_v32 = vpop.f32.mrf.mxu0 }
 0x64e   : > { %v9726_v37 = vadd.f32 %v15233_v3, %v15219_v38  ;;  %v9926_v24 = vadd.f32 %v9895_v14, %v9711_v2  ;;  %v20850_v3 = vpop.permute.xlu0 %11259 }
 0x64f   : > { %v9720_v62 = vpop.f32.mrf.mxu1  ;;  %v15272_v35 = vpop.f32.mrf.mxu0 }
 0x650   : > { %v9721_v7 = vadd.f32 %v9720_v62, %v9591_v43  ;;  %v9929_v22 = vadd.f32 %v20815_v17, %v9726_v37 }
 0x651   : > { %v15236_v23 = vpop.f32.mrf.mxu1  ;;  %v10193_v57 = vpop.f32.mrf.mxu0 }
 0x652   : > { %v9928_v56 = vadd.f32 %v20819_v29, %v9721_v7  ;;  %v20854_v29 = vpop.permute.xlu1 %11264 }
 0x653   : > { %v9730_v41 = vpop.f32.mrf.mxu1  ;;  %v20825_v5 = vpop.f32.mrf.mxu0 }
 0x654   : > { %v9731_v30 = vadd.f32 %v9730_v41, %v20817_v63 }
 0x655   : > { %v15255_v6 = vpop.f32.mrf.mxu1  ;;  %v20827_v1 = vpop.f32.mrf.mxu0 }
 0x656   : > { %v10078_v45 = vadd.f32 %v15255_v6, %v9925_v18  ;;  %v9930_v63 = vadd.f32 %v20823_v19, %v9731_v30 }
 0x657   : > { %v10038_v9 = vpop.f32.mrf.mxu1  ;;  %v20829_v48 = vpop.f32.mrf.mxu0 }
 0x658   : > { %v10077_v34 = vadd.f32 %v10038_v9, %v9924_v11  ;;  %v20875_v11 = vpop.permute.xlu1 %10952 }
 0x659   : > { %v15258_v42 = vpop.f32.mrf.mxu1  ;;  %v20831_v49 = vpop.f32.mrf.mxu0 }
 0x65a   : > { %v10080_v44 = vadd.f32 %v15258_v42, %v9927_v10  ;;  %v10222_v31 = vadd.f32 %v10183_v32, %v10077_v34 }
 0x65b   : > { %v10048_v4 = vpop.f32.mrf.mxu1  ;;  %v15297_v27 = vpop.f32.mrf.mxu0 }
 0x65c   : > { %v10079_v16 = vadd.f32 %v10048_v4, %v9926_v24  ;;  %v10225_v14 = vadd.f32 %v15272_v35, %v10080_v44 }
 0x65d   : > { %v15261_v61 = vpop.f32.mrf.mxu1  ;;  %v10489_v21 = vpop.f32.mrf.mxu0 }
 0x65e   : > { %v10224_v9 = vadd.f32 %v10193_v57, %v10079_v16 }
 0x65f   : > { %v10058_v59 = vpop.f32.mrf.mxu1  ;;  %v20833_v40 = vpop.f32.mrf.mxu0 }
 0x661   : > { %v15264_v39 = vpop.f32.mrf.mxu1  ;;  %v20835_v47 = vpop.f32.mrf.mxu0 }
 0x663   : > { %v10068_v0 = vpop.f32.mrf.mxu1  ;;  %v20837_v54 = vpop.f32.mrf.mxu0 }
 0x664   : > { %v10083_v36 = vadd.f32 %v10068_v0, %v9930_v63  ;;  %v20892_v63 = vpop.permute.xlu1 %11274 }
 0x665   : > { %v15283_v15 = vpop.f32.mrf.mxu1  ;;  %v20839_v12 = vpop.f32.mrf.mxu0 }
 0x666   : > { %22447 = vst [vmem:[#allocation123_spill] sm:$0xff] %v20839_v12  ;;  %v10223_v12 = vadd.f32 %v15269_v50, %v10078_v45  ;;  %v10082_v50 = vadd.f32 %v15261_v61, %v9929_v22 }
 0x667   : > { %v10336_v53 = vpop.f32.mrf.mxu1  ;;  %v20841_v8 = vpop.f32.mrf.mxu0 }
 0x668   : > { %22448 = vst [vmem:[#allocation55_spill] sm:$0xff] %v20841_v8  ;;  %v9736_v8 = vadd.f32 %v15236_v23, %v15222_v25  ;;  %v10376_v33 = vadd.f32 %v15283_v15, %v10223_v12  ;;  %v10375_v10 = vadd.f32 %v10336_v53, %v10222_v31  ;;  %v10081_v25 = vadd.f32 %v10058_v59, %v9928_v56 }
 0x669   : > { %v15286_v60 = vpop.f32.mrf.mxu1  ;;  %v20843_v20 = vpop.f32.mrf.mxu0  ;;  %v10227_v35 = vadd.f32 %v20825_v5, %v10082_v50  ;;  %v20870_v5 = vld [vmem:[%s21291_s9] ss:$0 sm:$0xff] }
 0x66a   : > { %v9931_v62 = vadd.f32 %v20821_v26, %v9736_v8  ;;  %v10378_v6 = vadd.f32 %v15286_v60, %v10225_v14  ;;  %v10529_v32 = vadd.f32 %v15297_v27, %v10376_v33  ;;  %v10528_v12 = vadd.f32 %v10489_v21, %v10375_v10  ;;  %v20861_v26 = vld [vmem:[%s21290_s8] ss:$0 sm:$0xff]  ;;  %v20863_v27 = vpop.permute.xlu0 %10947 }
 0x66b   : > { %v10346_v55 = vpop.f32.mrf.mxu1  ;;  %v15325_v52 = vpop.f32.mrf.mxu0  ;;  %v10226_v61 = vadd.f32 %v20827_v1, %v10081_v25 }
 0x66c   : > { %v10084_v42 = vadd.f32 %v15264_v39, %v9931_v62  ;;  %v10377_v4 = vadd.f32 %v10346_v55, %v10224_v9  ;;  %v10531_v39 = vadd.f32 %v20833_v40, %v10378_v6  ;;  %v10228_v40 = vadd.f32 %v20831_v49, %v10083_v36 }
 0x66d   : > { %v15289_v58 = vpop.f32.mrf.mxu1  ;;  %v10787_v13 = vpop.f32.mrf.mxu0  ;;  %v22449_v24 = vld [vmem:[#allocation123_spill] sm:$0xff] }
 0x66e   : > { %v10380_v53 = vadd.f32 %v15289_v58, %v10227_v35  ;;  %v10229_v21 = vadd.f32 %v20829_v48, %v10084_v42  ;;  %v10530_v2 = vadd.f32 %v20835_v47, %v10377_v4  ;;  %v20883_v31 = vpop.permute.xlu0 %11269 }
 0x66f   : > { %v10356_v46 = vpop.f32.mrf.mxu1  ;;  %v15328_v38 = vpop.f32.mrf.mxu0  ;;  %v22450_v56 = vld [vmem:[#allocation55_spill] sm:$0xff] }
 0x670   : > { %v10379_v8 = vadd.f32 %v10356_v46, %v10226_v61  ;;  %v10533_v44 = vadd.f32 %v20837_v54, %v10380_v53 }
 0x671   : > { %v15292_v43 = vpop.f32.mrf.mxu1  ;;  %v10797_v17 = vpop.f32.mrf.mxu0 }
 0x672   : > { %v10382_v45 = vadd.f32 %v15292_v43, %v10229_v21  ;;  %v10532_v46 = vadd.f32 %v22449_v24, %v10379_v8 }
 0x673   : > { %v10366_v23 = vpop.f32.mrf.mxu1  ;;  %v15331_v0 = vpop.f32.mrf.mxu0 }
 0x674   : > { %v10381_v37 = vadd.f32 %v10366_v23, %v10228_v40 }
 0x675   : > { %v15311_v41 = vpop.f32.mrf.mxu1  ;;  %v10807_v7 = vpop.f32.mrf.mxu0 }
 0x676   : > { %v10674_v15 = vadd.f32 %v15311_v41, %v10529_v32  ;;  %v10534_v23 = vadd.f32 %v20843_v20, %v10381_v37  ;;  %v20897_v20 = vpop.permute.xlu0 %10957 }
 0x677   : > { %v10634_v57 = vpop.f32.mrf.mxu1  ;;  %v15334_v50 = vpop.f32.mrf.mxu0 }
 0x678   : > { %v10827_v19 = vadd.f32 %v15325_v52, %v10674_v15  ;;  %v10673_v59 = vadd.f32 %v10634_v57, %v10528_v12 }
 0x679   : > { %v15314_v1 = vpop.f32.mrf.mxu1  ;;  %v10817_v35 = vpop.f32.mrf.mxu0 }
 0x67a   : > { %v10841_v51 = vmul.f32 %v20861_v26, %v10827_v19  ;;  %v10826_v18 = vadd.f32 %v10787_v13, %v10673_v59  ;;  %v10676_v60 = vadd.f32 %v15314_v1, %v10531_v39  ;;  %v20908_v1 = vpop.permute.xlu1 %10962 }
 0x67b   : > { %v10644_v58 = vpop.f32.mrf.mxu1 }
 0x67c   : > { %v10855_v48 = vadd.f32 %v20870_v5, %v10841_v51  ;;  %v10840_v55 = vmul.f32 %v20861_v26, %v10826_v18  ;;  %v10829_v52 = vadd.f32 %v15328_v38, %v10676_v60  ;;  %v10675_v34 = vadd.f32 %v10644_v58, %v10530_v2 }
 0x67d   : > { %v15317_v13 = vpop.f32.mrf.mxu1  ;;  %v10535_v38 = vadd.f32 %v22450_v56, %v10382_v45 }
 0x67e   : > { %v10863_v47 = vmax.f32 %v10855_v48, 0.0  ;;  %v10854_v16 = vadd.f32 %v20870_v5, %v10840_v55  ;;  %v10843_v49 = vmul.f32 %v20861_v26, %v10829_v52  ;;  %v10828_v33 = vadd.f32 %v10797_v17, %v10675_v34  ;;  %v20924_v48 = vpop.permute.xlu0 %11279  ;;  %v22451_v55 = vld [vmem:[#allocation117_spill] sm:$0xff]  ;;  %v10915_v52 = vld [vmem:[%s21292_s10 + $0x30] sm:$0xff]  ;;  %v10918_v34 = vld [vmem:[%s21292_s10 + $0x48] sm:$0xff] }
 0x67f   : > { %v10678_v30 = vadd.f32 %v15317_v13, %v10533_v44  ;;  %v10654_v22 = vpop.f32.mrf.mxu1 }
 0x680   : > { %10902 = vst.msk [vmem:[#allocation6 + $0x11] sm:$0xff] %vm10888_vm5, %v10863_v47  ;;  %v10862_v43 = vmax.f32 %v10854_v16, 0.0  ;;  %v10857_v54 = vadd.f32 %v20870_v5, %v10843_v49  ;;  %v10842_v10 = vmul.f32 %v20861_v26, %v10828_v33  ;;  %v10677_v14 = vadd.f32 %v10654_v22, %v10532_v46  ;;  %v22452_v47 = vld [vmem:[#allocation46_spill] sm:$0xff]  ;;  %v20954_v16 = vpop.permute.xlu1 %11284  ;;  %v10920_v49 = vld [vmem:[%s21292_s10 + $0x58] sm:$0xff] }
 0x681   : > { %v10831_v25 = vadd.f32 %v15331_v0, %v10678_v30  ;;  %v15320_v62 = vpop.f32.mrf.mxu1  ;;  %v10913_v0 = vld [vmem:[%s21292_s10 + $0x20] sm:$0xff] }
 0x682   : > { %10901 = vst.msk [vmem:[#allocation6 + $0x9] sm:$0xff] %vm10888_vm5, %v10862_v43  ;;  %v10865_v6 = vmax.f32 %v10857_v54, 0.0  ;;  %v10856_v9 = vadd.f32 %v20870_v5, %v10842_v10  ;;  %v10830_v32 = vadd.f32 %v10807_v7, %v10677_v14  ;;  %v10680_v42 = vadd.f32 %v15320_v62, %v10535_v38  ;;  %v20962_v33 = vpop.permute.xlu0 %10967 }
 0x683   : > { %v10845_v17 = vmul.f32 %v20861_v26, %v10831_v25  ;;  %v10664_v41 = vpop.f32.mrf.mxu1 }
 0x684   : > { %10904 = vst.msk [vmem:[#allocation6 + $0x21] sm:$0xff] %vm10888_vm5, %v10865_v6  ;;  %v10864_v4 = vmax.f32 %v10856_v9, 0.0  ;;  %v10844_v15 = vmul.f32 %v20861_v26, %v10830_v32  ;;  %v10833_v12 = vadd.f32 %v15334_v50, %v10680_v42  ;;  %v10679_v36 = vadd.f32 %v10664_v41, %v10534_v23  ;;  %v20982_v14 = vpop.permute.xlu1 %10972  ;;  %v22453_v32 = vld [vmem:[#allocation118_spill] sm:$0xff] }
 0x685   : > { %v10859_v61 = vadd.f32 %v20870_v5, %v10845_v17 }
 0x686   : > { %10903 = vst.msk [vmem:[#allocation6 + $0x19] sm:$0xff] %vm10888_vm5, %v10864_v4  ;;  %v10858_v57 = vadd.f32 %v20870_v5, %v10844_v15  ;;  %v10847_v19 = vmul.f32 %v20861_v26, %v10833_v12  ;;  %v10832_v59 = vadd.f32 %v10817_v35, %v10679_v36  ;;  %v10917_v15 = vld [vmem:[%s21292_s10 + $0x40] sm:$0xff] }
 0x687   : > { %v10867_v39 = vmax.f32 %v10859_v61, 0.0 }
 0x688   : > { %v10866_v53 = vmax.f32 %v10858_v57, 0.0  ;;  %v10861_v8 = vadd.f32 %v20870_v5, %v10847_v19  ;;  %v10846_v21 = vmul.f32 %v20861_v26, %v10832_v59  ;;  %v20919_v26 = vld [vmem:[#allocation6 + $0x11] sm:$0xff] }
 0x689   : > { %10906 = vst.msk [vmem:[#allocation6 + $0x31] sm:$0xff] %vm10888_vm5, %v10867_v39  ;;  %v20911_v51 = vld [vmem:[#allocation6 + $0x9] sm:$0xff]  ;;  %v10919_v57 = vld [vmem:[%s21292_s10 + $0x50] sm:$0xff] }
 0x68a   : > { %v10928_v18 = vld [vmem:[#allocation6 + $0x8] sm:$0xff]  ;;  %v20913_v60 = vld [vmem:[#allocation6 + $0x10] sm:$0xff]  ;;  %10905 = vst.msk [vmem:[#allocation6 + $0x29] sm:$0xff] %vm10888_vm5, %v10866_v53  ;;  %v10869_v2 = vmax.f32 %v10861_v8, 0.0  ;;  %v10860_v45 = vadd.f32 %v20870_v5, %v10846_v21  ;;  %15340 = vmatmul.mubr.msk.f32.vlgmr.msra.gmra.mxu1 %vm10888_vm5, %v20911_v51 }
 0x68b   : > { %v10976_v40 = vmul.f32 %v20845_v28, %v10928_v18  ;;  %v10977_v58 = vmul.f32 %v20863_v27, %v20913_v60  ;;  %15342 = vmatprep.mubr.msk.f32.mxu1 %vm10888_vm5, %v20919_v26  ;;  %15368 = vmatpush3.msra.mxu1 %v22451_v55  ;;  %v20947_v13 = vld [vmem:[#allocation6 + $0x21] sm:$0xff]  ;;  %v11250_v23 = vld [vmem:[#allocation6 + $0xa] sm:$0xff]  ;;  %v11450_v42 = vmul.f32 %v22453_v32, %v10928_v18  ;;  %v21041_v18 = vpop.permute.xlu0 %11289  ;;  %v21054_v55 = vpop.permute.xlu1 %11294 }
 0x68c   : > { %10908 = vst.msk [vmem:[#allocation6 + $0x41] sm:$0xff] %vm10888_vm5, %v10869_v2  ;;  %v10868_v5 = vmax.f32 %v10860_v45, 0.0  ;;  %15369 = vmatprep.subr.mxu1 %v10913_v0  ;;  %v11249_v10 = vld [vmem:[#allocation6 + $0x2] sm:$0xff]  ;;  %v11298_v17 = vmul.f32 %v20854_v29, %v11250_v23  ;;  %v11451_v12 = vmul.f32 %v20845_v28, %v20913_v60  ;;  %v10922_v39 = vld [vmem:[%s21292_s10 + $0x68] sm:$0xff] }
 0x68d   : > { %15356 = vmatmul.mubr.msk.f32.vlgmr.msra.gmra.mxu0 %vm10888_vm5, %v10976_v40  ;;  %v20938_v37 = vld [vmem:[#allocation6 + $0x19] sm:$0xff]  ;;  %15370 = vmatpush3.msra.mxu1 %v10913_v0  ;;  %v11297_v25 = vmul.f32 %v20850_v3, %v11249_v10 }
 0x68e   : > { %15358 = vmatprep.mubr.msk.f32.mxu0 %vm10888_vm5, %v10977_v58  ;;  %v20940_v7 = vld [vmem:[#allocation6 + $0x18] sm:$0xff]  ;;  %v20942_v44 = vld [vmem:[#allocation6 + $0x20] sm:$0xff]  ;;  %10907 = vst.msk [vmem:[#allocation6 + $0x39] sm:$0xff] %vm10888_vm5, %v10868_v5  ;;  %15343 = vmatmul.mubr.msk.f32.gmra.mxu1 %vm10888_vm5, %v20938_v37 }
 0x68f   : > { %v10978_v24 = vmul.f32 %v20875_v11, %v20940_v7  ;;  %v10979_v46 = vmul.f32 %v20897_v20, %v20942_v44  ;;  %15384 = vmatpush3.msra.mxu0 %v22452_v47  ;;  %15345 = vmatprep.mubr.msk.f32.mxu1 %vm10888_vm5, %v20947_v13  ;;  %v20994_v9 = vld [vmem:[#allocation6 + $0x12] sm:$0xff]  ;;  %v21003_v4 = vld [vmem:[#allocation6 + $0x1a] sm:$0xff]  ;;  %v11452_v35 = vmul.f32 %v20863_v27, %v20940_v7  ;;  %v10921_v47 = vld [vmem:[%s21292_s10 + $0x60] sm:$0xff] }
 0x690   : > { %15385 = vmatprep.subr.mxu0 %v10915_v52  ;;  %15399 = vmatprep.subr.mxu1 %v10918_v34  ;;  %v20973_v38 = vld [vmem:[#allocation6 + $0x31] sm:$0xff]  ;;  %v11299_v41 = vmul.f32 %v20883_v31, %v20994_v9  ;;  %v11300_v61 = vmul.f32 %v20892_v63, %v21003_v4  ;;  %v11453_v53 = vmul.f32 %v20875_v11, %v20942_v44  ;;  %v10924_v0 = vld [vmem:[%s21292_s10 + $0x78] sm:$0xff] }
 0x691   : > { %15359 = vmatmul.mubr.msk.f32.gmra.mxu0 %vm10888_vm5, %v10978_v24  ;;  %v20965_v30 = vld [vmem:[#allocation6 + $0x29] sm:$0xff] }
 0x692   : > { %15361 = vmatprep.mubr.msk.f32.mxu0 %vm10888_vm5, %v10979_v46  ;;  %v20967_v22 = vld [vmem:[#allocation6 + $0x28] sm:$0xff]  ;;  %v20969_v56 = vld [vmem:[#allocation6 + $0x30] sm:$0xff]  ;;  %15386 = vmatpush3.msra.mxu0 %v10915_v52  ;;  %v11748_v46 = vmul.f32 %v20850_v3, %v11250_v23 }
 0x693   : > { %15346 = vmatmul.mubr.msk.f32.gmra.mxu1 %vm10888_vm5, %v20965_v30  ;;  %v10980_v43 = vmul.f32 %v20908_v1, %v20967_v22  ;;  %v10981_v54 = vmul.f32 %v20962_v33, %v20969_v56  ;;  %15415 = vmatprep.subr.mxu0 %v10920_v49  ;;  %v21011_v36 = vld [vmem:[#allocation6 + $0x22] sm:$0xff]  ;;  %v21025_v59 = vld [vmem:[#allocation6 + $0x2a] sm:$0xff]  ;;  %v11454_v21 = vmul.f32 %v20897_v20, %v20967_v22 }
 0x694   : > { %15348 = vmatprep.mubr.msk.f32.mxu1 %vm10888_vm5, %v20973_v38  ;;  %v11301_v19 = vmul.f32 %v20924_v48, %v21011_v36  ;;  %v11302_v2 = vmul.f32 %v20954_v16, %v21025_v59  ;;  %v11455_v58 = vmul.f32 %v20908_v1, %v20969_v56  ;;  %v11751_v10 = vmul.f32 %v20892_v63, %v21011_v36 }
 0x695   : > { %15362 = vmatmul.mubr.msk.f32.gmra.mxu0 %vm10888_vm5, %v10980_v43  ;;  %v20985_v50 = vld [vmem:[#allocation6 + $0x39] sm:$0xff] }
 0x696   : > { %15364 = vmatprep.mubr.msk.f32.mxu0 %vm10888_vm5, %v10981_v54  ;;  %v20988_v62 = vld [vmem:[#allocation6 + $0x38] sm:$0xff]  ;;  %v21059_v52 = vld [vmem:[#allocation6 + $0x40] sm:$0xff]  ;;  %v10926_v54 = vld [vmem:[%s21292_s10 + $0x88] sm:$0xff] }
 0x697   : > { %15349 = vmatmul.mubr.msk.f32.gmra.mxu1 %vm10888_vm5, %v20985_v50  ;;  %v10982_v6 = vmul.f32 %v20982_v14, %v20988_v62  ;;  %v21033_v8 = vld [vmem:[#allocation6 + $0x32] sm:$0xff]  ;;  %v21049_v40 = vld [vmem:[#allocation6 + $0x3a] sm:$0xff]  ;;  %v11456_v5 = vmul.f32 %v20962_v33, %v20988_v62  ;;  %v11457_v24 = vmul.f32 %v21059_v52, %v20982_v14 }
 0x698   : > { %15371 = vmatprep.mubr.msk.f32.mxu1 %vm10888_vm5, %v11297_v25  ;;  %v11303_v45 = vmul.f32 %v21041_v18, %v21033_v8  ;;  %v10923_v43 = vld [vmem:[%s21292_s10 + $0x70] sm:$0xff]  ;;  %v11752_v25 = vmul.f32 %v20924_v48, %v21025_v59  ;;  %v11753_v23 = vmul.f32 %v20954_v16, %v21033_v8 }
 0x699   : > { %15365 = vmatmul.mubr.msk.f32.gmra.mxu0 %vm10888_vm5, %v10982_v6  ;;  %v11754_v6 = vmul.f32 %v21041_v18, %v21049_v40 }
 0x69a   : > { %15387 = vmatprep.mubr.msk.f32.mxu0 %vm10888_vm5, %v11450_v42  ;;  %v11747_v42 = vld [vmem:[#allocation6 + $0x42] sm:$0xff] }
 0x69b   : > { %15372 = vmatmul.mubr.msk.f32.vlgmr.msra.gmra.mxu1 %vm10888_vm5, %v11298_v17  ;;  %v11602_v17 = vld [vmem:[#allocation6 + $0x41] sm:$0xff] }
 0x69c   : > { %15374 = vmatprep.mubr.msk.f32.mxu1 %vm10888_vm5, %v11299_v41  ;;  %15400 = vmatpush3.msra.mxu1 %v10918_v34  ;;  %v11304_v34 = vmul.f32 %v21054_v55, %v21049_v40  ;;  %v11901_v41 = vmul.f32 %v22453_v32, %v20913_v60  ;;  %v10925_v60 = vld [vmem:[%s21292_s10 + $0x80] sm:$0xff] }
 0x69d   : > { %15388 = vmatmul.mubr.msk.f32.vlgmr.msra.gmra.mxu0 %vm10888_vm5, %v11451_v12  ;;  %15401 = vmatprep.subr.mxu1 %v10917_v15  ;;  %v11902_v12 = vmul.f32 %v20845_v28, %v20940_v7  ;;  %v11904_v28 = vmul.f32 %v20875_v11, %v20967_v22  ;;  %v11906_v11 = vmul.f32 %v20908_v1, %v20988_v62  ;;  %v12198_v22 = vld [vmem:[#allocation6 + $0x4a] sm:$0xff] }
 0x69e   : > { %15390 = vmatprep.mubr.msk.f32.mxu0 %vm10888_vm5, %v11452_v35  ;;  %15402 = vmatpush3.msra.mxu1 %v10917_v15  ;;  %v11755_v15 = vmul.f32 %v11747_v42, %v21054_v55  ;;  %v11903_v35 = vmul.f32 %v20863_v27, %v20942_v44  ;;  %v11905_v27 = vmul.f32 %v20897_v20, %v20969_v56  ;;  %v11900_v20 = vld [vmem:[#allocation6 + $0x48] sm:$0xff] }
 0x69f   : > { %15375 = vmatmul.mubr.msk.f32.gmra.mxu1 %vm10888_vm5, %v11300_v61  ;;  %15416 = vmatpush3.msra.mxu0 %v10920_v49  ;;  %v11749_v49 = vmul.f32 %v20854_v29, %v20994_v9  ;;  %v11908_v7 = vmul.f32 %v11900_v20, %v20982_v14  ;;  %v12199_v1 = vmul.f32 %v20850_v3, %v20994_v9  ;;  %v12053_v44 = vld [vmem:[#allocation6 + $0x49] sm:$0xff] }
 0x6a0   : > { %15377 = vmatprep.mubr.msk.f32.mxu1 %vm10888_vm5, %v11301_v19  ;;  %15417 = vmatprep.subr.mxu0 %v10919_v57  ;;  %v12202_v3 = vmul.f32 %v20892_v63, %v21025_v59  ;;  %v12206_v56 = vmul.f32 %v12198_v22, %v21054_v55  ;;  %v12380_v63 = vld [vmem:[%s21300_s18] sm:$0xff] }
 0x6a1   : > { %15391 = vmatmul.mubr.msk.f32.gmra.mxu0 %vm10888_vm5, %v11453_v53  ;;  %15431 = vmatprep.subr.mxu1 %v10922_v39 }
 0x6a2   : > { %15393 = vmatprep.mubr.msk.f32.mxu0 %vm10888_vm5, %v11454_v21  ;;  %15418 = vmatpush3.msra.mxu0 %v10919_v57 }
 0x6a3   : > { %15378 = vmatmul.mubr.msk.f32.gmra.mxu1 %vm10888_vm5, %v11302_v2  ;;  %15447 = vmatprep.subr.mxu0 %v10924_v0 }
 0x6a4   : > { %15380 = vmatprep.mubr.msk.f32.mxu1 %vm10888_vm5, %v11303_v45 }
 0x6a5   : > { %15394 = vmatmul.mubr.msk.f32.gmra.mxu0 %vm10888_vm5, %v11455_v58 }
 0x6a6   : > { %15396 = vmatprep.mubr.msk.f32.mxu0 %vm10888_vm5, %v11456_v5 }
 0x6a7   : > { %15381 = vmatmul.mubr.msk.f32.gmra.mxu1 %vm10888_vm5, %v11304_v34 }
 0x6a8   : > { %15403 = vmatprep.mubr.msk.f32.mxu1 %vm10888_vm5, %v20911_v51  ;;  %v11750_v51 = vmul.f32 %v20883_v31, %v21003_v4 }
 0x6a9   : > { %15397 = vmatmul.mubr.msk.f32.gmra.mxu0 %vm10888_vm5, %v11457_v24 }
 0x6aa   : > { %15419 = vmatprep.mubr.msk.f32.mxu0 %vm10888_vm5, %v11748_v46 }
 0x6ab   : > { %15404 = vmatmul.mubr.msk.f32.vlgmr.msra.gmra.mxu1 %vm10888_vm5, %v20919_v26 }
 0x6ac   : > { %15406 = vmatprep.mubr.msk.f32.mxu1 %vm10888_vm5, %v20938_v37  ;;  %15432 = vmatpush3.msra.mxu1 %v10922_v39 }
 0x6ad   : > { %15420 = vmatmul.mubr.msk.f32.vlgmr.msra.gmra.mxu0 %vm10888_vm5, %v11749_v49  ;;  %15433 = vmatprep.subr.mxu1 %v10921_v47 }
 0x6ae   : > { %15422 = vmatprep.mubr.msk.f32.mxu0 %vm10888_vm5, %v11750_v51  ;;  %15434 = vmatpush3.msra.mxu1 %v10921_v47 }
 0x6af   : > { %15407 = vmatmul.mubr.msk.f32.gmra.mxu1 %vm10888_vm5, %v20947_v13  ;;  %15448 = vmatpush3.msra.mxu0 %v10924_v0 }
 0x6b0   : > { %15409 = vmatprep.mubr.msk.f32.mxu1 %vm10888_vm5, %v20965_v30  ;;  %15449 = vmatprep.subr.mxu0 %v10923_v43 }
 0x6b1   : > { %15423 = vmatmul.mubr.msk.f32.gmra.mxu0 %vm10888_vm5, %v11751_v10  ;;  %15463 = vmatprep.subr.mxu1 %v10926_v54 }
 0x6b2   : > { %15425 = vmatprep.mubr.msk.f32.mxu0 %vm10888_vm5, %v11752_v25  ;;  %15450 = vmatpush3.msra.mxu0 %v10923_v43 }
 0x6b3   : > { %15410 = vmatmul.mubr.msk.f32.gmra.mxu1 %vm10888_vm5, %v20973_v38 }
 0x6b4   : > { %15412 = vmatprep.mubr.msk.f32.mxu1 %vm10888_vm5, %v20985_v50 }
 0x6b5   : > { %15426 = vmatmul.mubr.msk.f32.gmra.mxu0 %vm10888_vm5, %v11753_v23 }
 0x6b6   : > { %15428 = vmatprep.mubr.msk.f32.mxu0 %vm10888_vm5, %v11754_v6 }
 0x6b7   : > { %15413 = vmatmul.mubr.msk.f32.gmra.mxu1 %vm10888_vm5, %v11602_v17 }
 0x6b8   : > { %15435 = vmatprep.mubr.msk.f32.mxu1 %vm10888_vm5, %v11901_v41 }
 0x6b9   : > { %15429 = vmatmul.mubr.msk.f32.gmra.mxu0 %vm10888_vm5, %v11755_v15 }
 0x6ba   : > { %15451 = vmatprep.mubr.msk.f32.mxu0 %vm10888_vm5, %v20919_v26  ;;  %v22454_v26 = vmov 0.0  }
 0x6bb   : > { %15436 = vmatmul.mubr.msk.f32.vlgmr.msra.gmra.mxu1 %vm10888_vm5, %v11902_v12 }
 0x6bc   : > { %15438 = vmatprep.mubr.msk.f32.mxu1 %vm10888_vm5, %v11903_v35  ;;  %15464 = vmatpush3.msra.mxu1 %v10926_v54 }
 0x6bd   : > { %15452 = vmatmul.mubr.msk.f32.vlgmr.msra.gmra.mxu0 %vm10888_vm5, %v20938_v37  ;;  %15465 = vmatprep.subr.mxu1 %v10925_v60  ;;  %v11907_v37 = vmul.f32 %v21059_v52, %v20962_v33  ;;  %v12201_v33 = vmul.f32 %v20883_v31, %v21011_v36  ;;  %v12205_v31 = vmul.f32 %v11747_v42, %v21041_v18 }
 0x6be   : > { %15454 = vmatprep.mubr.msk.f32.mxu0 %vm10888_vm5, %v20947_v13  ;;  %15466 = vmatpush3.msra.mxu1 %v10925_v60  ;;  %v12200_v13 = vmul.f32 %v20854_v29, %v21003_v4  ;;  %v12204_v29 = vmul.f32 %v20954_v16, %v21049_v40 }
 0x6bf   : > { %15439 = vmatmul.mubr.msk.f32.gmra.mxu1 %vm10888_vm5, %v11904_v28  ;;  %15498 = vmatprep.subr.mxu1 %v22454_v26 }
 0x6c0   : > { %15441 = vmatprep.mubr.msk.f32.mxu1 %vm10888_vm5, %v11905_v27 }
 0x6c1   : > { %15455 = vmatmul.mubr.msk.f32.gmra.mxu0 %vm10888_vm5, %v20965_v30  ;;  %v12203_v30 = vmul.f32 %v20924_v48, %v21033_v8 }
 0x6c2   : > { %15457 = vmatprep.mubr.msk.f32.mxu0 %vm10888_vm5, %v20973_v38 }
 0x6c3   : > { %15442 = vmatmul.mubr.msk.f32.gmra.mxu1 %vm10888_vm5, %v11906_v11 }
 0x6c4   : > { %15444 = vmatprep.mubr.msk.f32.mxu1 %vm10888_vm5, %v11907_v37 }
 0x6c5   : > { %15458 = vmatmul.mubr.msk.f32.gmra.mxu0 %vm10888_vm5, %v20985_v50 }
 0x6c6   : > { %15460 = vmatprep.mubr.msk.f32.mxu0 %vm10888_vm5, %v11602_v17 }
 0x6c7   : > { %15445 = vmatmul.mubr.msk.f32.gmra.mxu1 %vm10888_vm5, %v11908_v7 }
 0x6c8   : > { %15467 = vmatprep.mubr.msk.f32.mxu1 %vm10888_vm5, %v12199_v1 }
 0x6c9   : > { %15461 = vmatmul.mubr.msk.f32.gmra.mxu0 %vm10888_vm5, %v12053_v44 }
 0x6ca   : > { %15495 = vmatprep.mubr.msk.f32.mxu0 %vm12439_vm7, %v12380_v63 }
 0x6cb   : > { %15468 = vmatmul.mubr.msk.f32.vlgmr.msra.gmra.mxu1 %vm10888_vm5, %v12200_v13 }
 0x6cc   : > { %15470 = vmatprep.mubr.msk.f32.mxu1 %vm10888_vm5, %v12201_v33 }
 0x6cf   : > { %15471 = vmatmul.mubr.msk.f32.gmra.mxu1 %vm10888_vm5, %v12202_v3 }
 0x6d0   : > { %15473 = vmatprep.mubr.msk.f32.mxu1 %vm10888_vm5, %v12203_v30 }
 0x6d3   : > { %15474 = vmatmul.mubr.msk.f32.gmra.mxu1 %vm10888_vm5, %v12204_v29 }
 0x6d4   : > { %15476 = vmatprep.mubr.msk.f32.mxu1 %vm10888_vm5, %v12205_v31 }
 0x6d7   : > { %15477 = vmatmul.mubr.msk.f32.gmra.mxu1 %vm10888_vm5, %v12206_v56 }
 0x74a   : > { %v15341_v48 = vpop.f32.mrf.mxu1 }
 0x74c   : > { %v11081_v16 = vpop.f32.mrf.mxu1 }
 0x74d   : > { %v15357_v38 = vpop.f32.mrf.mxu0 }
 0x74e   : > { %v15344_v14 = vpop.f32.mrf.mxu1  ;;  %v11216_v60 = vadd.f32 %v15357_v38, %v15341_v48 }
 0x74f   : > { %v11210_v50 = vpop.f32.mrf.mxu0 }
 0x750   : > { %v11091_v62 = vpop.f32.mrf.mxu1  ;;  %v11211_v11 = vadd.f32 %v11210_v50, %v11081_v16 }
 0x751   : > { %v15360_v9 = vpop.f32.mrf.mxu0 }
 0x752   : > { %v11226_v1 = vadd.f32 %v15360_v9, %v15344_v14 }
 0x753   : > { %v15347_v32 = vpop.f32.mrf.mxu1  ;;  %v11220_v4 = vpop.f32.mrf.mxu0 }
 0x754   : > { %v11221_v3 = vadd.f32 %v11220_v4, %v11091_v62 }
 0x755   : > { %v11101_v36 = vpop.f32.mrf.mxu1  ;;  %v15363_v61 = vpop.f32.mrf.mxu0 }
 0x756   : > { %v11236_v22 = vadd.f32 %v15363_v61, %v15347_v32 }
 0x757   : > { %v15350_v57 = vpop.f32.mrf.mxu1  ;;  %v11230_v19 = vpop.f32.mrf.mxu0 }
 0x758   : > { %v11231_v26 = vadd.f32 %v11230_v19, %v11101_v36 }
 0x759   : > { %v21182_v59 = vpop.f32.mrf.mxu1  ;;  %v15366_v39 = vpop.f32.mrf.mxu0 }
 0x75b   : > { %v21184_v53 = vpop.f32.mrf.mxu0  ;;  %v15373_v8 = vpop.f32.mrf.mxu1 }
 0x75c   : > { %v11435_v37 = vadd.f32 %v15373_v8, %v11216_v60  ;;  %v11241_v32 = vadd.f32 %v21184_v53, %v21182_v59 }
 0x75d   : > { %v11395_v21 = vpop.f32.mrf.mxu1  ;;  %v15389_v0 = vpop.f32.mrf.mxu0 }
 0x75e   : > { %v11434_v44 = vadd.f32 %v11395_v21, %v11211_v11  ;;  %v11588_v30 = vadd.f32 %v15389_v0, %v11435_v37 }
 0x75f   : > { %v15376_v18 = vpop.f32.mrf.mxu1  ;;  %v11548_v2 = vpop.f32.mrf.mxu0 }
 0x760   : > { %v11437_v29 = vadd.f32 %v15376_v18, %v11226_v1  ;;  %v11587_v63 = vadd.f32 %v11548_v2, %v11434_v44 }
 0x761   : > { %v11405_v45 = vpop.f32.mrf.mxu1  ;;  %v15392_v40 = vpop.f32.mrf.mxu0 }
 0x762   : > { %v11436_v48 = vadd.f32 %v11405_v45, %v11221_v3  ;;  %v11590_v8 = vadd.f32 %v15392_v40, %v11437_v29 }
 0x763   : > { %v15379_v58 = vpop.f32.mrf.mxu1  ;;  %v11558_v55 = vpop.f32.mrf.mxu0 }
 0x764   : > { %v11589_v21 = vadd.f32 %v11558_v55, %v11436_v48 }
 0x765   : > { %v11415_v5 = vpop.f32.mrf.mxu1  ;;  %v15395_v52 = vpop.f32.mrf.mxu0 }
 0x766   : > { %v11438_v14 = vadd.f32 %v11415_v5, %v11231_v26 }
 0x767   : > { %v15382_v34 = vpop.f32.mrf.mxu1  ;;  %v11568_v24 = vpop.f32.mrf.mxu0 }
 0x768   : > { %v11591_v45 = vadd.f32 %v11568_v24, %v11438_v14 }
 0x769   : > { %v11425_v46 = vpop.f32.mrf.mxu1  ;;  %v15398_v47 = vpop.f32.mrf.mxu0 }
 0x76b   : > { %v21186_v49 = vpop.f32.mrf.mxu0  ;;  %v15405_v51 = vpop.f32.mrf.mxu1 }
 0x76c   : > { %v11733_v38 = vadd.f32 %v15405_v51, %v11588_v30 }
 0x76d   : > { %v11693_v43 = vpop.f32.mrf.mxu1  ;;  %v15421_v54 = vpop.f32.mrf.mxu0 }
 0x76e   : > { %v11732_v60 = vadd.f32 %v11693_v43, %v11587_v63  ;;  %v11886_v11 = vadd.f32 %v15421_v54, %v11733_v38 }
 0x76f   : > { %v15408_v10 = vpop.f32.mrf.mxu1  ;;  %v11846_v25 = vpop.f32.mrf.mxu0 }
 0x770   : > { %v11735_v62 = vadd.f32 %v15408_v10, %v11590_v8  ;;  %v11885_v2 = vadd.f32 %v11846_v25, %v11732_v60 }
 0x771   : > { %v11703_v23 = vpop.f32.mrf.mxu1  ;;  %v15424_v6 = vpop.f32.mrf.mxu0 }
 0x772   : > { %v11734_v36 = vadd.f32 %v11703_v23, %v11589_v21 }
 0x773   : > { %v15411_v42 = vpop.f32.mrf.mxu1  ;;  %v11856_v17 = vpop.f32.mrf.mxu0 }
 0x774   : > { %v11887_v54 = vadd.f32 %v11856_v17, %v11734_v36  ;;  %v13456_v17 = vld [vmem:[%s21294_s12] ss:$0 sm:$0xff] }
 0x775   : > { %v11713_v41 = vpop.f32.mrf.mxu1  ;;  %v15427_v15 = vpop.f32.mrf.mxu0 }
 0x776   : > { %v11736_v5 = vadd.f32 %v11713_v41, %v11591_v45 }
 0x777   : > { %v15414_v12 = vpop.f32.mrf.mxu1  ;;  %v21188_v35 = vpop.f32.mrf.mxu0 }
 0x779   : > { %v11723_v28 = vpop.f32.mrf.mxu1  ;;  %v21190_v27 = vpop.f32.mrf.mxu0 }
 0x77a   : > { %22455 = vst [vmem:[#allocation19_spill] sm:$0xff] %v21190_v27  ;;  %v11439_v27 = vadd.f32 %v15379_v58, %v11236_v22  ;;  %v11440_v58 = vadd.f32 %v11425_v46, %v11241_v32 }
 0x77b   : > { %v21192_v20 = vpop.f32.mrf.mxu0  ;;  %v15437_v7 = vpop.f32.mrf.mxu1 }
 0x77c   : > { %22456 = vst [vmem:[#allocation71_spill] sm:$0xff] %v21192_v20  ;;  %v11246_v20 = vadd.f32 %v15366_v39, %v15350_v57  ;;  %v11592_v61 = vadd.f32 %v15395_v52, %v11439_v27  ;;  %v12039_v19 = vadd.f32 %v15437_v7, %v11886_v11  ;;  %v11888_v57 = vadd.f32 %v15424_v6, %v11735_v62 }
 0x77d   : > { %v11999_v13 = vpop.f32.mrf.mxu1  ;;  %v15453_v33 = vpop.f32.mrf.mxu0  ;;  %v11593_v59 = vadd.f32 %v21186_v49, %v11440_v58 }
 0x77e   : > { %v11441_v0 = vadd.f32 %v15382_v34, %v11246_v20  ;;  %v11737_v40 = vadd.f32 %v15411_v42, %v11592_v61  ;;  %v12038_v26 = vadd.f32 %v11999_v13, %v11885_v2  ;;  %v12184_v10 = vadd.f32 %v15453_v33, %v12039_v19  ;;  %v13455_v34 = vld [vmem:[%s21293_s11] ss:$0 sm:$0xff] }
 0x77f   : > { %v15440_v31 = vpop.f32.mrf.mxu1  ;;  %v12144_v56 = vpop.f32.mrf.mxu0  ;;  %v11738_v42 = vadd.f32 %v11723_v28, %v11593_v59 }
 0x780   : > { %v11594_v55 = vadd.f32 %v15398_v47, %v11441_v0  ;;  %v12041_v37 = vadd.f32 %v15440_v31, %v11888_v57  ;;  %v11890_v53 = vadd.f32 %v15427_v15, %v11737_v40  ;;  %v12183_v46 = vadd.f32 %v12144_v56, %v12038_v26 }
 0x781   : > { %v12009_v16 = vpop.f32.mrf.mxu1  ;;  %v15456_v50 = vpop.f32.mrf.mxu0  ;;  %v11889_v47 = vadd.f32 %v21188_v35, %v11736_v5  ;;  %v22457_v20 = vld [vmem:[#allocation19_spill] sm:$0xff] }
 0x782   : > { %v11739_v52 = vadd.f32 %v15414_v12, %v11594_v55  ;;  %v12040_v25 = vadd.f32 %v12009_v16, %v11887_v54  ;;  %v12186_v15 = vadd.f32 %v15456_v50, %v12041_v37 }
 0x783   : > { %v15443_v9 = vpop.f32.mrf.mxu1  ;;  %v12154_v4 = vpop.f32.mrf.mxu0  ;;  %v22458_v35 = vld [vmem:[#allocation71_spill] sm:$0xff] }
 0x784   : > { %v12043_v41 = vadd.f32 %v15443_v9, %v11890_v53  ;;  %v11892_v7 = vadd.f32 %v22457_v20, %v11739_v52  ;;  %v12185_v13 = vadd.f32 %v12154_v4, %v12040_v25  ;;  %v11891_v28 = vadd.f32 %v22458_v35, %v11738_v42 }
 0x785   : > { %v12019_v18 = vpop.f32.mrf.mxu1  ;;  %v15459_v39 = vpop.f32.mrf.mxu0 }
 0x786   : > { %v12042_v1 = vadd.f32 %v12019_v18, %v11889_v47  ;;  %v12188_v22 = vadd.f32 %v15459_v39, %v12043_v41 }
 0x787   : > { %v15446_v51 = vpop.f32.mrf.mxu1  ;;  %v12164_v23 = vpop.f32.mrf.mxu0 }
 0x788   : > { %v12045_v31 = vadd.f32 %v15446_v51, %v11892_v7  ;;  %v12187_v50 = vadd.f32 %v12164_v23, %v12042_v1 }
 0x789   : > { %v12029_v43 = vpop.f32.mrf.mxu1  ;;  %v15462_v33 = vpop.f32.mrf.mxu0 }
 0x78a   : > { %v12044_v8 = vadd.f32 %v12029_v43, %v11891_v28  ;;  %v12190_v4 = vadd.f32 %v15462_v33, %v12045_v31 }
 0x78b   : > { %v15469_v24 = vpop.f32.mrf.mxu1  ;;  %v12174_v14 = vpop.f32.mrf.mxu0 }
 0x78c   : > { %v12337_v6 = vadd.f32 %v15469_v24, %v12184_v10  ;;  %v12189_v36 = vadd.f32 %v12174_v14, %v12044_v8 }
 0x78d   : > { %v12297_v49 = vpop.f32.mrf.mxu1 }
 0x78e   : > { %v12351_v12 = vmul.f32 %v13455_v34, %v12337_v6  ;;  %v12336_v27 = vadd.f32 %v12297_v49, %v12183_v46  ;;  %v12430_v49 = vld [vmem:[#allocation7 + $0x40] sm:$0xff] }
 0x78f   : > { %v15472_v44 = vpop.f32.mrf.mxu1 }
 0x790   : > { %v12365_v3 = vadd.f32 %v13456_v17, %v12351_v12  ;;  %v12350_v30 = vmul.f32 %v13455_v34, %v12336_v27  ;;  %v12339_v29 = vadd.f32 %v15472_v44, %v12186_v15 }
 0x791   : > { %v12307_v56 = vpop.f32.mrf.mxu1 }
 0x792   : > { %v12373_v63 = vmax.f32 %v12365_v3, 0.0  ;;  %v12364_v48 = vadd.f32 %v13456_v17, %v12350_v30  ;;  %v12353_v38 = vmul.f32 %v13455_v34, %v12339_v29  ;;  %v12338_v16 = vadd.f32 %v12307_v56, %v12185_v13 }
 0x793   : > { %v15475_v60 = vpop.f32.mrf.mxu1 }
 0x794   : > { %12392 = vst.msk [vmem:[#allocation7 + $0x8] sm:$0xff] %vm10888_vm5, %v12373_v63  ;;  %v12372_v9 = vmax.f32 %v12364_v48, 0.0  ;;  %v12367_v21 = vadd.f32 %v13456_v17, %v12353_v38  ;;  %v12352_v11 = vmul.f32 %v13455_v34, %v12338_v16  ;;  %v12341_v62 = vadd.f32 %v15475_v60, %v12188_v22  ;;  %v12381_v16 = vld [vmem:[%s21300_s18 + $0x8] sm:$0xff]  ;;  %v12521_v60 = vld [vmem:[%s21301_s19] sm:$0xff] }
 0x795   : > { %v12317_v32 = vpop.f32.mrf.mxu1 }
 0x796   : > { %12391 = vst.msk [vmem:[#allocation7] sm:$0xff] %vm10888_vm5, %v12372_v9  ;;  %v12375_v61 = vmax.f32 %v12367_v21, 0.0  ;;  %v12366_v0 = vadd.f32 %v13456_v17, %v12352_v11  ;;  %v12355_v18 = vmul.f32 %v13455_v34, %v12341_v62  ;;  %v12340_v2 = vadd.f32 %v12317_v32, %v12187_v50  ;;  %v12523_v21 = vld [vmem:[%s21301_s19 + $0x10] sm:$0xff]  ;;  %v12524_v11 = vld [vmem:[%s21301_s19 + $0x18] sm:$0xff]  ;;  %v12525_v62 = vld [vmem:[%s21301_s19 + $0x20] sm:$0xff] }
 0x797   : > { %v15478_v19 = vpop.f32.mrf.mxu1  ;;  %v22459_v50 = vmov 0.0   ;;  %v12527_v32 = vld [vmem:[%s21301_s19 + $0x30] sm:$0x1] }
 0x798   : > { %12394 = vst.msk [vmem:[#allocation7 + $0x18] sm:$0xff] %vm10888_vm5, %v12375_v61  ;;  %v12374_v45 = vmax.f32 %v12366_v0, 0.0  ;;  %v12369_v58 = vadd.f32 %v13456_v17, %v12355_v18  ;;  %v12354_v40 = vmul.f32 %v13455_v34, %v12340_v2  ;;  %v12343_v51 = vadd.f32 %v15478_v19, %v12190_v4  ;;  %15502 = vmatprep.mubr.msk.f32.mxu1 %vm15597_vm8, %v22459_v50  ;;  %v12526_v4 = vld [vmem:[%s21301_s19 + $0x28] sm:$0xff] }
 0x799   : > { %v12327_v57 = vpop.f32.mrf.mxu1 }
 0x79a   : > { %12393 = vst.msk [vmem:[#allocation7 + $0x10] sm:$0xff] %vm10888_vm5, %v12374_v45  ;;  %v12377_v26 = vmax.f32 %v12369_v58, 0.0  ;;  %v12368_v39 = vadd.f32 %v13456_v17, %v12354_v40  ;;  %v12357_v55 = vmul.f32 %v13455_v34, %v12343_v51  ;;  %v12342_v5 = vadd.f32 %v12327_v57, %v12189_v36 }
 0x79c   : > { %12396 = vst.msk [vmem:[#allocation7 + $0x28] sm:$0xff] %vm10888_vm5, %v12377_v26  ;;  %v12376_v43 = vmax.f32 %v12368_v39, 0.0  ;;  %v12371_v54 = vadd.f32 %v13456_v17, %v12357_v55  ;;  %v12356_v10 = vmul.f32 %v13455_v34, %v12342_v5 }
 0x79d   : > { %v12399_v37 = vld [vmem:[#allocation7 + $0x1] sm:$0xff] }
 0x79e   : > { %12395 = vst.msk [vmem:[#allocation7 + $0x20] sm:$0xff] %vm10888_vm5, %v12376_v43  ;;  %v12379_v59 = vmax.f32 %v12371_v54, 0.0  ;;  %v12370_v53 = vadd.f32 %v13456_v17, %v12356_v10  ;;  %v12407_v52 = vmax.f32 %v12372_v9, %v12399_v37  ;;  %v12522_v9 = vld [vmem:[%s21301_s19 + $0x8] sm:$0xff] }
 0x7a0   : > { %12398 = vst.msk [vmem:[#allocation7 + $0x38] sm:$0xff] %vm10888_vm5, %v12379_v59  ;;  %v12378_v24 = vmax.f32 %v12370_v53, 0.0  ;;  %12415 = vst.msk [vmem:[#allocation7] sm:$0xff] %vm10888_vm5, %v12407_v52 }
 0x7a1   : > { %v12401_v46 = vld [vmem:[#allocation7 + $0x11] sm:$0xff]  ;;  %v12400_v25 = vld [vmem:[#allocation7 + $0x9] sm:$0xff] }
 0x7a2   : > { %12397 = vst.msk [vmem:[#allocation7 + $0x30] sm:$0xff] %vm10888_vm5, %v12378_v24  ;;  %v12409_v23 = vmax.f32 %v12374_v45, %v12401_v46  ;;  %v12408_v6 = vmax.f32 %v12373_v63, %v12400_v25 }
 0x7a4   : > { %12417 = vst.msk [vmem:[#allocation7 + $0x10] sm:$0xff] %vm10888_vm5, %v12409_v23  ;;  %12416 = vst.msk [vmem:[#allocation7 + $0x8] sm:$0xff] %vm10888_vm5, %v12408_v6 }
 0x7a5   : > { %v12403_v34 = vld [vmem:[#allocation7 + $0x21] sm:$0xff]  ;;  %v12402_v47 = vld [vmem:[#allocation7 + $0x19] sm:$0xff] }
 0x7a6   : > { %v12411_v42 = vmax.f32 %v12376_v43, %v12403_v34  ;;  %v12410_v41 = vmax.f32 %v12375_v61, %v12402_v47 }
 0x7a7   : > { %v12406_v17 = vld [vmem:[#allocation7 + $0x39] sm:$0xff] }
 0x7a8   : > { %v12414_v15 = vmax.f32 %v12379_v59, %v12406_v17  ;;  %12419 = vst.msk [vmem:[#allocation7 + $0x20] sm:$0xff] %vm10888_vm5, %v12411_v42  ;;  %12418 = vst.msk [vmem:[#allocation7 + $0x18] sm:$0xff] %vm10888_vm5, %v12410_v41 }
 0x7a9   : > { %v12405_v12 = vld [vmem:[#allocation7 + $0x31] sm:$0xff]  ;;  %v12404_v27 = vld [vmem:[#allocation7 + $0x29] sm:$0xff] }
 0x7aa   : > { %v12438_v20 = vmax.f32 %v12414_v15, %v12430_v49  ;;  %v12413_v7 = vmax.f32 %v12378_v24, %v12405_v12  ;;  %12422 = vst.msk [vmem:[#allocation7 + $0x38] sm:$0xff] %vm10888_vm5, %v12414_v15  ;;  %v12412_v1 = vmax.f32 %v12377_v26, %v12404_v27 }
 0x7ab   : > { %v12424_v31 = vld [vmem:[#allocation7 + $0x10] sm:$0xff]  ;;  %v12423_v63 = vld [vmem:[#allocation7 + $0x8] sm:$0xff] }
 0x7ac   : > { %15479 = vmatprep.subr.mxu0 %v12438_v20  ;;  %12421 = vst.msk [vmem:[#allocation7 + $0x30] sm:$0xff] %vm10888_vm5, %v12413_v7  ;;  %12420 = vst.msk [vmem:[#allocation7 + $0x28] sm:$0xff] %vm10888_vm5, %v12412_v1  ;;  %v12432_v48 = vmax.f32 %v12408_v6, %v12424_v31  ;;  %v12431_v38 = vmax.f32 %v12407_v52, %v12423_v63 }
 0x7ad   : > { %15480 = vmatpush3.msra.mxu0 %v12438_v20 }
 0x7af   : > { %v12426_v29 = vld [vmem:[#allocation7 + $0x20] sm:$0xff]  ;;  %v12425_v28 = vld [vmem:[#allocation7 + $0x18] sm:$0xff] }
 0x7b0   : > { %v12434_v22 = vmax.f32 %v12410_v41, %v12426_v29  ;;  %v12433_v56 = vmax.f32 %v12409_v23, %v12425_v28 }
 0x7b1   : > { %v12429_v44 = vld [vmem:[#allocation7 + $0x38] sm:$0xff] }
 0x7b2   : > { %v12437_v13 = vmax.f32 %v12413_v7, %v12429_v44 }
 0x7b3   : > { %v12428_v33 = vld [vmem:[#allocation7 + $0x30] sm:$0xff]  ;;  %v12427_v3 = vld [vmem:[#allocation7 + $0x28] sm:$0xff] }
 0x7b4   : > { %15481 = vmatprep.subr.mxu0 %v12437_v13  ;;  %v12436_v30 = vmax.f32 %v12412_v1, %v12428_v33  ;;  %v12435_v35 = vmax.f32 %v12411_v42, %v12427_v3 }
 0x7b5   : > { %15482 = vmatpush3.msra.mxu0 %v12437_v13 }
 0x7b6   : > { %15483 = vmatprep.subr.mxu0 %v12436_v30 }
 0x7b7   : > { %15484 = vmatpush3.msra.mxu0 %v12436_v30 }
 0x7b8   : > { %15485 = vmatprep.subr.mxu0 %v12435_v35 }
 0x7b9   : > { %15486 = vmatpush3.msra.mxu0 %v12435_v35 }
 0x7ba   : > { %15487 = vmatprep.subr.mxu0 %v12434_v22 }
 0x7bb   : > { %15488 = vmatpush3.msra.mxu0 %v12434_v22 }
 0x7bc   : > { %15489 = vmatprep.subr.mxu0 %v12433_v56 }
 0x7bd   : > { %15490 = vmatpush3.msra.mxu0 %v12433_v56 }
 0x7be   : > { %15491 = vmatprep.subr.mxu0 %v12432_v48 }
 0x7bf   : > { %15492 = vmatpush3.msra.mxu0 %v12432_v48 }
 0x7c0   : > { %15493 = vmatprep.subr.mxu0 %v12431_v38 }
 0x7c1   : > { %15494 = vmatpush3.msra.mxu0 %v12431_v38 }
 0x7c2   : > { %15496 = vmatmul.mubr.msk.f32.vlgmr.msra.gmra.mxu0 %vm12439_vm7, %v12381_v16 }
 0x882   : > { %v15497_v8 = vpop.f32.mrf.mxu0 }
 0x883   : > { %15499 = vmatpush3.msra.mxu1 %v15497_v8 }
 0x884   : > { %v12512_v14 = vpop.f32.mrf.mxu0  ;;  %15500 = vmatprep.subr.mxu1 %v22459_v50 }
 0x885   : > { %15501 = vmatpush3.msra.mxu1 %v12512_v14 }
 0x886   : > { %15503 = vmatmul.mubr.msk.f32.vlgmr.msra.gmra.mxu1 %vm10888_vm5, %v12521_v60 }
 0x887   : > { %15505 = vmatprep.mubr.msk.f32.mxu1 %vm15597_vm8, %v22459_v50 }
 0x88a   : > { %15506 = vmatmul.mubr.msk.f32.gmra.mxu1 %vm10888_vm5, %v12522_v9 }
 0x88b   : > { %15508 = vmatprep.mubr.msk.f32.mxu1 %vm15597_vm8, %v22459_v50 }
 0x88e   : > { %15509 = vmatmul.mubr.msk.f32.gmra.mxu1 %vm10888_vm5, %v12523_v21 }
 0x88f   : > { %15511 = vmatprep.mubr.msk.f32.mxu1 %vm15597_vm8, %v22459_v50 }
 0x892   : > { %15512 = vmatmul.mubr.msk.f32.gmra.mxu1 %vm10888_vm5, %v12524_v11 }
 0x893   : > { %15514 = vmatprep.mubr.msk.f32.mxu1 %vm15597_vm8, %v22459_v50 }
 0x896   : > { %15515 = vmatmul.mubr.msk.f32.gmra.mxu1 %vm10888_vm5, %v12525_v62 }
 0x897   : > { %15517 = vmatprep.mubr.msk.f32.mxu1 %vm15597_vm8, %v22459_v50 }
 0x89a   : > { %15518 = vmatmul.mubr.msk.f32.gmra.mxu1 %vm10888_vm5, %v12526_v4 }
 0x89b   : > { %15520 = vmatprep.mubr.msk.f32.mxu1 %vm15597_vm8, %v22459_v50 }
 0x89e   : > { %15521 = vmatmul.mubr.msk.f32.gmra.mxu1 %vm10888_vm5, %v12527_v32 }
 0x946   : > { %v12615_v61 = vpop.f32.mrf.mxu1 }
 0x947   : > { %12649 = vst.msk [vmem:[%s629_s21] sm:$0xff] %vm10888_vm5, %v12615_v61 }
 0x948   : > { %v15504_v0 = vpop.f32.mrf.mxu1 }
 0x94a   : > { %v12620_v18 = vpop.f32.mrf.mxu1 }
 0x94b   : > { %12650 = vst.msk [vmem:[%s629_s21 + $0x8] sm:$0xff] %vm10888_vm5, %v12620_v18 }
 0x94c   : > { %v15507_v2 = vpop.f32.mrf.mxu1 }
 0x94e   : > { %v12625_v36 = vpop.f32.mrf.mxu1 }
 0x94f   : > { %12651 = vst.msk [vmem:[%s629_s21 + $0x10] sm:$0xff] %vm10888_vm5, %v12625_v36 }
 0x950   : > { %v15510_v19 = vpop.f32.mrf.mxu1 }
 0x952   : > { %v12630_v45 = vpop.f32.mrf.mxu1 }
 0x953   : > { %12652 = vst.msk [vmem:[%s629_s21 + $0x18] sm:$0xff] %vm10888_vm5, %v12630_v45 }
 0x954   : > { %v15513_v58 = vpop.f32.mrf.mxu1 }
 0x956   : > { %v12635_v40 = vpop.f32.mrf.mxu1 }
 0x957   : > { %12653 = vst.msk [vmem:[%s629_s21 + $0x20] sm:$0xff] %vm10888_vm5, %v12635_v40 }
 0x958   : > { %v15516_v51 = vpop.f32.mrf.mxu1 }
 0x95a   : > { %v12640_v57 = vpop.f32.mrf.mxu1 }
 0x95b   : > { %12654 = vst.msk [vmem:[%s629_s21 + $0x28] sm:$0xff] %vm10888_vm5, %v12640_v57 }
 0x95c   : > { %v15519_v26 = vpop.f32.mrf.mxu1 }
 0x95e   : > { %v12645_v39 = vpop.f32.mrf.mxu1 }
 0x95f   : > { %12656 = vst.msk [vmem:[%s629_s21 + $0x30] sm:$0x1] %vm12655_vm9, %v12645_v39 }
 0x960   : > { %v15522_v55 = vpop.f32.mrf.mxu1 }
 0x961 PF: > { %s30_s1 = sadd.s32 1, %s15593_s1  }
 0x962   : > { %p27_p4 = scmp.ge.s32.totalorder %s30_s1, 4  }
 0x964   :  { %29 = sbr.rel (!%p27_p4) target bundleno = 6 (0x6), region = 130 }

</bundles_post_ra>
